<compile_context>
chip_gen: v6e
topology: v6e:2x2x1
jax: 0.10.0
libtpu: 0.0.40
codegen_flags: <defaults>
</compile_context>

<pallas_src>
import functools

import jax
import jax.numpy as jnp
from jax.experimental import pallas as pl
from jax.experimental.pallas import tpu as pltpu

INPUT_SIZE = 3
HIDDEN = 128
NUM_LAYERS = 3
OUTPUT = 1
MM_DTYPE = jnp.bfloat16     # MXU-native weight/input dtype; accumulation stays f32


def nalo_lstm_kernel(len_ref, xp_ref, whh0_ref, wih1_ref, whh1_ref,
                     wih2_ref, whh2_ref, b1_ref, b2_ref,
                     out_ref, h_scr, c_scr, *, unroll=8):
    """One grid step = TT timesteps of the 3-layer LSTM recurrence for one batch tile.

    len_ref        : (Bt, 1)      int32  sequence lengths (same block every chunk)
    xp_ref         : (TT, Bt, 4H) f32    precomputed x @ wih0 + b0 for this chunk
    whh0/wih1/...  : (H, 4H)      bf16   per-layer weights (read at the dot sites)
    b1, b2         : (1, 4H)      f32
    out_ref        : (TT, Bt, H)  f32    layer-2 hidden states, zeroed past length
    h_scr, c_scr   : (3, Bt, H)   f32    hidden/cell state carried across chunks
    """
    H = HIDDEN
    TT, Bt, _ = xp_ref.shape
    chunk = pl.program_id(1)

    @pl.when(chunk == 0)
    def _():
        h_scr[...] = jnp.zeros_like(h_scr)
        c_scr[...] = jnp.zeros_like(c_scr)

    lens = len_ref[...]                                  # (Bt, 1), one load per chunk
    b1 = jnp.broadcast_to(b1_ref[...], (Bt, 4 * H))      # once per chunk, not per step
    b2 = jnp.broadcast_to(b2_ref[...], (Bt, 4 * H))
    t0 = chunk * TT

    def cell(gates, c):                 # PyTorch gate order [i, f, g, o]
        i_g = jax.nn.sigmoid(gates[:, 0 * H:1 * H])
        f_g = jax.nn.sigmoid(gates[:, 1 * H:2 * H])
        g_g = jnp.tanh(gates[:, 2 * H:3 * H])
        o_g = jax.nn.sigmoid(gates[:, 3 * H:4 * H])
        c_new = f_g * c + i_g * g_g
        return o_g * jnp.tanh(c_new), c_new

    def step(s, carry):
        h0, c0, h1, c1, h2, c2 = carry
        # One mask broadcast per step, reused by every select below.
        mask = jnp.broadcast_to(lens > (t0 + s), (Bt, H))

        # Recurrent halves depend only on step s-1: issue them first so the
        # scheduler can overlap these MXU ops with the gate/EUP chains below.
        r0 = jnp.dot(h0.astype(MM_DTYPE), whh0_ref[...],
                     preferred_element_type=jnp.float32)
        r1 = jnp.dot(h1.astype(MM_DTYPE), whh1_ref[...],
                     preferred_element_type=jnp.float32)
        r2 = jnp.dot(h2.astype(MM_DTYPE), whh2_ref[...],
                     preferred_element_type=jnp.float32)

        # layer 0: input projection precomputed outside the kernel
        g0 = xp_ref[s] + r0
        h0n, c0n = cell(g0, c0)
        h0 = jnp.where(mask, h0n, h0)
        c0 = jnp.where(mask, c0n, c0)
        x1 = jnp.where(mask, h0n, 0.0)                   # packed-sequence semantics

        # layer 1: de-fused K=128 dots (no per-step concat)
        g1 = jnp.dot(x1.astype(MM_DTYPE), wih1_ref[...],
                     preferred_element_type=jnp.float32) + r1 + b1
        h1n, c1n = cell(g1, c1)
        h1 = jnp.where(mask, h1n, h1)
        c1 = jnp.where(mask, c1n, c1)
        x2 = jnp.where(mask, h1n, 0.0)

        # layer 2
        g2 = jnp.dot(x2.astype(MM_DTYPE), wih2_ref[...],
                     preferred_element_type=jnp.float32) + r2 + b2
        h2n, c2n = cell(g2, c2)
        h2 = jnp.where(mask, h2n, h2)
        c2 = jnp.where(mask, c2n, c2)

        # lane-dense (Bt, 128) store; zero past each sequence's length
        out_ref[s] = jnp.where(mask, h2n, 0.0)
        return h0, c0, h1, c1, h2, c2

    carry = (h_scr[0], c_scr[0], h_scr[1], c_scr[1], h_scr[2], c_scr[2])
    h0, c0, h1, c1, h2, c2 = jax.lax.fori_loop(0, TT, step, carry, unroll=unroll)
    h_scr[0], c_scr[0] = h0, c0
    h_scr[1], c_scr[1] = h1, c1
    h_scr[2], c_scr[2] = h2, c2


def nalo_lstm_forward(x, lengths, params, max_len=None, time_chunk=64):
    """x: (B, T, input_size) batch-first; lengths: (B,) int32 sorted descending.

    max_len: optional STATIC python int (= max(lengths)) if the caller wants the
    exact pad_packed_sequence output length; defaults to T so no host sync is
    needed and the wrapper stays fully jittable.  Returns (B, T_out, OUTPUT).
    """
    B, T, _ = x.shape
    H = HIDDEN
    T_out = T if max_len is None else int(min(max_len, T))
    if T_out <= 0:                                    # degenerate: empty output
        return jnp.zeros((B, 0, OUTPUT), jnp.float32)

    B_pad = -(-B // 8) * 8                            # fill f32 sublanes
    TT = min(time_chunk, T_out)
    T_pad = -(-T_out // TT) * TT
    n_chunks = T_pad // TT

    # Batch-parallel grid axis (feeds the 2nd TensorCore on v7x) once the
    # padded batch is big enough; a single tile otherwise.
    nb = 2 if (B_pad >= 16 and (B_pad // 2) % 8 == 0) else 1
    Bt = B_pad // nb

    x_p = jnp.pad(x[:, :T_out, :].astype(jnp.float32),
                  ((0, B_pad - B), (0, T_pad - T_out), (0, 0)))
    lens_p = jnp.pad(lengths.astype(jnp.int32), (0, B_pad - B)).reshape(B_pad, 1)

    # layer-0 input projection for all timesteps in one batched matmul
    xp = jnp.einsum('bti,ig->btg', x_p, params['wih0']) + params['b0']
    xp = jnp.transpose(xp, (1, 0, 2))                 # (T_pad, B_pad, 4H), time-major

    whh0 = params['whh0'].astype(MM_DTYPE)
    wih1 = params['wih1'].astype(MM_DTYPE)
    whh1 = params['whh1'].astype(MM_DTYPE)
    wih2 = params['wih2'].astype(MM_DTYPE)
    whh2 = params['whh2'].astype(MM_DTYPE)
    b1, b2 = params['b1'], params['b2']

    kernel = functools.partial(nalo_lstm_kernel, unroll=min(8, TT))

    h_out = pl.pallas_call(
        kernel,
        out_shape=jax.ShapeDtypeStruct((T_pad, B_pad, H), jnp.float32),
        grid=(nb, n_chunks),
        in_specs=[
            pl.BlockSpec((Bt, 1), lambda b, c: (b, 0)),
            pl.BlockSpec((TT, Bt, 4 * H), lambda b, c: (c, b, 0)),
            pl.BlockSpec((H, 4 * H), lambda b, c: (0, 0)),      # whh0
            pl.BlockSpec((H, 4 * H), lambda b, c: (0, 0)),      # wih1
            pl.BlockSpec((H, 4 * H), lambda b, c: (0, 0)),      # whh1
            pl.BlockSpec((H, 4 * H), lambda b, c: (0, 0)),      # wih2
            pl.BlockSpec((H, 4 * H), lambda b, c: (0, 0)),      # whh2
            pl.BlockSpec((1, 4 * H), lambda b, c: (0, 0)),      # b1
            pl.BlockSpec((1, 4 * H), lambda b, c: (0, 0)),      # b2
        ],
        out_specs=pl.BlockSpec((TT, Bt, H), lambda b, c: (c, b, 0)),
        scratch_shapes=[pltpu.VMEM((NUM_LAYERS, Bt, H), jnp.float32),
                        pltpu.VMEM((NUM_LAYERS, Bt, H), jnp.float32)],
        compiler_params=pltpu.CompilerParams(
            dimension_semantics=("parallel", "arbitrary")),     # serial time recurrence
    )(lens_p, xp, whh0, wih1, whh1, wih2, whh2, b1, b2)

    # final Linear over the zero-padded LSTM output: one well-shaped matmul,
    # fc(0) = bias on padded positions exactly as PyTorch produces.
    h_out = h_out[:T_out, :B]                         # (T_out, B, H)
    y = jnp.einsum('tbh,ho->tbo', h_out, params['fcw']) + params['fcb']
    return jnp.transpose(y, (1, 0, 2))                # (B, T_out, OUTPUT)


def nalo_lstm_reference(x, lengths, params):
    """Pure-JAX reference with the same bf16-weight / f32-accumulate de-fused math."""
    B, T, _ = x.shape
    H = HIDDEN
    whh0 = params['whh0'].astype(MM_DTYPE)
    wih1 = params['wih1'].astype(MM_DTYPE)
    whh1 = params['whh1'].astype(MM_DTYPE)
    wih2 = params['wih2'].astype(MM_DTYPE)
    whh2 = params['whh2'].astype(MM_DTYPE)
    b1, b2 = params['b1'], params['b2']
    xp = jnp.einsum('bti,ig->btg', x.astype(jnp.float32), params['wih0']) + params['b0']
    xp = jnp.transpose(xp, (1, 0, 2))
    lens = lengths.astype(jnp.int32).reshape(B, 1)

    def cell(g, c):
        i_g = jax.nn.sigmoid(g[:, 0 * H:1 * H])
        f_g = jax.nn.sigmoid(g[:, 1 * H:2 * H])
        g_g = jnp.tanh(g[:, 2 * H:3 * H])
        o_g = jax.nn.sigmoid(g[:, 3 * H:4 * H])
        c_new = f_g * c + i_g * g_g
        return o_g * jnp.tanh(c_new), c_new

    def step(carry, scan_in):
        h0, c0, h1, c1, h2, c2 = carry
        xp_t, t = scan_in
        mask = lens > t
        g0 = xp_t + jnp.dot(h0.astype(MM_DTYPE), whh0, preferred_element_type=jnp.float32)
        h0n, c0n = cell(g0, c0)
        h0 = jnp.where(mask, h0n, h0); c0 = jnp.where(mask, c0n, c0)
        x1 = jnp.where(mask, h0n, 0.0)
        g1 = (jnp.dot(x1.astype(MM_DTYPE), wih1, preferred_element_type=jnp.float32)
              + jnp.dot(h1.astype(MM_DTYPE), whh1, preferred_element_type=jnp.float32) + b1)
        h1n, c1n = cell(g1, c1)
        h1 = jnp.where(mask, h1n, h1); c1 = jnp.where(mask, c1n, c1)
        x2 = jnp.where(mask, h1n, 0.0)
        g2 = (jnp.dot(x2.astype(MM_DTYPE), wih2, preferred_element_type=jnp.float32)
              + jnp.dot(h2.astype(MM_DTYPE), whh2, preferred_element_type=jnp.float32) + b2)
        h2n, c2n = cell(g2, c2)
        h2 = jnp.where(mask, h2n, h2); c2 = jnp.where(mask, c2n, c2)
        return (h0, c0, h1, c1, h2, c2), jnp.where(mask, h2n, 0.0)

    init = tuple(jnp.zeros((B, H), jnp.float32) for _ in range(6))
    _, hs = jax.lax.scan(step, init, (xp, jnp.arange(T, dtype=jnp.int32)))
    y = jnp.einsum('tbh,ho->tbo', hs, params['fcw']) + params['fcb']
    return jnp.transpose(y, (1, 0, 2))


def init_params(key):
    """Deterministic init mirroring PyTorch LSTM/Linear shapes (uniform +/-1/sqrt(H))."""
    k = 1.0 / (HIDDEN ** 0.5)
    keys = jax.random.split(key, NUM_LAYERS * 4 + 2)
    params = {}
    idx = 0
    for l in range(NUM_LAYERS):
        in_dim = INPUT_SIZE if l == 0 else HIDDEN
        w_ih = jax.random.uniform(keys[idx], (4 * HIDDEN, in_dim), jnp.float32, -k, k); idx += 1
        w_hh = jax.random.uniform(keys[idx], (4 * HIDDEN, HIDDEN), jnp.float32, -k, k); idx += 1
        b_ih = jax.random.uniform(keys[idx], (4 * HIDDEN,), jnp.float32, -k, k); idx += 1
        b_hh = jax.random.uniform(keys[idx], (4 * HIDDEN,), jnp.float32, -k, k); idx += 1
        params[f"wih{l}"] = jnp.transpose(w_ih)            # (in_dim, 4H)
        params[f"whh{l}"] = jnp.transpose(w_hh)            # (H, 4H)
        params[f"b{l}"] = (b_ih + b_hh).reshape(1, 4 * HIDDEN)
    fc_w = jax.random.uniform(keys[idx], (OUTPUT, HIDDEN), jnp.float32, -k, k); idx += 1
    fc_b = jax.random.uniform(keys[idx], (OUTPUT,), jnp.float32, -k, k)
    params["fcw"] = jnp.transpose(fc_w)                    # (H, 1)
    params["fcb"] = fc_b.reshape(1, OUTPUT)
    return params


if __name__ == "__main__":
    key = jax.random.PRNGKey(0)
    kx, kp = jax.random.split(key)

    B, T = 2, 8
    x = jax.random.normal(kx, (B, T, INPUT_SIZE), jnp.float32)
    lengths = jnp.array([8, 5], jnp.int32)     # sorted descending (enforce_sorted=True)
    params = init_params(kp)

    fwd = jax.jit(nalo_lstm_forward)           # no host round-trip; fully jittable
    y = fwd(x, lengths, params)
    jax.block_until_ready(y)
    assert y.shape == (B, T, OUTPUT)

    y_ref = nalo_lstm_reference(x, lengths, params)
    max_err = float(jnp.max(jnp.abs(y - y_ref)))
    assert jnp.allclose(y, y_ref, atol=2e-3, rtol=2e-3), max_err
    print("KERNEL_OK")
</pallas_src>

<mosaic_0001>
module attributes {stable_mosaic.version = 11 : i64} {
  func.func @nalo_lstm_kernel(%arg0: i32, %arg1: i32, %arg2: memref<8x1xi32, #tpu.memory_space<vmem>>, %arg3: memref<8x8x512xf32, #tpu.memory_space<vmem>>, %arg4: memref<128x512xbf16, #tpu.memory_space<vmem>>, %arg5: memref<128x512xbf16, #tpu.memory_space<vmem>>, %arg6: memref<128x512xbf16, #tpu.memory_space<vmem>>, %arg7: memref<128x512xbf16, #tpu.memory_space<vmem>>, %arg8: memref<128x512xbf16, #tpu.memory_space<vmem>>, %arg9: memref<1x512xf32, #tpu.memory_space<vmem>>, %arg10: memref<1x512xf32, #tpu.memory_space<vmem>>, %arg11: memref<8x8x128xf32, #tpu.memory_space<vmem>>, %arg12: memref<3x8x128xf32, #tpu.memory_space<vmem>>, %arg13: memref<3x8x128xf32, #tpu.memory_space<vmem>>) attributes {dimension_semantics = [#tpu.dimension_semantics<parallel>, #tpu.dimension_semantics<arbitrary>], iteration_bounds = array<i64: 1, 1>, scalar_prefetch = 0 : i64, scratch_operands = 2 : i64, tpu.core_type = #tpu.core_type<tc>, window_params = [{transform_indices = @transform_0, window_bounds = array<i64: 8, 1>}, {transform_indices = @transform_1, window_bounds = array<i64: 8, 8, 512>}, {pipeline_mode = #tpu.pipeline_mode<synchronous>, transform_indices = @transform_2, window_bounds = array<i64: 128, 512>}, {pipeline_mode = #tpu.pipeline_mode<synchronous>, transform_indices = @transform_3, window_bounds = array<i64: 128, 512>}, {pipeline_mode = #tpu.pipeline_mode<synchronous>, transform_indices = @transform_4, window_bounds = array<i64: 128, 512>}, {pipeline_mode = #tpu.pipeline_mode<synchronous>, transform_indices = @transform_5, window_bounds = array<i64: 128, 512>}, {pipeline_mode = #tpu.pipeline_mode<synchronous>, transform_indices = @transform_6, window_bounds = array<i64: 128, 512>}, {pipeline_mode = #tpu.pipeline_mode<synchronous>, transform_indices = @transform_7, window_bounds = array<i64: 1, 512>}, {pipeline_mode = #tpu.pipeline_mode<synchronous>, transform_indices = @transform_8, window_bounds = array<i64: 1, 512>}, {transform_indices = @transform_9, window_bounds = array<i64: 8, 8, 128>}]} {
    %c0_i32 = arith.constant 0 : i32
    %0 = arith.cmpi eq, %arg1, %c0_i32 : i32
    %1 = arith.extui %0 : i1 to i32
    %c0_i32_0 = arith.constant 0 : i32
    %2 = arith.cmpi ne, %1, %c0_i32_0 : i32
    scf.if %2 {
      %cst_289 = arith.constant 0.000000e+00 : f32
      %993 = vector.broadcast %cst_289 : f32 to vector<3x8x128xf32>
      %c0_290 = arith.constant 0 : index
      %c0_291 = arith.constant 0 : index
      %c0_292 = arith.constant 0 : index
      %994 = vector.load %arg12[%c0_290, %c0_291, %c0_292] : memref<3x8x128xf32, #tpu.memory_space<vmem>>, vector<3x8x128xf32>
      tpu.vector_store %arg12[%c0_290, %c0_291, %c0_292], %993 {strides = array<i32>} : memref<3x8x128xf32, #tpu.memory_space<vmem>>, vector<3x8x128xf32>,
      %cst_293 = arith.constant 0.000000e+00 : f32
      %995 = vector.broadcast %cst_293 : f32 to vector<3x8x128xf32>
      %c0_294 = arith.constant 0 : index
      %c0_295 = arith.constant 0 : index
      %c0_296 = arith.constant 0 : index
      %996 = vector.load %arg13[%c0_294, %c0_295, %c0_296] : memref<3x8x128xf32, #tpu.memory_space<vmem>>, vector<3x8x128xf32>
      tpu.vector_store %arg13[%c0_294, %c0_295, %c0_296], %995 {strides = array<i32>} : memref<3x8x128xf32, #tpu.memory_space<vmem>>, vector<3x8x128xf32>,
    } else {
    }
    %c0 = arith.constant 0 : index
    %c0_1 = arith.constant 0 : index
    %3 = vector.load %arg2[%c0, %c0_1] : memref<8x1xi32, #tpu.memory_space<vmem>>, vector<8x1xi32>
    %c0_2 = arith.constant 0 : index
    %c0_3 = arith.constant 0 : index
    %4 = vector.load %arg9[%c0_2, %c0_3] : memref<1x512xf32, #tpu.memory_space<vmem>>, vector<1x512xf32>
    %5 = vector.shape_cast %4 : vector<1x512xf32> to vector<1x512xf32>
    %6 = vector.broadcast %5 : vector<1x512xf32> to vector<8x512xf32>
    %c0_4 = arith.constant 0 : index
    %c0_5 = arith.constant 0 : index
    %7 = vector.load %arg10[%c0_4, %c0_5] : memref<1x512xf32, #tpu.memory_space<vmem>>, vector<1x512xf32>
    %8 = vector.shape_cast %7 : vector<1x512xf32> to vector<1x512xf32>
    %9 = vector.broadcast %8 : vector<1x512xf32> to vector<8x512xf32>
    %c8_i32 = arith.constant 8 : i32
    %10 = arith.muli %arg1, %c8_i32 : i32
    %c0_6 = arith.constant 0 : index
    %c0_7 = arith.constant 0 : index
    %c0_8 = arith.constant 0 : index
    %11 = vector.load %arg12[%c0_6, %c0_7, %c0_8] : memref<3x8x128xf32, #tpu.memory_space<vmem>>, vector<1x8x128xf32>
    %12 = vector.shape_cast %11 : vector<1x8x128xf32> to vector<8x128xf32>
    %c0_9 = arith.constant 0 : index
    %c0_10 = arith.constant 0 : index
    %c0_11 = arith.constant 0 : index
    %13 = vector.load %arg13[%c0_9, %c0_10, %c0_11] : memref<3x8x128xf32, #tpu.memory_space<vmem>>, vector<1x8x128xf32>
    %14 = vector.shape_cast %13 : vector<1x8x128xf32> to vector<8x128xf32>
    %c1 = arith.constant 1 : index
    %c0_12 = arith.constant 0 : index
    %c0_13 = arith.constant 0 : index
    %15 = vector.load %arg12[%c1, %c0_12, %c0_13] : memref<3x8x128xf32, #tpu.memory_space<vmem>>, vector<1x8x128xf32>
    %16 = vector.shape_cast %15 : vector<1x8x128xf32> to vector<8x128xf32>
    %c1_14 = arith.constant 1 : index
    %c0_15 = arith.constant 0 : index
    %c0_16 = arith.constant 0 : index
    %17 = vector.load %arg13[%c1_14, %c0_15, %c0_16] : memref<3x8x128xf32, #tpu.memory_space<vmem>>, vector<1x8x128xf32>
    %18 = vector.shape_cast %17 : vector<1x8x128xf32> to vector<8x128xf32>
    %c2 = arith.constant 2 : index
    %c0_17 = arith.constant 0 : index
    %c0_18 = arith.constant 0 : index
    %19 = vector.load %arg12[%c2, %c0_17, %c0_18] : memref<3x8x128xf32, #tpu.memory_space<vmem>>, vector<1x8x128xf32>
    %20 = vector.shape_cast %19 : vector<1x8x128xf32> to vector<8x128xf32>
    %c2_19 = arith.constant 2 : index
    %c0_20 = arith.constant 0 : index
    %c0_21 = arith.constant 0 : index
    %21 = vector.load %arg13[%c2_19, %c0_20, %c0_21] : memref<3x8x128xf32, #tpu.memory_space<vmem>>, vector<1x8x128xf32>
    %22 = vector.shape_cast %21 : vector<1x8x128xf32> to vector<8x128xf32>
    %c0_i32_22 = arith.constant 0 : i32
    %23 = arith.addi %10, %c0_i32_22 : i32
    %24 = vector.broadcast %23 : i32 to vector<8x1xi32>
    %25 = arith.cmpi sgt, %3, %24 : vector<8x1xi32>
    %26 = vector.shape_cast %25 : vector<8x1xi1> to vector<8x1xi1>
    %27 = vector.broadcast %26 : vector<8x1xi1> to vector<8x128xi1>
    %28 = arith.truncf %12 : vector<8x128xf32> to vector<8x128xbf16>
    %c0_23 = arith.constant 0 : index
    %c0_24 = arith.constant 0 : index
    %29 = vector.load %arg4[%c0_23, %c0_24] : memref<128x512xbf16, #tpu.memory_space<vmem>>, vector<128x512xbf16>
    %cst = arith.constant dense<0.000000e+00> : vector<8x512xf32>
    %30 = tpu.matmul %28, %29, %cst {dimension_numbers = #tpu.dot_dimension_numbers<[1], [0], [0], [1], [0, 0, 1, 1], [], []>} : vector<8x128xbf16>, vector<128x512xbf16>, vector<8x512xf32> -> vector<8x512xf32>
    %31 = arith.truncf %16 : vector<8x128xf32> to vector<8x128xbf16>
    %c0_25 = arith.constant 0 : index
    %c0_26 = arith.constant 0 : index
    %32 = vector.load %arg6[%c0_25, %c0_26] : memref<128x512xbf16, #tpu.memory_space<vmem>>, vector<128x512xbf16>
    %cst_27 = arith.constant dense<0.000000e+00> : vector<8x512xf32>
    %33 = tpu.matmul %31, %32, %cst_27 {dimension_numbers = #tpu.dot_dimension_numbers<[1], [0], [0], [1], [0, 0, 1, 1], [], []>} : vector<8x128xbf16>, vector<128x512xbf16>, vector<8x512xf32> -> vector<8x512xf32>
    %34 = arith.truncf %20 : vector<8x128xf32> to vector<8x128xbf16>
    %c0_28 = arith.constant 0 : index
    %c0_29 = arith.constant 0 : index
    %35 = vector.load %arg8[%c0_28, %c0_29] : memref<128x512xbf16, #tpu.memory_space<vmem>>, vector<128x512xbf16>
    %cst_30 = arith.constant dense<0.000000e+00> : vector<8x512xf32>
    %36 = tpu.matmul %34, %35, %cst_30 {dimension_numbers = #tpu.dot_dimension_numbers<[1], [0], [0], [1], [0, 0, 1, 1], [], []>} : vector<8x128xbf16>, vector<128x512xbf16>, vector<8x512xf32> -> vector<8x512xf32>
    %37 = arith.index_cast %c0_i32_22 : i32 to index
    %c0_31 = arith.constant 0 : index
    %c0_32 = arith.constant 0 : index
    %38 = vector.load %arg3[%37, %c0_31, %c0_32] : memref<8x8x512xf32, #tpu.memory_space<vmem>>, vector<1x8x512xf32>
    %39 = vector.shape_cast %38 : vector<1x8x512xf32> to vector<8x512xf32>
    %40 = arith.addf %39, %30 : vector<8x512xf32>
    %41 = vector.extract_strided_slice %40 {offsets = [0, 0], sizes = [8, 128], strides = [1, 1]} : vector<8x512xf32> to vector<8x128xf32>
    %42 = arith.negf %41 : vector<8x128xf32>
    %43 = math.exp %42 : vector<8x128xf32>
    %cst_33 = arith.constant 1.000000e+00 : f32
    %44 = vector.broadcast %cst_33 : f32 to vector<8x128xf32>
    %45 = arith.addf %44, %43 : vector<8x128xf32>
    %46 = arith.divf %44, %45 : vector<8x128xf32>
    %47 = vector.extract_strided_slice %40 {offsets = [0, 128], sizes = [8, 128], strides = [1, 1]} : vector<8x512xf32> to vector<8x128xf32>
    %48 = arith.negf %47 : vector<8x128xf32>
    %49 = math.exp %48 : vector<8x128xf32>
    %cst_34 = arith.constant 1.000000e+00 : f32
    %50 = vector.broadcast %cst_34 : f32 to vector<8x128xf32>
    %51 = arith.addf %50, %49 : vector<8x128xf32>
    %52 = arith.divf %50, %51 : vector<8x128xf32>
    %53 = vector.extract_strided_slice %40 {offsets = [0, 256], sizes = [8, 128], strides = [1, 1]} : vector<8x512xf32> to vector<8x128xf32>
    %54 = math.tanh %53 : vector<8x128xf32>
    %55 = vector.extract_strided_slice %40 {offsets = [0, 384], sizes = [8, 128], strides = [1, 1]} : vector<8x512xf32> to vector<8x128xf32>
    %56 = arith.negf %55 : vector<8x128xf32>
    %57 = math.exp %56 : vector<8x128xf32>
    %cst_35 = arith.constant 1.000000e+00 : f32
    %58 = vector.broadcast %cst_35 : f32 to vector<8x128xf32>
    %59 = arith.addf %58, %57 : vector<8x128xf32>
    %60 = arith.divf %58, %59 : vector<8x128xf32>
    %61 = arith.mulf %52, %14 : vector<8x128xf32>
    %62 = arith.mulf %46, %54 : vector<8x128xf32>
    %63 = arith.addf %61, %62 : vector<8x128xf32>
    %64 = math.tanh %63 : vector<8x128xf32>
    %65 = arith.mulf %60, %64 : vector<8x128xf32>
    %66 = arith.select %27, %65, %12 : vector<8x128xi1>, vector<8x128xf32>
    %67 = arith.select %27, %63, %14 : vector<8x128xi1>, vector<8x128xf32>
    %cst_36 = arith.constant 0.000000e+00 : f32
    %68 = vector.broadcast %cst_36 : f32 to vector<8x128xf32>
    %69 = arith.select %27, %65, %68 : vector<8x128xi1>, vector<8x128xf32>
    %70 = arith.truncf %69 : vector<8x128xf32> to vector<8x128xbf16>
    %c0_37 = arith.constant 0 : index
    %c0_38 = arith.constant 0 : index
    %71 = vector.load %arg5[%c0_37, %c0_38] : memref<128x512xbf16, #tpu.memory_space<vmem>>, vector<128x512xbf16>
    %cst_39 = arith.constant dense<0.000000e+00> : vector<8x512xf32>
    %72 = tpu.matmul %70, %71, %cst_39 {dimension_numbers = #tpu.dot_dimension_numbers<[1], [0], [0], [1], [0, 0, 1, 1], [], []>} : vector<8x128xbf16>, vector<128x512xbf16>, vector<8x512xf32> -> vector<8x512xf32>
    %73 = arith.addf %72, %33 : vector<8x512xf32>
    %74 = arith.addf %73, %6 : vector<8x512xf32>
    %75 = vector.extract_strided_slice %74 {offsets = [0, 0], sizes = [8, 128], strides = [1, 1]} : vector<8x512xf32> to vector<8x128xf32>
    %76 = arith.negf %75 : vector<8x128xf32>
    %77 = math.exp %76 : vector<8x128xf32>
    %cst_40 = arith.constant 1.000000e+00 : f32
    %78 = vector.broadcast %cst_40 : f32 to vector<8x128xf32>
    %79 = arith.addf %78, %77 : vector<8x128xf32>
    %80 = arith.divf %78, %79 : vector<8x128xf32>
    %81 = vector.extract_strided_slice %74 {offsets = [0, 128], sizes = [8, 128], strides = [1, 1]} : vector<8x512xf32> to vector<8x128xf32>
    %82 = arith.negf %81 : vector<8x128xf32>
    %83 = math.exp %82 : vector<8x128xf32>
    %cst_41 = arith.constant 1.000000e+00 : f32
    %84 = vector.broadcast %cst_41 : f32 to vector<8x128xf32>
    %85 = arith.addf %84, %83 : vector<8x128xf32>
    %86 = arith.divf %84, %85 : vector<8x128xf32>
    %87 = vector.extract_strided_slice %74 {offsets = [0, 256], sizes = [8, 128], strides = [1, 1]} : vector<8x512xf32> to vector<8x128xf32>
    %88 = math.tanh %87 : vector<8x128xf32>
    %89 = vector.extract_strided_slice %74 {offsets = [0, 384], sizes = [8, 128], strides = [1, 1]} : vector<8x512xf32> to vector<8x128xf32>
    %90 = arith.negf %89 : vector<8x128xf32>
    %91 = math.exp %90 : vector<8x128xf32>
    %cst_42 = arith.constant 1.000000e+00 : f32
    %92 = vector.broadcast %cst_42 : f32 to vector<8x128xf32>
    %93 = arith.addf %92, %91 : vector<8x128xf32>
    %94 = arith.divf %92, %93 : vector<8x128xf32>
    %95 = arith.mulf %86, %18 : vector<8x128xf32>
    %96 = arith.mulf %80, %88 : vector<8x128xf32>
    %97 = arith.addf %95, %96 : vector<8x128xf32>
    %98 = math.tanh %97 : vector<8x128xf32>
    %99 = arith.mulf %94, %98 : vector<8x128xf32>
    %100 = arith.select %27, %99, %16 : vector<8x128xi1>, vector<8x128xf32>
    %101 = arith.select %27, %97, %18 : vector<8x128xi1>, vector<8x128xf32>
    %cst_43 = arith.constant 0.000000e+00 : f32
    %102 = vector.broadcast %cst_43 : f32 to vector<8x128xf32>
    %103 = arith.select %27, %99, %102 : vector<8x128xi1>, vector<8x128xf32>
    %104 = arith.truncf %103 : vector<8x128xf32> to vector<8x128xbf16>
    %c0_44 = arith.constant 0 : index
    %c0_45 = arith.constant 0 : index
    %105 = vector.load %arg7[%c0_44, %c0_45] : memref<128x512xbf16, #tpu.memory_space<vmem>>, vector<128x512xbf16>
    %cst_46 = arith.constant dense<0.000000e+00> : vector<8x512xf32>
    %106 = tpu.matmul %104, %105, %cst_46 {dimension_numbers = #tpu.dot_dimension_numbers<[1], [0], [0], [1], [0, 0, 1, 1], [], []>} : vector<8x128xbf16>, vector<128x512xbf16>, vector<8x512xf32> -> vector<8x512xf32>
    %107 = arith.addf %106, %36 : vector<8x512xf32>
    %108 = arith.addf %107, %9 : vector<8x512xf32>
    %109 = vector.extract_strided_slice %108 {offsets = [0, 0], sizes = [8, 128], strides = [1, 1]} : vector<8x512xf32> to vector<8x128xf32>
    %110 = arith.negf %109 : vector<8x128xf32>
    %111 = math.exp %110 : vector<8x128xf32>
    %cst_47 = arith.constant 1.000000e+00 : f32
    %112 = vector.broadcast %cst_47 : f32 to vector<8x128xf32>
    %113 = arith.addf %112, %111 : vector<8x128xf32>
    %114 = arith.divf %112, %113 : vector<8x128xf32>
    %115 = vector.extract_strided_slice %108 {offsets = [0, 128], sizes = [8, 128], strides = [1, 1]} : vector<8x512xf32> to vector<8x128xf32>
    %116 = arith.negf %115 : vector<8x128xf32>
    %117 = math.exp %116 : vector<8x128xf32>
    %cst_48 = arith.constant 1.000000e+00 : f32
    %118 = vector.broadcast %cst_48 : f32 to vector<8x128xf32>
    %119 = arith.addf %118, %117 : vector<8x128xf32>
    %120 = arith.divf %118, %119 : vector<8x128xf32>
    %121 = vector.extract_strided_slice %108 {offsets = [0, 256], sizes = [8, 128], strides = [1, 1]} : vector<8x512xf32> to vector<8x128xf32>
    %122 = math.tanh %121 : vector<8x128xf32>
    %123 = vector.extract_strided_slice %108 {offsets = [0, 384], sizes = [8, 128], strides = [1, 1]} : vector<8x512xf32> to vector<8x128xf32>
    %124 = arith.negf %123 : vector<8x128xf32>
    %125 = math.exp %124 : vector<8x128xf32>
    %cst_49 = arith.constant 1.000000e+00 : f32
    %126 = vector.broadcast %cst_49 : f32 to vector<8x128xf32>
    %127 = arith.addf %126, %125 : vector<8x128xf32>
    %128 = arith.divf %126, %127 : vector<8x128xf32>
    %129 = arith.mulf %120, %22 : vector<8x128xf32>
    %130 = arith.mulf %114, %122 : vector<8x128xf32>
    %131 = arith.addf %129, %130 : vector<8x128xf32>
    %132 = math.tanh %131 : vector<8x128xf32>
    %133 = arith.mulf %128, %132 : vector<8x128xf32>
    %134 = arith.select %27, %133, %20 : vector<8x128xi1>, vector<8x128xf32>
    %135 = arith.select %27, %131, %22 : vector<8x128xi1>, vector<8x128xf32>
    %cst_50 = arith.constant 0.000000e+00 : f32
    %136 = vector.broadcast %cst_50 : f32 to vector<8x128xf32>
    %137 = arith.select %27, %133, %136 : vector<8x128xi1>, vector<8x128xf32>
    %138 = arith.index_cast %c0_i32_22 : i32 to index
    %c0_51 = arith.constant 0 : index
    %c0_52 = arith.constant 0 : index
    %139 = vector.load %arg11[%138, %c0_51, %c0_52] : memref<8x8x128xf32, #tpu.memory_space<vmem>>, vector<1x8x128xf32>
    %140 = vector.shape_cast %139 : vector<1x8x128xf32> to vector<8x128xf32>
    %141 = vector.shape_cast %137 : vector<8x128xf32> to vector<1x8x128xf32>
    tpu.vector_store %arg11[%138, %c0_51, %c0_52], %141 {strides = array<i32>} : memref<8x8x128xf32, #tpu.memory_space<vmem>>, vector<1x8x128xf32>,
    %c1_i32 = arith.constant 1 : i32
    %142 = arith.addi %10, %c1_i32 : i32
    %143 = vector.broadcast %142 : i32 to vector<8x1xi32>
    %144 = arith.cmpi sgt, %3, %143 : vector<8x1xi32>
    %145 = vector.shape_cast %144 : vector<8x1xi1> to vector<8x1xi1>
    %146 = vector.broadcast %145 : vector<8x1xi1> to vector<8x128xi1>
    %147 = arith.truncf %66 : vector<8x128xf32> to vector<8x128xbf16>
    %c0_53 = arith.constant 0 : index
    %c0_54 = arith.constant 0 : index
    %148 = vector.load %arg4[%c0_53, %c0_54] : memref<128x512xbf16, #tpu.memory_space<vmem>>, vector<128x512xbf16>
    %cst_55 = arith.constant dense<0.000000e+00> : vector<8x512xf32>
    %149 = tpu.matmul %147, %148, %cst_55 {dimension_numbers = #tpu.dot_dimension_numbers<[1], [0], [0], [1], [0, 0, 1, 1], [], []>} : vector<8x128xbf16>, vector<128x512xbf16>, vector<8x512xf32> -> vector<8x512xf32>
    %150 = arith.truncf %100 : vector<8x128xf32> to vector<8x128xbf16>
    %c0_56 = arith.constant 0 : index
    %c0_57 = arith.constant 0 : index
    %151 = vector.load %arg6[%c0_56, %c0_57] : memref<128x512xbf16, #tpu.memory_space<vmem>>, vector<128x512xbf16>
    %cst_58 = arith.constant dense<0.000000e+00> : vector<8x512xf32>
    %152 = tpu.matmul %150, %151, %cst_58 {dimension_numbers = #tpu.dot_dimension_numbers<[1], [0], [0], [1], [0, 0, 1, 1], [], []>} : vector<8x128xbf16>, vector<128x512xbf16>, vector<8x512xf32> -> vector<8x512xf32>
    %153 = arith.truncf %134 : vector<8x128xf32> to vector<8x128xbf16>
    %c0_59 = arith.constant 0 : index
    %c0_60 = arith.constant 0 : index
    %154 = vector.load %arg8[%c0_59, %c0_60] : memref<128x512xbf16, #tpu.memory_space<vmem>>, vector<128x512xbf16>
    %cst_61 = arith.constant dense<0.000000e+00> : vector<8x512xf32>
    %155 = tpu.matmul %153, %154, %cst_61 {dimension_numbers = #tpu.dot_dimension_numbers<[1], [0], [0], [1], [0, 0, 1, 1], [], []>} : vector<8x128xbf16>, vector<128x512xbf16>, vector<8x512xf32> -> vector<8x512xf32>
    %156 = arith.index_cast %c1_i32 : i32 to index
    %c0_62 = arith.constant 0 : index
    %c0_63 = arith.constant 0 : index
    %157 = vector.load %arg3[%156, %c0_62, %c0_63] : memref<8x8x512xf32, #tpu.memory_space<vmem>>, vector<1x8x512xf32>
    %158 = vector.shape_cast %157 : vector<1x8x512xf32> to vector<8x512xf32>
    %159 = arith.addf %158, %149 : vector<8x512xf32>
    %160 = vector.extract_strided_slice %159 {offsets = [0, 0], sizes = [8, 128], strides = [1, 1]} : vector<8x512xf32> to vector<8x128xf32>
    %161 = arith.negf %160 : vector<8x128xf32>
    %162 = math.exp %161 : vector<8x128xf32>
    %cst_64 = arith.constant 1.000000e+00 : f32
    %163 = vector.broadcast %cst_64 : f32 to vector<8x128xf32>
    %164 = arith.addf %163, %162 : vector<8x128xf32>
    %165 = arith.divf %163, %164 : vector<8x128xf32>
    %166 = vector.extract_strided_slice %159 {offsets = [0, 128], sizes = [8, 128], strides = [1, 1]} : vector<8x512xf32> to vector<8x128xf32>
    %167 = arith.negf %166 : vector<8x128xf32>
    %168 = math.exp %167 : vector<8x128xf32>
    %cst_65 = arith.constant 1.000000e+00 : f32
    %169 = vector.broadcast %cst_65 : f32 to vector<8x128xf32>
    %170 = arith.addf %169, %168 : vector<8x128xf32>
    %171 = arith.divf %169, %170 : vector<8x128xf32>
    %172 = vector.extract_strided_slice %159 {offsets = [0, 256], sizes = [8, 128], strides = [1, 1]} : vector<8x512xf32> to vector<8x128xf32>
    %173 = math.tanh %172 : vector<8x128xf32>
    %174 = vector.extract_strided_slice %159 {offsets = [0, 384], sizes = [8, 128], strides = [1, 1]} : vector<8x512xf32> to vector<8x128xf32>
    %175 = arith.negf %174 : vector<8x128xf32>
    %176 = math.exp %175 : vector<8x128xf32>
    %cst_66 = arith.constant 1.000000e+00 : f32
    %177 = vector.broadcast %cst_66 : f32 to vector<8x128xf32>
    %178 = arith.addf %177, %176 : vector<8x128xf32>
    %179 = arith.divf %177, %178 : vector<8x128xf32>
    %180 = arith.mulf %171, %67 : vector<8x128xf32>
    %181 = arith.mulf %165, %173 : vector<8x128xf32>
    %182 = arith.addf %180, %181 : vector<8x128xf32>
    %183 = math.tanh %182 : vector<8x128xf32>
    %184 = arith.mulf %179, %183 : vector<8x128xf32>
    %185 = arith.select %146, %184, %66 : vector<8x128xi1>, vector<8x128xf32>
    %186 = arith.select %146, %182, %67 : vector<8x128xi1>, vector<8x128xf32>
    %cst_67 = arith.constant 0.000000e+00 : f32
    %187 = vector.broadcast %cst_67 : f32 to vector<8x128xf32>
    %188 = arith.select %146, %184, %187 : vector<8x128xi1>, vector<8x128xf32>
    %189 = arith.truncf %188 : vector<8x128xf32> to vector<8x128xbf16>
    %c0_68 = arith.constant 0 : index
    %c0_69 = arith.constant 0 : index
    %190 = vector.load %arg5[%c0_68, %c0_69] : memref<128x512xbf16, #tpu.memory_space<vmem>>, vector<128x512xbf16>
    %cst_70 = arith.constant dense<0.000000e+00> : vector<8x512xf32>
    %191 = tpu.matmul %189, %190, %cst_70 {dimension_numbers = #tpu.dot_dimension_numbers<[1], [0], [0], [1], [0, 0, 1, 1], [], []>} : vector<8x128xbf16>, vector<128x512xbf16>, vector<8x512xf32> -> vector<8x512xf32>
    %192 = arith.addf %191, %152 : vector<8x512xf32>
    %193 = arith.addf %192, %6 : vector<8x512xf32>
    %194 = vector.extract_strided_slice %193 {offsets = [0, 0], sizes = [8, 128], strides = [1, 1]} : vector<8x512xf32> to vector<8x128xf32>
    %195 = arith.negf %194 : vector<8x128xf32>
    %196 = math.exp %195 : vector<8x128xf32>
    %cst_71 = arith.constant 1.000000e+00 : f32
    %197 = vector.broadcast %cst_71 : f32 to vector<8x128xf32>
    %198 = arith.addf %197, %196 : vector<8x128xf32>
    %199 = arith.divf %197, %198 : vector<8x128xf32>
    %200 = vector.extract_strided_slice %193 {offsets = [0, 128], sizes = [8, 128], strides = [1, 1]} : vector<8x512xf32> to vector<8x128xf32>
    %201 = arith.negf %200 : vector<8x128xf32>
    %202 = math.exp %201 : vector<8x128xf32>
    %cst_72 = arith.constant 1.000000e+00 : f32
    %203 = vector.broadcast %cst_72 : f32 to vector<8x128xf32>
    %204 = arith.addf %203, %202 : vector<8x128xf32>
    %205 = arith.divf %203, %204 : vector<8x128xf32>
    %206 = vector.extract_strided_slice %193 {offsets = [0, 256], sizes = [8, 128], strides = [1, 1]} : vector<8x512xf32> to vector<8x128xf32>
    %207 = math.tanh %206 : vector<8x128xf32>
    %208 = vector.extract_strided_slice %193 {offsets = [0, 384], sizes = [8, 128], strides = [1, 1]} : vector<8x512xf32> to vector<8x128xf32>
    %209 = arith.negf %208 : vector<8x128xf32>
    %210 = math.exp %209 : vector<8x128xf32>
    %cst_73 = arith.constant 1.000000e+00 : f32
    %211 = vector.broadcast %cst_73 : f32 to vector<8x128xf32>
    %212 = arith.addf %211, %210 : vector<8x128xf32>
    %213 = arith.divf %211, %212 : vector<8x128xf32>
    %214 = arith.mulf %205, %101 : vector<8x128xf32>
    %215 = arith.mulf %199, %207 : vector<8x128xf32>
    %216 = arith.addf %214, %215 : vector<8x128xf32>
    %217 = math.tanh %216 : vector<8x128xf32>
    %218 = arith.mulf %213, %217 : vector<8x128xf32>
    %219 = arith.select %146, %218, %100 : vector<8x128xi1>, vector<8x128xf32>
    %220 = arith.select %146, %216, %101 : vector<8x128xi1>, vector<8x128xf32>
    %cst_74 = arith.constant 0.000000e+00 : f32
    %221 = vector.broadcast %cst_74 : f32 to vector<8x128xf32>
    %222 = arith.select %146, %218, %221 : vector<8x128xi1>, vector<8x128xf32>
    %223 = arith.truncf %222 : vector<8x128xf32> to vector<8x128xbf16>
    %c0_75 = arith.constant 0 : index
    %c0_76 = arith.constant 0 : index
    %224 = vector.load %arg7[%c0_75, %c0_76] : memref<128x512xbf16, #tpu.memory_space<vmem>>, vector<128x512xbf16>
    %cst_77 = arith.constant dense<0.000000e+00> : vector<8x512xf32>
    %225 = tpu.matmul %223, %224, %cst_77 {dimension_numbers = #tpu.dot_dimension_numbers<[1], [0], [0], [1], [0, 0, 1, 1], [], []>} : vector<8x128xbf16>, vector<128x512xbf16>, vector<8x512xf32> -> vector<8x512xf32>
    %226 = arith.addf %225, %155 : vector<8x512xf32>
    %227 = arith.addf %226, %9 : vector<8x512xf32>
    %228 = vector.extract_strided_slice %227 {offsets = [0, 0], sizes = [8, 128], strides = [1, 1]} : vector<8x512xf32> to vector<8x128xf32>
    %229 = arith.negf %228 : vector<8x128xf32>
    %230 = math.exp %229 : vector<8x128xf32>
    %cst_78 = arith.constant 1.000000e+00 : f32
    %231 = vector.broadcast %cst_78 : f32 to vector<8x128xf32>
    %232 = arith.addf %231, %230 : vector<8x128xf32>
    %233 = arith.divf %231, %232 : vector<8x128xf32>
    %234 = vector.extract_strided_slice %227 {offsets = [0, 128], sizes = [8, 128], strides = [1, 1]} : vector<8x512xf32> to vector<8x128xf32>
    %235 = arith.negf %234 : vector<8x128xf32>
    %236 = math.exp %235 : vector<8x128xf32>
    %cst_79 = arith.constant 1.000000e+00 : f32
    %237 = vector.broadcast %cst_79 : f32 to vector<8x128xf32>
    %238 = arith.addf %237, %236 : vector<8x128xf32>
    %239 = arith.divf %237, %238 : vector<8x128xf32>
    %240 = vector.extract_strided_slice %227 {offsets = [0, 256], sizes = [8, 128], strides = [1, 1]} : vector<8x512xf32> to vector<8x128xf32>
    %241 = math.tanh %240 : vector<8x128xf32>
    %242 = vector.extract_strided_slice %227 {offsets = [0, 384], sizes = [8, 128], strides = [1, 1]} : vector<8x512xf32> to vector<8x128xf32>
    %243 = arith.negf %242 : vector<8x128xf32>
    %244 = math.exp %243 : vector<8x128xf32>
    %cst_80 = arith.constant 1.000000e+00 : f32
    %245 = vector.broadcast %cst_80 : f32 to vector<8x128xf32>
    %246 = arith.addf %245, %244 : vector<8x128xf32>
    %247 = arith.divf %245, %246 : vector<8x128xf32>
    %248 = arith.mulf %239, %135 : vector<8x128xf32>
    %249 = arith.mulf %233, %241 : vector<8x128xf32>
    %250 = arith.addf %248, %249 : vector<8x128xf32>
    %251 = math.tanh %250 : vector<8x128xf32>
    %252 = arith.mulf %247, %251 : vector<8x128xf32>
    %253 = arith.select %146, %252, %134 : vector<8x128xi1>, vector<8x128xf32>
    %254 = arith.select %146, %250, %135 : vector<8x128xi1>, vector<8x128xf32>
    %cst_81 = arith.constant 0.000000e+00 : f32
    %255 = vector.broadcast %cst_81 : f32 to vector<8x128xf32>
    %256 = arith.select %146, %252, %255 : vector<8x128xi1>, vector<8x128xf32>
    %257 = arith.index_cast %c1_i32 : i32 to index
    %c0_82 = arith.constant 0 : index
    %c0_83 = arith.constant 0 : index
    %258 = vector.load %arg11[%257, %c0_82, %c0_83] : memref<8x8x128xf32, #tpu.memory_space<vmem>>, vector<1x8x128xf32>
    %259 = vector.shape_cast %258 : vector<1x8x128xf32> to vector<8x128xf32>
    %260 = vector.shape_cast %256 : vector<8x128xf32> to vector<1x8x128xf32>
    tpu.vector_store %arg11[%257, %c0_82, %c0_83], %260 {strides = array<i32>} : memref<8x8x128xf32, #tpu.memory_space<vmem>>, vector<1x8x128xf32>,
    %c2_i32 = arith.constant 2 : i32
    %261 = arith.addi %10, %c2_i32 : i32
    %262 = vector.broadcast %261 : i32 to vector<8x1xi32>
    %263 = arith.cmpi sgt, %3, %262 : vector<8x1xi32>
    %264 = vector.shape_cast %263 : vector<8x1xi1> to vector<8x1xi1>
    %265 = vector.broadcast %264 : vector<8x1xi1> to vector<8x128xi1>
    %266 = arith.truncf %185 : vector<8x128xf32> to vector<8x128xbf16>
    %c0_84 = arith.constant 0 : index
    %c0_85 = arith.constant 0 : index
    %267 = vector.load %arg4[%c0_84, %c0_85] : memref<128x512xbf16, #tpu.memory_space<vmem>>, vector<128x512xbf16>
    %cst_86 = arith.constant dense<0.000000e+00> : vector<8x512xf32>
    %268 = tpu.matmul %266, %267, %cst_86 {dimension_numbers = #tpu.dot_dimension_numbers<[1], [0], [0], [1], [0, 0, 1, 1], [], []>} : vector<8x128xbf16>, vector<128x512xbf16>, vector<8x512xf32> -> vector<8x512xf32>
    %269 = arith.truncf %219 : vector<8x128xf32> to vector<8x128xbf16>
    %c0_87 = arith.constant 0 : index
    %c0_88 = arith.constant 0 : index
    %270 = vector.load %arg6[%c0_87, %c0_88] : memref<128x512xbf16, #tpu.memory_space<vmem>>, vector<128x512xbf16>
    %cst_89 = arith.constant dense<0.000000e+00> : vector<8x512xf32>
    %271 = tpu.matmul %269, %270, %cst_89 {dimension_numbers = #tpu.dot_dimension_numbers<[1], [0], [0], [1], [0, 0, 1, 1], [], []>} : vector<8x128xbf16>, vector<128x512xbf16>, vector<8x512xf32> -> vector<8x512xf32>
    %272 = arith.truncf %253 : vector<8x128xf32> to vector<8x128xbf16>
    %c0_90 = arith.constant 0 : index
    %c0_91 = arith.constant 0 : index
    %273 = vector.load %arg8[%c0_90, %c0_91] : memref<128x512xbf16, #tpu.memory_space<vmem>>, vector<128x512xbf16>
    %cst_92 = arith.constant dense<0.000000e+00> : vector<8x512xf32>
    %274 = tpu.matmul %272, %273, %cst_92 {dimension_numbers = #tpu.dot_dimension_numbers<[1], [0], [0], [1], [0, 0, 1, 1], [], []>} : vector<8x128xbf16>, vector<128x512xbf16>, vector<8x512xf32> -> vector<8x512xf32>
    %275 = arith.index_cast %c2_i32 : i32 to index
    %c0_93 = arith.constant 0 : index
    %c0_94 = arith.constant 0 : index
    %276 = vector.load %arg3[%275, %c0_93, %c0_94] : memref<8x8x512xf32, #tpu.memory_space<vmem>>, vector<1x8x512xf32>
    %277 = vector.shape_cast %276 : vector<1x8x512xf32> to vector<8x512xf32>
    %278 = arith.addf %277, %268 : vector<8x512xf32>
    %279 = vector.extract_strided_slice %278 {offsets = [0, 0], sizes = [8, 128], strides = [1, 1]} : vector<8x512xf32> to vector<8x128xf32>
    %280 = arith.negf %279 : vector<8x128xf32>
    %281 = math.exp %280 : vector<8x128xf32>
    %cst_95 = arith.constant 1.000000e+00 : f32
    %282 = vector.broadcast %cst_95 : f32 to vector<8x128xf32>
    %283 = arith.addf %282, %281 : vector<8x128xf32>
    %284 = arith.divf %282, %283 : vector<8x128xf32>
    %285 = vector.extract_strided_slice %278 {offsets = [0, 128], sizes = [8, 128], strides = [1, 1]} : vector<8x512xf32> to vector<8x128xf32>
    %286 = arith.negf %285 : vector<8x128xf32>
    %287 = math.exp %286 : vector<8x128xf32>
    %cst_96 = arith.constant 1.000000e+00 : f32
    %288 = vector.broadcast %cst_96 : f32 to vector<8x128xf32>
    %289 = arith.addf %288, %287 : vector<8x128xf32>
    %290 = arith.divf %288, %289 : vector<8x128xf32>
    %291 = vector.extract_strided_slice %278 {offsets = [0, 256], sizes = [8, 128], strides = [1, 1]} : vector<8x512xf32> to vector<8x128xf32>
    %292 = math.tanh %291 : vector<8x128xf32>
    %293 = vector.extract_strided_slice %278 {offsets = [0, 384], sizes = [8, 128], strides = [1, 1]} : vector<8x512xf32> to vector<8x128xf32>
    %294 = arith.negf %293 : vector<8x128xf32>
    %295 = math.exp %294 : vector<8x128xf32>
    %cst_97 = arith.constant 1.000000e+00 : f32
    %296 = vector.broadcast %cst_97 : f32 to vector<8x128xf32>
    %297 = arith.addf %296, %295 : vector<8x128xf32>
    %298 = arith.divf %296, %297 : vector<8x128xf32>
    %299 = arith.mulf %290, %186 : vector<8x128xf32>
    %300 = arith.mulf %284, %292 : vector<8x128xf32>
    %301 = arith.addf %299, %300 : vector<8x128xf32>
    %302 = math.tanh %301 : vector<8x128xf32>
    %303 = arith.mulf %298, %302 : vector<8x128xf32>
    %304 = arith.select %265, %303, %185 : vector<8x128xi1>, vector<8x128xf32>
    %305 = arith.select %265, %301, %186 : vector<8x128xi1>, vector<8x128xf32>
    %cst_98 = arith.constant 0.000000e+00 : f32
    %306 = vector.broadcast %cst_98 : f32 to vector<8x128xf32>
    %307 = arith.select %265, %303, %306 : vector<8x128xi1>, vector<8x128xf32>
    %308 = arith.truncf %307 : vector<8x128xf32> to vector<8x128xbf16>
    %c0_99 = arith.constant 0 : index
    %c0_100 = arith.constant 0 : index
    %309 = vector.load %arg5[%c0_99, %c0_100] : memref<128x512xbf16, #tpu.memory_space<vmem>>, vector<128x512xbf16>
    %cst_101 = arith.constant dense<0.000000e+00> : vector<8x512xf32>
    %310 = tpu.matmul %308, %309, %cst_101 {dimension_numbers = #tpu.dot_dimension_numbers<[1], [0], [0], [1], [0, 0, 1, 1], [], []>} : vector<8x128xbf16>, vector<128x512xbf16>, vector<8x512xf32> -> vector<8x512xf32>
    %311 = arith.addf %310, %271 : vector<8x512xf32>
    %312 = arith.addf %311, %6 : vector<8x512xf32>
    %313 = vector.extract_strided_slice %312 {offsets = [0, 0], sizes = [8, 128], strides = [1, 1]} : vector<8x512xf32> to vector<8x128xf32>
    %314 = arith.negf %313 : vector<8x128xf32>
    %315 = math.exp %314 : vector<8x128xf32>
    %cst_102 = arith.constant 1.000000e+00 : f32
    %316 = vector.broadcast %cst_102 : f32 to vector<8x128xf32>
    %317 = arith.addf %316, %315 : vector<8x128xf32>
    %318 = arith.divf %316, %317 : vector<8x128xf32>
    %319 = vector.extract_strided_slice %312 {offsets = [0, 128], sizes = [8, 128], strides = [1, 1]} : vector<8x512xf32> to vector<8x128xf32>
    %320 = arith.negf %319 : vector<8x128xf32>
    %321 = math.exp %320 : vector<8x128xf32>
    %cst_103 = arith.constant 1.000000e+00 : f32
    %322 = vector.broadcast %cst_103 : f32 to vector<8x128xf32>
    %323 = arith.addf %322, %321 : vector<8x128xf32>
    %324 = arith.divf %322, %323 : vector<8x128xf32>
    %325 = vector.extract_strided_slice %312 {offsets = [0, 256], sizes = [8, 128], strides = [1, 1]} : vector<8x512xf32> to vector<8x128xf32>
    %326 = math.tanh %325 : vector<8x128xf32>
    %327 = vector.extract_strided_slice %312 {offsets = [0, 384], sizes = [8, 128], strides = [1, 1]} : vector<8x512xf32> to vector<8x128xf32>
    %328 = arith.negf %327 : vector<8x128xf32>
    %329 = math.exp %328 : vector<8x128xf32>
    %cst_104 = arith.constant 1.000000e+00 : f32
    %330 = vector.broadcast %cst_104 : f32 to vector<8x128xf32>
    %331 = arith.addf %330, %329 : vector<8x128xf32>
    %332 = arith.divf %330, %331 : vector<8x128xf32>
    %333 = arith.mulf %324, %220 : vector<8x128xf32>
    %334 = arith.mulf %318, %326 : vector<8x128xf32>
    %335 = arith.addf %333, %334 : vector<8x128xf32>
    %336 = math.tanh %335 : vector<8x128xf32>
    %337 = arith.mulf %332, %336 : vector<8x128xf32>
    %338 = arith.select %265, %337, %219 : vector<8x128xi1>, vector<8x128xf32>
    %339 = arith.select %265, %335, %220 : vector<8x128xi1>, vector<8x128xf32>
    %cst_105 = arith.constant 0.000000e+00 : f32
    %340 = vector.broadcast %cst_105 : f32 to vector<8x128xf32>
    %341 = arith.select %265, %337, %340 : vector<8x128xi1>, vector<8x128xf32>
    %342 = arith.truncf %341 : vector<8x128xf32> to vector<8x128xbf16>
    %c0_106 = arith.constant 0 : index
    %c0_107 = arith.constant 0 : index
    %343 = vector.load %arg7[%c0_106, %c0_107] : memref<128x512xbf16, #tpu.memory_space<vmem>>, vector<128x512xbf16>
    %cst_108 = arith.constant dense<0.000000e+00> : vector<8x512xf32>
    %344 = tpu.matmul %342, %343, %cst_108 {dimension_numbers = #tpu.dot_dimension_numbers<[1], [0], [0], [1], [0, 0, 1, 1], [], []>} : vector<8x128xbf16>, vector<128x512xbf16>, vector<8x512xf32> -> vector<8x512xf32>
    %345 = arith.addf %344, %274 : vector<8x512xf32>
    %346 = arith.addf %345, %9 : vector<8x512xf32>
    %347 = vector.extract_strided_slice %346 {offsets = [0, 0], sizes = [8, 128], strides = [1, 1]} : vector<8x512xf32> to vector<8x128xf32>
    %348 = arith.negf %347 : vector<8x128xf32>
    %349 = math.exp %348 : vector<8x128xf32>
    %cst_109 = arith.constant 1.000000e+00 : f32
    %350 = vector.broadcast %cst_109 : f32 to vector<8x128xf32>
    %351 = arith.addf %350, %349 : vector<8x128xf32>
    %352 = arith.divf %350, %351 : vector<8x128xf32>
    %353 = vector.extract_strided_slice %346 {offsets = [0, 128], sizes = [8, 128], strides = [1, 1]} : vector<8x512xf32> to vector<8x128xf32>
    %354 = arith.negf %353 : vector<8x128xf32>
    %355 = math.exp %354 : vector<8x128xf32>
    %cst_110 = arith.constant 1.000000e+00 : f32
    %356 = vector.broadcast %cst_110 : f32 to vector<8x128xf32>
    %357 = arith.addf %356, %355 : vector<8x128xf32>
    %358 = arith.divf %356, %357 : vector<8x128xf32>
    %359 = vector.extract_strided_slice %346 {offsets = [0, 256], sizes = [8, 128], strides = [1, 1]} : vector<8x512xf32> to vector<8x128xf32>
    %360 = math.tanh %359 : vector<8x128xf32>
    %361 = vector.extract_strided_slice %346 {offsets = [0, 384], sizes = [8, 128], strides = [1, 1]} : vector<8x512xf32> to vector<8x128xf32>
    %362 = arith.negf %361 : vector<8x128xf32>
    %363 = math.exp %362 : vector<8x128xf32>
    %cst_111 = arith.constant 1.000000e+00 : f32
    %364 = vector.broadcast %cst_111 : f32 to vector<8x128xf32>
    %365 = arith.addf %364, %363 : vector<8x128xf32>
    %366 = arith.divf %364, %365 : vector<8x128xf32>
    %367 = arith.mulf %358, %254 : vector<8x128xf32>
    %368 = arith.mulf %352, %360 : vector<8x128xf32>
    %369 = arith.addf %367, %368 : vector<8x128xf32>
    %370 = math.tanh %369 : vector<8x128xf32>
    %371 = arith.mulf %366, %370 : vector<8x128xf32>
    %372 = arith.select %265, %371, %253 : vector<8x128xi1>, vector<8x128xf32>
    %373 = arith.select %265, %369, %254 : vector<8x128xi1>, vector<8x128xf32>
    %cst_112 = arith.constant 0.000000e+00 : f32
    %374 = vector.broadcast %cst_112 : f32 to vector<8x128xf32>
    %375 = arith.select %265, %371, %374 : vector<8x128xi1>, vector<8x128xf32>
    %376 = arith.index_cast %c2_i32 : i32 to index
    %c0_113 = arith.constant 0 : index
    %c0_114 = arith.constant 0 : index
    %377 = vector.load %arg11[%376, %c0_113, %c0_114] : memref<8x8x128xf32, #tpu.memory_space<vmem>>, vector<1x8x128xf32>
    %378 = vector.shape_cast %377 : vector<1x8x128xf32> to vector<8x128xf32>
    %379 = vector.shape_cast %375 : vector<8x128xf32> to vector<1x8x128xf32>
    tpu.vector_store %arg11[%376, %c0_113, %c0_114], %379 {strides = array<i32>} : memref<8x8x128xf32, #tpu.memory_space<vmem>>, vector<1x8x128xf32>,
    %c3_i32 = arith.constant 3 : i32
    %380 = arith.addi %10, %c3_i32 : i32
    %381 = vector.broadcast %380 : i32 to vector<8x1xi32>
    %382 = arith.cmpi sgt, %3, %381 : vector<8x1xi32>
    %383 = vector.shape_cast %382 : vector<8x1xi1> to vector<8x1xi1>
    %384 = vector.broadcast %383 : vector<8x1xi1> to vector<8x128xi1>
    %385 = arith.truncf %304 : vector<8x128xf32> to vector<8x128xbf16>
    %c0_115 = arith.constant 0 : index
    %c0_116 = arith.constant 0 : index
    %386 = vector.load %arg4[%c0_115, %c0_116] : memref<128x512xbf16, #tpu.memory_space<vmem>>, vector<128x512xbf16>
    %cst_117 = arith.constant dense<0.000000e+00> : vector<8x512xf32>
    %387 = tpu.matmul %385, %386, %cst_117 {dimension_numbers = #tpu.dot_dimension_numbers<[1], [0], [0], [1], [0, 0, 1, 1], [], []>} : vector<8x128xbf16>, vector<128x512xbf16>, vector<8x512xf32> -> vector<8x512xf32>
    %388 = arith.truncf %338 : vector<8x128xf32> to vector<8x128xbf16>
    %c0_118 = arith.constant 0 : index
    %c0_119 = arith.constant 0 : index
    %389 = vector.load %arg6[%c0_118, %c0_119] : memref<128x512xbf16, #tpu.memory_space<vmem>>, vector<128x512xbf16>
    %cst_120 = arith.constant dense<0.000000e+00> : vector<8x512xf32>
    %390 = tpu.matmul %388, %389, %cst_120 {dimension_numbers = #tpu.dot_dimension_numbers<[1], [0], [0], [1], [0, 0, 1, 1], [], []>} : vector<8x128xbf16>, vector<128x512xbf16>, vector<8x512xf32> -> vector<8x512xf32>
    %391 = arith.truncf %372 : vector<8x128xf32> to vector<8x128xbf16>
    %c0_121 = arith.constant 0 : index
    %c0_122 = arith.constant 0 : index
    %392 = vector.load %arg8[%c0_121, %c0_122] : memref<128x512xbf16, #tpu.memory_space<vmem>>, vector<128x512xbf16>
    %cst_123 = arith.constant dense<0.000000e+00> : vector<8x512xf32>
    %393 = tpu.matmul %391, %392, %cst_123 {dimension_numbers = #tpu.dot_dimension_numbers<[1], [0], [0], [1], [0, 0, 1, 1], [], []>} : vector<8x128xbf16>, vector<128x512xbf16>, vector<8x512xf32> -> vector<8x512xf32>
    %394 = arith.index_cast %c3_i32 : i32 to index
    %c0_124 = arith.constant 0 : index
    %c0_125 = arith.constant 0 : index
    %395 = vector.load %arg3[%394, %c0_124, %c0_125] : memref<8x8x512xf32, #tpu.memory_space<vmem>>, vector<1x8x512xf32>
    %396 = vector.shape_cast %395 : vector<1x8x512xf32> to vector<8x512xf32>
    %397 = arith.addf %396, %387 : vector<8x512xf32>
    %398 = vector.extract_strided_slice %397 {offsets = [0, 0], sizes = [8, 128], strides = [1, 1]} : vector<8x512xf32> to vector<8x128xf32>
    %399 = arith.negf %398 : vector<8x128xf32>
    %400 = math.exp %399 : vector<8x128xf32>
    %cst_126 = arith.constant 1.000000e+00 : f32
    %401 = vector.broadcast %cst_126 : f32 to vector<8x128xf32>
    %402 = arith.addf %401, %400 : vector<8x128xf32>
    %403 = arith.divf %401, %402 : vector<8x128xf32>
    %404 = vector.extract_strided_slice %397 {offsets = [0, 128], sizes = [8, 128], strides = [1, 1]} : vector<8x512xf32> to vector<8x128xf32>
    %405 = arith.negf %404 : vector<8x128xf32>
    %406 = math.exp %405 : vector<8x128xf32>
    %cst_127 = arith.constant 1.000000e+00 : f32
    %407 = vector.broadcast %cst_127 : f32 to vector<8x128xf32>
    %408 = arith.addf %407, %406 : vector<8x128xf32>
    %409 = arith.divf %407, %408 : vector<8x128xf32>
    %410 = vector.extract_strided_slice %397 {offsets = [0, 256], sizes = [8, 128], strides = [1, 1]} : vector<8x512xf32> to vector<8x128xf32>
    %411 = math.tanh %410 : vector<8x128xf32>
    %412 = vector.extract_strided_slice %397 {offsets = [0, 384], sizes = [8, 128], strides = [1, 1]} : vector<8x512xf32> to vector<8x128xf32>
    %413 = arith.negf %412 : vector<8x128xf32>
    %414 = math.exp %413 : vector<8x128xf32>
    %cst_128 = arith.constant 1.000000e+00 : f32
    %415 = vector.broadcast %cst_128 : f32 to vector<8x128xf32>
    %416 = arith.addf %415, %414 : vector<8x128xf32>
    %417 = arith.divf %415, %416 : vector<8x128xf32>
    %418 = arith.mulf %409, %305 : vector<8x128xf32>
    %419 = arith.mulf %403, %411 : vector<8x128xf32>
    %420 = arith.addf %418, %419 : vector<8x128xf32>
    %421 = math.tanh %420 : vector<8x128xf32>
    %422 = arith.mulf %417, %421 : vector<8x128xf32>
    %423 = arith.select %384, %422, %304 : vector<8x128xi1>, vector<8x128xf32>
    %424 = arith.select %384, %420, %305 : vector<8x128xi1>, vector<8x128xf32>
    %cst_129 = arith.constant 0.000000e+00 : f32
    %425 = vector.broadcast %cst_129 : f32 to vector<8x128xf32>
    %426 = arith.select %384, %422, %425 : vector<8x128xi1>, vector<8x128xf32>
    %427 = arith.truncf %426 : vector<8x128xf32> to vector<8x128xbf16>
    %c0_130 = arith.constant 0 : index
    %c0_131 = arith.constant 0 : index
    %428 = vector.load %arg5[%c0_130, %c0_131] : memref<128x512xbf16, #tpu.memory_space<vmem>>, vector<128x512xbf16>
    %cst_132 = arith.constant dense<0.000000e+00> : vector<8x512xf32>
    %429 = tpu.matmul %427, %428, %cst_132 {dimension_numbers = #tpu.dot_dimension_numbers<[1], [0], [0], [1], [0, 0, 1, 1], [], []>} : vector<8x128xbf16>, vector<128x512xbf16>, vector<8x512xf32> -> vector<8x512xf32>
    %430 = arith.addf %429, %390 : vector<8x512xf32>
    %431 = arith.addf %430, %6 : vector<8x512xf32>
    %432 = vector.extract_strided_slice %431 {offsets = [0, 0], sizes = [8, 128], strides = [1, 1]} : vector<8x512xf32> to vector<8x128xf32>
    %433 = arith.negf %432 : vector<8x128xf32>
    %434 = math.exp %433 : vector<8x128xf32>
    %cst_133 = arith.constant 1.000000e+00 : f32
    %435 = vector.broadcast %cst_133 : f32 to vector<8x128xf32>
    %436 = arith.addf %435, %434 : vector<8x128xf32>
    %437 = arith.divf %435, %436 : vector<8x128xf32>
    %438 = vector.extract_strided_slice %431 {offsets = [0, 128], sizes = [8, 128], strides = [1, 1]} : vector<8x512xf32> to vector<8x128xf32>
    %439 = arith.negf %438 : vector<8x128xf32>
    %440 = math.exp %439 : vector<8x128xf32>
    %cst_134 = arith.constant 1.000000e+00 : f32
    %441 = vector.broadcast %cst_134 : f32 to vector<8x128xf32>
    %442 = arith.addf %441, %440 : vector<8x128xf32>
    %443 = arith.divf %441, %442 : vector<8x128xf32>
    %444 = vector.extract_strided_slice %431 {offsets = [0, 256], sizes = [8, 128], strides = [1, 1]} : vector<8x512xf32> to vector<8x128xf32>
    %445 = math.tanh %444 : vector<8x128xf32>
    %446 = vector.extract_strided_slice %431 {offsets = [0, 384], sizes = [8, 128], strides = [1, 1]} : vector<8x512xf32> to vector<8x128xf32>
    %447 = arith.negf %446 : vector<8x128xf32>
    %448 = math.exp %447 : vector<8x128xf32>
    %cst_135 = arith.constant 1.000000e+00 : f32
    %449 = vector.broadcast %cst_135 : f32 to vector<8x128xf32>
    %450 = arith.addf %449, %448 : vector<8x128xf32>
    %451 = arith.divf %449, %450 : vector<8x128xf32>
    %452 = arith.mulf %443, %339 : vector<8x128xf32>
    %453 = arith.mulf %437, %445 : vector<8x128xf32>
    %454 = arith.addf %452, %453 : vector<8x128xf32>
    %455 = math.tanh %454 : vector<8x128xf32>
    %456 = arith.mulf %451, %455 : vector<8x128xf32>
    %457 = arith.select %384, %456, %338 : vector<8x128xi1>, vector<8x128xf32>
    %458 = arith.select %384, %454, %339 : vector<8x128xi1>, vector<8x128xf32>
    %cst_136 = arith.constant 0.000000e+00 : f32
    %459 = vector.broadcast %cst_136 : f32 to vector<8x128xf32>
    %460 = arith.select %384, %456, %459 : vector<8x128xi1>, vector<8x128xf32>
    %461 = arith.truncf %460 : vector<8x128xf32> to vector<8x128xbf16>
    %c0_137 = arith.constant 0 : index
    %c0_138 = arith.constant 0 : index
    %462 = vector.load %arg7[%c0_137, %c0_138] : memref<128x512xbf16, #tpu.memory_space<vmem>>, vector<128x512xbf16>
    %cst_139 = arith.constant dense<0.000000e+00> : vector<8x512xf32>
    %463 = tpu.matmul %461, %462, %cst_139 {dimension_numbers = #tpu.dot_dimension_numbers<[1], [0], [0], [1], [0, 0, 1, 1], [], []>} : vector<8x128xbf16>, vector<128x512xbf16>, vector<8x512xf32> -> vector<8x512xf32>
    %464 = arith.addf %463, %393 : vector<8x512xf32>
    %465 = arith.addf %464, %9 : vector<8x512xf32>
    %466 = vector.extract_strided_slice %465 {offsets = [0, 0], sizes = [8, 128], strides = [1, 1]} : vector<8x512xf32> to vector<8x128xf32>
    %467 = arith.negf %466 : vector<8x128xf32>
    %468 = math.exp %467 : vector<8x128xf32>
    %cst_140 = arith.constant 1.000000e+00 : f32
    %469 = vector.broadcast %cst_140 : f32 to vector<8x128xf32>
    %470 = arith.addf %469, %468 : vector<8x128xf32>
    %471 = arith.divf %469, %470 : vector<8x128xf32>
    %472 = vector.extract_strided_slice %465 {offsets = [0, 128], sizes = [8, 128], strides = [1, 1]} : vector<8x512xf32> to vector<8x128xf32>
    %473 = arith.negf %472 : vector<8x128xf32>
    %474 = math.exp %473 : vector<8x128xf32>
    %cst_141 = arith.constant 1.000000e+00 : f32
    %475 = vector.broadcast %cst_141 : f32 to vector<8x128xf32>
    %476 = arith.addf %475, %474 : vector<8x128xf32>
    %477 = arith.divf %475, %476 : vector<8x128xf32>
    %478 = vector.extract_strided_slice %465 {offsets = [0, 256], sizes = [8, 128], strides = [1, 1]} : vector<8x512xf32> to vector<8x128xf32>
    %479 = math.tanh %478 : vector<8x128xf32>
    %480 = vector.extract_strided_slice %465 {offsets = [0, 384], sizes = [8, 128], strides = [1, 1]} : vector<8x512xf32> to vector<8x128xf32>
    %481 = arith.negf %480 : vector<8x128xf32>
    %482 = math.exp %481 : vector<8x128xf32>
    %cst_142 = arith.constant 1.000000e+00 : f32
    %483 = vector.broadcast %cst_142 : f32 to vector<8x128xf32>
    %484 = arith.addf %483, %482 : vector<8x128xf32>
    %485 = arith.divf %483, %484 : vector<8x128xf32>
    %486 = arith.mulf %477, %373 : vector<8x128xf32>
    %487 = arith.mulf %471, %479 : vector<8x128xf32>
    %488 = arith.addf %486, %487 : vector<8x128xf32>
    %489 = math.tanh %488 : vector<8x128xf32>
    %490 = arith.mulf %485, %489 : vector<8x128xf32>
    %491 = arith.select %384, %490, %372 : vector<8x128xi1>, vector<8x128xf32>
    %492 = arith.select %384, %488, %373 : vector<8x128xi1>, vector<8x128xf32>
    %cst_143 = arith.constant 0.000000e+00 : f32
    %493 = vector.broadcast %cst_143 : f32 to vector<8x128xf32>
    %494 = arith.select %384, %490, %493 : vector<8x128xi1>, vector<8x128xf32>
    %495 = arith.index_cast %c3_i32 : i32 to index
    %c0_144 = arith.constant 0 : index
    %c0_145 = arith.constant 0 : index
    %496 = vector.load %arg11[%495, %c0_144, %c0_145] : memref<8x8x128xf32, #tpu.memory_space<vmem>>, vector<1x8x128xf32>
    %497 = vector.shape_cast %496 : vector<1x8x128xf32> to vector<8x128xf32>
    %498 = vector.shape_cast %494 : vector<8x128xf32> to vector<1x8x128xf32>
    tpu.vector_store %arg11[%495, %c0_144, %c0_145], %498 {strides = array<i32>} : memref<8x8x128xf32, #tpu.memory_space<vmem>>, vector<1x8x128xf32>,
    %c4_i32 = arith.constant 4 : i32
    %499 = arith.addi %10, %c4_i32 : i32
    %500 = vector.broadcast %499 : i32 to vector<8x1xi32>
    %501 = arith.cmpi sgt, %3, %500 : vector<8x1xi32>
    %502 = vector.shape_cast %501 : vector<8x1xi1> to vector<8x1xi1>
    %503 = vector.broadcast %502 : vector<8x1xi1> to vector<8x128xi1>
    %504 = arith.truncf %423 : vector<8x128xf32> to vector<8x128xbf16>
    %c0_146 = arith.constant 0 : index
    %c0_147 = arith.constant 0 : index
    %505 = vector.load %arg4[%c0_146, %c0_147] : memref<128x512xbf16, #tpu.memory_space<vmem>>, vector<128x512xbf16>
    %cst_148 = arith.constant dense<0.000000e+00> : vector<8x512xf32>
    %506 = tpu.matmul %504, %505, %cst_148 {dimension_numbers = #tpu.dot_dimension_numbers<[1], [0], [0], [1], [0, 0, 1, 1], [], []>} : vector<8x128xbf16>, vector<128x512xbf16>, vector<8x512xf32> -> vector<8x512xf32>
    %507 = arith.truncf %457 : vector<8x128xf32> to vector<8x128xbf16>
    %c0_149 = arith.constant 0 : index
    %c0_150 = arith.constant 0 : index
    %508 = vector.load %arg6[%c0_149, %c0_150] : memref<128x512xbf16, #tpu.memory_space<vmem>>, vector<128x512xbf16>
    %cst_151 = arith.constant dense<0.000000e+00> : vector<8x512xf32>
    %509 = tpu.matmul %507, %508, %cst_151 {dimension_numbers = #tpu.dot_dimension_numbers<[1], [0], [0], [1], [0, 0, 1, 1], [], []>} : vector<8x128xbf16>, vector<128x512xbf16>, vector<8x512xf32> -> vector<8x512xf32>
    %510 = arith.truncf %491 : vector<8x128xf32> to vector<8x128xbf16>
    %c0_152 = arith.constant 0 : index
    %c0_153 = arith.constant 0 : index
    %511 = vector.load %arg8[%c0_152, %c0_153] : memref<128x512xbf16, #tpu.memory_space<vmem>>, vector<128x512xbf16>
    %cst_154 = arith.constant dense<0.000000e+00> : vector<8x512xf32>
    %512 = tpu.matmul %510, %511, %cst_154 {dimension_numbers = #tpu.dot_dimension_numbers<[1], [0], [0], [1], [0, 0, 1, 1], [], []>} : vector<8x128xbf16>, vector<128x512xbf16>, vector<8x512xf32> -> vector<8x512xf32>
    %513 = arith.index_cast %c4_i32 : i32 to index
    %c0_155 = arith.constant 0 : index
    %c0_156 = arith.constant 0 : index
    %514 = vector.load %arg3[%513, %c0_155, %c0_156] : memref<8x8x512xf32, #tpu.memory_space<vmem>>, vector<1x8x512xf32>
    %515 = vector.shape_cast %514 : vector<1x8x512xf32> to vector<8x512xf32>
    %516 = arith.addf %515, %506 : vector<8x512xf32>
    %517 = vector.extract_strided_slice %516 {offsets = [0, 0], sizes = [8, 128], strides = [1, 1]} : vector<8x512xf32> to vector<8x128xf32>
    %518 = arith.negf %517 : vector<8x128xf32>
    %519 = math.exp %518 : vector<8x128xf32>
    %cst_157 = arith.constant 1.000000e+00 : f32
    %520 = vector.broadcast %cst_157 : f32 to vector<8x128xf32>
    %521 = arith.addf %520, %519 : vector<8x128xf32>
    %522 = arith.divf %520, %521 : vector<8x128xf32>
    %523 = vector.extract_strided_slice %516 {offsets = [0, 128], sizes = [8, 128], strides = [1, 1]} : vector<8x512xf32> to vector<8x128xf32>
    %524 = arith.negf %523 : vector<8x128xf32>
    %525 = math.exp %524 : vector<8x128xf32>
    %cst_158 = arith.constant 1.000000e+00 : f32
    %526 = vector.broadcast %cst_158 : f32 to vector<8x128xf32>
    %527 = arith.addf %526, %525 : vector<8x128xf32>
    %528 = arith.divf %526, %527 : vector<8x128xf32>
    %529 = vector.extract_strided_slice %516 {offsets = [0, 256], sizes = [8, 128], strides = [1, 1]} : vector<8x512xf32> to vector<8x128xf32>
    %530 = math.tanh %529 : vector<8x128xf32>
    %531 = vector.extract_strided_slice %516 {offsets = [0, 384], sizes = [8, 128], strides = [1, 1]} : vector<8x512xf32> to vector<8x128xf32>
    %532 = arith.negf %531 : vector<8x128xf32>
    %533 = math.exp %532 : vector<8x128xf32>
    %cst_159 = arith.constant 1.000000e+00 : f32
    %534 = vector.broadcast %cst_159 : f32 to vector<8x128xf32>
    %535 = arith.addf %534, %533 : vector<8x128xf32>
    %536 = arith.divf %534, %535 : vector<8x128xf32>
    %537 = arith.mulf %528, %424 : vector<8x128xf32>
    %538 = arith.mulf %522, %530 : vector<8x128xf32>
    %539 = arith.addf %537, %538 : vector<8x128xf32>
    %540 = math.tanh %539 : vector<8x128xf32>
    %541 = arith.mulf %536, %540 : vector<8x128xf32>
    %542 = arith.select %503, %541, %423 : vector<8x128xi1>, vector<8x128xf32>
    %543 = arith.select %503, %539, %424 : vector<8x128xi1>, vector<8x128xf32>
    %cst_160 = arith.constant 0.000000e+00 : f32
    %544 = vector.broadcast %cst_160 : f32 to vector<8x128xf32>
    %545 = arith.select %503, %541, %544 : vector<8x128xi1>, vector<8x128xf32>
    %546 = arith.truncf %545 : vector<8x128xf32> to vector<8x128xbf16>
    %c0_161 = arith.constant 0 : index
    %c0_162 = arith.constant 0 : index
    %547 = vector.load %arg5[%c0_161, %c0_162] : memref<128x512xbf16, #tpu.memory_space<vmem>>, vector<128x512xbf16>
    %cst_163 = arith.constant dense<0.000000e+00> : vector<8x512xf32>
    %548 = tpu.matmul %546, %547, %cst_163 {dimension_numbers = #tpu.dot_dimension_numbers<[1], [0], [0], [1], [0, 0, 1, 1], [], []>} : vector<8x128xbf16>, vector<128x512xbf16>, vector<8x512xf32> -> vector<8x512xf32>
    %549 = arith.addf %548, %509 : vector<8x512xf32>
    %550 = arith.addf %549, %6 : vector<8x512xf32>
    %551 = vector.extract_strided_slice %550 {offsets = [0, 0], sizes = [8, 128], strides = [1, 1]} : vector<8x512xf32> to vector<8x128xf32>
    %552 = arith.negf %551 : vector<8x128xf32>
    %553 = math.exp %552 : vector<8x128xf32>
    %cst_164 = arith.constant 1.000000e+00 : f32
    %554 = vector.broadcast %cst_164 : f32 to vector<8x128xf32>
    %555 = arith.addf %554, %553 : vector<8x128xf32>
    %556 = arith.divf %554, %555 : vector<8x128xf32>
    %557 = vector.extract_strided_slice %550 {offsets = [0, 128], sizes = [8, 128], strides = [1, 1]} : vector<8x512xf32> to vector<8x128xf32>
    %558 = arith.negf %557 : vector<8x128xf32>
    %559 = math.exp %558 : vector<8x128xf32>
    %cst_165 = arith.constant 1.000000e+00 : f32
    %560 = vector.broadcast %cst_165 : f32 to vector<8x128xf32>
    %561 = arith.addf %560, %559 : vector<8x128xf32>
    %562 = arith.divf %560, %561 : vector<8x128xf32>
    %563 = vector.extract_strided_slice %550 {offsets = [0, 256], sizes = [8, 128], strides = [1, 1]} : vector<8x512xf32> to vector<8x128xf32>
    %564 = math.tanh %563 : vector<8x128xf32>
    %565 = vector.extract_strided_slice %550 {offsets = [0, 384], sizes = [8, 128], strides = [1, 1]} : vector<8x512xf32> to vector<8x128xf32>
    %566 = arith.negf %565 : vector<8x128xf32>
    %567 = math.exp %566 : vector<8x128xf32>
    %cst_166 = arith.constant 1.000000e+00 : f32
    %568 = vector.broadcast %cst_166 : f32 to vector<8x128xf32>
    %569 = arith.addf %568, %567 : vector<8x128xf32>
    %570 = arith.divf %568, %569 : vector<8x128xf32>
    %571 = arith.mulf %562, %458 : vector<8x128xf32>
    %572 = arith.mulf %556, %564 : vector<8x128xf32>
    %573 = arith.addf %571, %572 : vector<8x128xf32>
    %574 = math.tanh %573 : vector<8x128xf32>
    %575 = arith.mulf %570, %574 : vector<8x128xf32>
    %576 = arith.select %503, %575, %457 : vector<8x128xi1>, vector<8x128xf32>
    %577 = arith.select %503, %573, %458 : vector<8x128xi1>, vector<8x128xf32>
    %cst_167 = arith.constant 0.000000e+00 : f32
    %578 = vector.broadcast %cst_167 : f32 to vector<8x128xf32>
    %579 = arith.select %503, %575, %578 : vector<8x128xi1>, vector<8x128xf32>
    %580 = arith.truncf %579 : vector<8x128xf32> to vector<8x128xbf16>
    %c0_168 = arith.constant 0 : index
    %c0_169 = arith.constant 0 : index
    %581 = vector.load %arg7[%c0_168, %c0_169] : memref<128x512xbf16, #tpu.memory_space<vmem>>, vector<128x512xbf16>
    %cst_170 = arith.constant dense<0.000000e+00> : vector<8x512xf32>
    %582 = tpu.matmul %580, %581, %cst_170 {dimension_numbers = #tpu.dot_dimension_numbers<[1], [0], [0], [1], [0, 0, 1, 1], [], []>} : vector<8x128xbf16>, vector<128x512xbf16>, vector<8x512xf32> -> vector<8x512xf32>
    %583 = arith.addf %582, %512 : vector<8x512xf32>
    %584 = arith.addf %583, %9 : vector<8x512xf32>
    %585 = vector.extract_strided_slice %584 {offsets = [0, 0], sizes = [8, 128], strides = [1, 1]} : vector<8x512xf32> to vector<8x128xf32>
    %586 = arith.negf %585 : vector<8x128xf32>
    %587 = math.exp %586 : vector<8x128xf32>
    %cst_171 = arith.constant 1.000000e+00 : f32
    %588 = vector.broadcast %cst_171 : f32 to vector<8x128xf32>
    %589 = arith.addf %588, %587 : vector<8x128xf32>
    %590 = arith.divf %588, %589 : vector<8x128xf32>
    %591 = vector.extract_strided_slice %584 {offsets = [0, 128], sizes = [8, 128], strides = [1, 1]} : vector<8x512xf32> to vector<8x128xf32>
    %592 = arith.negf %591 : vector<8x128xf32>
    %593 = math.exp %592 : vector<8x128xf32>
    %cst_172 = arith.constant 1.000000e+00 : f32
    %594 = vector.broadcast %cst_172 : f32 to vector<8x128xf32>
    %595 = arith.addf %594, %593 : vector<8x128xf32>
    %596 = arith.divf %594, %595 : vector<8x128xf32>
    %597 = vector.extract_strided_slice %584 {offsets = [0, 256], sizes = [8, 128], strides = [1, 1]} : vector<8x512xf32> to vector<8x128xf32>
    %598 = math.tanh %597 : vector<8x128xf32>
    %599 = vector.extract_strided_slice %584 {offsets = [0, 384], sizes = [8, 128], strides = [1, 1]} : vector<8x512xf32> to vector<8x128xf32>
    %600 = arith.negf %599 : vector<8x128xf32>
    %601 = math.exp %600 : vector<8x128xf32>
    %cst_173 = arith.constant 1.000000e+00 : f32
    %602 = vector.broadcast %cst_173 : f32 to vector<8x128xf32>
    %603 = arith.addf %602, %601 : vector<8x128xf32>
    %604 = arith.divf %602, %603 : vector<8x128xf32>
    %605 = arith.mulf %596, %492 : vector<8x128xf32>
    %606 = arith.mulf %590, %598 : vector<8x128xf32>
    %607 = arith.addf %605, %606 : vector<8x128xf32>
    %608 = math.tanh %607 : vector<8x128xf32>
    %609 = arith.mulf %604, %608 : vector<8x128xf32>
    %610 = arith.select %503, %609, %491 : vector<8x128xi1>, vector<8x128xf32>
    %611 = arith.select %503, %607, %492 : vector<8x128xi1>, vector<8x128xf32>
    %cst_174 = arith.constant 0.000000e+00 : f32
    %612 = vector.broadcast %cst_174 : f32 to vector<8x128xf32>
    %613 = arith.select %503, %609, %612 : vector<8x128xi1>, vector<8x128xf32>
    %614 = arith.index_cast %c4_i32 : i32 to index
    %c0_175 = arith.constant 0 : index
    %c0_176 = arith.constant 0 : index
    %615 = vector.load %arg11[%614, %c0_175, %c0_176] : memref<8x8x128xf32, #tpu.memory_space<vmem>>, vector<1x8x128xf32>
    %616 = vector.shape_cast %615 : vector<1x8x128xf32> to vector<8x128xf32>
    %617 = vector.shape_cast %613 : vector<8x128xf32> to vector<1x8x128xf32>
    tpu.vector_store %arg11[%614, %c0_175, %c0_176], %617 {strides = array<i32>} : memref<8x8x128xf32, #tpu.memory_space<vmem>>, vector<1x8x128xf32>,
    %c5_i32 = arith.constant 5 : i32
    %618 = arith.addi %10, %c5_i32 : i32
    %619 = vector.broadcast %618 : i32 to vector<8x1xi32>
    %620 = arith.cmpi sgt, %3, %619 : vector<8x1xi32>
    %621 = vector.shape_cast %620 : vector<8x1xi1> to vector<8x1xi1>
    %622 = vector.broadcast %621 : vector<8x1xi1> to vector<8x128xi1>
    %623 = arith.truncf %542 : vector<8x128xf32> to vector<8x128xbf16>
    %c0_177 = arith.constant 0 : index
    %c0_178 = arith.constant 0 : index
    %624 = vector.load %arg4[%c0_177, %c0_178] : memref<128x512xbf16, #tpu.memory_space<vmem>>, vector<128x512xbf16>
    %cst_179 = arith.constant dense<0.000000e+00> : vector<8x512xf32>
    %625 = tpu.matmul %623, %624, %cst_179 {dimension_numbers = #tpu.dot_dimension_numbers<[1], [0], [0], [1], [0, 0, 1, 1], [], []>} : vector<8x128xbf16>, vector<128x512xbf16>, vector<8x512xf32> -> vector<8x512xf32>
    %626 = arith.truncf %576 : vector<8x128xf32> to vector<8x128xbf16>
    %c0_180 = arith.constant 0 : index
    %c0_181 = arith.constant 0 : index
    %627 = vector.load %arg6[%c0_180, %c0_181] : memref<128x512xbf16, #tpu.memory_space<vmem>>, vector<128x512xbf16>
    %cst_182 = arith.constant dense<0.000000e+00> : vector<8x512xf32>
    %628 = tpu.matmul %626, %627, %cst_182 {dimension_numbers = #tpu.dot_dimension_numbers<[1], [0], [0], [1], [0, 0, 1, 1], [], []>} : vector<8x128xbf16>, vector<128x512xbf16>, vector<8x512xf32> -> vector<8x512xf32>
    %629 = arith.truncf %610 : vector<8x128xf32> to vector<8x128xbf16>
    %c0_183 = arith.constant 0 : index
    %c0_184 = arith.constant 0 : index
    %630 = vector.load %arg8[%c0_183, %c0_184] : memref<128x512xbf16, #tpu.memory_space<vmem>>, vector<128x512xbf16>
    %cst_185 = arith.constant dense<0.000000e+00> : vector<8x512xf32>
    %631 = tpu.matmul %629, %630, %cst_185 {dimension_numbers = #tpu.dot_dimension_numbers<[1], [0], [0], [1], [0, 0, 1, 1], [], []>} : vector<8x128xbf16>, vector<128x512xbf16>, vector<8x512xf32> -> vector<8x512xf32>
    %632 = arith.index_cast %c5_i32 : i32 to index
    %c0_186 = arith.constant 0 : index
    %c0_187 = arith.constant 0 : index
    %633 = vector.load %arg3[%632, %c0_186, %c0_187] : memref<8x8x512xf32, #tpu.memory_space<vmem>>, vector<1x8x512xf32>
    %634 = vector.shape_cast %633 : vector<1x8x512xf32> to vector<8x512xf32>
    %635 = arith.addf %634, %625 : vector<8x512xf32>
    %636 = vector.extract_strided_slice %635 {offsets = [0, 0], sizes = [8, 128], strides = [1, 1]} : vector<8x512xf32> to vector<8x128xf32>
    %637 = arith.negf %636 : vector<8x128xf32>
    %638 = math.exp %637 : vector<8x128xf32>
    %cst_188 = arith.constant 1.000000e+00 : f32
    %639 = vector.broadcast %cst_188 : f32 to vector<8x128xf32>
    %640 = arith.addf %639, %638 : vector<8x128xf32>
    %641 = arith.divf %639, %640 : vector<8x128xf32>
    %642 = vector.extract_strided_slice %635 {offsets = [0, 128], sizes = [8, 128], strides = [1, 1]} : vector<8x512xf32> to vector<8x128xf32>
    %643 = arith.negf %642 : vector<8x128xf32>
    %644 = math.exp %643 : vector<8x128xf32>
    %cst_189 = arith.constant 1.000000e+00 : f32
    %645 = vector.broadcast %cst_189 : f32 to vector<8x128xf32>
    %646 = arith.addf %645, %644 : vector<8x128xf32>
    %647 = arith.divf %645, %646 : vector<8x128xf32>
    %648 = vector.extract_strided_slice %635 {offsets = [0, 256], sizes = [8, 128], strides = [1, 1]} : vector<8x512xf32> to vector<8x128xf32>
    %649 = math.tanh %648 : vector<8x128xf32>
    %650 = vector.extract_strided_slice %635 {offsets = [0, 384], sizes = [8, 128], strides = [1, 1]} : vector<8x512xf32> to vector<8x128xf32>
    %651 = arith.negf %650 : vector<8x128xf32>
    %652 = math.exp %651 : vector<8x128xf32>
    %cst_190 = arith.constant 1.000000e+00 : f32
    %653 = vector.broadcast %cst_190 : f32 to vector<8x128xf32>
    %654 = arith.addf %653, %652 : vector<8x128xf32>
    %655 = arith.divf %653, %654 : vector<8x128xf32>
    %656 = arith.mulf %647, %543 : vector<8x128xf32>
    %657 = arith.mulf %641, %649 : vector<8x128xf32>
    %658 = arith.addf %656, %657 : vector<8x128xf32>
    %659 = math.tanh %658 : vector<8x128xf32>
    %660 = arith.mulf %655, %659 : vector<8x128xf32>
    %661 = arith.select %622, %660, %542 : vector<8x128xi1>, vector<8x128xf32>
    %662 = arith.select %622, %658, %543 : vector<8x128xi1>, vector<8x128xf32>
    %cst_191 = arith.constant 0.000000e+00 : f32
    %663 = vector.broadcast %cst_191 : f32 to vector<8x128xf32>
    %664 = arith.select %622, %660, %663 : vector<8x128xi1>, vector<8x128xf32>
    %665 = arith.truncf %664 : vector<8x128xf32> to vector<8x128xbf16>
    %c0_192 = arith.constant 0 : index
    %c0_193 = arith.constant 0 : index
    %666 = vector.load %arg5[%c0_192, %c0_193] : memref<128x512xbf16, #tpu.memory_space<vmem>>, vector<128x512xbf16>
    %cst_194 = arith.constant dense<0.000000e+00> : vector<8x512xf32>
    %667 = tpu.matmul %665, %666, %cst_194 {dimension_numbers = #tpu.dot_dimension_numbers<[1], [0], [0], [1], [0, 0, 1, 1], [], []>} : vector<8x128xbf16>, vector<128x512xbf16>, vector<8x512xf32> -> vector<8x512xf32>
    %668 = arith.addf %667, %628 : vector<8x512xf32>
    %669 = arith.addf %668, %6 : vector<8x512xf32>
    %670 = vector.extract_strided_slice %669 {offsets = [0, 0], sizes = [8, 128], strides = [1, 1]} : vector<8x512xf32> to vector<8x128xf32>
    %671 = arith.negf %670 : vector<8x128xf32>
    %672 = math.exp %671 : vector<8x128xf32>
    %cst_195 = arith.constant 1.000000e+00 : f32
    %673 = vector.broadcast %cst_195 : f32 to vector<8x128xf32>
    %674 = arith.addf %673, %672 : vector<8x128xf32>
    %675 = arith.divf %673, %674 : vector<8x128xf32>
    %676 = vector.extract_strided_slice %669 {offsets = [0, 128], sizes = [8, 128], strides = [1, 1]} : vector<8x512xf32> to vector<8x128xf32>
    %677 = arith.negf %676 : vector<8x128xf32>
    %678 = math.exp %677 : vector<8x128xf32>
    %cst_196 = arith.constant 1.000000e+00 : f32
    %679 = vector.broadcast %cst_196 : f32 to vector<8x128xf32>
    %680 = arith.addf %679, %678 : vector<8x128xf32>
    %681 = arith.divf %679, %680 : vector<8x128xf32>
    %682 = vector.extract_strided_slice %669 {offsets = [0, 256], sizes = [8, 128], strides = [1, 1]} : vector<8x512xf32> to vector<8x128xf32>
    %683 = math.tanh %682 : vector<8x128xf32>
    %684 = vector.extract_strided_slice %669 {offsets = [0, 384], sizes = [8, 128], strides = [1, 1]} : vector<8x512xf32> to vector<8x128xf32>
    %685 = arith.negf %684 : vector<8x128xf32>
    %686 = math.exp %685 : vector<8x128xf32>
    %cst_197 = arith.constant 1.000000e+00 : f32
    %687 = vector.broadcast %cst_197 : f32 to vector<8x128xf32>
    %688 = arith.addf %687, %686 : vector<8x128xf32>
    %689 = arith.divf %687, %688 : vector<8x128xf32>
    %690 = arith.mulf %681, %577 : vector<8x128xf32>
    %691 = arith.mulf %675, %683 : vector<8x128xf32>
    %692 = arith.addf %690, %691 : vector<8x128xf32>
    %693 = math.tanh %692 : vector<8x128xf32>
    %694 = arith.mulf %689, %693 : vector<8x128xf32>
    %695 = arith.select %622, %694, %576 : vector<8x128xi1>, vector<8x128xf32>
    %696 = arith.select %622, %692, %577 : vector<8x128xi1>, vector<8x128xf32>
    %cst_198 = arith.constant 0.000000e+00 : f32
    %697 = vector.broadcast %cst_198 : f32 to vector<8x128xf32>
    %698 = arith.select %622, %694, %697 : vector<8x128xi1>, vector<8x128xf32>
    %699 = arith.truncf %698 : vector<8x128xf32> to vector<8x128xbf16>
    %c0_199 = arith.constant 0 : index
    %c0_200 = arith.constant 0 : index
    %700 = vector.load %arg7[%c0_199, %c0_200] : memref<128x512xbf16, #tpu.memory_space<vmem>>, vector<128x512xbf16>
    %cst_201 = arith.constant dense<0.000000e+00> : vector<8x512xf32>
    %701 = tpu.matmul %699, %700, %cst_201 {dimension_numbers = #tpu.dot_dimension_numbers<[1], [0], [0], [1], [0, 0, 1, 1], [], []>} : vector<8x128xbf16>, vector<128x512xbf16>, vector<8x512xf32> -> vector<8x512xf32>
    %702 = arith.addf %701, %631 : vector<8x512xf32>
    %703 = arith.addf %702, %9 : vector<8x512xf32>
    %704 = vector.extract_strided_slice %703 {offsets = [0, 0], sizes = [8, 128], strides = [1, 1]} : vector<8x512xf32> to vector<8x128xf32>
    %705 = arith.negf %704 : vector<8x128xf32>
    %706 = math.exp %705 : vector<8x128xf32>
    %cst_202 = arith.constant 1.000000e+00 : f32
    %707 = vector.broadcast %cst_202 : f32 to vector<8x128xf32>
    %708 = arith.addf %707, %706 : vector<8x128xf32>
    %709 = arith.divf %707, %708 : vector<8x128xf32>
    %710 = vector.extract_strided_slice %703 {offsets = [0, 128], sizes = [8, 128], strides = [1, 1]} : vector<8x512xf32> to vector<8x128xf32>
    %711 = arith.negf %710 : vector<8x128xf32>
    %712 = math.exp %711 : vector<8x128xf32>
    %cst_203 = arith.constant 1.000000e+00 : f32
    %713 = vector.broadcast %cst_203 : f32 to vector<8x128xf32>
    %714 = arith.addf %713, %712 : vector<8x128xf32>
    %715 = arith.divf %713, %714 : vector<8x128xf32>
    %716 = vector.extract_strided_slice %703 {offsets = [0, 256], sizes = [8, 128], strides = [1, 1]} : vector<8x512xf32> to vector<8x128xf32>
    %717 = math.tanh %716 : vector<8x128xf32>
    %718 = vector.extract_strided_slice %703 {offsets = [0, 384], sizes = [8, 128], strides = [1, 1]} : vector<8x512xf32> to vector<8x128xf32>
    %719 = arith.negf %718 : vector<8x128xf32>
    %720 = math.exp %719 : vector<8x128xf32>
    %cst_204 = arith.constant 1.000000e+00 : f32
    %721 = vector.broadcast %cst_204 : f32 to vector<8x128xf32>
    %722 = arith.addf %721, %720 : vector<8x128xf32>
    %723 = arith.divf %721, %722 : vector<8x128xf32>
    %724 = arith.mulf %715, %611 : vector<8x128xf32>
    %725 = arith.mulf %709, %717 : vector<8x128xf32>
    %726 = arith.addf %724, %725 : vector<8x128xf32>
    %727 = math.tanh %726 : vector<8x128xf32>
    %728 = arith.mulf %723, %727 : vector<8x128xf32>
    %729 = arith.select %622, %728, %610 : vector<8x128xi1>, vector<8x128xf32>
    %730 = arith.select %622, %726, %611 : vector<8x128xi1>, vector<8x128xf32>
    %cst_205 = arith.constant 0.000000e+00 : f32
    %731 = vector.broadcast %cst_205 : f32 to vector<8x128xf32>
    %732 = arith.select %622, %728, %731 : vector<8x128xi1>, vector<8x128xf32>
    %733 = arith.index_cast %c5_i32 : i32 to index
    %c0_206 = arith.constant 0 : index
    %c0_207 = arith.constant 0 : index
    %734 = vector.load %arg11[%733, %c0_206, %c0_207] : memref<8x8x128xf32, #tpu.memory_space<vmem>>, vector<1x8x128xf32>
    %735 = vector.shape_cast %734 : vector<1x8x128xf32> to vector<8x128xf32>
    %736 = vector.shape_cast %732 : vector<8x128xf32> to vector<1x8x128xf32>
    tpu.vector_store %arg11[%733, %c0_206, %c0_207], %736 {strides = array<i32>} : memref<8x8x128xf32, #tpu.memory_space<vmem>>, vector<1x8x128xf32>,
    %c6_i32 = arith.constant 6 : i32
    %737 = arith.addi %10, %c6_i32 : i32
    %738 = vector.broadcast %737 : i32 to vector<8x1xi32>
    %739 = arith.cmpi sgt, %3, %738 : vector<8x1xi32>
    %740 = vector.shape_cast %739 : vector<8x1xi1> to vector<8x1xi1>
    %741 = vector.broadcast %740 : vector<8x1xi1> to vector<8x128xi1>
    %742 = arith.truncf %661 : vector<8x128xf32> to vector<8x128xbf16>
    %c0_208 = arith.constant 0 : index
    %c0_209 = arith.constant 0 : index
    %743 = vector.load %arg4[%c0_208, %c0_209] : memref<128x512xbf16, #tpu.memory_space<vmem>>, vector<128x512xbf16>
    %cst_210 = arith.constant dense<0.000000e+00> : vector<8x512xf32>
    %744 = tpu.matmul %742, %743, %cst_210 {dimension_numbers = #tpu.dot_dimension_numbers<[1], [0], [0], [1], [0, 0, 1, 1], [], []>} : vector<8x128xbf16>, vector<128x512xbf16>, vector<8x512xf32> -> vector<8x512xf32>
    %745 = arith.truncf %695 : vector<8x128xf32> to vector<8x128xbf16>
    %c0_211 = arith.constant 0 : index
    %c0_212 = arith.constant 0 : index
    %746 = vector.load %arg6[%c0_211, %c0_212] : memref<128x512xbf16, #tpu.memory_space<vmem>>, vector<128x512xbf16>
    %cst_213 = arith.constant dense<0.000000e+00> : vector<8x512xf32>
    %747 = tpu.matmul %745, %746, %cst_213 {dimension_numbers = #tpu.dot_dimension_numbers<[1], [0], [0], [1], [0, 0, 1, 1], [], []>} : vector<8x128xbf16>, vector<128x512xbf16>, vector<8x512xf32> -> vector<8x512xf32>
    %748 = arith.truncf %729 : vector<8x128xf32> to vector<8x128xbf16>
    %c0_214 = arith.constant 0 : index
    %c0_215 = arith.constant 0 : index
    %749 = vector.load %arg8[%c0_214, %c0_215] : memref<128x512xbf16, #tpu.memory_space<vmem>>, vector<128x512xbf16>
    %cst_216 = arith.constant dense<0.000000e+00> : vector<8x512xf32>
    %750 = tpu.matmul %748, %749, %cst_216 {dimension_numbers = #tpu.dot_dimension_numbers<[1], [0], [0], [1], [0, 0, 1, 1], [], []>} : vector<8x128xbf16>, vector<128x512xbf16>, vector<8x512xf32> -> vector<8x512xf32>
    %751 = arith.index_cast %c6_i32 : i32 to index
    %c0_217 = arith.constant 0 : index
    %c0_218 = arith.constant 0 : index
    %752 = vector.load %arg3[%751, %c0_217, %c0_218] : memref<8x8x512xf32, #tpu.memory_space<vmem>>, vector<1x8x512xf32>
    %753 = vector.shape_cast %752 : vector<1x8x512xf32> to vector<8x512xf32>
    %754 = arith.addf %753, %744 : vector<8x512xf32>
    %755 = vector.extract_strided_slice %754 {offsets = [0, 0], sizes = [8, 128], strides = [1, 1]} : vector<8x512xf32> to vector<8x128xf32>
    %756 = arith.negf %755 : vector<8x128xf32>
    %757 = math.exp %756 : vector<8x128xf32>
    %cst_219 = arith.constant 1.000000e+00 : f32
    %758 = vector.broadcast %cst_219 : f32 to vector<8x128xf32>
    %759 = arith.addf %758, %757 : vector<8x128xf32>
    %760 = arith.divf %758, %759 : vector<8x128xf32>
    %761 = vector.extract_strided_slice %754 {offsets = [0, 128], sizes = [8, 128], strides = [1, 1]} : vector<8x512xf32> to vector<8x128xf32>
    %762 = arith.negf %761 : vector<8x128xf32>
    %763 = math.exp %762 : vector<8x128xf32>
    %cst_220 = arith.constant 1.000000e+00 : f32
    %764 = vector.broadcast %cst_220 : f32 to vector<8x128xf32>
    %765 = arith.addf %764, %763 : vector<8x128xf32>
    %766 = arith.divf %764, %765 : vector<8x128xf32>
    %767 = vector.extract_strided_slice %754 {offsets = [0, 256], sizes = [8, 128], strides = [1, 1]} : vector<8x512xf32> to vector<8x128xf32>
    %768 = math.tanh %767 : vector<8x128xf32>
    %769 = vector.extract_strided_slice %754 {offsets = [0, 384], sizes = [8, 128], strides = [1, 1]} : vector<8x512xf32> to vector<8x128xf32>
    %770 = arith.negf %769 : vector<8x128xf32>
    %771 = math.exp %770 : vector<8x128xf32>
    %cst_221 = arith.constant 1.000000e+00 : f32
    %772 = vector.broadcast %cst_221 : f32 to vector<8x128xf32>
    %773 = arith.addf %772, %771 : vector<8x128xf32>
    %774 = arith.divf %772, %773 : vector<8x128xf32>
    %775 = arith.mulf %766, %662 : vector<8x128xf32>
    %776 = arith.mulf %760, %768 : vector<8x128xf32>
    %777 = arith.addf %775, %776 : vector<8x128xf32>
    %778 = math.tanh %777 : vector<8x128xf32>
    %779 = arith.mulf %774, %778 : vector<8x128xf32>
    %780 = arith.select %741, %779, %661 : vector<8x128xi1>, vector<8x128xf32>
    %781 = arith.select %741, %777, %662 : vector<8x128xi1>, vector<8x128xf32>
    %cst_222 = arith.constant 0.000000e+00 : f32
    %782 = vector.broadcast %cst_222 : f32 to vector<8x128xf32>
    %783 = arith.select %741, %779, %782 : vector<8x128xi1>, vector<8x128xf32>
    %784 = arith.truncf %783 : vector<8x128xf32> to vector<8x128xbf16>
    %c0_223 = arith.constant 0 : index
    %c0_224 = arith.constant 0 : index
    %785 = vector.load %arg5[%c0_223, %c0_224] : memref<128x512xbf16, #tpu.memory_space<vmem>>, vector<128x512xbf16>
    %cst_225 = arith.constant dense<0.000000e+00> : vector<8x512xf32>
    %786 = tpu.matmul %784, %785, %cst_225 {dimension_numbers = #tpu.dot_dimension_numbers<[1], [0], [0], [1], [0, 0, 1, 1], [], []>} : vector<8x128xbf16>, vector<128x512xbf16>, vector<8x512xf32> -> vector<8x512xf32>
    %787 = arith.addf %786, %747 : vector<8x512xf32>
    %788 = arith.addf %787, %6 : vector<8x512xf32>
    %789 = vector.extract_strided_slice %788 {offsets = [0, 0], sizes = [8, 128], strides = [1, 1]} : vector<8x512xf32> to vector<8x128xf32>
    %790 = arith.negf %789 : vector<8x128xf32>
    %791 = math.exp %790 : vector<8x128xf32>
    %cst_226 = arith.constant 1.000000e+00 : f32
    %792 = vector.broadcast %cst_226 : f32 to vector<8x128xf32>
    %793 = arith.addf %792, %791 : vector<8x128xf32>
    %794 = arith.divf %792, %793 : vector<8x128xf32>
    %795 = vector.extract_strided_slice %788 {offsets = [0, 128], sizes = [8, 128], strides = [1, 1]} : vector<8x512xf32> to vector<8x128xf32>
    %796 = arith.negf %795 : vector<8x128xf32>
    %797 = math.exp %796 : vector<8x128xf32>
    %cst_227 = arith.constant 1.000000e+00 : f32
    %798 = vector.broadcast %cst_227 : f32 to vector<8x128xf32>
    %799 = arith.addf %798, %797 : vector<8x128xf32>
    %800 = arith.divf %798, %799 : vector<8x128xf32>
    %801 = vector.extract_strided_slice %788 {offsets = [0, 256], sizes = [8, 128], strides = [1, 1]} : vector<8x512xf32> to vector<8x128xf32>
    %802 = math.tanh %801 : vector<8x128xf32>
    %803 = vector.extract_strided_slice %788 {offsets = [0, 384], sizes = [8, 128], strides = [1, 1]} : vector<8x512xf32> to vector<8x128xf32>
    %804 = arith.negf %803 : vector<8x128xf32>
    %805 = math.exp %804 : vector<8x128xf32>
    %cst_228 = arith.constant 1.000000e+00 : f32
    %806 = vector.broadcast %cst_228 : f32 to vector<8x128xf32>
    %807 = arith.addf %806, %805 : vector<8x128xf32>
    %808 = arith.divf %806, %807 : vector<8x128xf32>
    %809 = arith.mulf %800, %696 : vector<8x128xf32>
    %810 = arith.mulf %794, %802 : vector<8x128xf32>
    %811 = arith.addf %809, %810 : vector<8x128xf32>
    %812 = math.tanh %811 : vector<8x128xf32>
    %813 = arith.mulf %808, %812 : vector<8x128xf32>
    %814 = arith.select %741, %813, %695 : vector<8x128xi1>, vector<8x128xf32>
    %815 = arith.select %741, %811, %696 : vector<8x128xi1>, vector<8x128xf32>
    %cst_229 = arith.constant 0.000000e+00 : f32
    %816 = vector.broadcast %cst_229 : f32 to vector<8x128xf32>
    %817 = arith.select %741, %813, %816 : vector<8x128xi1>, vector<8x128xf32>
    %818 = arith.truncf %817 : vector<8x128xf32> to vector<8x128xbf16>
    %c0_230 = arith.constant 0 : index
    %c0_231 = arith.constant 0 : index
    %819 = vector.load %arg7[%c0_230, %c0_231] : memref<128x512xbf16, #tpu.memory_space<vmem>>, vector<128x512xbf16>
    %cst_232 = arith.constant dense<0.000000e+00> : vector<8x512xf32>
    %820 = tpu.matmul %818, %819, %cst_232 {dimension_numbers = #tpu.dot_dimension_numbers<[1], [0], [0], [1], [0, 0, 1, 1], [], []>} : vector<8x128xbf16>, vector<128x512xbf16>, vector<8x512xf32> -> vector<8x512xf32>
    %821 = arith.addf %820, %750 : vector<8x512xf32>
    %822 = arith.addf %821, %9 : vector<8x512xf32>
    %823 = vector.extract_strided_slice %822 {offsets = [0, 0], sizes = [8, 128], strides = [1, 1]} : vector<8x512xf32> to vector<8x128xf32>
    %824 = arith.negf %823 : vector<8x128xf32>
    %825 = math.exp %824 : vector<8x128xf32>
    %cst_233 = arith.constant 1.000000e+00 : f32
    %826 = vector.broadcast %cst_233 : f32 to vector<8x128xf32>
    %827 = arith.addf %826, %825 : vector<8x128xf32>
    %828 = arith.divf %826, %827 : vector<8x128xf32>
    %829 = vector.extract_strided_slice %822 {offsets = [0, 128], sizes = [8, 128], strides = [1, 1]} : vector<8x512xf32> to vector<8x128xf32>
    %830 = arith.negf %829 : vector<8x128xf32>
    %831 = math.exp %830 : vector<8x128xf32>
    %cst_234 = arith.constant 1.000000e+00 : f32
    %832 = vector.broadcast %cst_234 : f32 to vector<8x128xf32>
    %833 = arith.addf %832, %831 : vector<8x128xf32>
    %834 = arith.divf %832, %833 : vector<8x128xf32>
    %835 = vector.extract_strided_slice %822 {offsets = [0, 256], sizes = [8, 128], strides = [1, 1]} : vector<8x512xf32> to vector<8x128xf32>
    %836 = math.tanh %835 : vector<8x128xf32>
    %837 = vector.extract_strided_slice %822 {offsets = [0, 384], sizes = [8, 128], strides = [1, 1]} : vector<8x512xf32> to vector<8x128xf32>
    %838 = arith.negf %837 : vector<8x128xf32>
    %839 = math.exp %838 : vector<8x128xf32>
    %cst_235 = arith.constant 1.000000e+00 : f32
    %840 = vector.broadcast %cst_235 : f32 to vector<8x128xf32>
    %841 = arith.addf %840, %839 : vector<8x128xf32>
    %842 = arith.divf %840, %841 : vector<8x128xf32>
    %843 = arith.mulf %834, %730 : vector<8x128xf32>
    %844 = arith.mulf %828, %836 : vector<8x128xf32>
    %845 = arith.addf %843, %844 : vector<8x128xf32>
    %846 = math.tanh %845 : vector<8x128xf32>
    %847 = arith.mulf %842, %846 : vector<8x128xf32>
    %848 = arith.select %741, %847, %729 : vector<8x128xi1>, vector<8x128xf32>
    %849 = arith.select %741, %845, %730 : vector<8x128xi1>, vector<8x128xf32>
    %cst_236 = arith.constant 0.000000e+00 : f32
    %850 = vector.broadcast %cst_236 : f32 to vector<8x128xf32>
    %851 = arith.select %741, %847, %850 : vector<8x128xi1>, vector<8x128xf32>
    %852 = arith.index_cast %c6_i32 : i32 to index
    %c0_237 = arith.constant 0 : index
    %c0_238 = arith.constant 0 : index
    %853 = vector.load %arg11[%852, %c0_237, %c0_238] : memref<8x8x128xf32, #tpu.memory_space<vmem>>, vector<1x8x128xf32>
    %854 = vector.shape_cast %853 : vector<1x8x128xf32> to vector<8x128xf32>
    %855 = vector.shape_cast %851 : vector<8x128xf32> to vector<1x8x128xf32>
    tpu.vector_store %arg11[%852, %c0_237, %c0_238], %855 {strides = array<i32>} : memref<8x8x128xf32, #tpu.memory_space<vmem>>, vector<1x8x128xf32>,
    %c7_i32 = arith.constant 7 : i32
    %856 = arith.addi %10, %c7_i32 : i32
    %857 = vector.broadcast %856 : i32 to vector<8x1xi32>
    %858 = arith.cmpi sgt, %3, %857 : vector<8x1xi32>
    %859 = vector.shape_cast %858 : vector<8x1xi1> to vector<8x1xi1>
    %860 = vector.broadcast %859 : vector<8x1xi1> to vector<8x128xi1>
    %861 = arith.truncf %780 : vector<8x128xf32> to vector<8x128xbf16>
    %c0_239 = arith.constant 0 : index
    %c0_240 = arith.constant 0 : index
    %862 = vector.load %arg4[%c0_239, %c0_240] : memref<128x512xbf16, #tpu.memory_space<vmem>>, vector<128x512xbf16>
    %cst_241 = arith.constant dense<0.000000e+00> : vector<8x512xf32>
    %863 = tpu.matmul %861, %862, %cst_241 {dimension_numbers = #tpu.dot_dimension_numbers<[1], [0], [0], [1], [0, 0, 1, 1], [], []>} : vector<8x128xbf16>, vector<128x512xbf16>, vector<8x512xf32> -> vector<8x512xf32>
    %864 = arith.truncf %814 : vector<8x128xf32> to vector<8x128xbf16>
    %c0_242 = arith.constant 0 : index
    %c0_243 = arith.constant 0 : index
    %865 = vector.load %arg6[%c0_242, %c0_243] : memref<128x512xbf16, #tpu.memory_space<vmem>>, vector<128x512xbf16>
    %cst_244 = arith.constant dense<0.000000e+00> : vector<8x512xf32>
    %866 = tpu.matmul %864, %865, %cst_244 {dimension_numbers = #tpu.dot_dimension_numbers<[1], [0], [0], [1], [0, 0, 1, 1], [], []>} : vector<8x128xbf16>, vector<128x512xbf16>, vector<8x512xf32> -> vector<8x512xf32>
    %867 = arith.truncf %848 : vector<8x128xf32> to vector<8x128xbf16>
    %c0_245 = arith.constant 0 : index
    %c0_246 = arith.constant 0 : index
    %868 = vector.load %arg8[%c0_245, %c0_246] : memref<128x512xbf16, #tpu.memory_space<vmem>>, vector<128x512xbf16>
    %cst_247 = arith.constant dense<0.000000e+00> : vector<8x512xf32>
    %869 = tpu.matmul %867, %868, %cst_247 {dimension_numbers = #tpu.dot_dimension_numbers<[1], [0], [0], [1], [0, 0, 1, 1], [], []>} : vector<8x128xbf16>, vector<128x512xbf16>, vector<8x512xf32> -> vector<8x512xf32>
    %870 = arith.index_cast %c7_i32 : i32 to index
    %c0_248 = arith.constant 0 : index
    %c0_249 = arith.constant 0 : index
    %871 = vector.load %arg3[%870, %c0_248, %c0_249] : memref<8x8x512xf32, #tpu.memory_space<vmem>>, vector<1x8x512xf32>
    %872 = vector.shape_cast %871 : vector<1x8x512xf32> to vector<8x512xf32>
    %873 = arith.addf %872, %863 : vector<8x512xf32>
    %874 = vector.extract_strided_slice %873 {offsets = [0, 0], sizes = [8, 128], strides = [1, 1]} : vector<8x512xf32> to vector<8x128xf32>
    %875 = arith.negf %874 : vector<8x128xf32>
    %876 = math.exp %875 : vector<8x128xf32>
    %cst_250 = arith.constant 1.000000e+00 : f32
    %877 = vector.broadcast %cst_250 : f32 to vector<8x128xf32>
    %878 = arith.addf %877, %876 : vector<8x128xf32>
    %879 = arith.divf %877, %878 : vector<8x128xf32>
    %880 = vector.extract_strided_slice %873 {offsets = [0, 128], sizes = [8, 128], strides = [1, 1]} : vector<8x512xf32> to vector<8x128xf32>
    %881 = arith.negf %880 : vector<8x128xf32>
    %882 = math.exp %881 : vector<8x128xf32>
    %cst_251 = arith.constant 1.000000e+00 : f32
    %883 = vector.broadcast %cst_251 : f32 to vector<8x128xf32>
    %884 = arith.addf %883, %882 : vector<8x128xf32>
    %885 = arith.divf %883, %884 : vector<8x128xf32>
    %886 = vector.extract_strided_slice %873 {offsets = [0, 256], sizes = [8, 128], strides = [1, 1]} : vector<8x512xf32> to vector<8x128xf32>
    %887 = math.tanh %886 : vector<8x128xf32>
    %888 = vector.extract_strided_slice %873 {offsets = [0, 384], sizes = [8, 128], strides = [1, 1]} : vector<8x512xf32> to vector<8x128xf32>
    %889 = arith.negf %888 : vector<8x128xf32>
    %890 = math.exp %889 : vector<8x128xf32>
    %cst_252 = arith.constant 1.000000e+00 : f32
    %891 = vector.broadcast %cst_252 : f32 to vector<8x128xf32>
    %892 = arith.addf %891, %890 : vector<8x128xf32>
    %893 = arith.divf %891, %892 : vector<8x128xf32>
    %894 = arith.mulf %885, %781 : vector<8x128xf32>
    %895 = arith.mulf %879, %887 : vector<8x128xf32>
    %896 = arith.addf %894, %895 : vector<8x128xf32>
    %897 = math.tanh %896 : vector<8x128xf32>
    %898 = arith.mulf %893, %897 : vector<8x128xf32>
    %899 = arith.select %860, %898, %780 : vector<8x128xi1>, vector<8x128xf32>
    %900 = arith.select %860, %896, %781 : vector<8x128xi1>, vector<8x128xf32>
    %cst_253 = arith.constant 0.000000e+00 : f32
    %901 = vector.broadcast %cst_253 : f32 to vector<8x128xf32>
    %902 = arith.select %860, %898, %901 : vector<8x128xi1>, vector<8x128xf32>
    %903 = arith.truncf %902 : vector<8x128xf32> to vector<8x128xbf16>
    %c0_254 = arith.constant 0 : index
    %c0_255 = arith.constant 0 : index
    %904 = vector.load %arg5[%c0_254, %c0_255] : memref<128x512xbf16, #tpu.memory_space<vmem>>, vector<128x512xbf16>
    %cst_256 = arith.constant dense<0.000000e+00> : vector<8x512xf32>
    %905 = tpu.matmul %903, %904, %cst_256 {dimension_numbers = #tpu.dot_dimension_numbers<[1], [0], [0], [1], [0, 0, 1, 1], [], []>} : vector<8x128xbf16>, vector<128x512xbf16>, vector<8x512xf32> -> vector<8x512xf32>
    %906 = arith.addf %905, %866 : vector<8x512xf32>
    %907 = arith.addf %906, %6 : vector<8x512xf32>
    %908 = vector.extract_strided_slice %907 {offsets = [0, 0], sizes = [8, 128], strides = [1, 1]} : vector<8x512xf32> to vector<8x128xf32>
    %909 = arith.negf %908 : vector<8x128xf32>
    %910 = math.exp %909 : vector<8x128xf32>
    %cst_257 = arith.constant 1.000000e+00 : f32
    %911 = vector.broadcast %cst_257 : f32 to vector<8x128xf32>
    %912 = arith.addf %911, %910 : vector<8x128xf32>
    %913 = arith.divf %911, %912 : vector<8x128xf32>
    %914 = vector.extract_strided_slice %907 {offsets = [0, 128], sizes = [8, 128], strides = [1, 1]} : vector<8x512xf32> to vector<8x128xf32>
    %915 = arith.negf %914 : vector<8x128xf32>
    %916 = math.exp %915 : vector<8x128xf32>
    %cst_258 = arith.constant 1.000000e+00 : f32
    %917 = vector.broadcast %cst_258 : f32 to vector<8x128xf32>
    %918 = arith.addf %917, %916 : vector<8x128xf32>
    %919 = arith.divf %917, %918 : vector<8x128xf32>
    %920 = vector.extract_strided_slice %907 {offsets = [0, 256], sizes = [8, 128], strides = [1, 1]} : vector<8x512xf32> to vector<8x128xf32>
    %921 = math.tanh %920 : vector<8x128xf32>
    %922 = vector.extract_strided_slice %907 {offsets = [0, 384], sizes = [8, 128], strides = [1, 1]} : vector<8x512xf32> to vector<8x128xf32>
    %923 = arith.negf %922 : vector<8x128xf32>
    %924 = math.exp %923 : vector<8x128xf32>
    %cst_259 = arith.constant 1.000000e+00 : f32
    %925 = vector.broadcast %cst_259 : f32 to vector<8x128xf32>
    %926 = arith.addf %925, %924 : vector<8x128xf32>
    %927 = arith.divf %925, %926 : vector<8x128xf32>
    %928 = arith.mulf %919, %815 : vector<8x128xf32>
    %929 = arith.mulf %913, %921 : vector<8x128xf32>
    %930 = arith.addf %928, %929 : vector<8x128xf32>
    %931 = math.tanh %930 : vector<8x128xf32>
    %932 = arith.mulf %927, %931 : vector<8x128xf32>
    %933 = arith.select %860, %932, %814 : vector<8x128xi1>, vector<8x128xf32>
    %934 = arith.select %860, %930, %815 : vector<8x128xi1>, vector<8x128xf32>
    %cst_260 = arith.constant 0.000000e+00 : f32
    %935 = vector.broadcast %cst_260 : f32 to vector<8x128xf32>
    %936 = arith.select %860, %932, %935 : vector<8x128xi1>, vector<8x128xf32>
    %937 = arith.truncf %936 : vector<8x128xf32> to vector<8x128xbf16>
    %c0_261 = arith.constant 0 : index
    %c0_262 = arith.constant 0 : index
    %938 = vector.load %arg7[%c0_261, %c0_262] : memref<128x512xbf16, #tpu.memory_space<vmem>>, vector<128x512xbf16>
    %cst_263 = arith.constant dense<0.000000e+00> : vector<8x512xf32>
    %939 = tpu.matmul %937, %938, %cst_263 {dimension_numbers = #tpu.dot_dimension_numbers<[1], [0], [0], [1], [0, 0, 1, 1], [], []>} : vector<8x128xbf16>, vector<128x512xbf16>, vector<8x512xf32> -> vector<8x512xf32>
    %940 = arith.addf %939, %869 : vector<8x512xf32>
    %941 = arith.addf %940, %9 : vector<8x512xf32>
    %942 = vector.extract_strided_slice %941 {offsets = [0, 0], sizes = [8, 128], strides = [1, 1]} : vector<8x512xf32> to vector<8x128xf32>
    %943 = arith.negf %942 : vector<8x128xf32>
    %944 = math.exp %943 : vector<8x128xf32>
    %cst_264 = arith.constant 1.000000e+00 : f32
    %945 = vector.broadcast %cst_264 : f32 to vector<8x128xf32>
    %946 = arith.addf %945, %944 : vector<8x128xf32>
    %947 = arith.divf %945, %946 : vector<8x128xf32>
    %948 = vector.extract_strided_slice %941 {offsets = [0, 128], sizes = [8, 128], strides = [1, 1]} : vector<8x512xf32> to vector<8x128xf32>
    %949 = arith.negf %948 : vector<8x128xf32>
    %950 = math.exp %949 : vector<8x128xf32>
    %cst_265 = arith.constant 1.000000e+00 : f32
    %951 = vector.broadcast %cst_265 : f32 to vector<8x128xf32>
    %952 = arith.addf %951, %950 : vector<8x128xf32>
    %953 = arith.divf %951, %952 : vector<8x128xf32>
    %954 = vector.extract_strided_slice %941 {offsets = [0, 256], sizes = [8, 128], strides = [1, 1]} : vector<8x512xf32> to vector<8x128xf32>
    %955 = math.tanh %954 : vector<8x128xf32>
    %956 = vector.extract_strided_slice %941 {offsets = [0, 384], sizes = [8, 128], strides = [1, 1]} : vector<8x512xf32> to vector<8x128xf32>
    %957 = arith.negf %956 : vector<8x128xf32>
    %958 = math.exp %957 : vector<8x128xf32>
    %cst_266 = arith.constant 1.000000e+00 : f32
    %959 = vector.broadcast %cst_266 : f32 to vector<8x128xf32>
    %960 = arith.addf %959, %958 : vector<8x128xf32>
    %961 = arith.divf %959, %960 : vector<8x128xf32>
    %962 = arith.mulf %953, %849 : vector<8x128xf32>
    %963 = arith.mulf %947, %955 : vector<8x128xf32>
    %964 = arith.addf %962, %963 : vector<8x128xf32>
    %965 = math.tanh %964 : vector<8x128xf32>
    %966 = arith.mulf %961, %965 : vector<8x128xf32>
    %967 = arith.select %860, %966, %848 : vector<8x128xi1>, vector<8x128xf32>
    %968 = arith.select %860, %964, %849 : vector<8x128xi1>, vector<8x128xf32>
    %cst_267 = arith.constant 0.000000e+00 : f32
    %969 = vector.broadcast %cst_267 : f32 to vector<8x128xf32>
    %970 = arith.select %860, %966, %969 : vector<8x128xi1>, vector<8x128xf32>
    %971 = arith.index_cast %c7_i32 : i32 to index
    %c0_268 = arith.constant 0 : index
    %c0_269 = arith.constant 0 : index
    %972 = vector.load %arg11[%971, %c0_268, %c0_269] : memref<8x8x128xf32, #tpu.memory_space<vmem>>, vector<1x8x128xf32>
    %973 = vector.shape_cast %972 : vector<1x8x128xf32> to vector<8x128xf32>
    %974 = vector.shape_cast %970 : vector<8x128xf32> to vector<1x8x128xf32>
    tpu.vector_store %arg11[%971, %c0_268, %c0_269], %974 {strides = array<i32>} : memref<8x8x128xf32, #tpu.memory_space<vmem>>, vector<1x8x128xf32>,
    %c8_i32_270 = arith.constant 8 : i32
    %c0_271 = arith.constant 0 : index
    %c0_272 = arith.constant 0 : index
    %c0_273 = arith.constant 0 : index
    %975 = vector.load %arg12[%c0_271, %c0_272, %c0_273] : memref<3x8x128xf32, #tpu.memory_space<vmem>>, vector<1x8x128xf32>
    %976 = vector.shape_cast %975 : vector<1x8x128xf32> to vector<8x128xf32>
    %977 = vector.shape_cast %899 : vector<8x128xf32> to vector<1x8x128xf32>
    tpu.vector_store %arg12[%c0_271, %c0_272, %c0_273], %977 {strides = array<i32>} : memref<3x8x128xf32, #tpu.memory_space<vmem>>, vector<1x8x128xf32>,
    %c0_274 = arith.constant 0 : index
    %c0_275 = arith.constant 0 : index
    %c0_276 = arith.constant 0 : index
    %978 = vector.load %arg13[%c0_274, %c0_275, %c0_276] : memref<3x8x128xf32, #tpu.memory_space<vmem>>, vector<1x8x128xf32>
    %979 = vector.shape_cast %978 : vector<1x8x128xf32> to vector<8x128xf32>
    %980 = vector.shape_cast %900 : vector<8x128xf32> to vector<1x8x128xf32>
    tpu.vector_store %arg13[%c0_274, %c0_275, %c0_276], %980 {strides = array<i32>} : memref<3x8x128xf32, #tpu.memory_space<vmem>>, vector<1x8x128xf32>,
    %c1_277 = arith.constant 1 : index
    %c0_278 = arith.constant 0 : index
    %c0_279 = arith.constant 0 : index
    %981 = vector.load %arg12[%c1_277, %c0_278, %c0_279] : memref<3x8x128xf32, #tpu.memory_space<vmem>>, vector<1x8x128xf32>
    %982 = vector.shape_cast %981 : vector<1x8x128xf32> to vector<8x128xf32>
    %983 = vector.shape_cast %933 : vector<8x128xf32> to vector<1x8x128xf32>
    tpu.vector_store %arg12[%c1_277, %c0_278, %c0_279], %983 {strides = array<i32>} : memref<3x8x128xf32, #tpu.memory_space<vmem>>, vector<1x8x128xf32>,
    %c1_280 = arith.constant 1 : index
    %c0_281 = arith.constant 0 : index
    %c0_282 = arith.constant 0 : index
    %984 = vector.load %arg13[%c1_280, %c0_281, %c0_282] : memref<3x8x128xf32, #tpu.memory_space<vmem>>, vector<1x8x128xf32>
    %985 = vector.shape_cast %984 : vector<1x8x128xf32> to vector<8x128xf32>
    %986 = vector.shape_cast %934 : vector<8x128xf32> to vector<1x8x128xf32>
    tpu.vector_store %arg13[%c1_280, %c0_281, %c0_282], %986 {strides = array<i32>} : memref<3x8x128xf32, #tpu.memory_space<vmem>>, vector<1x8x128xf32>,
    %c2_283 = arith.constant 2 : index
    %c0_284 = arith.constant 0 : index
    %c0_285 = arith.constant 0 : index
    %987 = vector.load %arg12[%c2_283, %c0_284, %c0_285] : memref<3x8x128xf32, #tpu.memory_space<vmem>>, vector<1x8x128xf32>
    %988 = vector.shape_cast %987 : vector<1x8x128xf32> to vector<8x128xf32>
    %989 = vector.shape_cast %967 : vector<8x128xf32> to vector<1x8x128xf32>
    tpu.vector_store %arg12[%c2_283, %c0_284, %c0_285], %989 {strides = array<i32>} : memref<3x8x128xf32, #tpu.memory_space<vmem>>, vector<1x8x128xf32>,
    %c2_286 = arith.constant 2 : index
    %c0_287 = arith.constant 0 : index
    %c0_288 = arith.constant 0 : index
    %990 = vector.load %arg13[%c2_286, %c0_287, %c0_288] : memref<3x8x128xf32, #tpu.memory_space<vmem>>, vector<1x8x128xf32>
    %991 = vector.shape_cast %990 : vector<1x8x128xf32> to vector<8x128xf32>
    %992 = vector.shape_cast %968 : vector<8x128xf32> to vector<1x8x128xf32>
    tpu.vector_store %arg13[%c2_286, %c0_287, %c0_288], %992 {strides = array<i32>} : memref<3x8x128xf32, #tpu.memory_space<vmem>>, vector<1x8x128xf32>,
    return
  }
  func.func @transform_0(%arg0: i32, %arg1: i32) -> (i32, i32) {
    %c0_i32 = arith.constant 0 : i32
    %c0_i32_0 = arith.constant 0 : i32
    return %arg0, %c0_i32 : i32, i32
  }
  func.func @transform_1(%arg0: i32, %arg1: i32) -> (i32, i32, i32) {
    %c0_i32 = arith.constant 0 : i32
    %c0_i32_0 = arith.constant 0 : i32
    return %arg1, %arg0, %c0_i32 : i32, i32, i32
  }
  func.func @transform_2(%arg0: i32, %arg1: i32) -> (i32, i32) {
    %c0_i32 = arith.constant 0 : i32
    %c0_i32_0 = arith.constant 0 : i32
    %c0_i32_1 = arith.constant 0 : i32
    return %c0_i32, %c0_i32_0 : i32, i32
  }
  func.func @transform_3(%arg0: i32, %arg1: i32) -> (i32, i32) {
    %c0_i32 = arith.constant 0 : i32
    %c0_i32_0 = arith.constant 0 : i32
    %c0_i32_1 = arith.constant 0 : i32
    return %c0_i32, %c0_i32_0 : i32, i32
  }
  func.func @transform_4(%arg0: i32, %arg1: i32) -> (i32, i32) {
    %c0_i32 = arith.constant 0 : i32
    %c0_i32_0 = arith.constant 0 : i32
    %c0_i32_1 = arith.constant 0 : i32
    return %c0_i32, %c0_i32_0 : i32, i32
  }
  func.func @transform_5(%arg0: i32, %arg1: i32) -> (i32, i32) {
    %c0_i32 = arith.constant 0 : i32
    %c0_i32_0 = arith.constant 0 : i32
    %c0_i32_1 = arith.constant 0 : i32
    return %c0_i32, %c0_i32_0 : i32, i32
  }
  func.func @transform_6(%arg0: i32, %arg1: i32) -> (i32, i32) {
    %c0_i32 = arith.constant 0 : i32
    %c0_i32_0 = arith.constant 0 : i32
    %c0_i32_1 = arith.constant 0 : i32
    return %c0_i32, %c0_i32_0 : i32, i32
  }
  func.func @transform_7(%arg0: i32, %arg1: i32) -> (i32, i32) {
    %c0_i32 = arith.constant 0 : i32
    %c0_i32_0 = arith.constant 0 : i32
    %c0_i32_1 = arith.constant 0 : i32
    return %c0_i32, %c0_i32_0 : i32, i32
  }
  func.func @transform_8(%arg0: i32, %arg1: i32) -> (i32, i32) {
    %c0_i32 = arith.constant 0 : i32
    %c0_i32_0 = arith.constant 0 : i32
    %c0_i32_1 = arith.constant 0 : i32
    return %c0_i32, %c0_i32_0 : i32, i32
  }
  func.func @transform_9(%arg0: i32, %arg1: i32) -> (i32, i32, i32) {
    %c0_i32 = arith.constant 0 : i32
    %c0_i32_0 = arith.constant 0 : i32
    return %arg1, %arg0, %c0_i32 : i32, i32, i32
  }
}

</mosaic_0001>

<bundles_post_ra>
// kernel: nalo_lstm_forward.1
= control target key start
LH: loop header
LB: loop body
LE: loop exit
PB: predicated region body
PF: predicated region fallthrough
CT: control target
= control target key end

     0   :  { %v15780_v1 = vmov 0   ;;  %v15781_v41 = vmov 0.0|0.0   ;;  %s20674_s2 = inlined_call_operand.vmem [shape: bf16[128,512], index: 2, kind: input, shape index: {}]   ;;  %s20675_s0 = inlined_call_operand.vmem [shape: s32[8,1], index: 0, kind: input, shape index: {}]   ;;  %s20676_s4 = inlined_call_operand.vmem [shape: bf16[128,512], index: 4, kind: input, shape index: {}]   ;;  %s20677_s6 = inlined_call_operand.vmem [shape: bf16[128,512], index: 6, kind: input, shape index: {}]   ;;  %s20678_s3 = inlined_call_operand.vmem [shape: bf16[128,512], index: 3, kind: input, shape index: {}]   ;;  %s20679_s1 = inlined_call_operand.vmem [shape: f32[8,8,512], index: 1, kind: input, shape index: {}]   ;;  %s20680_s5 = inlined_call_operand.vmem [shape: bf16[128,512], index: 5, kind: input, shape index: {}]   ;;  %s20681_s7 = inlined_call_operand.vmem [shape: f32[1,512], index: 7, kind: input, shape index: {}]   ;;  %s20682_s8 = inlined_call_operand.vmem [shape: f32[1,512], index: 8, kind: input, shape index: {}]   ;;  %s20683_s9 = inlined_call_operand.vmem [shape: f32[8,8,128], index: 9, kind: output, shape index: {}]  }
   0x1   :  { %v13475_v0 = vld [vmem:[%s20674_s2 + $0xe4] ss:$16 sps:$4 sm:$0xff]   ;;  %331 = vmatprep.mubr.bf16.mxu0 %v15780_v1  ;;  %372 = vmatprep.mubr.bf16.mxu1 %v15780_v1  ;;  %v13477_v2 = vld [vmem:[%s20674_s2 + $0xe0] ss:$16 sps:$4 sm:$0xff]   ;;  %v13486_v6 = vld [vmem:[%s20674_s2 + $0xec] ss:$16 sps:$4 sm:$0xff]  }
   0x2   :  { %13473 = vset.pattern.permute.xlu0 %v15780_v1  ;;  %13474 = vset.pattern.permute.xlu1 %v15780_v1  ;;  %v13478_v3 = vld [vmem:[%s20674_s2 + $0xc4] ss:$16 sps:$4 sm:$0xff]   ;;  %v13480_v4 = vld [vmem:[%s20674_s2 + $0xc0] ss:$16 sps:$4 sm:$0xff]   ;;  %v13489_v7 = vld [vmem:[%s20674_s2 + $0xe8] ss:$16 sps:$4 sm:$0xff]  }
   0x3   :  { %299 = vmatprep.subr.bf16.mxu0 %v13475_v0  ;;  %v13481_v5 = vld [vmem:[%s20674_s2 + $0xa4] ss:$16 sps:$4 sm:$0xff]   ;;  %v13483_v8 = vld [vmem:[%s20674_s2 + $0xa0] ss:$16 sps:$4 sm:$0xff]   ;;  %340 = vmatprep.subr.bf16.mxu1 %v13486_v6  ;;  %v13492_v10 = vld [vmem:[%s20674_s2 + $0xcc] ss:$16 sps:$4 sm:$0xff]  }
   0x4   :  { %300 = vmatpush1.bf16.msra.mxu0 %v13477_v2  ;;  %v13484_v9 = vld [vmem:[%s20674_s2 + $0x84] ss:$16 sps:$4 sm:$0xff]   ;;  %341 = vmatpush1.bf16.msra.mxu1 %v13489_v7  ;;  %v13495_v11 = vld [vmem:[%s20674_s2 + $0xc8] ss:$16 sps:$4 sm:$0xff]   ;;  %v13488_v12 = vld [vmem:[%s20674_s2 + $0x80] ss:$16 sps:$4 sm:$0xff]  }
   0x5   :  { %301 = vmatprep.subr.bf16.mxu0 %v13478_v3  ;;  %342 = vmatprep.subr.bf16.mxu1 %v13492_v10  ;;  %v13490_v13 = vld [vmem:[%s20674_s2 + $0x64] ss:$16 sps:$4 sm:$0xff]   ;;  %v13498_v14 = vld [vmem:[%s20674_s2 + $0xac] ss:$16 sps:$4 sm:$0xff]   ;;  %v13501_v15 = vld [vmem:[%s20674_s2 + $0xa8] ss:$16 sps:$4 sm:$0xff]  }
   0x6   :  { %v13504_v16 = vld [vmem:[%s20674_s2 + $0x8c] ss:$16 sps:$4 sm:$0xff]   ;;  %v13494_v17 = vld [vmem:[%s20674_s2 + $0x60] ss:$16 sps:$4 sm:$0xff]   ;;  %v13496_v18 = vld [vmem:[%s20674_s2 + $0x44] ss:$16 sps:$4 sm:$0xff]  }
   0x7   :  { %v13507_v19 = vld [vmem:[%s20674_s2 + $0x88] ss:$16 sps:$4 sm:$0xff]   ;;  %v13510_v20 = vld [vmem:[%s20674_s2 + $0x6c] ss:$16 sps:$4 sm:$0xff]   ;;  %v13500_v21 = vld [vmem:[%s20674_s2 + $0x40] ss:$16 sps:$4 sm:$0xff]  }
   0x8   :  { %302 = vmatpush1.bf16.msra.mxu0 %v13480_v4  ;;  %343 = vmatpush1.bf16.msra.mxu1 %v13495_v11  ;;  %v13502_v22 = vld [vmem:[%s20674_s2 + $0x24] ss:$16 sps:$4 sm:$0xff]   ;;  %v13513_v23 = vld [vmem:[%s20674_s2 + $0x68] ss:$16 sps:$4 sm:$0xff]   ;;  %v13514_v24 = vld [vmem:[%s20674_s2 + $0x4c] ss:$16 sps:$4 sm:$0xff]  }
   0x9   :  { %303 = vmatprep.subr.bf16.mxu0 %v13481_v5  ;;  %344 = vmatprep.subr.bf16.mxu1 %v13498_v14  ;;  %v43_v25 = vld [vmem:[%s20675_s0] sm:$0xff]  ;;  %v13516_v29 = vld [vmem:[%s20674_s2 + $0x48] ss:$16 sps:$4 sm:$0xff]   ;;  %v13517_v30 = vld [vmem:[%s20674_s2 + $0x2c] ss:$16 sps:$4 sm:$0xff]  }
   0xa   :  { %vm100_vm0 = vcmp.gt.s32.totalorder %v43_v25, 0  ;;  %v13506_v26 = vld [vmem:[%s20674_s2 + $0x20] ss:$16 sps:$4 sm:$0xff]   ;;  %vm1581_vm1 = vcmp.gt.s32.totalorder %v43_v25, 1  ;;  %v13508_v28 = vld [vmem:[%s20674_s2 + $0x4] ss:$16 sps:$4 sm:$0xff]  }
   0xb   :  { %v101_v27 = vsel %vm100_vm0, 1, %v15780_v1  ;;  %v1582_v31 = vsel %vm1581_vm1, 1, %v15780_v1  ;;  %v13512_v32 = vld [vmem:[%s20674_s2] ss:$16 sps:$4 sm:$0xff]   ;;  %v13519_v33 = vld [vmem:[%s20674_s2 + $0x28] ss:$16 sps:$4 sm:$0xff]  }
   0xc   :  { %304 = vmatpush1.bf16.msra.mxu0 %v13483_v8  ;;  %345 = vmatpush1.bf16.msra.mxu1 %v13501_v15  ;;  %vm6030_vm2 = vcmp.gt.s32.totalorder %v43_v25, 4  ;;  %v13525_v34 = vld [vmem:[%s20676_s4 + $0xe4] ss:$16 sps:$4 sm:$0xff]   ;;  %v13520_v35 = vld [vmem:[%s20674_s2 + $0xc] ss:$16 sps:$4 sm:$0xff]   ;;  %vm8996_vm3 = vcmp.gt.s32.totalorder %v43_v25, 6 }
   0xd   :  { %305 = vmatprep.subr.bf16.mxu0 %v13484_v9  ;;  %346 = vmatprep.subr.bf16.mxu1 %v13504_v16  ;;  %v6031_v36 = vsel %vm6030_vm2, 1, %v15780_v1  ;;  %v13522_v37 = vld [vmem:[%s20674_s2 + $0x8] ss:$16 sps:$4 sm:$0xff]   ;;  %v13523_v38 = vld [vmem:[%s20676_s4 + $0xe0] ss:$16 sps:$4 sm:$0xff]   ;;  %v8997_v42 = vsel %vm8996_vm3, 1, %v15780_v1 }
   0xe   :  { %103 = vperm.xlu0 %13473, %v101_v27   ;;  %v13528_v39 = vld [vmem:[%s20676_s4 + $0xc4] ss:$16 sps:$4 sm:$0xff]   ;;  %v13531_v40 = vld [vmem:[%s20676_s4 + $0xec] ss:$16 sps:$4 sm:$0xff]   ;;  %v13526_v43 = vld [vmem:[%s20676_s4 + $0xc0] ss:$16 sps:$4 sm:$0xff]  }
   0xf   :  { %v13529_v44 = vld [vmem:[%s20676_s4 + $0xe8] ss:$16 sps:$4 sm:$0xff]   ;;  %v13534_v45 = vld [vmem:[%s20676_s4 + $0xa4] ss:$16 sps:$4 sm:$0xff]   ;;  %v13537_v46 = vld [vmem:[%s20676_s4 + $0xcc] ss:$16 sps:$4 sm:$0xff]  }
  0x10   :  { %306 = vmatpush1.bf16.msra.mxu0 %v13488_v12  ;;  %347 = vmatpush1.bf16.msra.mxu1 %v13507_v19  ;;  %v13532_v47 = vld [vmem:[%s20676_s4 + $0xa0] ss:$16 sps:$4 sm:$0xff]   ;;  %v13535_v48 = vld [vmem:[%s20676_s4 + $0xc8] ss:$16 sps:$4 sm:$0xff]   ;;  %v13540_v49 = vld [vmem:[%s20676_s4 + $0x84] ss:$16 sps:$4 sm:$0xff]  }
  0x11   :  { %307 = vmatprep.subr.bf16.mxu0 %v13490_v13  ;;  %348 = vmatprep.subr.bf16.mxu1 %v13510_v20  ;;  %v13543_v50 = vld [vmem:[%s20676_s4 + $0xac] ss:$16 sps:$4 sm:$0xff]   ;;  %v13538_v51 = vld [vmem:[%s20676_s4 + $0x80] ss:$16 sps:$4 sm:$0xff]   ;;  %v13541_v52 = vld [vmem:[%s20676_s4 + $0xa8] ss:$16 sps:$4 sm:$0xff]  }
  0x12   :  { %1584 = vperm.xlu0 %13473, %v1582_v31   ;;  %v13546_v53 = vld [vmem:[%s20676_s4 + $0x64] ss:$16 sps:$4 sm:$0xff]   ;;  %v13549_v54 = vld [vmem:[%s20676_s4 + $0x8c] ss:$16 sps:$4 sm:$0xff]   ;;  %v13544_v55 = vld [vmem:[%s20676_s4 + $0x60] ss:$16 sps:$4 sm:$0xff]  }
  0x13   :  { %v13547_v56 = vld [vmem:[%s20676_s4 + $0x88] ss:$16 sps:$4 sm:$0xff]   ;;  %v13552_v57 = vld [vmem:[%s20676_s4 + $0x44] ss:$16 sps:$4 sm:$0xff]   ;;  %v13550_v58 = vld [vmem:[%s20676_s4 + $0x40] ss:$16 sps:$4 sm:$0xff]  }
  0x14   :  { %308 = vmatpush1.bf16.msra.mxu0 %v13494_v17  ;;  %349 = vmatpush1.bf16.msra.mxu1 %v13513_v23  ;;  %v13555_v59 = vld [vmem:[%s20676_s4 + $0x6c] ss:$16 sps:$4 sm:$0xff]   ;;  %v13553_v60 = vld [vmem:[%s20676_s4 + $0x68] ss:$16 sps:$4 sm:$0xff]   ;;  %v13558_v61 = vld [vmem:[%s20676_s4 + $0x24] ss:$16 sps:$4 sm:$0xff]  }
  0x15   :  { %309 = vmatprep.subr.bf16.mxu0 %v13496_v18  ;;  %350 = vmatprep.subr.bf16.mxu1 %v13514_v24  ;;  %v13561_v62 = vld [vmem:[%s20676_s4 + $0x4c] ss:$16 sps:$4 sm:$0xff]   ;;  %v13556_v63 = vld [vmem:[%s20676_s4 + $0x20] ss:$16 sps:$4 sm:$0xff]   ;;  %v13559_v0 = vld [vmem:[%s20676_s4 + $0x48] ss:$16 sps:$4 sm:$0xff]  }
  0x16   :  { %6033 = vperm.xlu0 %13473, %v6031_v36   ;;  %v13564_v2 = vld [vmem:[%s20676_s4 + $0x4] ss:$16 sps:$4 sm:$0xff]   ;;  %v13567_v3 = vld [vmem:[%s20676_s4 + $0x2c] ss:$16 sps:$4 sm:$0xff]   ;;  %v13562_v4 = vld [vmem:[%s20676_s4] ss:$16 sps:$4 sm:$0xff]  }
  0x17   :  { %v13565_v5 = vld [vmem:[%s20676_s4 + $0x28] ss:$16 sps:$4 sm:$0xff]   ;;  %v13570_v6 = vld [vmem:[%s20677_s6 + $0xe4] ss:$16 sps:$4 sm:$0xff]   ;;  %v13573_v7 = vld [vmem:[%s20676_s4 + $0xc] ss:$16 sps:$4 sm:$0xff]  }
  0x18   :  { %310 = vmatpush1.bf16.msra.mxu0 %v13500_v21  ;;  %351 = vmatpush1.bf16.msra.mxu1 %v13516_v29  ;;  %v13568_v8 = vld [vmem:[%s20677_s6 + $0xe0] ss:$16 sps:$4 sm:$0xff]   ;;  %v13571_v9 = vld [vmem:[%s20676_s4 + $0x8] ss:$16 sps:$4 sm:$0xff]   ;;  %v13576_v10 = vld [vmem:[%s20677_s6 + $0xc4] ss:$16 sps:$4 sm:$0xff]  }
  0x19   :  { %311 = vmatprep.subr.bf16.mxu0 %v13502_v22  ;;  %352 = vmatprep.subr.bf16.mxu1 %v13517_v30  ;;  %v13579_v11 = vld [vmem:[%s20677_s6 + $0xec] ss:$16 sps:$4 sm:$0xff]   ;;  %v13574_v12 = vld [vmem:[%s20677_s6 + $0xc0] ss:$16 sps:$4 sm:$0xff]   ;;  %v13577_v13 = vld [vmem:[%s20677_s6 + $0xe8] ss:$16 sps:$4 sm:$0xff]  }
  0x1a   :  { %8999 = vperm.xlu0 %13473, %v8997_v42   ;;  %v13582_v14 = vld [vmem:[%s20677_s6 + $0xa4] ss:$16 sps:$4 sm:$0xff]   ;;  %v13585_v15 = vld [vmem:[%s20677_s6 + $0xcc] ss:$16 sps:$4 sm:$0xff]   ;;  %v13580_v16 = vld [vmem:[%s20677_s6 + $0xa0] ss:$16 sps:$4 sm:$0xff]  }
  0x1b   :  { %v13583_v17 = vld [vmem:[%s20677_s6 + $0xc8] ss:$16 sps:$4 sm:$0xff]   ;;  %v13588_v18 = vld [vmem:[%s20677_s6 + $0x84] ss:$16 sps:$4 sm:$0xff]   ;;  %v13586_v19 = vld [vmem:[%s20677_s6 + $0x80] ss:$16 sps:$4 sm:$0xff]  }
  0x1c   :  { %312 = vmatpush1.bf16.msra.mxu0 %v13506_v26  ;;  %353 = vmatpush1.bf16.msra.mxu1 %v13519_v33  ;;  %v13591_v20 = vld [vmem:[%s20677_s6 + $0xac] ss:$16 sps:$4 sm:$0xff]   ;;  %v13589_v21 = vld [vmem:[%s20677_s6 + $0xa8] ss:$16 sps:$4 sm:$0xff]   ;;  %v13594_v22 = vld [vmem:[%s20677_s6 + $0x64] ss:$16 sps:$4 sm:$0xff]  }
  0x1d   :  { %313 = vmatprep.subr.bf16.mxu0 %v13508_v28  ;;  %354 = vmatprep.subr.bf16.mxu1 %v13520_v35  ;;  %v13592_v23 = vld [vmem:[%s20677_s6 + $0x60] ss:$16 sps:$4 sm:$0xff]   ;;  %v13597_v24 = vld [vmem:[%s20677_s6 + $0x8c] ss:$16 sps:$4 sm:$0xff]   ;;  %v13595_v25 = vld [vmem:[%s20677_s6 + $0x88] ss:$16 sps:$4 sm:$0xff]  }
  0x1e   :  { %v13600_v26 = vld [vmem:[%s20677_s6 + $0x44] ss:$16 sps:$4 sm:$0xff]   ;;  %v13598_v27 = vld [vmem:[%s20677_s6 + $0x40] ss:$16 sps:$4 sm:$0xff]   ;;  %v13603_v28 = vld [vmem:[%s20677_s6 + $0x6c] ss:$16 sps:$4 sm:$0xff]  }
  0x1f   :  { %v13601_v29 = vld [vmem:[%s20677_s6 + $0x68] ss:$16 sps:$4 sm:$0xff]   ;;  %v13606_v30 = vld [vmem:[%s20677_s6 + $0x24] ss:$16 sps:$4 sm:$0xff]   ;;  %v13604_v31 = vld [vmem:[%s20677_s6 + $0x20] ss:$16 sps:$4 sm:$0xff]  }
  0x20   :  { %314 = vmatpush1.bf16.msra.mxu0 %v13512_v32  ;;  %355 = vmatpush1.bf16.msra.mxu1 %v13522_v37  ;;  %v13609_v32 = vld [vmem:[%s20677_s6 + $0x4c] ss:$16 sps:$4 sm:$0xff]   ;;  %v13607_v33 = vld [vmem:[%s20677_s6 + $0x48] ss:$16 sps:$4 sm:$0xff]   ;;  %v13610_v35 = vld [vmem:[%s20677_s6] ss:$16 sps:$4 sm:$0xff]  }
  0x21   :  { %574 = vmatprep.subr.bf16.mxu0 %v13525_v34  ;;  %615 = vmatprep.subr.bf16.mxu1 %v13531_v40  ;;  %v13612_v34 = vld [vmem:[%s20677_s6 + $0x4] ss:$16 sps:$4 sm:$0xff]   ;;  %v13615_v36 = vld [vmem:[%s20677_s6 + $0x2c] ss:$16 sps:$4 sm:$0xff]   ;;  %v13613_v37 = vld [vmem:[%s20677_s6 + $0x28] ss:$16 sps:$4 sm:$0xff]  }
  0x22   :  { %v13621_v40 = vld [vmem:[%s20678_s3 + $0xe4] ss:$16 sps:$4 sm:$0xff]   ;;  %v13619_v42 = vld [vmem:[%s20678_s3 + $0xe0] ss:$16 sps:$4 sm:$0xff]  }
  0x23   :  { %332 = vmatmul.mubr.bf16.vlgmr.msra.gmra.mxu0 %v15781_v41  ;;  %373 = vmatmul.mubr.bf16.vlgmr.msra.gmra.mxu1 %v15781_v41 }
  0x24   :  { %575 = vmatpush1.bf16.msra.mxu0 %v13523_v38  ;;  %606 = vmatprep.mubr.bf16.mxu0 %v15780_v1  ;;  %v13618_v38 = vld [vmem:[%s20677_s6 + $0xc] ss:$16 sps:$4 sm:$0xff]  }
  0x25   :  { %576 = vmatprep.subr.bf16.mxu0 %v13528_v39  ;;  %616 = vmatpush1.bf16.msra.mxu1 %v13529_v44  ;;  %v13616_v39 = vld [vmem:[%s20677_s6 + $0x8] ss:$16 sps:$4 sm:$0xff]   ;;  %v13624_v44 = vld [vmem:[%s20678_s3 + $0xec] ss:$16 sps:$4 sm:$0xff]  }
  0x26   :  { %617 = vmatprep.subr.bf16.mxu1 %v13537_v46  ;;  %647 = vmatprep.mubr.bf16.mxu1 %v15780_v1  ;;  %v13630_v46 = vld [vmem:[%s20678_s3 + $0xcc] ss:$16 sps:$4 sm:$0xff]  }
  0x28   :  { %577 = vmatpush1.bf16.msra.mxu0 %v13526_v43  ;;  %v13622_v43 = vld [vmem:[%s20678_s3 + $0xe8] ss:$16 sps:$4 sm:$0xff]  }
  0x29   :  { %578 = vmatprep.subr.bf16.mxu0 %v13534_v45  ;;  %618 = vmatpush1.bf16.msra.mxu1 %v13535_v48  ;;  %v13627_v45 = vld [vmem:[%s20678_s3 + $0xc4] ss:$16 sps:$4 sm:$0xff]  }
  0x2a   :  { %619 = vmatprep.subr.bf16.mxu1 %v13543_v50  ;;  %v13633_v48 = vld [vmem:[%s20678_s3 + $0xa4] ss:$16 sps:$4 sm:$0xff]   ;;  %v13631_v50 = vld [vmem:[%s20678_s3 + $0xa0] ss:$16 sps:$4 sm:$0xff]  }
  0x2c   :  { %579 = vmatpush1.bf16.msra.mxu0 %v13532_v47  ;;  %v13625_v47 = vld [vmem:[%s20678_s3 + $0xc0] ss:$16 sps:$4 sm:$0xff]  }
  0x2d   :  { %580 = vmatprep.subr.bf16.mxu0 %v13540_v49  ;;  %620 = vmatpush1.bf16.msra.mxu1 %v13541_v52  ;;  %v13636_v49 = vld [vmem:[%s20678_s3 + $0xac] ss:$16 sps:$4 sm:$0xff]   ;;  %v13637_v52 = vld [vmem:[%s20678_s3 + $0x80] ss:$16 sps:$4 sm:$0xff]  }
  0x2e   :  { %621 = vmatprep.subr.bf16.mxu1 %v13549_v54  ;;  %v13640_v54 = vld [vmem:[%s20678_s3 + $0x88] ss:$16 sps:$4 sm:$0xff]  }
  0x30   :  { %581 = vmatpush1.bf16.msra.mxu0 %v13538_v51  ;;  %v13634_v51 = vld [vmem:[%s20678_s3 + $0xa8] ss:$16 sps:$4 sm:$0xff]  }
  0x31   :  { %582 = vmatprep.subr.bf16.mxu0 %v13546_v53  ;;  %622 = vmatpush1.bf16.msra.mxu1 %v13547_v56  ;;  %v13639_v53 = vld [vmem:[%s20678_s3 + $0x84] ss:$16 sps:$4 sm:$0xff]   ;;  %v13643_v56 = vld [vmem:[%s20678_s3 + $0x60] ss:$16 sps:$4 sm:$0xff]  }
  0x32   :  { %623 = vmatprep.subr.bf16.mxu1 %v13555_v59  ;;  %v13648_v59 = vld [vmem:[%s20678_s3 + $0x6c] ss:$16 sps:$4 sm:$0xff]  }
  0x34   :  { %583 = vmatpush1.bf16.msra.mxu0 %v13544_v55  ;;  %v13642_v55 = vld [vmem:[%s20678_s3 + $0x8c] ss:$16 sps:$4 sm:$0xff]  }
  0x35   :  { %584 = vmatprep.subr.bf16.mxu0 %v13552_v57  ;;  %624 = vmatpush1.bf16.msra.mxu1 %v13553_v60  ;;  %v13645_v57 = vld [vmem:[%s20678_s3 + $0x64] ss:$16 sps:$4 sm:$0xff]  }
  0x36   :  { %625 = vmatprep.subr.bf16.mxu1 %v13561_v62  ;;  %v13651_v60 = vld [vmem:[%s20678_s3 + $0x44] ss:$16 sps:$4 sm:$0xff]   ;;  %v13649_v62 = vld [vmem:[%s20678_s3 + $0x40] ss:$16 sps:$4 sm:$0xff]  }
  0x38   :  { %585 = vmatpush1.bf16.msra.mxu0 %v13550_v58  ;;  %v13646_v58 = vld [vmem:[%s20678_s3 + $0x68] ss:$16 sps:$4 sm:$0xff]  }
  0x39   :  { %586 = vmatprep.subr.bf16.mxu0 %v13558_v61  ;;  %626 = vmatpush1.bf16.msra.mxu1 %v13559_v0  ;;  %v13654_v61 = vld [vmem:[%s20678_s3 + $0x4c] ss:$16 sps:$4 sm:$0xff]   ;;  %v13657_v0 = vld [vmem:[%s20678_s3 + $0x24] ss:$16 sps:$4 sm:$0xff]  }
  0x3a   :  { %627 = vmatprep.subr.bf16.mxu1 %v13567_v3  ;;  %v13660_v3 = vld [vmem:[%s20678_s3 + $0x2c] ss:$16 sps:$4 sm:$0xff]  }
  0x3c   :  { %587 = vmatpush1.bf16.msra.mxu0 %v13556_v63  ;;  %v13652_v63 = vld [vmem:[%s20678_s3 + $0x48] ss:$16 sps:$4 sm:$0xff]  }
  0x3d   :  { %588 = vmatprep.subr.bf16.mxu0 %v13564_v2  ;;  %628 = vmatpush1.bf16.msra.mxu1 %v13565_v5  ;;  %v13655_v2 = vld [vmem:[%s20678_s3 + $0x20] ss:$16 sps:$4 sm:$0xff]   ;;  %v13658_v5 = vld [vmem:[%s20678_s3 + $0x28] ss:$16 sps:$4 sm:$0xff]  }
  0x3e   :  { %629 = vmatprep.subr.bf16.mxu1 %v13573_v7  ;;  %v13661_v7 = vld [vmem:[%s20678_s3] ss:$16 sps:$4 sm:$0xff]  }
  0x40   :  { %589 = vmatpush1.bf16.msra.mxu0 %v13562_v4  ;;  %v13663_v4 = vld [vmem:[%s20678_s3 + $0x4] ss:$16 sps:$4 sm:$0xff]  }
  0x41   :  { %849 = vmatprep.subr.bf16.mxu0 %v13570_v6  ;;  %630 = vmatpush1.bf16.msra.mxu1 %v13571_v9  ;;  %v13666_v6 = vld [vmem:[%s20678_s3 + $0xc] ss:$16 sps:$4 sm:$0xff]   ;;  %v931_v9 = vld [vmem:[%s20679_s1] sm:$0xff] }
  0x42   :  { %890 = vmatprep.subr.bf16.mxu1 %v13579_v11 }
  0x43   :  { %607 = vmatmul.mubr.bf16.vlgmr.msra.gmra.mxu0 %v15781_v41 }
  0x44   :  { %850 = vmatpush1.bf16.msra.mxu0 %v13568_v8  ;;  %881 = vmatprep.mubr.bf16.mxu0 %v15780_v1  ;;  %v13664_v8 = vld [vmem:[%s20678_s3 + $0x8] ss:$16 sps:$4 sm:$0xff]  }
  0x45   :  { %851 = vmatprep.subr.bf16.mxu0 %v13576_v10  ;;  %648 = vmatmul.mubr.bf16.vlgmr.msra.gmra.mxu1 %v15781_v41  ;;  %v932_v10 = vld [vmem:[%s20679_s1 + $0x8] sm:$0xff] }
  0x46   :  { %891 = vmatpush1.bf16.msra.mxu1 %v13577_v13  ;;  %922 = vmatprep.mubr.bf16.mxu1 %v15780_v1 }
  0x47   :  { %892 = vmatprep.subr.bf16.mxu1 %v13585_v15 }
  0x48   :  { %852 = vmatpush1.bf16.msra.mxu0 %v13574_v12 }
  0x49   :  { %853 = vmatprep.subr.bf16.mxu0 %v13582_v14 }
  0x4a   :  { %893 = vmatpush1.bf16.msra.mxu1 %v13583_v17 }
  0x4b   :  { %894 = vmatprep.subr.bf16.mxu1 %v13591_v20 }
  0x4c   :  { %854 = vmatpush1.bf16.msra.mxu0 %v13580_v16 }
  0x4d   :  { %855 = vmatprep.subr.bf16.mxu0 %v13588_v18 }
  0x4e   :  { %895 = vmatpush1.bf16.msra.mxu1 %v13589_v21  ;;  %v934_v21 = vld [vmem:[%s20679_s1 + $0x18] sm:$0xff] }
  0x4f   :  { %896 = vmatprep.subr.bf16.mxu1 %v13597_v24 }
  0x50   :  { %856 = vmatpush1.bf16.msra.mxu0 %v13586_v19 }
  0x51   :  { %857 = vmatprep.subr.bf16.mxu0 %v13594_v22 }
  0x52   :  { %897 = vmatpush1.bf16.msra.mxu1 %v13595_v25 }
  0x53   :  { %898 = vmatprep.subr.bf16.mxu1 %v13603_v28 }
  0x54   :  { %858 = vmatpush1.bf16.msra.mxu0 %v13592_v23  ;;  %v933_v23 = vld [vmem:[%s20679_s1 + $0x10] sm:$0xff] }
  0x55   :  { %859 = vmatprep.subr.bf16.mxu0 %v13600_v26 }
  0x56   :  { %899 = vmatpush1.bf16.msra.mxu1 %v13601_v29 }
  0x57   :  { %900 = vmatprep.subr.bf16.mxu1 %v13609_v32 }
  0x58   :  { %860 = vmatpush1.bf16.msra.mxu0 %v13598_v27 }
  0x59   :  { %861 = vmatprep.subr.bf16.mxu0 %v13606_v30 }
  0x5a   :  { %901 = vmatpush1.bf16.msra.mxu1 %v13607_v33 }
  0x5b   :  { %902 = vmatprep.subr.bf16.mxu1 %v13615_v36 }
  0x5c   :  { %862 = vmatpush1.bf16.msra.mxu0 %v13604_v31 }
  0x5d   :  { %863 = vmatprep.subr.bf16.mxu0 %v13612_v34 }
  0x5e   :  { %903 = vmatpush1.bf16.msra.mxu1 %v13613_v37 }
  0x5f   :  { %904 = vmatprep.subr.bf16.mxu1 %v13618_v38 }
  0x60   :  { %864 = vmatpush1.bf16.msra.mxu0 %v13610_v35 }
  0x61   :  { %1159 = vmatprep.subr.bf16.mxu0 %v13621_v40 }
  0x62   :  { %905 = vmatpush1.bf16.msra.mxu1 %v13616_v39 }
  0x63   :  { %882 = vmatmul.mubr.bf16.vlgmr.msra.gmra.mxu0 %v15781_v41  ;;  %1200 = vmatprep.subr.bf16.mxu1 %v13624_v44 }
  0x64   :  { %1191 = vmatprep.mubr.bf16.mxu0 %v15780_v1  ;;  %1160 = vmatpush1.bf16.msra.mxu0 %v13619_v42 }
  0x65   :  { %923 = vmatmul.mubr.bf16.vlgmr.msra.gmra.mxu1 %v15781_v41  ;;  %v13628_v41 = vld [vmem:[%s20678_s3 + $0xc8] ss:$16 sps:$4 sm:$0xff]   ;;  %1161 = vmatprep.subr.bf16.mxu0 %v13627_v45 }
  0x66   :  { %1232 = vmatprep.mubr.bf16.mxu1 %v15780_v1  ;;  %1201 = vmatpush1.bf16.msra.mxu1 %v13622_v43 }
  0x67   :  { %1202 = vmatprep.subr.bf16.mxu1 %v13630_v46 }
  0x68   :  { %1162 = vmatpush1.bf16.msra.mxu0 %v13625_v47 }
  0x69   :  { %1163 = vmatprep.subr.bf16.mxu0 %v13633_v48 }
  0x6a   :  { %1203 = vmatpush1.bf16.msra.mxu1 %v13628_v41 }
  0x6b   :  { %1204 = vmatprep.subr.bf16.mxu1 %v13636_v49  ;;  %v13876_v49 = vld [vmem:[%s20678_s3 + $0xac] ss:$16 sps:$4 sm:$0xff]  }
  0x6c   :  { %1164 = vmatpush1.bf16.msra.mxu0 %v13631_v50 }
  0x6d   :  { %1165 = vmatprep.subr.bf16.mxu0 %v13639_v53 }
  0x6e   :  { %1205 = vmatpush1.bf16.msra.mxu1 %v13634_v51 }
  0x6f   :  { %1206 = vmatprep.subr.bf16.mxu1 %v13642_v55 }
  0x70   :  { %1166 = vmatpush1.bf16.msra.mxu0 %v13637_v52 }
  0x71   :  { %1167 = vmatprep.subr.bf16.mxu0 %v13645_v57 }
  0x72   :  { %1207 = vmatpush1.bf16.msra.mxu1 %v13640_v54 }
  0x73   :  { %1208 = vmatprep.subr.bf16.mxu1 %v13648_v59 }
  0x74   :  { %1168 = vmatpush1.bf16.msra.mxu0 %v13643_v56 }
  0x75   :  { %1169 = vmatprep.subr.bf16.mxu0 %v13651_v60 }
  0x76   :  { %1209 = vmatpush1.bf16.msra.mxu1 %v13646_v58 }
  0x77   :  { %1210 = vmatprep.subr.bf16.mxu1 %v13654_v61 }
  0x78   :  { %1170 = vmatpush1.bf16.msra.mxu0 %v13649_v62  ;;  %v13669_v62 = vld [vmem:[%s20680_s5 + $0xe4] ss:$16 sps:$4 sm:$0xff]  }
  0x79   :  { %1171 = vmatprep.subr.bf16.mxu0 %v13657_v0  ;;  %v13670_v0 = vld [vmem:[%s20680_s5 + $0xe8] ss:$16 sps:$4 sm:$0xff]  }
  0x7a   :  { %1211 = vmatpush1.bf16.msra.mxu1 %v13652_v63  ;;  %v13667_v63 = vld [vmem:[%s20680_s5 + $0xe0] ss:$16 sps:$4 sm:$0xff]  }
  0x7b   :  { %1212 = vmatprep.subr.bf16.mxu1 %v13660_v3  ;;  %v13675_v3 = vld [vmem:[%s20680_s5 + $0xc4] ss:$16 sps:$4 sm:$0xff]  }
  0x7c   :  { %1172 = vmatpush1.bf16.msra.mxu0 %v13655_v2  ;;  %v13672_v2 = vld [vmem:[%s20680_s5 + $0xec] ss:$16 sps:$4 sm:$0xff]  }
  0x7d   :  { %1173 = vmatprep.subr.bf16.mxu0 %v13663_v4  ;;  %v13678_v4 = vld [vmem:[%s20680_s5 + $0xcc] ss:$16 sps:$4 sm:$0xff]  }
  0x7e   :  { %1213 = vmatpush1.bf16.msra.mxu1 %v13658_v5  ;;  %v13673_v5 = vld [vmem:[%s20680_s5 + $0xc0] ss:$16 sps:$4 sm:$0xff]  }
  0x7f   :  { %1214 = vmatprep.subr.bf16.mxu1 %v13666_v6  ;;  %v13676_v6 = vld [vmem:[%s20680_s5 + $0xc8] ss:$16 sps:$4 sm:$0xff]  }
  0x80   :  { %1174 = vmatpush1.bf16.msra.mxu0 %v13661_v7  ;;  %v13681_v7 = vld [vmem:[%s20680_s5 + $0xa4] ss:$16 sps:$4 sm:$0xff]  }
  0x81   :  { %1465 = vmatprep.subr.bf16.mxu0 %v13669_v62 }
  0x82   :  { %1215 = vmatpush1.bf16.msra.mxu1 %v13664_v8  ;;  %v13684_v8 = vld [vmem:[%s20680_s5 + $0xac] ss:$16 sps:$4 sm:$0xff]  }
  0x83   :  { %1506 = vmatprep.subr.bf16.mxu1 %v13672_v2 }
  0x89   :  { %v16262_v48 = vpop.permute.xlu0 %103 }
  0x8a   :  { %vm105_vm4 = vcmp.eq.s32.totalorder %v16262_v48, 1  ;;  %v12435_v48 = vld [vmem:[%s20679_s1 + $0x50] sm:$0xff] }
  0x8b   :  { %vm16268_vm5 = vmpackc.low %vm105_vm4, %vm105_vm4 }
  0xe3   :  { %v333_v11 = vpop.f32.mrf.mxu0  ;;  %v374_v18 = vpop.f32.mrf.mxu1 }
  0xe4   :  { %v935_v12 = vadd.f32 %v931_v9, %v333_v11  ;;  %v937_v26 = vadd.f32 %v933_v23, %v374_v18  ;;  %v13679_v9 = vld [vmem:[%s20680_s5 + $0xa0] ss:$16 sps:$4 sm:$0xff]   ;;  %v13687_v11 = vld [vmem:[%s20680_s5 + $0x84] ss:$16 sps:$4 sm:$0xff]   ;;  %v13696_v18 = vld [vmem:[%s20680_s5 + $0x6c] ss:$16 sps:$4 sm:$0xff]  }
  0xe5   :  { %v335_v13 = vpop.f32.mrf.mxu0  ;;  %v376_v20 = vpop.f32.mrf.mxu1  ;;  %v13700_v23 = vld [vmem:[%s20680_s5 + $0x48] ss:$16 sps:$4 sm:$0xff]  }
  0xe6   :  { %v12066_v14 = vmul.f32 -1.442695, %v935_v12  ;;  %v936_v15 = vadd.f32 %v932_v10, %v335_v13  ;;  %v938_v25 = vadd.f32 %v934_v21, %v376_v20  ;;  %v13682_v10 = vld [vmem:[%s20680_s5 + $0xa8] ss:$16 sps:$4 sm:$0xff]   ;;  %v13690_v12 = vld [vmem:[%s20680_s5 + $0x8c] ss:$16 sps:$4 sm:$0xff]  }
  0xe7   :  { %v337_v16 = vpop.f32.mrf.mxu0  ;;  %v378_v22 = vpop.f32.mrf.mxu1  ;;  %v13685_v13 = vld [vmem:[%s20680_s5 + $0x80] ss:$16 sps:$4 sm:$0xff]   ;;  %v13702_v20 = vld [vmem:[%s20680_s5 + $0x4c] ss:$16 sps:$4 sm:$0xff]  }
  0xe8   :  { %15395 = vpow2.f32 %v12066_v14  ;;  %v12067_v17 = vmul.f32 -1.442695, %v936_v15  ;;  %v12068_v27 = vmul.f32 -1.442695, %v938_v25  ;;  %v13688_v14 = vld [vmem:[%s20680_s5 + $0x88] ss:$16 sps:$4 sm:$0xff]  }
  0xe9   :  { %v338_v19 = vpop.f32.mrf.mxu0  ;;  %v379_v24 = vpop.f32.mrf.mxu1  ;;  %v13691_v15 = vld [vmem:[%s20680_s5 + $0x60] ss:$16 sps:$4 sm:$0xff]   ;;  %v13693_v16 = vld [vmem:[%s20680_s5 + $0x64] ss:$16 sps:$4 sm:$0xff]   ;;  %v13708_v25 = vld [vmem:[%s20680_s5 + $0x2c] ss:$16 sps:$4 sm:$0xff]  }
  0xea   :  { %15397 = vpow2.f32 %v12067_v17  ;;  %v13694_v17 = vld [vmem:[%s20680_s5 + $0x68] ss:$16 sps:$4 sm:$0xff]   ;;  %v13699_v19 = vld [vmem:[%s20680_s5 + $0x44] ss:$16 sps:$4 sm:$0xff]   ;;  %v13697_v21 = vld [vmem:[%s20680_s5 + $0x40] ss:$16 sps:$4 sm:$0xff]  }
  0xeb   :  { %15399 = vtanh.f32 %v937_v26  ;;  %v13705_v22 = vld [vmem:[%s20680_s5 + $0x24] ss:$16 sps:$4 sm:$0xff]   ;;  %v13703_v24 = vld [vmem:[%s20680_s5 + $0x20] ss:$16 sps:$4 sm:$0xff]  }
  0xec   :  { %15401 = vpow2.f32 %v12068_v27  ;;  %v13711_v26 = vld [vmem:[%s20680_s5 + $0x4] ss:$16 sps:$4 sm:$0xff]   ;;  %v13706_v27 = vld [vmem:[%s20680_s5 + $0x28] ss:$16 sps:$4 sm:$0xff]  }
  0xf5   :  { %v15396_v28 = vpop.eup %15395 }
  0xf6   :  { %v942_v29 = vadd.f32 1.0, %v15396_v28  ;;  %v13714_v28 = vld [vmem:[%s20680_s5 + $0xc] ss:$16 sps:$4 sm:$0xff]  }
  0xf7   :  { %v15398_v30 = vpop.eup %15397 }
  0xf8   :  { %15403 = vrcp.f32 %v942_v29  ;;  %v948_v31 = vadd.f32 1.0, %v15398_v30  ;;  %v15400_v32 = vpop.eup %15399  ;;  %v13709_v29 = vld [vmem:[%s20680_s5] ss:$16 sps:$4 sm:$0xff]   ;;  %v13717_v30 = vld [vmem:[%s20674_s2 + $0xe4] ss:$16 sps:$4 sm:$0xff]  }
  0xf9   :  { %v15402_v34 = vpop.eup %15401 }
  0xfa   :  { %15405 = vrcp.f32 %v948_v31  ;;  %v955_v38 = vadd.f32 1.0, %v15402_v34  ;;  %v13712_v31 = vld [vmem:[%s20680_s5 + $0x8] ss:$16 sps:$4 sm:$0xff]   ;;  %v46_v34 = vlaneseq }
  0xfc   :  { %15407 = vrcp.f32 %v955_v38 }
 0x103   :  { %v16251_v33 = vpop.f32.mrf.mxu0 }
 0x105   :  { %v15404_v35 = vpop.eup %15403  ;;  %v16253_v36 = vpop.f32.mrf.mxu0 }
 0x106   :  { %v959_v42 = vmul.f32 %v15404_v35, %v15400_v32  ;;  %v16255_v43 = vpop.f32.mrf.mxu1  ;;  %v13720_v32 = vld [vmem:[%s20674_s2 + $0xec] ss:$16 sps:$4 sm:$0xff]   ;;  %v16396_v35 = vshrl.u32 %v46_v34, 7  ;;  %v13727_v34 = vld [vmem:[%s20674_s2 + $0xa0] ss:$16 sps:$4 sm:$0xff]  }
 0x107   :  { %v15406_v37 = vpop.eup %15405  ;;  %v612_v39 = vpop.f32.mrf.mxu0 }
 0x108   :  { %v958_v40 = vmul.f32 0.0, %v15406_v37  ;;  %v16259_v46 = vpop.f32.mrf.mxu1  ;;  %v44_v37 = vld [vmem:[%s20681_s7] sm:$0xf]  ;;  %v48_v38 = vsub.s32 0, %v16396_v35  ;;  %v52_v39 = vsub.s32 1, %v16396_v35 }
 0x109   :  { %v613_v44 = vpop.f32.mrf.mxu0  ;;  %v15408_v50 = vpop.eup %15407 }
 0x10a   :  { %v16257_v45 = vadd.f32 %v959_v42, %v958_v40  ;;  %v653_v47 = vpop.f32.mrf.mxu1  ;;  %v16405_v40 = vrot.slane %v44_v37, %v48_v38 }
 0x10c   :  { %15409 = vtanh.f32 %v16257_v45  ;;  %v654_v41 = vpop.f32.mrf.mxu1 }
 0x10d   :  { %v16410_v41 = vrot.slane %v44_v37, %v52_v39 }
 0x119   :  { %v15410_v51 = vpop.eup %15409 }
 0x11a   :  { %v16272_v52 = vmul.f32 %v15410_v51, %v15408_v50 }
 0x11c   :  { %v16276_v53 = vpack.c.bf16 %v16272_v52, %v16272_v52 }
 0x11e   :  { %12103 = vmatmul.mubr.msk.bf16.vlgmr.msra.gmra.mxu0 %vm16268_vm5, %v16276_v53  ;;  %12106 = vmatmul.mubr.msk.bf16.vlgmr.msra.gmra.mxu1 %vm16268_vm5, %v16276_v53 }
 0x11f   :  { %1497 = vmatprep.mubr.bf16.mxu0 %v15780_v1  ;;  %1538 = vmatprep.mubr.bf16.mxu1 %v15780_v1 }
 0x120   :  { %1466 = vmatpush1.bf16.msra.mxu0 %v13667_v63  ;;  %1507 = vmatpush1.bf16.msra.mxu1 %v13670_v0  ;;  %v60_v0 = vsub.s32 3, %v16396_v35 }
 0x121   :  { %1467 = vmatprep.subr.bf16.mxu0 %v13675_v3  ;;  %1508 = vmatprep.subr.bf16.mxu1 %v13678_v4 }
 0x122   :  { %v16418_v4 = vrot.slane %v44_v37, %v60_v0 }
 0x123   :  { %v16286_v54 = vpop.f32.mrf.mxu0 }
 0x124   :  { %1468 = vmatpush1.bf16.msra.mxu0 %v13673_v5  ;;  %1509 = vmatpush1.bf16.msra.mxu1 %v13676_v6 }
 0x125   :  { %v16288_v55 = vpop.f32.mrf.mxu0  ;;  %v16290_v57 = vpop.f32.mrf.mxu1  ;;  %1469 = vmatprep.subr.bf16.mxu0 %v13681_v7  ;;  %1510 = vmatprep.subr.bf16.mxu1 %v13684_v8 }
 0x127   :  { %v887_v56 = vpop.f32.mrf.mxu0  ;;  %v16292_v59 = vpop.f32.mrf.mxu1 }
 0x128   :  { %1470 = vmatpush1.bf16.msra.mxu0 %v13679_v9  ;;  %1511 = vmatpush1.bf16.msra.mxu1 %v13682_v10 }
 0x129   :  { %v888_v58 = vpop.f32.mrf.mxu0  ;;  %v928_v60 = vpop.f32.mrf.mxu1  ;;  %1471 = vmatprep.subr.bf16.mxu0 %v13687_v11  ;;  %1512 = vmatprep.subr.bf16.mxu1 %v13690_v12 }
 0x12b   :  { %v929_v61 = vpop.f32.mrf.mxu1 }
 0x12c   :  { %1472 = vmatpush1.bf16.msra.mxu0 %v13685_v13  ;;  %1513 = vmatpush1.bf16.msra.mxu1 %v13688_v14 }
 0x12d   :  { %1473 = vmatprep.subr.bf16.mxu0 %v13693_v16  ;;  %1514 = vmatprep.subr.bf16.mxu1 %v13696_v18 }
 0x130   :  { %1474 = vmatpush1.bf16.msra.mxu0 %v13691_v15  ;;  %1515 = vmatpush1.bf16.msra.mxu1 %v13694_v17 }
 0x131   :  { %1475 = vmatprep.subr.bf16.mxu0 %v13699_v19  ;;  %1516 = vmatprep.subr.bf16.mxu1 %v13702_v20 }
 0x134   :  { %1476 = vmatpush1.bf16.msra.mxu0 %v13697_v21  ;;  %1517 = vmatpush1.bf16.msra.mxu1 %v13700_v23 }
 0x135   :  { %1477 = vmatprep.subr.bf16.mxu0 %v13705_v22  ;;  %1518 = vmatprep.subr.bf16.mxu1 %v13708_v25  ;;  %v13718_v25 = vld [vmem:[%s20674_s2 + $0xe8] ss:$16 sps:$4 sm:$0xff]  }
 0x138   :  { %1478 = vmatpush1.bf16.msra.mxu0 %v13703_v24  ;;  %1519 = vmatpush1.bf16.msra.mxu1 %v13706_v27  ;;  %v13715_v24 = vld [vmem:[%s20674_s2 + $0xe0] ss:$16 sps:$4 sm:$0xff]   ;;  %v13723_v27 = vld [vmem:[%s20674_s2 + $0xc4] ss:$16 sps:$4 sm:$0xff]  }
 0x139   :  { %1479 = vmatprep.subr.bf16.mxu0 %v13711_v26  ;;  %1520 = vmatprep.subr.bf16.mxu1 %v13714_v28  ;;  %v13726_v28 = vld [vmem:[%s20674_s2 + $0xcc] ss:$16 sps:$4 sm:$0xff]  }
 0x13c   :  { %1480 = vmatpush1.bf16.msra.mxu0 %v13709_v29  ;;  %1521 = vmatpush1.bf16.msra.mxu1 %v13712_v31  ;;  %v13721_v29 = vld [vmem:[%s20674_s2 + $0xc0] ss:$16 sps:$4 sm:$0xff]   ;;  %v13729_v31 = vld [vmem:[%s20674_s2 + $0xa4] ss:$16 sps:$4 sm:$0xff]  }
 0x13d   :  { %1780 = vmatprep.subr.bf16.mxu0 %v13717_v30  ;;  %1821 = vmatprep.subr.bf16.mxu1 %v13720_v32  ;;  %v13724_v30 = vld [vmem:[%s20674_s2 + $0xc8] ss:$16 sps:$4 sm:$0xff]   ;;  %v13732_v32 = vld [vmem:[%s20674_s2 + $0xac] ss:$16 sps:$4 sm:$0xff]  }
 0x1de   :  { %v1193_v42 = vpop.f32.mrf.mxu0  ;;  %v1234_v44 = vpop.f32.mrf.mxu1 }
 0x1df   :  { %v1194_v47 = vadd.f32 %v1193_v42, %v16251_v33  ;;  %v1235_v8 = vadd.f32 %v1234_v44, %v16255_v43  ;;  %v13735_v42 = vld [vmem:[%s20674_s2 + $0x84] ss:$16 sps:$4 sm:$0xff]   ;;  %v13738_v44 = vld [vmem:[%s20674_s2 + $0x8c] ss:$16 sps:$4 sm:$0xff]  }
 0x1e0   :  { %v1195_v50 = vpop.f32.mrf.mxu0  ;;  %v1236_v51 = vpop.f32.mrf.mxu1 }
 0x1e1   :  { %v1241_v56 = vadd.f32 %v1194_v47, %v16405_v40  ;;  %v1196_v58 = vadd.f32 %v1195_v50, %v16253_v36  ;;  %v1237_v5 = vadd.f32 %v1236_v51, %v16259_v46  ;;  %v56_v36 = vsub.s32 2, %v16396_v35  ;;  %v13733_v47 = vld [vmem:[%s20674_s2 + $0x80] ss:$16 sps:$4 sm:$0xff]   ;;  %v13736_v50 = vld [vmem:[%s20674_s2 + $0x88] ss:$16 sps:$4 sm:$0xff]  }
 0x1e2   :  { %v1197_v60 = vpop.f32.mrf.mxu0  ;;  %v1238_v61 = vpop.f32.mrf.mxu1  ;;  %v13741_v51 = vld [vmem:[%s20674_s2 + $0x64] ss:$16 sps:$4 sm:$0xff]  }
 0x1e3   :  { %v12107_v62 = vmul.f32 -1.442695, %v1241_v56  ;;  %v1242_v63 = vadd.f32 %v1196_v58, %v16410_v41  ;;  %v1244_v6 = vadd.f32 %v1237_v5, %v16418_v4  ;;  %v16425_v7 = vrot.slane %v44_v37, %v56_v36  ;;  %v13730_v37 = vld [vmem:[%s20674_s2 + $0xa8] ss:$16 sps:$4 sm:$0xff]   ;;  %v13744_v56 = vld [vmem:[%s20674_s2 + $0x6c] ss:$16 sps:$4 sm:$0xff]  }
 0x1e4   :  { %v1198_v2 = vpop.f32.mrf.mxu0  ;;  %v1239_v3 = vpop.f32.mrf.mxu1  ;;  %v13739_v58 = vld [vmem:[%s20674_s2 + $0x60] ss:$16 sps:$4 sm:$0xff]   ;;  %v13742_v60 = vld [vmem:[%s20674_s2 + $0x68] ss:$16 sps:$4 sm:$0xff]   ;;  %v13747_v61 = vld [vmem:[%s20674_s2 + $0x44] ss:$16 sps:$4 sm:$0xff]  }
 0x1e5   :  { %15411 = vpow2.f32 %v12107_v62  ;;  %v12108_v33 = vmul.f32 -1.442695, %v1242_v63  ;;  %v12109_v9 = vmul.f32 -1.442695, %v1244_v6  ;;  %v1243_v11 = vadd.f32 %v1235_v8, %v16425_v7  ;;  %v13750_v62 = vld [vmem:[%s20674_s2 + $0x4c] ss:$16 sps:$4 sm:$0xff]  }
 0x1e6   :  { %v13745_v63 = vld [vmem:[%s20674_s2 + $0x40] ss:$16 sps:$4 sm:$0xff]   ;;  %v13748_v2 = vld [vmem:[%s20674_s2 + $0x48] ss:$16 sps:$4 sm:$0xff]   ;;  %v13753_v3 = vld [vmem:[%s20674_s2 + $0x24] ss:$16 sps:$4 sm:$0xff]  }
 0x1e7   :  { %15413 = vpow2.f32 %v12108_v33  ;;  %v13756_v33 = vld [vmem:[%s20674_s2 + $0x2c] ss:$16 sps:$4 sm:$0xff]   ;;  %v13751_v5 = vld [vmem:[%s20674_s2 + $0x20] ss:$16 sps:$4 sm:$0xff]   ;;  %v13754_v6 = vld [vmem:[%s20674_s2 + $0x28] ss:$16 sps:$4 sm:$0xff]  }
 0x1e8   :  { %15415 = vpow2.f32 %v12109_v9  ;;  %v13759_v8 = vld [vmem:[%s20674_s2 + $0x4] ss:$16 sps:$4 sm:$0xff]   ;;  %v13762_v9 = vld [vmem:[%s20674_s2 + $0xc] ss:$16 sps:$4 sm:$0xff]  }
 0x1f2   :  { %v15412_v10 = vpop.eup %15411 }
 0x1f3   :  { %v1248_v12 = vadd.f32 1.0, %v15412_v10  ;;  %v13757_v10 = vld [vmem:[%s20674_s2] ss:$16 sps:$4 sm:$0xff]  }
 0x1f4   :  { %v15414_v13 = vpop.eup %15413 }
 0x1f5   :  { %15417 = vrcp.f32 %v1248_v12  ;;  %v1254_v14 = vadd.f32 1.0, %v15414_v13  ;;  %v15416_v46 = vpop.eup %15415  ;;  %v13765_v12 = vld [vmem:[%s20676_s4 + $0xe4] ss:$16 sps:$4 sm:$0xff]   ;;  %v13768_v13 = vld [vmem:[%s20676_s4 + $0xec] ss:$16 sps:$4 sm:$0xff]  }
 0x1f6   :  { %15419 = vtanh.f32 %v1243_v11  ;;  %v1261_v18 = vadd.f32 1.0, %v15416_v46  ;;  %v13760_v11 = vld [vmem:[%s20674_s2 + $0x8] ss:$16 sps:$4 sm:$0xff]  }
 0x1f7   :  { %15421 = vrcp.f32 %v1254_v14  ;;  %v13763_v14 = vld [vmem:[%s20676_s4 + $0xe0] ss:$16 sps:$4 sm:$0xff]   ;;  %v13766_v46 = vld [vmem:[%s20676_s4 + $0xe8] ss:$16 sps:$4 sm:$0xff]  }
 0x1f8   :  { %15423 = vrcp.f32 %v1261_v18  ;;  %v13772_v18 = vld [vmem:[%s20676_s4 + $0xc8] ss:$16 sps:$4 sm:$0xff]  }
 0x202   :  { %v15418_v15 = vpop.eup %15417 }
 0x203   :  { %v15420_v16 = vpop.eup %15419 }
 0x204   :  { %v15422_v17 = vpop.eup %15421  ;;  %v1265_v20 = vmul.f32 %v15420_v16, %v15418_v15  ;;  %v13771_v15 = vld [vmem:[%s20676_s4 + $0xc4] ss:$16 sps:$4 sm:$0xff]   ;;  %v13774_v16 = vld [vmem:[%s20676_s4 + $0xcc] ss:$16 sps:$4 sm:$0xff]  }
 0x205   :  { %v1264_v19 = vmul.f32 0.0, %v15422_v17  ;;  %v15424_v43 = vpop.eup %15423  ;;  %v13769_v17 = vld [vmem:[%s20676_s4 + $0xc0] ss:$16 sps:$4 sm:$0xff]  }
 0x207   :  { %v16429_v21 = vadd.f32 %v1265_v20, %v1264_v19  ;;  %v13777_v19 = vld [vmem:[%s20676_s4 + $0xa4] ss:$16 sps:$4 sm:$0xff]   ;;  %v13775_v20 = vld [vmem:[%s20676_s4 + $0xa0] ss:$16 sps:$4 sm:$0xff]  }
 0x209   :  { %15425 = vtanh.f32 %v16429_v21 }
 0x216   :  { %v15426_v22 = vpop.eup %15425 }
 0x217   :  { %v16432_v23 = vmul.f32 %v15426_v22, %v15424_v43  ;;  %v13778_v43 = vld [vmem:[%s20676_s4 + $0xa8] ss:$16 sps:$4 sm:$0xff]   ;;  %v13783_v22 = vld [vmem:[%s20676_s4 + $0x84] ss:$16 sps:$4 sm:$0xff]  }
 0x219   :  { %v16442_v26 = vpack.c.bf16 %v16432_v23, %v16432_v23 }
 0x21b   :  { %12144 = vmatmul.mubr.msk.bf16.vlgmr.msra.gmra.mxu0 %vm16268_vm5, %v16442_v26  ;;  %12147 = vmatmul.mubr.msk.bf16.vlgmr.msra.gmra.mxu1 %vm16268_vm5, %v16442_v26 }
 0x21c   :  { %1781 = vmatpush1.bf16.msra.mxu0 %v13715_v24  ;;  %1822 = vmatpush1.bf16.msra.mxu1 %v13718_v25  ;;  %v13786_v24 = vld [vmem:[%s20676_s4 + $0x8c] ss:$16 sps:$4 sm:$0xff]   ;;  %v13781_v25 = vld [vmem:[%s20676_s4 + $0x80] ss:$16 sps:$4 sm:$0xff]  }
 0x21d   :  { %1782 = vmatprep.subr.bf16.mxu0 %v13723_v27  ;;  %1823 = vmatprep.subr.bf16.mxu1 %v13726_v28  ;;  %v13784_v27 = vld [vmem:[%s20676_s4 + $0x88] ss:$16 sps:$4 sm:$0xff]   ;;  %v13789_v28 = vld [vmem:[%s20676_s4 + $0x64] ss:$16 sps:$4 sm:$0xff]  }
 0x21e   :  { %1812 = vmatprep.mubr.bf16.mxu0 %v15780_v1  ;;  %1853 = vmatprep.mubr.bf16.mxu1 %v15780_v1 }
 0x220   :  { %1783 = vmatpush1.bf16.msra.mxu0 %v13721_v29  ;;  %1824 = vmatpush1.bf16.msra.mxu1 %v13724_v30  ;;  %v13792_v29 = vld [vmem:[%s20676_s4 + $0x6c] ss:$16 sps:$4 sm:$0xff]   ;;  %v13787_v30 = vld [vmem:[%s20676_s4 + $0x60] ss:$16 sps:$4 sm:$0xff]  }
 0x221   :  { %1784 = vmatprep.subr.bf16.mxu0 %v13729_v31  ;;  %1825 = vmatprep.subr.bf16.mxu1 %v13732_v32  ;;  %v13790_v31 = vld [vmem:[%s20676_s4 + $0x68] ss:$16 sps:$4 sm:$0xff]   ;;  %v13795_v32 = vld [vmem:[%s20676_s4 + $0x44] ss:$16 sps:$4 sm:$0xff]  }
 0x224   :  { %1785 = vmatpush1.bf16.msra.mxu0 %v13727_v34  ;;  %1826 = vmatpush1.bf16.msra.mxu1 %v13730_v37  ;;  %v13798_v34 = vld [vmem:[%s20676_s4 + $0x4c] ss:$16 sps:$4 sm:$0xff]   ;;  %v13793_v37 = vld [vmem:[%s20676_s4 + $0x40] ss:$16 sps:$4 sm:$0xff]  }
 0x225   :  { %1786 = vmatprep.subr.bf16.mxu0 %v13735_v42  ;;  %1827 = vmatprep.subr.bf16.mxu1 %v13738_v44  ;;  %v13796_v42 = vld [vmem:[%s20676_s4 + $0x48] ss:$16 sps:$4 sm:$0xff]   ;;  %v13801_v44 = vld [vmem:[%s20676_s4 + $0x24] ss:$16 sps:$4 sm:$0xff]  }
 0x228   :  { %1787 = vmatpush1.bf16.msra.mxu0 %v13733_v47  ;;  %1828 = vmatpush1.bf16.msra.mxu1 %v13736_v50  ;;  %v13804_v47 = vld [vmem:[%s20676_s4 + $0x2c] ss:$16 sps:$4 sm:$0xff]   ;;  %v13799_v50 = vld [vmem:[%s20676_s4 + $0x20] ss:$16 sps:$4 sm:$0xff]  }
 0x229   :  { %1788 = vmatprep.subr.bf16.mxu0 %v13741_v51  ;;  %1829 = vmatprep.subr.bf16.mxu1 %v13744_v56  ;;  %v13802_v51 = vld [vmem:[%s20676_s4 + $0x28] ss:$16 sps:$4 sm:$0xff]   ;;  %v13807_v56 = vld [vmem:[%s20676_s4 + $0x4] ss:$16 sps:$4 sm:$0xff]  }
 0x22c   :  { %1789 = vmatpush1.bf16.msra.mxu0 %v13739_v58  ;;  %1830 = vmatpush1.bf16.msra.mxu1 %v13742_v60  ;;  %v13810_v58 = vld [vmem:[%s20676_s4 + $0xc] ss:$16 sps:$4 sm:$0xff]   ;;  %v13805_v60 = vld [vmem:[%s20676_s4] ss:$16 sps:$4 sm:$0xff]  }
 0x22d   :  { %1790 = vmatprep.subr.bf16.mxu0 %v13747_v61  ;;  %1831 = vmatprep.subr.bf16.mxu1 %v13750_v62  ;;  %v13808_v61 = vld [vmem:[%s20676_s4 + $0x8] ss:$16 sps:$4 sm:$0xff]   ;;  %v13813_v62 = vld [vmem:[%s20677_s6 + $0xe4] ss:$16 sps:$4 sm:$0xff]  }
 0x230   :  { %1791 = vmatpush1.bf16.msra.mxu0 %v13745_v63  ;;  %1832 = vmatpush1.bf16.msra.mxu1 %v13748_v2  ;;  %v13816_v63 = vld [vmem:[%s20677_s6 + $0xec] ss:$16 sps:$4 sm:$0xff]   ;;  %v13811_v2 = vld [vmem:[%s20677_s6 + $0xe0] ss:$16 sps:$4 sm:$0xff]  }
 0x231   :  { %1792 = vmatprep.subr.bf16.mxu0 %v13753_v3  ;;  %1833 = vmatprep.subr.bf16.mxu1 %v13756_v33  ;;  %v13819_v3 = vld [vmem:[%s20677_s6 + $0xc4] ss:$16 sps:$4 sm:$0xff]   ;;  %v13822_v33 = vld [vmem:[%s20677_s6 + $0xcc] ss:$16 sps:$4 sm:$0xff]  }
 0x234   :  { %1793 = vmatpush1.bf16.msra.mxu0 %v13751_v5  ;;  %1834 = vmatpush1.bf16.msra.mxu1 %v13754_v6  ;;  %v13817_v5 = vld [vmem:[%s20677_s6 + $0xc0] ss:$16 sps:$4 sm:$0xff]   ;;  %v13820_v6 = vld [vmem:[%s20677_s6 + $0xc8] ss:$16 sps:$4 sm:$0xff]  }
 0x235   :  { %1794 = vmatprep.subr.bf16.mxu0 %v13759_v8  ;;  %1835 = vmatprep.subr.bf16.mxu1 %v13762_v9  ;;  %v13825_v8 = vld [vmem:[%s20677_s6 + $0xa4] ss:$16 sps:$4 sm:$0xff]   ;;  %v13828_v9 = vld [vmem:[%s20677_s6 + $0xac] ss:$16 sps:$4 sm:$0xff]  }
 0x238   :  { %1795 = vmatpush1.bf16.msra.mxu0 %v13757_v10  ;;  %1836 = vmatpush1.bf16.msra.mxu1 %v13760_v11  ;;  %v13823_v10 = vld [vmem:[%s20677_s6 + $0xa0] ss:$16 sps:$4 sm:$0xff]   ;;  %v13826_v11 = vld [vmem:[%s20677_s6 + $0xa8] ss:$16 sps:$4 sm:$0xff]  }
 0x239   :  { %2055 = vmatprep.subr.bf16.mxu0 %v13765_v12  ;;  %2096 = vmatprep.subr.bf16.mxu1 %v13768_v13  ;;  %v13831_v12 = vld [vmem:[%s20677_s6 + $0x84] ss:$16 sps:$4 sm:$0xff]   ;;  %v13834_v13 = vld [vmem:[%s20677_s6 + $0x8c] ss:$16 sps:$4 sm:$0xff]  }
 0x23b   :  { %13455 = vmatmul.mubr.msk.bf16.vlgmr.msra.gmra.mxu0 %vm16268_vm5, %v16276_v53  ;;  %13458 = vmatmul.mubr.msk.bf16.vlgmr.msra.gmra.mxu1 %vm16268_vm5, %v16276_v53  ;;  %v13780_v53 = vld [vmem:[%s20676_s4 + $0xac] ss:$16 sps:$4 sm:$0xff]  }
 0x23c   :  { %2056 = vmatpush1.bf16.msra.mxu0 %v13763_v14  ;;  %2097 = vmatpush1.bf16.msra.mxu1 %v13766_v46  ;;  %v13829_v14 = vld [vmem:[%s20677_s6 + $0x80] ss:$16 sps:$4 sm:$0xff]   ;;  %v13832_v46 = vld [vmem:[%s20677_s6 + $0x88] ss:$16 sps:$4 sm:$0xff]  }
 0x23d   :  { %2057 = vmatprep.subr.bf16.mxu0 %v13771_v15  ;;  %2098 = vmatprep.subr.bf16.mxu1 %v13774_v16  ;;  %v13837_v15 = vld [vmem:[%s20677_s6 + $0x64] ss:$16 sps:$4 sm:$0xff]   ;;  %v13840_v16 = vld [vmem:[%s20677_s6 + $0x6c] ss:$16 sps:$4 sm:$0xff]  }
 0x23e   :  { %2087 = vmatprep.mubr.bf16.mxu0 %v15780_v1  ;;  %2128 = vmatprep.mubr.bf16.mxu1 %v15780_v1 }
 0x240   :  { %2058 = vmatpush1.bf16.msra.mxu0 %v13769_v17  ;;  %2099 = vmatpush1.bf16.msra.mxu1 %v13772_v18  ;;  %v13835_v17 = vld [vmem:[%s20677_s6 + $0x60] ss:$16 sps:$4 sm:$0xff]   ;;  %v13838_v18 = vld [vmem:[%s20677_s6 + $0x68] ss:$16 sps:$4 sm:$0xff]  }
 0x241   :  { %2059 = vmatprep.subr.bf16.mxu0 %v13777_v19  ;;  %2100 = vmatprep.subr.bf16.mxu1 %v13780_v53  ;;  %v13843_v19 = vld [vmem:[%s20677_s6 + $0x44] ss:$16 sps:$4 sm:$0xff]   ;;  %v13846_v53 = vld [vmem:[%s20677_s6 + $0x4c] ss:$16 sps:$4 sm:$0xff]  }
 0x244   :  { %2060 = vmatpush1.bf16.msra.mxu0 %v13775_v20  ;;  %2101 = vmatpush1.bf16.msra.mxu1 %v13778_v43  ;;  %v13841_v20 = vld [vmem:[%s20677_s6 + $0x40] ss:$16 sps:$4 sm:$0xff]   ;;  %v13844_v43 = vld [vmem:[%s20677_s6 + $0x48] ss:$16 sps:$4 sm:$0xff]  }
 0x245   :  { %2061 = vmatprep.subr.bf16.mxu0 %v13783_v22  ;;  %2102 = vmatprep.subr.bf16.mxu1 %v13786_v24  ;;  %v13849_v22 = vld [vmem:[%s20677_s6 + $0x24] ss:$16 sps:$4 sm:$0xff]   ;;  %v13852_v24 = vld [vmem:[%s20677_s6 + $0x2c] ss:$16 sps:$4 sm:$0xff]  }
 0x248   :  { %2062 = vmatpush1.bf16.msra.mxu0 %v13781_v25  ;;  %2103 = vmatpush1.bf16.msra.mxu1 %v13784_v27  ;;  %v13847_v25 = vld [vmem:[%s20677_s6 + $0x20] ss:$16 sps:$4 sm:$0xff]   ;;  %v13850_v27 = vld [vmem:[%s20677_s6 + $0x28] ss:$16 sps:$4 sm:$0xff]  }
 0x249   :  { %2063 = vmatprep.subr.bf16.mxu0 %v13789_v28  ;;  %2104 = vmatprep.subr.bf16.mxu1 %v13792_v29  ;;  %v13855_v28 = vld [vmem:[%s20677_s6 + $0x4] ss:$16 sps:$4 sm:$0xff]   ;;  %v13858_v29 = vld [vmem:[%s20677_s6 + $0xc] ss:$16 sps:$4 sm:$0xff]  }
 0x24c   :  { %2064 = vmatpush1.bf16.msra.mxu0 %v13787_v30  ;;  %2105 = vmatpush1.bf16.msra.mxu1 %v13790_v31  ;;  %v13853_v30 = vld [vmem:[%s20677_s6] ss:$16 sps:$4 sm:$0xff]   ;;  %v13856_v31 = vld [vmem:[%s20677_s6 + $0x8] ss:$16 sps:$4 sm:$0xff]  }
 0x24d   :  { %2065 = vmatprep.subr.bf16.mxu0 %v13795_v32  ;;  %2106 = vmatprep.subr.bf16.mxu1 %v13798_v34  ;;  %v13861_v32 = vld [vmem:[%s20678_s3 + $0xe4] ss:$16 sps:$4 sm:$0xff]   ;;  %v13864_v34 = vld [vmem:[%s20678_s3 + $0xec] ss:$16 sps:$4 sm:$0xff]  }
 0x250   :  { %2066 = vmatpush1.bf16.msra.mxu0 %v13793_v37  ;;  %2107 = vmatpush1.bf16.msra.mxu1 %v13796_v42  ;;  %v66_v37 = vld [vmem:[%s20682_s8] sm:$0xf] }
 0x251   :  { %2067 = vmatprep.subr.bf16.mxu0 %v13801_v44  ;;  %2108 = vmatprep.subr.bf16.mxu1 %v13804_v47  ;;  %v16755_v42 = vrot.slane %v66_v37, %v48_v38 }
 0x254   :  { %2068 = vmatpush1.bf16.msra.mxu0 %v13799_v50  ;;  %2109 = vmatpush1.bf16.msra.mxu1 %v13802_v51  ;;  %v16760_v51 = vrot.slane %v66_v37, %v52_v39 }
 0x255   :  { %2069 = vmatprep.subr.bf16.mxu0 %v13807_v56  ;;  %2110 = vmatprep.subr.bf16.mxu1 %v13810_v58 }
 0x258   :  { %2070 = vmatpush1.bf16.msra.mxu0 %v13805_v60  ;;  %2111 = vmatpush1.bf16.msra.mxu1 %v13808_v61 }
 0x259   :  { %2330 = vmatprep.subr.bf16.mxu0 %v13813_v62  ;;  %2371 = vmatprep.subr.bf16.mxu1 %v13816_v63 }
 0x25b   :  { %13461 = vmatmul.mubr.msk.bf16.vlgmr.msra.gmra.mxu0 %vm16268_vm5, %v16442_v26  ;;  %13464 = vmatmul.mubr.msk.bf16.vlgmr.msra.gmra.mxu1 %vm16268_vm5, %v16442_v26  ;;  %v13814_v26 = vld [vmem:[%s20677_s6 + $0xe8] ss:$16 sps:$4 sm:$0xff]  }
 0x25c   :  { %2362 = vmatprep.mubr.bf16.mxu0 %v15780_v1  ;;  %2403 = vmatprep.mubr.bf16.mxu1 %v15780_v1 }
 0x25d   :  { %2331 = vmatpush1.bf16.msra.mxu0 %v13811_v2  ;;  %2372 = vmatpush1.bf16.msra.mxu1 %v13814_v26 }
 0x25e   :  { %2332 = vmatprep.subr.bf16.mxu0 %v13819_v3  ;;  %2373 = vmatprep.subr.bf16.mxu1 %v13822_v33 }
 0x261   :  { %2333 = vmatpush1.bf16.msra.mxu0 %v13817_v5  ;;  %2374 = vmatpush1.bf16.msra.mxu1 %v13820_v6 }
 0x262   :  { %2334 = vmatprep.subr.bf16.mxu0 %v13825_v8  ;;  %2375 = vmatprep.subr.bf16.mxu1 %v13828_v9 }
 0x265   :  { %2335 = vmatpush1.bf16.msra.mxu0 %v13823_v10  ;;  %2376 = vmatpush1.bf16.msra.mxu1 %v13826_v11 }
 0x266   :  { %2336 = vmatprep.subr.bf16.mxu0 %v13831_v12  ;;  %2377 = vmatprep.subr.bf16.mxu1 %v13834_v13 }
 0x269   :  { %2337 = vmatpush1.bf16.msra.mxu0 %v13829_v14  ;;  %2378 = vmatpush1.bf16.msra.mxu1 %v13832_v46 }
 0x26a   :  { %2338 = vmatprep.subr.bf16.mxu0 %v13837_v15  ;;  %2379 = vmatprep.subr.bf16.mxu1 %v13840_v16 }
 0x26d   :  { %2339 = vmatpush1.bf16.msra.mxu0 %v13835_v17  ;;  %2380 = vmatpush1.bf16.msra.mxu1 %v13838_v18 }
 0x26e   :  { %2340 = vmatprep.subr.bf16.mxu0 %v13843_v19  ;;  %2381 = vmatprep.subr.bf16.mxu1 %v13846_v53 }
 0x271   :  { %2341 = vmatpush1.bf16.msra.mxu0 %v13841_v20  ;;  %2382 = vmatpush1.bf16.msra.mxu1 %v13844_v43 }
 0x272   :  { %2342 = vmatprep.subr.bf16.mxu0 %v13849_v22  ;;  %2383 = vmatprep.subr.bf16.mxu1 %v13852_v24 }
 0x275   :  { %2343 = vmatpush1.bf16.msra.mxu0 %v13847_v25  ;;  %2384 = vmatpush1.bf16.msra.mxu1 %v13850_v27 }
 0x276   :  { %2344 = vmatprep.subr.bf16.mxu0 %v13855_v28  ;;  %2385 = vmatprep.subr.bf16.mxu1 %v13858_v29 }
 0x279   :  { %2345 = vmatpush1.bf16.msra.mxu0 %v13853_v30  ;;  %2386 = vmatpush1.bf16.msra.mxu1 %v13856_v31  ;;  %v12250_v31 = vld [vmem:[%s20679_s1 + $0x38] sm:$0xff] }
 0x27a   :  { %2641 = vmatprep.subr.bf16.mxu0 %v13861_v32  ;;  %2682 = vmatprep.subr.bf16.mxu1 %v13864_v34  ;;  %v12249_v34 = vld [vmem:[%s20679_s1 + $0x30] sm:$0xff] }
 0x2db   :  { %v1499_v44 = vpop.f32.mrf.mxu0  ;;  %v1540_v47 = vpop.f32.mrf.mxu1 }
 0x2dc   :  { %v1500_v50 = vadd.f32 %v1499_v44, %v16286_v54  ;;  %v16767_v54 = vrot.slane %v66_v37, %v60_v0  ;;  %v1541_v6 = vadd.f32 %v1540_v47, %v16290_v57  ;;  %v12248_v57 = vld [vmem:[%s20679_s1 + $0x28] sm:$0xff] }
 0x2dd   :  { %v1501_v56 = vpop.f32.mrf.mxu0  ;;  %v1542_v58 = vpop.f32.mrf.mxu1 }
 0x2de   :  { %v1547_v60 = vadd.f32 %v1500_v50, %v16755_v42  ;;  %v1502_v61 = vadd.f32 %v1501_v56, %v16288_v55  ;;  %v1543_v39 = vadd.f32 %v1542_v58, %v16292_v59  ;;  %v16773_v55 = vrot.slane %v66_v37, %v56_v36  ;;  %v12247_v59 = vld [vmem:[%s20679_s1 + $0x20] sm:$0xff] }
 0x2df   :  { %v1503_v62 = vpop.f32.mrf.mxu0  ;;  %v1544_v63 = vpop.f32.mrf.mxu1 }
 0x2e0   :  { %v12148_v2 = vmul.f32 -1.442695, %v1547_v60  ;;  %v1548_v38 = vadd.f32 %v1502_v61, %v16760_v51  ;;  %v1550_v5 = vadd.f32 %v1543_v39, %v16767_v54  ;;  %v1549_v10 = vadd.f32 %v1541_v6, %v16773_v55  ;;  %v13859_v63 = vld [vmem:[%s20678_s3 + $0xe0] ss:$16 sps:$4 sm:$0xff]   ;;  %v13873_v6 = vld [vmem:[%s20678_s3 + $0xa4] ss:$16 sps:$4 sm:$0xff]  }
 0x2e1   :  { %v1504_v26 = vpop.f32.mrf.mxu0  ;;  %v1545_v3 = vpop.f32.mrf.mxu1  ;;  %v13865_v39 = vld [vmem:[%s20678_s3 + $0xc0] ss:$16 sps:$4 sm:$0xff]  }
 0x2e2   :  { %15427 = vpow2.f32 %v12148_v2  ;;  %v12149_v33 = vmul.f32 -1.442695, %v1548_v38  ;;  %v12150_v8 = vmul.f32 -1.442695, %v1550_v5  ;;  %v13862_v2 = vld [vmem:[%s20678_s3 + $0xe8] ss:$16 sps:$4 sm:$0xff]  }
 0x2e3   :  { %v13867_v26 = vld [vmem:[%s20678_s3 + $0xc4] ss:$16 sps:$4 sm:$0xff]   ;;  %v13870_v3 = vld [vmem:[%s20678_s3 + $0xcc] ss:$16 sps:$4 sm:$0xff]   ;;  %v13868_v5 = vld [vmem:[%s20678_s3 + $0xc8] ss:$16 sps:$4 sm:$0xff]  }
 0x2e4   :  { %15429 = vpow2.f32 %v12149_v33 }
 0x2e5   :  { %15431 = vpow2.f32 %v12150_v8 }
 0x2ef   :  { %v15428_v9 = vpop.eup %15427 }
 0x2f0   :  { %v1554_v11 = vadd.f32 1.0, %v15428_v9 }
 0x2f1   :  { %v15430_v12 = vpop.eup %15429 }
 0x2f2   :  { %15433 = vrcp.f32 %v1554_v11  ;;  %v1560_v0 = vadd.f32 1.0, %v15430_v12  ;;  %v15432_v15 = vpop.eup %15431 }
 0x2f3   :  { %15435 = vtanh.f32 %v1549_v10  ;;  %v1567_v24 = vadd.f32 1.0, %v15432_v15 }
 0x2f4   :  { %15437 = vrcp.f32 %v1560_v0 }
 0x2fb   :  { %v1814_v35 = vpop.f32.mrf.mxu0  ;;  %v1855_v36 = vpop.f32.mrf.mxu1 }
 0x2fc   :  { %v2417_v13 = vadd.f32 %v12247_v59, %v1814_v35  ;;  %v2419_v47 = vadd.f32 %v12249_v34, %v1855_v36  ;;  %v13871_v59 = vld [vmem:[%s20678_s3 + $0xa0] ss:$16 sps:$4 sm:$0xff]   ;;  %v13874_v35 = vld [vmem:[%s20678_s3 + $0xa8] ss:$16 sps:$4 sm:$0xff]   ;;  %v13894_v34 = vld [vmem:[%s20678_s3 + $0x4c] ss:$16 sps:$4 sm:$0xff]  }
 0x2fd   :  { %v1816_v14 = vpop.f32.mrf.mxu0  ;;  %v1857_v46 = vpop.f32.mrf.mxu1 }
 0x2fe   :  { %v12251_v16 = vmul.f32 -1.442695, %v2417_v13  ;;  %v2418_v17 = vadd.f32 %v12248_v57, %v1816_v14  ;;  %v2420_v32 = vadd.f32 %v12250_v31, %v1857_v46  ;;  %v13879_v57 = vld [vmem:[%s20678_s3 + $0x84] ss:$16 sps:$4 sm:$0xff]   ;;  %v13882_v13 = vld [vmem:[%s20678_s3 + $0x8c] ss:$16 sps:$4 sm:$0xff]  }
 0x2ff   :  { %v15434_v18 = vpop.eup %15433  ;;  %v1818_v19 = vpop.f32.mrf.mxu0  ;;  %v964_v46 = vsel %vm105_vm4, %v16257_v45, 0.0  ;;  %v13886_v31 = vld [vmem:[%s20678_s3 + $0x68] ss:$16 sps:$4 sm:$0xff]  }
 0x300   :  { %v1859_v53 = vpop.f32.mrf.mxu1  ;;  %v15436_v20 = vpop.eup %15435  ;;  %15439 = vpow2.f32 %v12251_v16  ;;  %v12252_v43 = vmul.f32 -1.442695, %v2418_v17  ;;  %v12253_v37 = vmul.f32 -1.442695, %v2420_v32  ;;  %v13891_v32 = vld [vmem:[%s20678_s3 + $0x44] ss:$16 sps:$4 sm:$0xff]  }
 0x301   :  { %v15438_v22 = vpop.eup %15437  ;;  %v1819_v25 = vpop.f32.mrf.mxu0  ;;  %v1571_v29 = vmul.f32 %v15436_v20, %v15434_v18 }
 0x302   :  { %v1860_v27 = vpop.f32.mrf.mxu1  ;;  %v1570_v28 = vmul.f32 0.0, %v15438_v22  ;;  %15441 = vpow2.f32 %v12252_v43  ;;  %v13877_v43 = vld [vmem:[%s20678_s3 + $0x80] ss:$16 sps:$4 sm:$0xff]   ;;  %v13880_v22 = vld [vmem:[%s20678_s3 + $0x88] ss:$16 sps:$4 sm:$0xff]  }
 0x303   :  { %15443 = vrcp.f32 %v1567_v24  ;;  %v16859_v24 = vpop.permute.xlu0 %1584  ;;  %v13885_v25 = vld [vmem:[%s20678_s3 + $0x64] ss:$16 sps:$4 sm:$0xff]   ;;  %v13888_v27 = vld [vmem:[%s20678_s3 + $0x6c] ss:$16 sps:$4 sm:$0xff]  }
 0x304   :  { %v16783_v30 = vadd.f32 %v1571_v29, %v1570_v28  ;;  %vm1586_vm6 = vcmp.eq.s32.totalorder %v16859_v24, 1  ;;  %v13883_v29 = vld [vmem:[%s20678_s3 + $0x60] ss:$16 sps:$4 sm:$0xff]   ;;  %v14108_v24 = vld [vmem:[%s20678_s3 + $0xc8] ss:$16 sps:$4 sm:$0xff]  }
 0x305   :  { %vm16924_vm7 = vmpackc.low %vm1586_vm6, %vm1586_vm6 }
 0x306   :  { %15445 = vtanh.f32 %v16783_v30 }
 0x307   :  { %15447 = vpow2.f32 %v12253_v37  ;;  %v13889_v37 = vld [vmem:[%s20678_s3 + $0x40] ss:$16 sps:$4 sm:$0xff]  }
 0x30d   :  { %v15440_v44 = vpop.eup %15439 }
 0x30e   :  { %v2424_v50 = vadd.f32 1.0, %v15440_v44  ;;  %v13892_v44 = vld [vmem:[%s20678_s3 + $0x48] ss:$16 sps:$4 sm:$0xff]  }
 0x30f   :  { %v15442_v56 = vpop.eup %15441 }
 0x310   :  { %15449 = vrcp.f32 %v2424_v50  ;;  %v2430_v58 = vadd.f32 1.0, %v15442_v56  ;;  %v15444_v60 = vpop.eup %15443  ;;  %v13900_v50 = vld [vmem:[%s20678_s3 + $0x2c] ss:$16 sps:$4 sm:$0xff]   ;;  %v13895_v56 = vld [vmem:[%s20678_s3 + $0x20] ss:$16 sps:$4 sm:$0xff]  }
 0x311   :  { %15451 = vtanh.f32 %v2419_v47  ;;  %v13897_v47 = vld [vmem:[%s20678_s3 + $0x24] ss:$16 sps:$4 sm:$0xff]  }
 0x312   :  { %15453 = vrcp.f32 %v2430_v58  ;;  %v13898_v58 = vld [vmem:[%s20678_s3 + $0x28] ss:$16 sps:$4 sm:$0xff]  }
 0x313   :  { %v15446_v61 = vpop.eup %15445 }
 0x314   :  { %v1574_v62 = vmul.f32 %v15446_v61, %v15444_v60  ;;  %v15448_v10 = vpop.eup %15447  ;;  %v13903_v60 = vld [vmem:[%s20678_s3 + $0x4] ss:$16 sps:$4 sm:$0xff]   ;;  %v13906_v61 = vld [vmem:[%s20678_s3 + $0xc] ss:$16 sps:$4 sm:$0xff]  }
 0x315   :  { %v2437_v15 = vadd.f32 1.0, %v15448_v10  ;;  %v13907_v10 = vld [vmem:[%s20680_s5 + $0xe0] ss:$16 sps:$4 sm:$0xff]  }
 0x316   :  { %v13466_v38 = vpack.c.bf16 %v1574_v62, %v1574_v62  ;;  %v16806_v33 = vsel %vm105_vm4, %v1574_v62, 0.0 }
 0x317   :  { %1578 = vst [vmem:[%s20683_s9] sm:$0xff] %v16806_v33  ;;  %15455 = vrcp.f32 %v2437_v15  ;;  %v13922_v15 = vld [vmem:[%s20680_s5 + $0xa8] ss:$16 sps:$4 sm:$0xff]  }
 0x318   :  { %13467 = vmatmul.mubr.msk.bf16.vlgmr.msra.gmra.mxu0 %vm16268_vm5, %v13466_v38  ;;  %13470 = vmatmul.mubr.msk.bf16.vlgmr.msra.gmra.mxu1 %vm16268_vm5, %v13466_v38  ;;  %v13904_v38 = vld [vmem:[%s20678_s3 + $0x8] ss:$16 sps:$4 sm:$0xff]  }
 0x319   :  { %2642 = vmatpush1.bf16.msra.mxu0 %v13859_v63  ;;  %2683 = vmatpush1.bf16.msra.mxu1 %v13862_v2  ;;  %v13901_v2 = vld [vmem:[%s20678_s3] ss:$16 sps:$4 sm:$0xff]  }
 0x31a   :  { %2643 = vmatprep.subr.bf16.mxu0 %v13867_v26  ;;  %2684 = vmatprep.subr.bf16.mxu1 %v13870_v3  ;;  %v963_v3 = vsel %vm105_vm4, %v16272_v52, 0.0  ;;  %v13909_v52 = vld [vmem:[%s20680_s5 + $0xe4] ss:$16 sps:$4 sm:$0xff]  }
 0x31b   :  { %v16828_v8 = vpop.f32.mrf.mxu0  ;;  %v16830_v9 = vpop.f32.mrf.mxu1  ;;  %2673 = vmatprep.mubr.bf16.mxu0 %v15780_v1  ;;  %2714 = vmatprep.mubr.bf16.mxu1 %v15780_v1 }
 0x31d   :  { %v15450_v11 = vpop.eup %15449  ;;  %v16834_v12 = vpop.f32.mrf.mxu0  ;;  %2644 = vmatpush1.bf16.msra.mxu0 %v13865_v39  ;;  %2685 = vmatpush1.bf16.msra.mxu1 %v13868_v5 }
 0x31e   :  { %v16836_v0 = vpop.f32.mrf.mxu1  ;;  %v15452_v36 = vpop.eup %15451  ;;  %2645 = vmatprep.subr.bf16.mxu0 %v13873_v6  ;;  %2686 = vmatprep.subr.bf16.mxu1 %v13876_v49  ;;  %v13912_v49 = vld [vmem:[%s20680_s5 + $0xec] ss:$16 sps:$4 sm:$0xff]  }
 0x31f   :  { %v15454_v14 = vpop.eup %15453  ;;  %v2093_v16 = vpop.f32.mrf.mxu0  ;;  %v2441_v18 = vmul.f32 %v15452_v36, %v15450_v11  ;;  %v13910_v11 = vld [vmem:[%s20680_s5 + $0xe8] ss:$16 sps:$4 sm:$0xff]   ;;  %v13913_v36 = vld [vmem:[%s20680_s5 + $0xc0] ss:$16 sps:$4 sm:$0xff]   ;;  %v13972_v6 = vld [vmem:[%s20674_s2 + $0xac] ss:$16 sps:$4 sm:$0xff]  }
 0x320   :  { %v2134_v17 = vpop.f32.mrf.mxu1  ;;  %v2440_v19 = vmul.f32 %v15454_v14, %v964_v46  ;;  %v13924_v14 = vld [vmem:[%s20680_s5 + $0xac] ss:$16 sps:$4 sm:$0xff]   ;;  %v13927_v16 = vld [vmem:[%s20680_s5 + $0x84] ss:$16 sps:$4 sm:$0xff]  }
 0x321   :  { %v2094_v53 = vpop.f32.mrf.mxu0  ;;  %2646 = vmatpush1.bf16.msra.mxu0 %v13871_v59  ;;  %2687 = vmatpush1.bf16.msra.mxu1 %v13874_v35  ;;  %v13915_v59 = vld [vmem:[%s20680_s5 + $0xc4] ss:$16 sps:$4 sm:$0xff]   ;;  %v13918_v35 = vld [vmem:[%s20680_s5 + $0xcc] ss:$16 sps:$4 sm:$0xff]  }
 0x322   :  { %v2135_v20 = vpop.f32.mrf.mxu1  ;;  %v2442_v45 = vadd.f32 %v2441_v18, %v2440_v19  ;;  %2647 = vmatprep.subr.bf16.mxu0 %v13879_v57  ;;  %2688 = vmatprep.subr.bf16.mxu1 %v13882_v13  ;;  %v13916_v57 = vld [vmem:[%s20680_s5 + $0xc8] ss:$16 sps:$4 sm:$0xff]   ;;  %v13921_v13 = vld [vmem:[%s20680_s5 + $0xa4] ss:$16 sps:$4 sm:$0xff]   ;;  %v13930_v17 = vld [vmem:[%s20680_s5 + $0x8c] ss:$16 sps:$4 sm:$0xff]  }
 0x323   :  { %v13925_v18 = vld [vmem:[%s20680_s5 + $0x80] ss:$16 sps:$4 sm:$0xff]   ;;  %v13928_v19 = vld [vmem:[%s20680_s5 + $0x88] ss:$16 sps:$4 sm:$0xff]   ;;  %v13933_v20 = vld [vmem:[%s20680_s5 + $0x64] ss:$16 sps:$4 sm:$0xff]  }
 0x324   :  { %15457 = vtanh.f32 %v2442_v45  ;;  %v16870_v28 = vsel %vm1586_vm6, %v2442_v45, %v964_v46  ;;  %v15456_v62 = vpop.eup %15455  ;;  %v13919_v46 = vld [vmem:[%s20680_s5 + $0xa0] ss:$16 sps:$4 sm:$0xff]   ;;  %v13939_v45 = vld [vmem:[%s20680_s5 + $0x44] ss:$16 sps:$4 sm:$0xff]  }
 0x325   :  { %2648 = vmatpush1.bf16.msra.mxu0 %v13877_v43  ;;  %2689 = vmatpush1.bf16.msra.mxu1 %v13880_v22  ;;  %v13931_v53 = vld [vmem:[%s20680_s5 + $0x60] ss:$16 sps:$4 sm:$0xff]   ;;  %v13934_v43 = vld [vmem:[%s20680_s5 + $0x68] ss:$16 sps:$4 sm:$0xff]   ;;  %v13936_v22 = vld [vmem:[%s20680_s5 + $0x6c] ss:$16 sps:$4 sm:$0xff]  }
 0x326   :  { %2649 = vmatprep.subr.bf16.mxu0 %v13885_v25  ;;  %2690 = vmatprep.subr.bf16.mxu1 %v13888_v27  ;;  %v13942_v25 = vld [vmem:[%s20680_s5 + $0x4c] ss:$16 sps:$4 sm:$0xff]   ;;  %v13937_v27 = vld [vmem:[%s20680_s5 + $0x40] ss:$16 sps:$4 sm:$0xff]  }
 0x329   :  { %2650 = vmatpush1.bf16.msra.mxu0 %v13883_v29  ;;  %2691 = vmatpush1.bf16.msra.mxu1 %v13886_v31  ;;  %v13940_v29 = vld [vmem:[%s20680_s5 + $0x48] ss:$16 sps:$4 sm:$0xff]   ;;  %v13945_v31 = vld [vmem:[%s20680_s5 + $0x24] ss:$16 sps:$4 sm:$0xff]  }
 0x32a   :  { %2651 = vmatprep.subr.bf16.mxu0 %v13891_v32  ;;  %2692 = vmatprep.subr.bf16.mxu1 %v13894_v34  ;;  %v13948_v32 = vld [vmem:[%s20680_s5 + $0x2c] ss:$16 sps:$4 sm:$0xff]   ;;  %v13943_v34 = vld [vmem:[%s20680_s5 + $0x20] ss:$16 sps:$4 sm:$0xff]  }
 0x32d   :  { %2652 = vmatpush1.bf16.msra.mxu0 %v13889_v37  ;;  %2693 = vmatpush1.bf16.msra.mxu1 %v13892_v44  ;;  %v13946_v37 = vld [vmem:[%s20680_s5 + $0x28] ss:$16 sps:$4 sm:$0xff]   ;;  %v13951_v44 = vld [vmem:[%s20680_s5 + $0x4] ss:$16 sps:$4 sm:$0xff]  }
 0x32e   :  { %2653 = vmatprep.subr.bf16.mxu0 %v13897_v47  ;;  %2694 = vmatprep.subr.bf16.mxu1 %v13900_v50  ;;  %v13954_v47 = vld [vmem:[%s20680_s5 + $0xc] ss:$16 sps:$4 sm:$0xff]   ;;  %v13949_v50 = vld [vmem:[%s20680_s5] ss:$16 sps:$4 sm:$0xff]  }
 0x331   :  { %v15458_v63 = vpop.eup %15457  ;;  %2654 = vmatpush1.bf16.msra.mxu0 %v13895_v56  ;;  %2695 = vmatpush1.bf16.msra.mxu1 %v13898_v58  ;;  %v13952_v56 = vld [vmem:[%s20680_s5 + $0x8] ss:$16 sps:$4 sm:$0xff]   ;;  %v13957_v58 = vld [vmem:[%s20674_s2 + $0xe4] ss:$16 sps:$4 sm:$0xff]  }
 0x332   :  { %2655 = vmatprep.subr.bf16.mxu0 %v13903_v60  ;;  %2696 = vmatprep.subr.bf16.mxu1 %v13906_v61  ;;  %v2444_v26 = vmul.f32 %v15458_v63, %v15456_v62  ;;  %v13960_v60 = vld [vmem:[%s20674_s2 + $0xec] ss:$16 sps:$4 sm:$0xff]  }
 0x334   :  { %v16919_v39 = vsel %vm1586_vm6, %v2444_v26, %v963_v3  ;;  %v12287_v5 = vpack.c.bf16 %v2444_v26, %v2444_v26 }
 0x335   :  { %2656 = vmatpush1.bf16.msra.mxu0 %v13901_v2  ;;  %2697 = vmatpush1.bf16.msra.mxu1 %v13904_v38 }
 0x336   :  { %2947 = vmatprep.subr.bf16.mxu0 %v13909_v52  ;;  %2988 = vmatprep.subr.bf16.mxu1 %v13912_v49  ;;  %v15779_v52 = vld [vmem:[%s20675_s0] sm:$0xff] }
 0x337   :  { %vm3064_vm8 = vcmp.gt.s32.totalorder %v15779_v52, 2  ;;  %vm4547_vm9 = vcmp.gt.s32.totalorder %v15779_v52, 3  ;;  %vm7513_vm10 = vcmp.gt.s32.totalorder %v15779_v52, 5  ;;  %vm10479_vm11 = vcmp.gt.s32.totalorder %v15779_v52, 7 }
 0x338   :  { %12288 = vmatmul.mubr.msk.bf16.vlgmr.msra.gmra.mxu0 %vm16924_vm7, %v12287_v5  ;;  %12291 = vmatmul.mubr.msk.bf16.vlgmr.msra.gmra.mxu1 %vm16924_vm7, %v12287_v5  ;;  %v3065_v49 = vsel %vm3064_vm8, 1, %v15780_v1  ;;  %v1269_v52 = vsel %vm105_vm4, %v16432_v23, 0.0  ;;  %v13961_v23 = vld [vmem:[%s20674_s2 + $0xc0] ss:$16 sps:$4 sm:$0xff]  }
 0x339   :  { %2979 = vmatprep.mubr.bf16.mxu0 %v15780_v1  ;;  %3020 = vmatprep.mubr.bf16.mxu1 %v15780_v1 }
 0x33a   :  { %2948 = vmatpush1.bf16.msra.mxu0 %v13907_v10  ;;  %2989 = vmatpush1.bf16.msra.mxu1 %v13910_v11 }
 0x33b   :  { %2949 = vmatprep.subr.bf16.mxu0 %v13915_v59  ;;  %2990 = vmatprep.subr.bf16.mxu1 %v13918_v35  ;;  %v4548_v59 = vsel %vm4547_vm9, 1, %v15780_v1 }
 0x33c   :  { %3067 = vperm.xlu1 %13474, %v3065_v49  }
 0x33e   :  { %2950 = vmatpush1.bf16.msra.mxu0 %v13913_v36  ;;  %2991 = vmatpush1.bf16.msra.mxu1 %v13916_v57 }
 0x33f   :  { %2951 = vmatprep.subr.bf16.mxu0 %v13921_v13  ;;  %2992 = vmatprep.subr.bf16.mxu1 %v13924_v14 }
 0x340   :  { %4550 = vperm.xlu1 %13474, %v4548_v59  }
 0x342   :  { %2952 = vmatpush1.bf16.msra.mxu0 %v13919_v46  ;;  %2993 = vmatpush1.bf16.msra.mxu1 %v13922_v15 }
 0x343   :  { %2953 = vmatprep.subr.bf16.mxu0 %v13927_v16  ;;  %2994 = vmatprep.subr.bf16.mxu1 %v13930_v17  ;;  %v7514_v16 = vsel %vm7513_vm10, 1, %v15780_v1 }
 0x344   :  { %7516 = vperm.xlu1 %13474, %v7514_v16   ;;  %v13976_v16 = vld [vmem:[%s20674_s2 + $0x88] ss:$16 sps:$4 sm:$0xff]  }
 0x346   :  { %2954 = vmatpush1.bf16.msra.mxu0 %v13925_v18  ;;  %2995 = vmatpush1.bf16.msra.mxu1 %v13928_v19 }
 0x347   :  { %2955 = vmatprep.subr.bf16.mxu0 %v13933_v20  ;;  %2996 = vmatprep.subr.bf16.mxu1 %v13936_v22  ;;  %v10480_v20 = vsel %vm10479_vm11, 1, %v15780_v1 }
 0x348   :  { %10482 = vperm.xlu1 %13474, %v10480_v20   ;;  %v13990_v20 = vld [vmem:[%s20674_s2 + $0x4c] ss:$16 sps:$4 sm:$0xff]  }
 0x34a   :  { %2956 = vmatpush1.bf16.msra.mxu0 %v13931_v53  ;;  %2997 = vmatpush1.bf16.msra.mxu1 %v13934_v43 }
 0x34b   :  { %2957 = vmatprep.subr.bf16.mxu0 %v13939_v45  ;;  %2998 = vmatprep.subr.bf16.mxu1 %v13942_v25 }
 0x34e   :  { %2958 = vmatpush1.bf16.msra.mxu0 %v13937_v27  ;;  %2999 = vmatpush1.bf16.msra.mxu1 %v13940_v29 }
 0x34f   :  { %2959 = vmatprep.subr.bf16.mxu0 %v13945_v31  ;;  %3000 = vmatprep.subr.bf16.mxu1 %v13948_v32 }
 0x352   :  { %2960 = vmatpush1.bf16.msra.mxu0 %v13943_v34  ;;  %3001 = vmatpush1.bf16.msra.mxu1 %v13946_v37 }
 0x353   :  { %2961 = vmatprep.subr.bf16.mxu0 %v13951_v44  ;;  %3002 = vmatprep.subr.bf16.mxu1 %v13954_v47  ;;  %v1270_v47 = vsel %vm105_vm4, %v16429_v21, 0.0  ;;  %v13958_v21 = vld [vmem:[%s20674_s2 + $0xe8] ss:$16 sps:$4 sm:$0xff]  }
 0x356   :  { %2962 = vmatpush1.bf16.msra.mxu0 %v13949_v50  ;;  %3003 = vmatpush1.bf16.msra.mxu1 %v13952_v56 }
 0x357   :  { %3263 = vmatprep.subr.bf16.mxu0 %v13957_v58  ;;  %3304 = vmatprep.subr.bf16.mxu1 %v13960_v60 }
 0x3d8   :  { %v17036_v61 = vpop.f32.mrf.mxu0  ;;  %v17038_v62 = vpop.f32.mrf.mxu1 }
 0x3da   :  { %v17040_v63 = vpop.f32.mrf.mxu0  ;;  %v17042_v2 = vpop.f32.mrf.mxu1 }
 0x3dc   :  { %v2368_v38 = vpop.f32.mrf.mxu0  ;;  %v2409_v26 = vpop.f32.mrf.mxu1 }
 0x3de   :  { %v2369_v3 = vpop.f32.mrf.mxu0  ;;  %v2410_v5 = vpop.f32.mrf.mxu1 }
 0x3df   :  { %v13955_v5 = vld [vmem:[%s20674_s2 + $0xe0] ss:$16 sps:$4 sm:$0xff]  }
 0x3f8   :  { %v2675_v10 = vpop.f32.mrf.mxu0  ;;  %v2716_v11 = vpop.f32.mrf.mxu1 }
 0x3f9   :  { %v2676_v35 = vadd.f32 %v2675_v10, %v16828_v8  ;;  %v2717_v22 = vadd.f32 %v2716_v11, %v16830_v9  ;;  %v13963_v10 = vld [vmem:[%s20674_s2 + $0xc4] ss:$16 sps:$4 sm:$0xff]   ;;  %v13966_v11 = vld [vmem:[%s20674_s2 + $0xcc] ss:$16 sps:$4 sm:$0xff]  }
 0x3fa   :  { %v2677_v36 = vpop.f32.mrf.mxu0  ;;  %v2718_v57 = vpop.f32.mrf.mxu1 }
 0x3fb   :  { %v2723_v13 = vadd.f32 %v2676_v35, %v16405_v40  ;;  %v2678_v14 = vadd.f32 %v2677_v36, %v16834_v12  ;;  %v2719_v43 = vadd.f32 %v2718_v57, %v16836_v0  ;;  %v2725_v27 = vadd.f32 %v2717_v22, %v16425_v7  ;;  %v13964_v35 = vld [vmem:[%s20674_s2 + $0xc8] ss:$16 sps:$4 sm:$0xff]   ;;  %v13969_v36 = vld [vmem:[%s20674_s2 + $0xa4] ss:$16 sps:$4 sm:$0xff]   ;;  %v13967_v57 = vld [vmem:[%s20674_s2 + $0xa0] ss:$16 sps:$4 sm:$0xff]  }
 0x3fc   :  { %v2679_v46 = vpop.f32.mrf.mxu0  ;;  %v2720_v15 = vpop.f32.mrf.mxu1  ;;  %v13993_v22 = vld [vmem:[%s20674_s2 + $0x24] ss:$16 sps:$4 sm:$0xff]  }
 0x3fd   :  { %v12292_v17 = vmul.f32 -1.442695, %v2723_v13  ;;  %v2724_v18 = vadd.f32 %v2678_v14, %v16410_v41  ;;  %v2726_v12 = vadd.f32 %v2719_v43, %v16418_v4  ;;  %v13970_v13 = vld [vmem:[%s20674_s2 + $0xa8] ss:$16 sps:$4 sm:$0xff]   ;;  %v13975_v14 = vld [vmem:[%s20674_s2 + $0x84] ss:$16 sps:$4 sm:$0xff]  }
 0x3fe   :  { %v2680_v19 = vpop.f32.mrf.mxu0  ;;  %v2721_v53 = vpop.f32.mrf.mxu1  ;;  %v13978_v46 = vld [vmem:[%s20674_s2 + $0x8c] ss:$16 sps:$4 sm:$0xff]   ;;  %v13973_v15 = vld [vmem:[%s20674_s2 + $0x80] ss:$16 sps:$4 sm:$0xff]  }
 0x3ff   :  { %15459 = vpow2.f32 %v12292_v17  ;;  %v12293_v8 = vmul.f32 -1.442695, %v2724_v18  ;;  %v12294_v45 = vmul.f32 -1.442695, %v2726_v12  ;;  %v13981_v17 = vld [vmem:[%s20674_s2 + $0x64] ss:$16 sps:$4 sm:$0xff]  }
 0x400   :  { %v13984_v18 = vld [vmem:[%s20674_s2 + $0x6c] ss:$16 sps:$4 sm:$0xff]   ;;  %v13979_v19 = vld [vmem:[%s20674_s2 + $0x60] ss:$16 sps:$4 sm:$0xff]   ;;  %v13982_v53 = vld [vmem:[%s20674_s2 + $0x68] ss:$16 sps:$4 sm:$0xff]  }
 0x401   :  { %15461 = vpow2.f32 %v12293_v8  ;;  %v13987_v8 = vld [vmem:[%s20674_s2 + $0x44] ss:$16 sps:$4 sm:$0xff]   ;;  %v13985_v43 = vld [vmem:[%s20674_s2 + $0x40] ss:$16 sps:$4 sm:$0xff]   ;;  %v13988_v12 = vld [vmem:[%s20674_s2 + $0x48] ss:$16 sps:$4 sm:$0xff]  }
 0x402   :  { %15463 = vpow2.f32 %v12294_v45  ;;  %v13996_v45 = vld [vmem:[%s20674_s2 + $0x2c] ss:$16 sps:$4 sm:$0xff]  }
 0x40c   :  { %v15460_v25 = vpop.eup %15459 }
 0x40d   :  { %v2730_v29 = vadd.f32 1.0, %v15460_v25  ;;  %v13991_v25 = vld [vmem:[%s20674_s2 + $0x20] ss:$16 sps:$4 sm:$0xff]  }
 0x40e   :  { %v15462_v31 = vpop.eup %15461 }
 0x40f   :  { %15465 = vrcp.f32 %v2730_v29  ;;  %v2736_v32 = vadd.f32 1.0, %v15462_v31  ;;  %v15464_v34 = vpop.eup %15463  ;;  %v13999_v29 = vld [vmem:[%s20674_s2 + $0x4] ss:$16 sps:$4 sm:$0xff]   ;;  %v14002_v31 = vld [vmem:[%s20674_s2 + $0xc] ss:$16 sps:$4 sm:$0xff]  }
 0x410   :  { %15467 = vtanh.f32 %v2725_v27  ;;  %v2743_v9 = vadd.f32 1.0, %v15464_v34  ;;  %v13994_v27 = vld [vmem:[%s20674_s2 + $0x28] ss:$16 sps:$4 sm:$0xff]  }
 0x411   :  { %15469 = vrcp.f32 %v2736_v32  ;;  %v13997_v32 = vld [vmem:[%s20674_s2] ss:$16 sps:$4 sm:$0xff]   ;;  %v14000_v34 = vld [vmem:[%s20674_s2 + $0x8] ss:$16 sps:$4 sm:$0xff]  }
 0x412   :  { %15471 = vrcp.f32 %v2743_v9  ;;  %v3070_v9 = vpack.c.bf16 %v16919_v39, %v16919_v39 }
 0x41c   :  { %v15466_v37 = vpop.eup %15465 }
 0x41d   :  { %v15468_v44 = vpop.eup %15467 }
 0x41e   :  { %v15470_v0 = vpop.eup %15469  ;;  %v2747_v50 = vmul.f32 %v15468_v44, %v15466_v37  ;;  %v14005_v37 = vld [vmem:[%s20676_s4 + $0xe4] ss:$16 sps:$4 sm:$0xff]   ;;  %v14008_v44 = vld [vmem:[%s20676_s4 + $0xec] ss:$16 sps:$4 sm:$0xff]  }
 0x41f   :  { %v2746_v56 = vmul.f32 %v15470_v0, %v1270_v47  ;;  %v15472_v38 = vpop.eup %15471  ;;  %v14003_v0 = vld [vmem:[%s20676_s4 + $0xe0] ss:$16 sps:$4 sm:$0xff]  }
 0x421   :  { %v2748_v58 = vadd.f32 %v2747_v50, %v2746_v56  ;;  %v14011_v50 = vld [vmem:[%s20676_s4 + $0xc4] ss:$16 sps:$4 sm:$0xff]   ;;  %v14014_v56 = vld [vmem:[%s20676_s4 + $0xcc] ss:$16 sps:$4 sm:$0xff]  }
 0x423   :  { %15473 = vtanh.f32 %v2748_v58  ;;  %v17064_v60 = vsel %vm1586_vm6, %v2748_v58, %v1270_v47  ;;  %v14006_v47 = vld [vmem:[%s20676_s4 + $0xe8] ss:$16 sps:$4 sm:$0xff]   ;;  %v14009_v58 = vld [vmem:[%s20676_s4 + $0xc0] ss:$16 sps:$4 sm:$0xff]  }
 0x430   :  { %v15474_v26 = vpop.eup %15473 }
 0x431   :  { %v2750_v3 = vmul.f32 %v15474_v26, %v15472_v38  ;;  %v14012_v38 = vld [vmem:[%s20676_s4 + $0xc8] ss:$16 sps:$4 sm:$0xff]   ;;  %v14017_v26 = vld [vmem:[%s20676_s4 + $0xa4] ss:$16 sps:$4 sm:$0xff]  }
 0x433   :  { %v12328_v49 = vpack.c.bf16 %v2750_v3, %v2750_v3  ;;  %v17083_v59 = vsel %vm1586_vm6, %v2750_v3, %v1269_v52  ;;  %v14020_v3 = vld [vmem:[%s20676_s4 + $0xac] ss:$16 sps:$4 sm:$0xff]   ;;  %v14023_v52 = vld [vmem:[%s20676_s4 + $0x84] ss:$16 sps:$4 sm:$0xff]  }
 0x435   :  { %12329 = vmatmul.mubr.msk.bf16.vlgmr.msra.gmra.mxu0 %vm16924_vm7, %v12328_v49  ;;  %12332 = vmatmul.mubr.msk.bf16.vlgmr.msra.gmra.mxu1 %vm16924_vm7, %v12328_v49  ;;  %v14026_v49 = vld [vmem:[%s20676_s4 + $0x8c] ss:$16 sps:$4 sm:$0xff]  }
 0x436   :  { %3264 = vmatpush1.bf16.msra.mxu0 %v13955_v5  ;;  %3305 = vmatpush1.bf16.msra.mxu1 %v13958_v21  ;;  %v14015_v5 = vld [vmem:[%s20676_s4 + $0xa0] ss:$16 sps:$4 sm:$0xff]   ;;  %v14018_v21 = vld [vmem:[%s20676_s4 + $0xa8] ss:$16 sps:$4 sm:$0xff]  }
 0x437   :  { %3265 = vmatprep.subr.bf16.mxu0 %v13963_v10  ;;  %3306 = vmatprep.subr.bf16.mxu1 %v13966_v11  ;;  %v14021_v10 = vld [vmem:[%s20676_s4 + $0x80] ss:$16 sps:$4 sm:$0xff]   ;;  %v14024_v11 = vld [vmem:[%s20676_s4 + $0x88] ss:$16 sps:$4 sm:$0xff]  }
 0x438   :  { %3295 = vmatprep.mubr.bf16.mxu0 %v15780_v1  ;;  %3336 = vmatprep.mubr.bf16.mxu1 %v15780_v1 }
 0x43a   :  { %3266 = vmatpush1.bf16.msra.mxu0 %v13961_v23  ;;  %3307 = vmatpush1.bf16.msra.mxu1 %v13964_v35  ;;  %v14029_v23 = vld [vmem:[%s20676_s4 + $0x64] ss:$16 sps:$4 sm:$0xff]   ;;  %v14032_v35 = vld [vmem:[%s20676_s4 + $0x6c] ss:$16 sps:$4 sm:$0xff]  }
 0x43b   :  { %3267 = vmatprep.subr.bf16.mxu0 %v13969_v36  ;;  %3308 = vmatprep.subr.bf16.mxu1 %v13972_v6  ;;  %v14027_v36 = vld [vmem:[%s20676_s4 + $0x60] ss:$16 sps:$4 sm:$0xff]   ;;  %v14030_v6 = vld [vmem:[%s20676_s4 + $0x68] ss:$16 sps:$4 sm:$0xff]  }
 0x43e   :  { %3268 = vmatpush1.bf16.msra.mxu0 %v13967_v57  ;;  %3309 = vmatpush1.bf16.msra.mxu1 %v13970_v13  ;;  %v14035_v57 = vld [vmem:[%s20676_s4 + $0x44] ss:$16 sps:$4 sm:$0xff]   ;;  %v14038_v13 = vld [vmem:[%s20676_s4 + $0x4c] ss:$16 sps:$4 sm:$0xff]  }
 0x43f   :  { %3269 = vmatprep.subr.bf16.mxu0 %v13975_v14  ;;  %3310 = vmatprep.subr.bf16.mxu1 %v13978_v46  ;;  %v14033_v14 = vld [vmem:[%s20676_s4 + $0x40] ss:$16 sps:$4 sm:$0xff]   ;;  %v14036_v46 = vld [vmem:[%s20676_s4 + $0x48] ss:$16 sps:$4 sm:$0xff]  }
 0x442   :  { %3270 = vmatpush1.bf16.msra.mxu0 %v13973_v15  ;;  %3311 = vmatpush1.bf16.msra.mxu1 %v13976_v16  ;;  %v14041_v15 = vld [vmem:[%s20676_s4 + $0x24] ss:$16 sps:$4 sm:$0xff]   ;;  %v14044_v16 = vld [vmem:[%s20676_s4 + $0x2c] ss:$16 sps:$4 sm:$0xff]  }
 0x443   :  { %3271 = vmatprep.subr.bf16.mxu0 %v13981_v17  ;;  %3312 = vmatprep.subr.bf16.mxu1 %v13984_v18  ;;  %v14039_v17 = vld [vmem:[%s20676_s4 + $0x20] ss:$16 sps:$4 sm:$0xff]   ;;  %v14042_v18 = vld [vmem:[%s20676_s4 + $0x28] ss:$16 sps:$4 sm:$0xff]  }
 0x446   :  { %3272 = vmatpush1.bf16.msra.mxu0 %v13979_v19  ;;  %3313 = vmatpush1.bf16.msra.mxu1 %v13982_v53  ;;  %v14047_v19 = vld [vmem:[%s20676_s4 + $0x4] ss:$16 sps:$4 sm:$0xff]   ;;  %v14050_v53 = vld [vmem:[%s20676_s4 + $0xc] ss:$16 sps:$4 sm:$0xff]  }
 0x447   :  { %3273 = vmatprep.subr.bf16.mxu0 %v13987_v8  ;;  %3314 = vmatprep.subr.bf16.mxu1 %v13990_v20  ;;  %v14045_v8 = vld [vmem:[%s20676_s4] ss:$16 sps:$4 sm:$0xff]   ;;  %v14048_v20 = vld [vmem:[%s20676_s4 + $0x8] ss:$16 sps:$4 sm:$0xff]  }
 0x44a   :  { %3274 = vmatpush1.bf16.msra.mxu0 %v13985_v43  ;;  %3315 = vmatpush1.bf16.msra.mxu1 %v13988_v12  ;;  %v3345_v43 = vpack.c.bf16 %v17083_v59, %v17083_v59  ;;  %v14053_v12 = vld [vmem:[%s20677_s6 + $0xe4] ss:$16 sps:$4 sm:$0xff]  }
 0x44b   :  { %3275 = vmatprep.subr.bf16.mxu0 %v13993_v22  ;;  %3316 = vmatprep.subr.bf16.mxu1 %v13996_v45  ;;  %v14056_v22 = vld [vmem:[%s20677_s6 + $0xec] ss:$16 sps:$4 sm:$0xff]   ;;  %v14051_v45 = vld [vmem:[%s20677_s6 + $0xe0] ss:$16 sps:$4 sm:$0xff]  }
 0x44e   :  { %3276 = vmatpush1.bf16.msra.mxu0 %v13991_v25  ;;  %3317 = vmatpush1.bf16.msra.mxu1 %v13994_v27  ;;  %v14054_v25 = vld [vmem:[%s20677_s6 + $0xe8] ss:$16 sps:$4 sm:$0xff]   ;;  %v14059_v27 = vld [vmem:[%s20677_s6 + $0xc4] ss:$16 sps:$4 sm:$0xff]  }
 0x44f   :  { %3277 = vmatprep.subr.bf16.mxu0 %v13999_v29  ;;  %3318 = vmatprep.subr.bf16.mxu1 %v14002_v31  ;;  %v14062_v29 = vld [vmem:[%s20677_s6 + $0xcc] ss:$16 sps:$4 sm:$0xff]   ;;  %v14057_v31 = vld [vmem:[%s20677_s6 + $0xc0] ss:$16 sps:$4 sm:$0xff]  }
 0x452   :  { %3278 = vmatpush1.bf16.msra.mxu0 %v13997_v32  ;;  %3319 = vmatpush1.bf16.msra.mxu1 %v14000_v34  ;;  %v14060_v32 = vld [vmem:[%s20677_s6 + $0xc8] ss:$16 sps:$4 sm:$0xff]   ;;  %v14065_v34 = vld [vmem:[%s20677_s6 + $0xa4] ss:$16 sps:$4 sm:$0xff]  }
 0x453   :  { %3538 = vmatprep.subr.bf16.mxu0 %v14005_v37  ;;  %3579 = vmatprep.subr.bf16.mxu1 %v14008_v44  ;;  %v14068_v37 = vld [vmem:[%s20677_s6 + $0xac] ss:$16 sps:$4 sm:$0xff]   ;;  %v14063_v44 = vld [vmem:[%s20677_s6 + $0xa0] ss:$16 sps:$4 sm:$0xff]  }
 0x455   :  { %3296 = vmatmul.mubr.bf16.vlgmr.msra.gmra.mxu0 %v3070_v9  ;;  %3337 = vmatmul.mubr.bf16.vlgmr.msra.gmra.mxu1 %v3070_v9  ;;  %v14074_v9 = vld [vmem:[%s20677_s6 + $0x8c] ss:$16 sps:$4 sm:$0xff]  }
 0x456   :  { %3539 = vmatpush1.bf16.msra.mxu0 %v14003_v0  ;;  %3580 = vmatpush1.bf16.msra.mxu1 %v14006_v47  ;;  %v14066_v0 = vld [vmem:[%s20677_s6 + $0xa8] ss:$16 sps:$4 sm:$0xff]   ;;  %v14071_v47 = vld [vmem:[%s20677_s6 + $0x84] ss:$16 sps:$4 sm:$0xff]  }
 0x457   :  { %3540 = vmatprep.subr.bf16.mxu0 %v14011_v50  ;;  %3581 = vmatprep.subr.bf16.mxu1 %v14014_v56  ;;  %v14069_v50 = vld [vmem:[%s20677_s6 + $0x80] ss:$16 sps:$4 sm:$0xff]   ;;  %v14072_v56 = vld [vmem:[%s20677_s6 + $0x88] ss:$16 sps:$4 sm:$0xff]  }
 0x458   :  { %3570 = vmatprep.mubr.bf16.mxu0 %v15780_v1  ;;  %3611 = vmatprep.mubr.bf16.mxu1 %v15780_v1 }
 0x45a   :  { %3541 = vmatpush1.bf16.msra.mxu0 %v14009_v58  ;;  %3582 = vmatpush1.bf16.msra.mxu1 %v14012_v38  ;;  %v14077_v58 = vld [vmem:[%s20677_s6 + $0x64] ss:$16 sps:$4 sm:$0xff]   ;;  %v14080_v38 = vld [vmem:[%s20677_s6 + $0x6c] ss:$16 sps:$4 sm:$0xff]  }
 0x45b   :  { %3542 = vmatprep.subr.bf16.mxu0 %v14017_v26  ;;  %3583 = vmatprep.subr.bf16.mxu1 %v14020_v3  ;;  %v14075_v26 = vld [vmem:[%s20677_s6 + $0x60] ss:$16 sps:$4 sm:$0xff]   ;;  %v14078_v3 = vld [vmem:[%s20677_s6 + $0x68] ss:$16 sps:$4 sm:$0xff]  }
 0x45e   :  { %3543 = vmatpush1.bf16.msra.mxu0 %v14015_v5  ;;  %3584 = vmatpush1.bf16.msra.mxu1 %v14018_v21  ;;  %v14083_v5 = vld [vmem:[%s20677_s6 + $0x44] ss:$16 sps:$4 sm:$0xff]   ;;  %v14086_v21 = vld [vmem:[%s20677_s6 + $0x4c] ss:$16 sps:$4 sm:$0xff]  }
 0x45f   :  { %3544 = vmatprep.subr.bf16.mxu0 %v14023_v52  ;;  %3585 = vmatprep.subr.bf16.mxu1 %v14026_v49  ;;  %v14081_v52 = vld [vmem:[%s20677_s6 + $0x40] ss:$16 sps:$4 sm:$0xff]   ;;  %v14084_v49 = vld [vmem:[%s20677_s6 + $0x48] ss:$16 sps:$4 sm:$0xff]  }
 0x462   :  { %3545 = vmatpush1.bf16.msra.mxu0 %v14021_v10  ;;  %3586 = vmatpush1.bf16.msra.mxu1 %v14024_v11  ;;  %v14089_v10 = vld [vmem:[%s20677_s6 + $0x24] ss:$16 sps:$4 sm:$0xff]   ;;  %v14092_v11 = vld [vmem:[%s20677_s6 + $0x2c] ss:$16 sps:$4 sm:$0xff]  }
 0x463   :  { %3546 = vmatprep.subr.bf16.mxu0 %v14029_v23  ;;  %3587 = vmatprep.subr.bf16.mxu1 %v14032_v35  ;;  %v14087_v23 = vld [vmem:[%s20677_s6 + $0x20] ss:$16 sps:$4 sm:$0xff]   ;;  %v14090_v35 = vld [vmem:[%s20677_s6 + $0x28] ss:$16 sps:$4 sm:$0xff]  }
 0x466   :  { %3547 = vmatpush1.bf16.msra.mxu0 %v14027_v36  ;;  %3588 = vmatpush1.bf16.msra.mxu1 %v14030_v6  ;;  %v14095_v36 = vld [vmem:[%s20677_s6 + $0x4] ss:$16 sps:$4 sm:$0xff]   ;;  %v14098_v6 = vld [vmem:[%s20677_s6 + $0xc] ss:$16 sps:$4 sm:$0xff]  }
 0x467   :  { %3548 = vmatprep.subr.bf16.mxu0 %v14035_v57  ;;  %3589 = vmatprep.subr.bf16.mxu1 %v14038_v13  ;;  %v14093_v57 = vld [vmem:[%s20677_s6] ss:$16 sps:$4 sm:$0xff]   ;;  %v14096_v13 = vld [vmem:[%s20677_s6 + $0x8] ss:$16 sps:$4 sm:$0xff]  }
 0x46a   :  { %3549 = vmatpush1.bf16.msra.mxu0 %v14033_v14  ;;  %3590 = vmatpush1.bf16.msra.mxu1 %v14036_v46  ;;  %v14101_v14 = vld [vmem:[%s20678_s3 + $0xe4] ss:$16 sps:$4 sm:$0xff]   ;;  %v14104_v46 = vld [vmem:[%s20678_s3 + $0xec] ss:$16 sps:$4 sm:$0xff]  }
 0x46b   :  { %3550 = vmatprep.subr.bf16.mxu0 %v14041_v15  ;;  %3591 = vmatprep.subr.bf16.mxu1 %v14044_v16 }
 0x46e   :  { %3551 = vmatpush1.bf16.msra.mxu0 %v14039_v17  ;;  %3592 = vmatpush1.bf16.msra.mxu1 %v14042_v18 }
 0x46f   :  { %3552 = vmatprep.subr.bf16.mxu0 %v14047_v19  ;;  %3593 = vmatprep.subr.bf16.mxu1 %v14050_v53 }
 0x472   :  { %3553 = vmatpush1.bf16.msra.mxu0 %v14045_v8  ;;  %3594 = vmatpush1.bf16.msra.mxu1 %v14048_v20 }
 0x473   :  { %3813 = vmatprep.subr.bf16.mxu0 %v14053_v12  ;;  %3854 = vmatprep.subr.bf16.mxu1 %v14056_v22 }
 0x475   :  { %3571 = vmatmul.mubr.bf16.vlgmr.msra.gmra.mxu0 %v3345_v43  ;;  %3612 = vmatmul.mubr.bf16.vlgmr.msra.gmra.mxu1 %v3345_v43 }
 0x476   :  { %3845 = vmatprep.mubr.bf16.mxu0 %v15780_v1  ;;  %3886 = vmatprep.mubr.bf16.mxu1 %v15780_v1 }
 0x477   :  { %3814 = vmatpush1.bf16.msra.mxu0 %v14051_v45  ;;  %3855 = vmatpush1.bf16.msra.mxu1 %v14054_v25 }
 0x478   :  { %3815 = vmatprep.subr.bf16.mxu0 %v14059_v27  ;;  %3856 = vmatprep.subr.bf16.mxu1 %v14062_v29 }
 0x47b   :  { %3816 = vmatpush1.bf16.msra.mxu0 %v14057_v31  ;;  %3857 = vmatpush1.bf16.msra.mxu1 %v14060_v32 }
 0x47c   :  { %3817 = vmatprep.subr.bf16.mxu0 %v14065_v34  ;;  %3858 = vmatprep.subr.bf16.mxu1 %v14068_v37 }
 0x47f   :  { %3818 = vmatpush1.bf16.msra.mxu0 %v14063_v44  ;;  %3859 = vmatpush1.bf16.msra.mxu1 %v14066_v0 }
 0x480   :  { %3819 = vmatprep.subr.bf16.mxu0 %v14071_v47  ;;  %3860 = vmatprep.subr.bf16.mxu1 %v14074_v9  ;;  %v12433_v47 = vld [vmem:[%s20679_s1 + $0x40] sm:$0xff] }
 0x483   :  { %3820 = vmatpush1.bf16.msra.mxu0 %v14069_v50  ;;  %3861 = vmatpush1.bf16.msra.mxu1 %v14072_v56 }
 0x484   :  { %3821 = vmatprep.subr.bf16.mxu0 %v14077_v58  ;;  %3862 = vmatprep.subr.bf16.mxu1 %v14080_v38 }
 0x487   :  { %3822 = vmatpush1.bf16.msra.mxu0 %v14075_v26  ;;  %3863 = vmatpush1.bf16.msra.mxu1 %v14078_v3 }
 0x488   :  { %3823 = vmatprep.subr.bf16.mxu0 %v14083_v5  ;;  %3864 = vmatprep.subr.bf16.mxu1 %v14086_v21 }
 0x48b   :  { %3824 = vmatpush1.bf16.msra.mxu0 %v14081_v52  ;;  %3865 = vmatpush1.bf16.msra.mxu1 %v14084_v49 }
 0x48c   :  { %3825 = vmatprep.subr.bf16.mxu0 %v14089_v10  ;;  %3866 = vmatprep.subr.bf16.mxu1 %v14092_v11 }
 0x48f   :  { %3826 = vmatpush1.bf16.msra.mxu0 %v14087_v23  ;;  %3867 = vmatpush1.bf16.msra.mxu1 %v14090_v35  ;;  %v1576_v23 = vsel %vm105_vm4, %v16783_v30, 0.0 }
 0x490   :  { %3827 = vmatprep.subr.bf16.mxu0 %v14095_v36  ;;  %3868 = vmatprep.subr.bf16.mxu1 %v14098_v6 }
 0x493   :  { %3828 = vmatpush1.bf16.msra.mxu0 %v14093_v57  ;;  %3869 = vmatpush1.bf16.msra.mxu1 %v14096_v13 }
 0x494   :  { %4124 = vmatprep.subr.bf16.mxu0 %v14101_v14  ;;  %4165 = vmatprep.subr.bf16.mxu1 %v14104_v46  ;;  %v12436_v46 = vld [vmem:[%s20679_s1 + $0x58] sm:$0xff] }
 0x4f5   :  { %v2981_v15 = vpop.f32.mrf.mxu0  ;;  %v3022_v16 = vpop.f32.mrf.mxu1 }
 0x4f6   :  { %v2982_v17 = vadd.f32 %v2981_v15, %v17036_v61  ;;  %v3023_v31 = vadd.f32 %v3022_v16, %v17038_v62  ;;  %v12434_v62 = vld [vmem:[%s20679_s1 + $0x48] sm:$0xff] }
 0x4f7   :  { %v2983_v18 = vpop.f32.mrf.mxu0  ;;  %v3024_v19 = vpop.f32.mrf.mxu1 }
 0x4f8   :  { %v3029_v53 = vadd.f32 %v2982_v17, %v16755_v42  ;;  %v2984_v8 = vadd.f32 %v2983_v18, %v17040_v63  ;;  %v3025_v29 = vadd.f32 %v3024_v19, %v17042_v2  ;;  %v3031_v63 = vadd.f32 %v3023_v31, %v16773_v55  ;;  %v14110_v31 = vld [vmem:[%s20678_s3 + $0xcc] ss:$16 sps:$4 sm:$0xff]  }
 0x4f9   :  { %v2985_v20 = vpop.f32.mrf.mxu0  ;;  %v3026_v43 = vpop.f32.mrf.mxu1 }
 0x4fa   :  { %v12333_v12 = vmul.f32 -1.442695, %v3029_v53  ;;  %v3030_v22 = vadd.f32 %v2984_v8, %v16760_v51  ;;  %v3032_v61 = vadd.f32 %v3025_v29, %v16767_v54 }
 0x4fb   :  { %v2986_v45 = vpop.f32.mrf.mxu0  ;;  %v3027_v25 = vpop.f32.mrf.mxu1 }
 0x4fc   :  { %15475 = vpow2.f32 %v12333_v12  ;;  %v12334_v27 = vmul.f32 -1.442695, %v3030_v22  ;;  %v12335_v32 = vmul.f32 -1.442695, %v3032_v61  ;;  %v14099_v22 = vld [vmem:[%s20678_s3 + $0xe0] ss:$16 sps:$4 sm:$0xff]  }
 0x4fd   :  { %v14102_v45 = vld [vmem:[%s20678_s3 + $0xe8] ss:$16 sps:$4 sm:$0xff]   ;;  %v14107_v61 = vld [vmem:[%s20678_s3 + $0xc4] ss:$16 sps:$4 sm:$0xff]  }
 0x4fe   :  { %15477 = vpow2.f32 %v12334_v27 }
 0x4ff   :  { %15479 = vpow2.f32 %v12335_v32 }
 0x509   :  { %v15476_v34 = vpop.eup %15475 }
 0x50a   :  { %v3036_v37 = vadd.f32 1.0, %v15476_v34 }
 0x50b   :  { %v15478_v44 = vpop.eup %15477 }
 0x50c   :  { %15481 = vrcp.f32 %v3036_v37  ;;  %v3042_v0 = vadd.f32 1.0, %v15478_v44  ;;  %v15480_v38 = vpop.eup %15479  ;;  %v14116_v37 = vld [vmem:[%s20678_s3 + $0xac] ss:$16 sps:$4 sm:$0xff]  }
 0x50d   :  { %15483 = vtanh.f32 %v3031_v63  ;;  %v3049_v35 = vadd.f32 1.0, %v15480_v38  ;;  %v14113_v63 = vld [vmem:[%s20678_s3 + $0xa4] ss:$16 sps:$4 sm:$0xff]  }
 0x50e   :  { %15485 = vrcp.f32 %v3042_v0 }
 0x515   :  { %v3297_v2 = vpop.f32.mrf.mxu0  ;;  %v3338_v9 = vpop.f32.mrf.mxu1 }
 0x516   :  { %v3900_v50 = vadd.f32 %v12433_v47, %v3297_v2  ;;  %v3902_v16 = vadd.f32 %v12435_v48, %v3338_v9  ;;  %v14131_v48 = vld [vmem:[%s20678_s3 + $0x44] ss:$16 sps:$4 sm:$0xff]  }
 0x517   :  { %v3299_v56 = vpop.f32.mrf.mxu0  ;;  %v3340_v58 = vpop.f32.mrf.mxu1 }
 0x518   :  { %v12437_v26 = vmul.f32 -1.442695, %v3900_v50  ;;  %v3901_v3 = vadd.f32 %v12434_v62, %v3299_v56  ;;  %v3903_v30 = vadd.f32 %v12436_v46, %v3340_v58  ;;  %v14111_v62 = vld [vmem:[%s20678_s3 + $0xa0] ss:$16 sps:$4 sm:$0xff]   ;;  %v14114_v50 = vld [vmem:[%s20678_s3 + $0xa8] ss:$16 sps:$4 sm:$0xff]   ;;  %v17454_v56 = vpop.permute.xlu1 %3067 }
 0x519   :  { %v15482_v5 = vpop.eup %15481  ;;  %v3301_v21 = vpop.f32.mrf.mxu0  ;;  %vm3069_vm12 = vcmp.eq.s32.totalorder %v17454_v56, 1  ;;  %v14126_v46 = vld [vmem:[%s20678_s3 + $0x68] ss:$16 sps:$4 sm:$0xff]  }
 0x51a   :  { %v3342_v52 = vpop.f32.mrf.mxu1  ;;  %v15484_v49 = vpop.eup %15483  ;;  %15487 = vpow2.f32 %v12437_v26  ;;  %v12438_v10 = vmul.f32 -1.442695, %v3901_v3  ;;  %v12439_v18 = vmul.f32 -1.442695, %v3903_v30  ;;  %v14119_v3 = vld [vmem:[%s20678_s3 + $0x84] ss:$16 sps:$4 sm:$0xff]   ;;  %vm17528_vm13 = vmpackc.low %vm3069_vm12, %vm3069_vm12 }
 0x51b   :  { %v15486_v11 = vpop.eup %15485  ;;  %v3302_v36 = vpop.f32.mrf.mxu0  ;;  %v3053_v57 = vmul.f32 %v15484_v49, %v15482_v5  ;;  %v14122_v5 = vld [vmem:[%s20678_s3 + $0x8c] ss:$16 sps:$4 sm:$0xff]   ;;  %v14129_v30 = vld [vmem:[%s20678_s3 + $0x40] ss:$16 sps:$4 sm:$0xff]   ;;  %v14348_v56 = vld [vmem:[%s20678_s3 + $0xc8] ss:$16 sps:$4 sm:$0xff]  }
 0x51c   :  { %v3343_v6 = vpop.f32.mrf.mxu1  ;;  %v3052_v13 = vmul.f32 %v15486_v11, %v1576_v23  ;;  %15489 = vpow2.f32 %v12438_v10  ;;  %v14120_v36 = vld [vmem:[%s20678_s3 + $0x88] ss:$16 sps:$4 sm:$0xff]  }
 0x51d   :  { %15491 = vrcp.f32 %v3049_v35  ;;  %v14117_v35 = vld [vmem:[%s20678_s3 + $0x80] ss:$16 sps:$4 sm:$0xff]   ;;  %v14125_v6 = vld [vmem:[%s20678_s3 + $0x64] ss:$16 sps:$4 sm:$0xff]  }
 0x51e   :  { %v3054_v14 = vadd.f32 %v3053_v57, %v3052_v13  ;;  %v14128_v57 = vld [vmem:[%s20678_s3 + $0x6c] ss:$16 sps:$4 sm:$0xff]  }
 0x520   :  { %15493 = vtanh.f32 %v3054_v14  ;;  %v17397_v15 = vsel %vm1586_vm6, %v3054_v14, %v1576_v23  ;;  %v14123_v14 = vld [vmem:[%s20678_s3 + $0x60] ss:$16 sps:$4 sm:$0xff]  }
 0x521   :  { %15495 = vtanh.f32 %v3902_v16  ;;  %v14132_v16 = vld [vmem:[%s20678_s3 + $0x48] ss:$16 sps:$4 sm:$0xff]  }
 0x527   :  { %v15488_v17 = vpop.eup %15487 }
 0x528   :  { %v3907_v19 = vadd.f32 1.0, %v15488_v17  ;;  %v14137_v17 = vld [vmem:[%s20678_s3 + $0x24] ss:$16 sps:$4 sm:$0xff]  }
 0x529   :  { %v15490_v53 = vpop.eup %15489 }
 0x52a   :  { %15497 = vrcp.f32 %v3907_v19  ;;  %v3913_v8 = vadd.f32 1.0, %v15490_v53  ;;  %v15492_v20 = vpop.eup %15491  ;;  %v14135_v19 = vld [vmem:[%s20678_s3 + $0x20] ss:$16 sps:$4 sm:$0xff]   ;;  %v14138_v53 = vld [vmem:[%s20678_s3 + $0x28] ss:$16 sps:$4 sm:$0xff]  }
 0x52b   :  { %15499 = vpow2.f32 %v12439_v18  ;;  %v14140_v18 = vld [vmem:[%s20678_s3 + $0x2c] ss:$16 sps:$4 sm:$0xff]  }
 0x52c   :  { %15501 = vrcp.f32 %v3913_v8  ;;  %v14143_v8 = vld [vmem:[%s20678_s3 + $0x4] ss:$16 sps:$4 sm:$0xff]  }
 0x52d   :  { %v15494_v43 = vpop.eup %15493 }
 0x52e   :  { %v3056_v12 = vmul.f32 %v15494_v43, %v15492_v20  ;;  %v15496_v44 = vpop.eup %15495  ;;  %v14146_v20 = vld [vmem:[%s20678_s3 + $0xc] ss:$16 sps:$4 sm:$0xff]  }
 0x530   :  { %v17411_v25 = vsel %vm1586_vm6, %v3056_v12, %v16806_v33  ;;  %v3059_v27 = vsel %vm1586_vm6, %v3056_v12, 0.0  ;;  %v14105_v33 = vld [vmem:[%s20678_s3 + $0xc0] ss:$16 sps:$4 sm:$0xff]  }
 0x531   :  { %12336 = vst [vmem:[%s20683_s9 + $0x8] sm:$0xff] %v3059_v27  ;;  %v3620_v29 = vpack.c.bf16 %v17411_v25, %v17411_v25 }
 0x533   :  { %3846 = vmatmul.mubr.bf16.vlgmr.msra.gmra.mxu0 %v3620_v29  ;;  %3887 = vmatmul.mubr.bf16.vlgmr.msra.gmra.mxu1 %v3620_v29  ;;  %v14212_v29 = vld [vmem:[%s20674_s2 + $0xac] ss:$16 sps:$4 sm:$0xff]  }
 0x534   :  { %4125 = vmatpush1.bf16.msra.mxu0 %v14099_v22  ;;  %4166 = vmatpush1.bf16.msra.mxu1 %v14102_v45  ;;  %v14141_v22 = vld [vmem:[%s20678_s3] ss:$16 sps:$4 sm:$0xff]   ;;  %v14144_v45 = vld [vmem:[%s20678_s3 + $0x8] ss:$16 sps:$4 sm:$0xff]  }
 0x535   :  { %v17432_v32 = vpop.f32.mrf.mxu0  ;;  %v17434_v34 = vpop.f32.mrf.mxu1  ;;  %4126 = vmatprep.subr.bf16.mxu0 %v14107_v61  ;;  %4167 = vmatprep.subr.bf16.mxu1 %v14110_v31  ;;  %v14149_v31 = vld [vmem:[%s20680_s5 + $0xe4] ss:$16 sps:$4 sm:$0xff]  }
 0x536   :  { %4156 = vmatprep.mubr.bf16.mxu0 %v15780_v1  ;;  %4197 = vmatprep.mubr.bf16.mxu1 %v15780_v1 }
 0x537   :  { %v15498_v0 = vpop.eup %15497  ;;  %v17444_v47 = vpop.f32.mrf.mxu0 }
 0x538   :  { %v17446_v2 = vpop.f32.mrf.mxu1  ;;  %v15500_v9 = vpop.eup %15499  ;;  %4127 = vmatpush1.bf16.msra.mxu0 %v14105_v33  ;;  %4168 = vmatpush1.bf16.msra.mxu1 %v14108_v24  ;;  %v3924_v21 = vmul.f32 %v15498_v0, %v15496_v44  ;;  %v14152_v33 = vld [vmem:[%s20680_s5 + $0xec] ss:$16 sps:$4 sm:$0xff]   ;;  %v14147_v24 = vld [vmem:[%s20680_s5 + $0xe0] ss:$16 sps:$4 sm:$0xff]  }
 0x539   :  { %v15502_v58 = vpop.eup %15501  ;;  %v3576_v38 = vpop.f32.mrf.mxu0  ;;  %4128 = vmatprep.subr.bf16.mxu0 %v14113_v63  ;;  %4169 = vmatprep.subr.bf16.mxu1 %v14116_v37  ;;  %v3920_v49 = vadd.f32 1.0, %v15500_v9  ;;  %v14150_v63 = vld [vmem:[%s20680_s5 + $0xe8] ss:$16 sps:$4 sm:$0xff]   ;;  %v14155_v37 = vld [vmem:[%s20680_s5 + $0xc4] ss:$16 sps:$4 sm:$0xff]  }
 0x53a   :  { %v3617_v26 = vpop.f32.mrf.mxu1  ;;  %v3923_v52 = vmul.f32 %v15502_v58, %v16870_v28  ;;  %v14158_v44 = vld [vmem:[%s20680_s5 + $0xcc] ss:$16 sps:$4 sm:$0xff]   ;;  %v14153_v0 = vld [vmem:[%s20680_s5 + $0xc0] ss:$16 sps:$4 sm:$0xff]   ;;  %v14156_v9 = vld [vmem:[%s20680_s5 + $0xc8] ss:$16 sps:$4 sm:$0xff]  }
 0x53b   :  { %v3577_v10 = vpop.f32.mrf.mxu0  ;;  %v14159_v58 = vld [vmem:[%s20680_s5 + $0xa0] ss:$16 sps:$4 sm:$0xff]   ;;  %v14162_v38 = vld [vmem:[%s20680_s5 + $0xa8] ss:$16 sps:$4 sm:$0xff]   ;;  %v14167_v26 = vld [vmem:[%s20680_s5 + $0x84] ss:$16 sps:$4 sm:$0xff]  }
 0x53c   :  { %v3618_v11 = vpop.f32.mrf.mxu1  ;;  %v3925_v23 = vadd.f32 %v3924_v21, %v3923_v52  ;;  %4129 = vmatpush1.bf16.msra.mxu0 %v14111_v62  ;;  %4170 = vmatpush1.bf16.msra.mxu1 %v14114_v50  ;;  %v14161_v62 = vld [vmem:[%s20680_s5 + $0xa4] ss:$16 sps:$4 sm:$0xff]   ;;  %v14164_v50 = vld [vmem:[%s20680_s5 + $0xac] ss:$16 sps:$4 sm:$0xff]   ;;  %v14168_v21 = vld [vmem:[%s20680_s5 + $0x88] ss:$16 sps:$4 sm:$0xff]  }
 0x53d   :  { %4130 = vmatprep.subr.bf16.mxu0 %v14119_v3  ;;  %4171 = vmatprep.subr.bf16.mxu1 %v14122_v5  ;;  %v14170_v3 = vld [vmem:[%s20680_s5 + $0x8c] ss:$16 sps:$4 sm:$0xff]   ;;  %v14165_v5 = vld [vmem:[%s20680_s5 + $0x80] ss:$16 sps:$4 sm:$0xff]   ;;  %v14174_v10 = vld [vmem:[%s20680_s5 + $0x68] ss:$16 sps:$4 sm:$0xff]  }
 0x53e   :  { %15503 = vtanh.f32 %v3925_v23  ;;  %v17479_v13 = vsel %vm3069_vm12, %v3925_v23, %v16870_v28  ;;  %v14134_v28 = vld [vmem:[%s20678_s3 + $0x4c] ss:$16 sps:$4 sm:$0xff]   ;;  %v14171_v52 = vld [vmem:[%s20680_s5 + $0x60] ss:$16 sps:$4 sm:$0xff]   ;;  %v14179_v23 = vld [vmem:[%s20680_s5 + $0x44] ss:$16 sps:$4 sm:$0xff]  }
 0x53f   :  { %15505 = vrcp.f32 %v3920_v49  ;;  %v14173_v49 = vld [vmem:[%s20680_s5 + $0x64] ss:$16 sps:$4 sm:$0xff]   ;;  %v14176_v11 = vld [vmem:[%s20680_s5 + $0x6c] ss:$16 sps:$4 sm:$0xff]  }
 0x540   :  { %4131 = vmatpush1.bf16.msra.mxu0 %v14117_v35  ;;  %4172 = vmatpush1.bf16.msra.mxu1 %v14120_v36  ;;  %v14182_v35 = vld [vmem:[%s20680_s5 + $0x4c] ss:$16 sps:$4 sm:$0xff]   ;;  %v14177_v36 = vld [vmem:[%s20680_s5 + $0x40] ss:$16 sps:$4 sm:$0xff]  }
 0x541   :  { %4132 = vmatprep.subr.bf16.mxu0 %v14125_v6  ;;  %4173 = vmatprep.subr.bf16.mxu1 %v14128_v57  ;;  %v14180_v6 = vld [vmem:[%s20680_s5 + $0x48] ss:$16 sps:$4 sm:$0xff]   ;;  %v14185_v57 = vld [vmem:[%s20680_s5 + $0x24] ss:$16 sps:$4 sm:$0xff]  }
 0x544   :  { %4133 = vmatpush1.bf16.msra.mxu0 %v14123_v14  ;;  %4174 = vmatpush1.bf16.msra.mxu1 %v14126_v46  ;;  %v14188_v14 = vld [vmem:[%s20680_s5 + $0x2c] ss:$16 sps:$4 sm:$0xff]   ;;  %v14183_v46 = vld [vmem:[%s20680_s5 + $0x20] ss:$16 sps:$4 sm:$0xff]  }
 0x545   :  { %4134 = vmatprep.subr.bf16.mxu0 %v14131_v48  ;;  %4175 = vmatprep.subr.bf16.mxu1 %v14134_v28  ;;  %v14186_v48 = vld [vmem:[%s20680_s5 + $0x28] ss:$16 sps:$4 sm:$0xff]   ;;  %v14191_v28 = vld [vmem:[%s20680_s5 + $0x4] ss:$16 sps:$4 sm:$0xff]  }
 0x548   :  { %4135 = vmatpush1.bf16.msra.mxu0 %v14129_v30  ;;  %4176 = vmatpush1.bf16.msra.mxu1 %v14132_v16  ;;  %v14194_v30 = vld [vmem:[%s20680_s5 + $0xc] ss:$16 sps:$4 sm:$0xff]   ;;  %v14189_v16 = vld [vmem:[%s20680_s5] ss:$16 sps:$4 sm:$0xff]  }
 0x549   :  { %4136 = vmatprep.subr.bf16.mxu0 %v14137_v17  ;;  %4177 = vmatprep.subr.bf16.mxu1 %v14140_v18  ;;  %v14192_v17 = vld [vmem:[%s20680_s5 + $0x8] ss:$16 sps:$4 sm:$0xff]   ;;  %v14197_v18 = vld [vmem:[%s20674_s2 + $0xe4] ss:$16 sps:$4 sm:$0xff]  }
 0x54b   :  { %v15504_v43 = vpop.eup %15503 }
 0x54c   :  { %v15506_v12 = vpop.eup %15505  ;;  %4137 = vmatpush1.bf16.msra.mxu0 %v14135_v19  ;;  %4178 = vmatpush1.bf16.msra.mxu1 %v14138_v53  ;;  %v14200_v19 = vld [vmem:[%s20674_s2 + $0xec] ss:$16 sps:$4 sm:$0xff]  }
 0x54d   :  { %4138 = vmatprep.subr.bf16.mxu0 %v14143_v8  ;;  %4179 = vmatprep.subr.bf16.mxu1 %v14146_v20  ;;  %v17523_v27 = vmul.f32 %v15506_v12, %v15504_v43 }
 0x54f   :  { %v12473_v61 = vpack.c.bf16 %v17523_v27, %v17523_v27 }
 0x550   :  { %4139 = vmatpush1.bf16.msra.mxu0 %v14141_v22  ;;  %4180 = vmatpush1.bf16.msra.mxu1 %v14144_v45 }
 0x551   :  { %4430 = vmatprep.subr.bf16.mxu0 %v14149_v31  ;;  %4471 = vmatprep.subr.bf16.mxu1 %v14152_v33 }
 0x553   :  { %12474 = vmatmul.mubr.msk.bf16.vlgmr.msra.gmra.mxu0 %vm17528_vm13, %v12473_v61  ;;  %12477 = vmatmul.mubr.msk.bf16.vlgmr.msra.gmra.mxu1 %vm17528_vm13, %v12473_v61 }
 0x554   :  { %4462 = vmatprep.mubr.bf16.mxu0 %v15780_v1  ;;  %4503 = vmatprep.mubr.bf16.mxu1 %v15780_v1 }
 0x555   :  { %4431 = vmatpush1.bf16.msra.mxu0 %v14147_v24  ;;  %4472 = vmatpush1.bf16.msra.mxu1 %v14150_v63 }
 0x556   :  { %4432 = vmatprep.subr.bf16.mxu0 %v14155_v37  ;;  %4473 = vmatprep.subr.bf16.mxu1 %v14158_v44 }
 0x559   :  { %4433 = vmatpush1.bf16.msra.mxu0 %v14153_v0  ;;  %4474 = vmatpush1.bf16.msra.mxu1 %v14156_v9 }
 0x55a   :  { %4434 = vmatprep.subr.bf16.mxu0 %v14161_v62  ;;  %4475 = vmatprep.subr.bf16.mxu1 %v14164_v50 }
 0x55d   :  { %4435 = vmatpush1.bf16.msra.mxu0 %v14159_v58  ;;  %4476 = vmatpush1.bf16.msra.mxu1 %v14162_v38 }
 0x55e   :  { %4436 = vmatprep.subr.bf16.mxu0 %v14167_v26  ;;  %4477 = vmatprep.subr.bf16.mxu1 %v14170_v3 }
 0x561   :  { %4437 = vmatpush1.bf16.msra.mxu0 %v14165_v5  ;;  %4478 = vmatpush1.bf16.msra.mxu1 %v14168_v21 }
 0x562   :  { %4438 = vmatprep.subr.bf16.mxu0 %v14173_v49  ;;  %4479 = vmatprep.subr.bf16.mxu1 %v14176_v11 }
 0x565   :  { %4439 = vmatpush1.bf16.msra.mxu0 %v14171_v52  ;;  %4480 = vmatpush1.bf16.msra.mxu1 %v14174_v10 }
 0x566   :  { %4440 = vmatprep.subr.bf16.mxu0 %v14179_v23  ;;  %4481 = vmatprep.subr.bf16.mxu1 %v14182_v35 }
 0x569   :  { %4441 = vmatpush1.bf16.msra.mxu0 %v14177_v36  ;;  %4482 = vmatpush1.bf16.msra.mxu1 %v14180_v6 }
 0x56a   :  { %4442 = vmatprep.subr.bf16.mxu0 %v14185_v57  ;;  %4483 = vmatprep.subr.bf16.mxu1 %v14188_v14 }
 0x56d   :  { %4443 = vmatpush1.bf16.msra.mxu0 %v14183_v46  ;;  %4484 = vmatpush1.bf16.msra.mxu1 %v14186_v48 }
 0x56e   :  { %4444 = vmatprep.subr.bf16.mxu0 %v14191_v28  ;;  %4485 = vmatprep.subr.bf16.mxu1 %v14194_v30 }
 0x571   :  { %4445 = vmatpush1.bf16.msra.mxu0 %v14189_v16  ;;  %4486 = vmatpush1.bf16.msra.mxu1 %v14192_v17  ;;  %v14195_v17 = vld [vmem:[%s20674_s2 + $0xe0] ss:$16 sps:$4 sm:$0xff]  }
 0x572   :  { %4746 = vmatprep.subr.bf16.mxu0 %v14197_v18  ;;  %4787 = vmatprep.subr.bf16.mxu1 %v14200_v19  ;;  %v14198_v18 = vld [vmem:[%s20674_s2 + $0xe8] ss:$16 sps:$4 sm:$0xff]  }
 0x5f3   :  { %v17642_v53 = vpop.f32.mrf.mxu0  ;;  %v17644_v8 = vpop.f32.mrf.mxu1 }
 0x5f5   :  { %v17646_v20 = vpop.f32.mrf.mxu0  ;;  %v17648_v43 = vpop.f32.mrf.mxu1 }
 0x5f7   :  { %v3851_v12 = vpop.f32.mrf.mxu0  ;;  %v3892_v22 = vpop.f32.mrf.mxu1 }
 0x5f8   :  { %v14206_v12 = vld [vmem:[%s20674_s2 + $0xcc] ss:$16 sps:$4 sm:$0xff]   ;;  %v14201_v22 = vld [vmem:[%s20674_s2 + $0xc0] ss:$16 sps:$4 sm:$0xff]  }
 0x5f9   :  { %v3852_v45 = vpop.f32.mrf.mxu0  ;;  %v3893_v61 = vpop.f32.mrf.mxu1 }
 0x5fa   :  { %v14204_v45 = vld [vmem:[%s20674_s2 + $0xc8] ss:$16 sps:$4 sm:$0xff]   ;;  %v14209_v61 = vld [vmem:[%s20674_s2 + $0xa4] ss:$16 sps:$4 sm:$0xff]  }
 0x613   :  { %v4158_v31 = vpop.f32.mrf.mxu0  ;;  %v4199_v33 = vpop.f32.mrf.mxu1 }
 0x614   :  { %v4159_v24 = vadd.f32 %v4158_v31, %v17432_v32  ;;  %v4200_v21 = vadd.f32 %v4199_v33, %v17434_v34  ;;  %v14207_v31 = vld [vmem:[%s20674_s2 + $0xa0] ss:$16 sps:$4 sm:$0xff]   ;;  %v14210_v33 = vld [vmem:[%s20674_s2 + $0xa8] ss:$16 sps:$4 sm:$0xff]  }
 0x615   :  { %v4160_v63 = vpop.f32.mrf.mxu0  ;;  %v4201_v37 = vpop.f32.mrf.mxu1 }
 0x616   :  { %v4206_v44 = vadd.f32 %v4159_v24, %v16405_v40  ;;  %v4161_v0 = vadd.f32 %v4160_v63, %v17444_v47  ;;  %v4202_v5 = vadd.f32 %v4201_v37, %v17446_v2  ;;  %v4208_v47 = vadd.f32 %v4200_v21, %v16425_v7  ;;  %v14215_v24 = vld [vmem:[%s20674_s2 + $0x84] ss:$16 sps:$4 sm:$0xff]   ;;  %v14218_v63 = vld [vmem:[%s20674_s2 + $0x8c] ss:$16 sps:$4 sm:$0xff]   ;;  %v14213_v37 = vld [vmem:[%s20674_s2 + $0x80] ss:$16 sps:$4 sm:$0xff]  }
 0x617   :  { %v4162_v9 = vpop.f32.mrf.mxu0  ;;  %v4203_v62 = vpop.f32.mrf.mxu1  ;;  %v14231_v21 = vld [vmem:[%s20674_s2 + $0x20] ss:$16 sps:$4 sm:$0xff]  }
 0x618   :  { %v12478_v50 = vmul.f32 -1.442695, %v4206_v44  ;;  %v4207_v58 = vadd.f32 %v4161_v0, %v16410_v41  ;;  %v4209_v32 = vadd.f32 %v4202_v5, %v16418_v4  ;;  %v14216_v44 = vld [vmem:[%s20674_s2 + $0x88] ss:$16 sps:$4 sm:$0xff]   ;;  %v14221_v0 = vld [vmem:[%s20674_s2 + $0x64] ss:$16 sps:$4 sm:$0xff]  }
 0x619   :  { %v4163_v38 = vpop.f32.mrf.mxu0  ;;  %v4204_v26 = vpop.f32.mrf.mxu1  ;;  %v14224_v9 = vld [vmem:[%s20674_s2 + $0x6c] ss:$16 sps:$4 sm:$0xff]   ;;  %v14219_v62 = vld [vmem:[%s20674_s2 + $0x60] ss:$16 sps:$4 sm:$0xff]   ;;  %v14233_v5 = vld [vmem:[%s20674_s2 + $0x24] ss:$16 sps:$4 sm:$0xff]  }
 0x61a   :  { %15507 = vpow2.f32 %v12478_v50  ;;  %v12479_v3 = vmul.f32 -1.442695, %v4207_v58  ;;  %v12480_v52 = vmul.f32 -1.442695, %v4209_v32  ;;  %v14222_v50 = vld [vmem:[%s20674_s2 + $0x68] ss:$16 sps:$4 sm:$0xff]  }
 0x61b   :  { %v14227_v58 = vld [vmem:[%s20674_s2 + $0x44] ss:$16 sps:$4 sm:$0xff]   ;;  %v14230_v38 = vld [vmem:[%s20674_s2 + $0x4c] ss:$16 sps:$4 sm:$0xff]   ;;  %v14225_v26 = vld [vmem:[%s20674_s2 + $0x40] ss:$16 sps:$4 sm:$0xff]  }
 0x61c   :  { %15509 = vpow2.f32 %v12479_v3  ;;  %v14228_v3 = vld [vmem:[%s20674_s2 + $0x48] ss:$16 sps:$4 sm:$0xff]   ;;  %v14236_v32 = vld [vmem:[%s20674_s2 + $0x2c] ss:$16 sps:$4 sm:$0xff]  }
 0x61d   :  { %15511 = vpow2.f32 %v12480_v52  ;;  %v14234_v52 = vld [vmem:[%s20674_s2 + $0x28] ss:$16 sps:$4 sm:$0xff]  }
 0x627   :  { %v15508_v49 = vpop.eup %15507 }
 0x628   :  { %v4213_v10 = vadd.f32 1.0, %v15508_v49  ;;  %v14239_v49 = vld [vmem:[%s20674_s2 + $0x4] ss:$16 sps:$4 sm:$0xff]  }
 0x629   :  { %v15510_v11 = vpop.eup %15509 }
 0x62a   :  { %15513 = vrcp.f32 %v4213_v10  ;;  %v4219_v23 = vadd.f32 1.0, %v15510_v11  ;;  %v15512_v35 = vpop.eup %15511  ;;  %v14237_v10 = vld [vmem:[%s20674_s2] ss:$16 sps:$4 sm:$0xff]   ;;  %v14240_v11 = vld [vmem:[%s20674_s2 + $0x8] ss:$16 sps:$4 sm:$0xff]  }
 0x62b   :  { %15515 = vtanh.f32 %v4208_v47  ;;  %v4226_v2 = vadd.f32 1.0, %v15512_v35  ;;  %v14242_v47 = vld [vmem:[%s20674_s2 + $0xc] ss:$16 sps:$4 sm:$0xff]  }
 0x62c   :  { %15517 = vrcp.f32 %v4219_v23  ;;  %v14245_v23 = vld [vmem:[%s20676_s4 + $0xe4] ss:$16 sps:$4 sm:$0xff]   ;;  %v14248_v35 = vld [vmem:[%s20676_s4 + $0xec] ss:$16 sps:$4 sm:$0xff]  }
 0x62d   :  { %15519 = vrcp.f32 %v4226_v2 }
 0x637   :  { %v15514_v36 = vpop.eup %15513 }
 0x638   :  { %v15516_v6 = vpop.eup %15515 }
 0x639   :  { %v15518_v57 = vpop.eup %15517  ;;  %v4230_v14 = vmul.f32 %v15516_v6, %v15514_v36  ;;  %v17774_v36 = vsel %vm3069_vm12, %v17523_v27, %v16919_v39  ;;  %v14243_v6 = vld [vmem:[%s20676_s4 + $0xe0] ss:$16 sps:$4 sm:$0xff]   ;;  %v14251_v39 = vld [vmem:[%s20676_s4 + $0xc4] ss:$16 sps:$4 sm:$0xff]   ;;  %v14254_v27 = vld [vmem:[%s20676_s4 + $0xcc] ss:$16 sps:$4 sm:$0xff]  }
 0x63a   :  { %v4229_v46 = vmul.f32 %v15518_v57, %v17064_v60  ;;  %v15520_v28 = vpop.eup %15519  ;;  %v14246_v57 = vld [vmem:[%s20676_s4 + $0xe8] ss:$16 sps:$4 sm:$0xff]   ;;  %v4553_v2 = vpack.c.bf16 %v17774_v36, %v17774_v36 }
 0x63c   :  { %v4231_v34 = vadd.f32 %v4230_v14, %v4229_v46  ;;  %v14249_v14 = vld [vmem:[%s20676_s4 + $0xc0] ss:$16 sps:$4 sm:$0xff]   ;;  %v14252_v46 = vld [vmem:[%s20676_s4 + $0xc8] ss:$16 sps:$4 sm:$0xff]  }
 0x63e   :  { %15521 = vtanh.f32 %v4231_v34  ;;  %v17662_v48 = vsel %vm3069_vm12, %v4231_v34, %v17064_v60  ;;  %v14203_v60 = vld [vmem:[%s20674_s2 + $0xc4] ss:$16 sps:$4 sm:$0xff]  }
 0x63f   :  { %v14257_v34 = vld [vmem:[%s20676_s4 + $0xa4] ss:$16 sps:$4 sm:$0xff]  }
 0x64b   :  { %v15522_v30 = vpop.eup %15521 }
 0x64c   :  { %v17664_v16 = vmul.f32 %v15522_v30, %v15520_v28  ;;  %v14260_v28 = vld [vmem:[%s20676_s4 + $0xac] ss:$16 sps:$4 sm:$0xff]   ;;  %v14255_v30 = vld [vmem:[%s20676_s4 + $0xa0] ss:$16 sps:$4 sm:$0xff]  }
 0x64e   :  { %v12514_v19 = vpack.c.bf16 %v17664_v16, %v17664_v16 }
 0x650   :  { %12515 = vmatmul.mubr.msk.bf16.vlgmr.msra.gmra.mxu0 %vm17528_vm13, %v12514_v19  ;;  %12518 = vmatmul.mubr.msk.bf16.vlgmr.msra.gmra.mxu1 %vm17528_vm13, %v12514_v19  ;;  %v14266_v19 = vld [vmem:[%s20676_s4 + $0x8c] ss:$16 sps:$4 sm:$0xff]  }
 0x651   :  { %4747 = vmatpush1.bf16.msra.mxu0 %v14195_v17  ;;  %4788 = vmatpush1.bf16.msra.mxu1 %v14198_v18  ;;  %v14258_v17 = vld [vmem:[%s20676_s4 + $0xa8] ss:$16 sps:$4 sm:$0xff]   ;;  %v14263_v18 = vld [vmem:[%s20676_s4 + $0x84] ss:$16 sps:$4 sm:$0xff]  }
 0x652   :  { %4748 = vmatprep.subr.bf16.mxu0 %v14203_v60  ;;  %4789 = vmatprep.subr.bf16.mxu1 %v14206_v12  ;;  %v14261_v60 = vld [vmem:[%s20676_s4 + $0x80] ss:$16 sps:$4 sm:$0xff]   ;;  %v14264_v12 = vld [vmem:[%s20676_s4 + $0x88] ss:$16 sps:$4 sm:$0xff]  }
 0x653   :  { %4778 = vmatprep.mubr.bf16.mxu0 %v15780_v1  ;;  %4819 = vmatprep.mubr.bf16.mxu1 %v15780_v1 }
 0x655   :  { %4749 = vmatpush1.bf16.msra.mxu0 %v14201_v22  ;;  %4790 = vmatpush1.bf16.msra.mxu1 %v14204_v45  ;;  %v14269_v22 = vld [vmem:[%s20676_s4 + $0x64] ss:$16 sps:$4 sm:$0xff]   ;;  %v14272_v45 = vld [vmem:[%s20676_s4 + $0x6c] ss:$16 sps:$4 sm:$0xff]  }
 0x656   :  { %4750 = vmatprep.subr.bf16.mxu0 %v14209_v61  ;;  %4791 = vmatprep.subr.bf16.mxu1 %v14212_v29  ;;  %v14267_v61 = vld [vmem:[%s20676_s4 + $0x60] ss:$16 sps:$4 sm:$0xff]   ;;  %v14270_v29 = vld [vmem:[%s20676_s4 + $0x68] ss:$16 sps:$4 sm:$0xff]  }
 0x659   :  { %4751 = vmatpush1.bf16.msra.mxu0 %v14207_v31  ;;  %4792 = vmatpush1.bf16.msra.mxu1 %v14210_v33  ;;  %v14275_v31 = vld [vmem:[%s20676_s4 + $0x44] ss:$16 sps:$4 sm:$0xff]   ;;  %v14278_v33 = vld [vmem:[%s20676_s4 + $0x4c] ss:$16 sps:$4 sm:$0xff]  }
 0x65a   :  { %4752 = vmatprep.subr.bf16.mxu0 %v14215_v24  ;;  %4793 = vmatprep.subr.bf16.mxu1 %v14218_v63  ;;  %v14273_v24 = vld [vmem:[%s20676_s4 + $0x40] ss:$16 sps:$4 sm:$0xff]   ;;  %v14276_v63 = vld [vmem:[%s20676_s4 + $0x48] ss:$16 sps:$4 sm:$0xff]  }
 0x65d   :  { %4753 = vmatpush1.bf16.msra.mxu0 %v14213_v37  ;;  %4794 = vmatpush1.bf16.msra.mxu1 %v14216_v44  ;;  %v14281_v37 = vld [vmem:[%s20676_s4 + $0x24] ss:$16 sps:$4 sm:$0xff]   ;;  %v14284_v44 = vld [vmem:[%s20676_s4 + $0x2c] ss:$16 sps:$4 sm:$0xff]  }
 0x65e   :  { %4754 = vmatprep.subr.bf16.mxu0 %v14221_v0  ;;  %4795 = vmatprep.subr.bf16.mxu1 %v14224_v9  ;;  %v14279_v0 = vld [vmem:[%s20676_s4 + $0x20] ss:$16 sps:$4 sm:$0xff]   ;;  %v14282_v9 = vld [vmem:[%s20676_s4 + $0x28] ss:$16 sps:$4 sm:$0xff]  }
 0x661   :  { %4755 = vmatpush1.bf16.msra.mxu0 %v14219_v62  ;;  %4796 = vmatpush1.bf16.msra.mxu1 %v14222_v50  ;;  %v14287_v62 = vld [vmem:[%s20676_s4 + $0x4] ss:$16 sps:$4 sm:$0xff]   ;;  %v14290_v50 = vld [vmem:[%s20676_s4 + $0xc] ss:$16 sps:$4 sm:$0xff]  }
 0x662   :  { %4756 = vmatprep.subr.bf16.mxu0 %v14227_v58  ;;  %4797 = vmatprep.subr.bf16.mxu1 %v14230_v38  ;;  %v14285_v58 = vld [vmem:[%s20676_s4] ss:$16 sps:$4 sm:$0xff]   ;;  %v14288_v38 = vld [vmem:[%s20676_s4 + $0x8] ss:$16 sps:$4 sm:$0xff]  }
 0x665   :  { %4757 = vmatpush1.bf16.msra.mxu0 %v14225_v26  ;;  %4798 = vmatpush1.bf16.msra.mxu1 %v14228_v3  ;;  %v17874_v26 = vsel %vm3069_vm12, %v17664_v16, %v17083_v59  ;;  %v14296_v59 = vld [vmem:[%s20677_s6 + $0xec] ss:$16 sps:$4 sm:$0xff]   ;;  %v14291_v16 = vld [vmem:[%s20677_s6 + $0xe0] ss:$16 sps:$4 sm:$0xff]  }
 0x666   :  { %4758 = vmatprep.subr.bf16.mxu0 %v14233_v5  ;;  %4799 = vmatprep.subr.bf16.mxu1 %v14236_v32  ;;  %v4828_v3 = vpack.c.bf16 %v17874_v26, %v17874_v26  ;;  %v14293_v5 = vld [vmem:[%s20677_s6 + $0xe4] ss:$16 sps:$4 sm:$0xff]   ;;  %v14294_v32 = vld [vmem:[%s20677_s6 + $0xe8] ss:$16 sps:$4 sm:$0xff]  }
 0x669   :  { %4759 = vmatpush1.bf16.msra.mxu0 %v14231_v21  ;;  %4800 = vmatpush1.bf16.msra.mxu1 %v14234_v52  ;;  %v14299_v21 = vld [vmem:[%s20677_s6 + $0xc4] ss:$16 sps:$4 sm:$0xff]   ;;  %v14302_v52 = vld [vmem:[%s20677_s6 + $0xcc] ss:$16 sps:$4 sm:$0xff]  }
 0x66a   :  { %4760 = vmatprep.subr.bf16.mxu0 %v14239_v49  ;;  %4801 = vmatprep.subr.bf16.mxu1 %v14242_v47  ;;  %v14297_v49 = vld [vmem:[%s20677_s6 + $0xc0] ss:$16 sps:$4 sm:$0xff]   ;;  %v14300_v47 = vld [vmem:[%s20677_s6 + $0xc8] ss:$16 sps:$4 sm:$0xff]  }
 0x66d   :  { %4761 = vmatpush1.bf16.msra.mxu0 %v14237_v10  ;;  %4802 = vmatpush1.bf16.msra.mxu1 %v14240_v11  ;;  %v14305_v10 = vld [vmem:[%s20677_s6 + $0xa4] ss:$16 sps:$4 sm:$0xff]   ;;  %v14308_v11 = vld [vmem:[%s20677_s6 + $0xac] ss:$16 sps:$4 sm:$0xff]  }
 0x66e   :  { %5021 = vmatprep.subr.bf16.mxu0 %v14245_v23  ;;  %5062 = vmatprep.subr.bf16.mxu1 %v14248_v35  ;;  %v14303_v23 = vld [vmem:[%s20677_s6 + $0xa0] ss:$16 sps:$4 sm:$0xff]   ;;  %v14306_v35 = vld [vmem:[%s20677_s6 + $0xa8] ss:$16 sps:$4 sm:$0xff]  }
 0x670   :  { %4779 = vmatmul.mubr.bf16.vlgmr.msra.gmra.mxu0 %v4553_v2  ;;  %4820 = vmatmul.mubr.bf16.vlgmr.msra.gmra.mxu1 %v4553_v2  ;;  %v14309_v2 = vld [vmem:[%s20677_s6 + $0x80] ss:$16 sps:$4 sm:$0xff]  }
 0x671   :  { %5022 = vmatpush1.bf16.msra.mxu0 %v14243_v6  ;;  %5063 = vmatpush1.bf16.msra.mxu1 %v14246_v57  ;;  %v14311_v6 = vld [vmem:[%s20677_s6 + $0x84] ss:$16 sps:$4 sm:$0xff]   ;;  %v14314_v57 = vld [vmem:[%s20677_s6 + $0x8c] ss:$16 sps:$4 sm:$0xff]  }
 0x672   :  { %5023 = vmatprep.subr.bf16.mxu0 %v14251_v39  ;;  %5064 = vmatprep.subr.bf16.mxu1 %v14254_v27  ;;  %v14312_v39 = vld [vmem:[%s20677_s6 + $0x88] ss:$16 sps:$4 sm:$0xff]   ;;  %v14317_v27 = vld [vmem:[%s20677_s6 + $0x64] ss:$16 sps:$4 sm:$0xff]  }
 0x673   :  { %5053 = vmatprep.mubr.bf16.mxu0 %v15780_v1  ;;  %5094 = vmatprep.mubr.bf16.mxu1 %v15780_v1 }
 0x675   :  { %5024 = vmatpush1.bf16.msra.mxu0 %v14249_v14  ;;  %5065 = vmatpush1.bf16.msra.mxu1 %v14252_v46  ;;  %v14320_v14 = vld [vmem:[%s20677_s6 + $0x6c] ss:$16 sps:$4 sm:$0xff]   ;;  %v14315_v46 = vld [vmem:[%s20677_s6 + $0x60] ss:$16 sps:$4 sm:$0xff]  }
 0x676   :  { %5025 = vmatprep.subr.bf16.mxu0 %v14257_v34  ;;  %5066 = vmatprep.subr.bf16.mxu1 %v14260_v28  ;;  %v14318_v34 = vld [vmem:[%s20677_s6 + $0x68] ss:$16 sps:$4 sm:$0xff]   ;;  %v14323_v28 = vld [vmem:[%s20677_s6 + $0x44] ss:$16 sps:$4 sm:$0xff]  }
 0x679   :  { %5026 = vmatpush1.bf16.msra.mxu0 %v14255_v30  ;;  %5067 = vmatpush1.bf16.msra.mxu1 %v14258_v17  ;;  %v14326_v30 = vld [vmem:[%s20677_s6 + $0x4c] ss:$16 sps:$4 sm:$0xff]   ;;  %v14321_v17 = vld [vmem:[%s20677_s6 + $0x40] ss:$16 sps:$4 sm:$0xff]  }
 0x67a   :  { %5027 = vmatprep.subr.bf16.mxu0 %v14263_v18  ;;  %5068 = vmatprep.subr.bf16.mxu1 %v14266_v19  ;;  %v14324_v18 = vld [vmem:[%s20677_s6 + $0x48] ss:$16 sps:$4 sm:$0xff]   ;;  %v14329_v19 = vld [vmem:[%s20677_s6 + $0x24] ss:$16 sps:$4 sm:$0xff]  }
 0x67d   :  { %5028 = vmatpush1.bf16.msra.mxu0 %v14261_v60  ;;  %5069 = vmatpush1.bf16.msra.mxu1 %v14264_v12  ;;  %v14332_v60 = vld [vmem:[%s20677_s6 + $0x2c] ss:$16 sps:$4 sm:$0xff]   ;;  %v14327_v12 = vld [vmem:[%s20677_s6 + $0x20] ss:$16 sps:$4 sm:$0xff]  }
 0x67e   :  { %5029 = vmatprep.subr.bf16.mxu0 %v14269_v22  ;;  %5070 = vmatprep.subr.bf16.mxu1 %v14272_v45  ;;  %v14330_v22 = vld [vmem:[%s20677_s6 + $0x28] ss:$16 sps:$4 sm:$0xff]   ;;  %v14335_v45 = vld [vmem:[%s20677_s6 + $0x4] ss:$16 sps:$4 sm:$0xff]  }
 0x681   :  { %5030 = vmatpush1.bf16.msra.mxu0 %v14267_v61  ;;  %5071 = vmatpush1.bf16.msra.mxu1 %v14270_v29  ;;  %v14338_v61 = vld [vmem:[%s20677_s6 + $0xc] ss:$16 sps:$4 sm:$0xff]   ;;  %v14333_v29 = vld [vmem:[%s20677_s6] ss:$16 sps:$4 sm:$0xff]  }
 0x682   :  { %5031 = vmatprep.subr.bf16.mxu0 %v14275_v31  ;;  %5072 = vmatprep.subr.bf16.mxu1 %v14278_v33  ;;  %v14336_v31 = vld [vmem:[%s20677_s6 + $0x8] ss:$16 sps:$4 sm:$0xff]   ;;  %v14341_v33 = vld [vmem:[%s20678_s3 + $0xe4] ss:$16 sps:$4 sm:$0xff]  }
 0x685   :  { %5032 = vmatpush1.bf16.msra.mxu0 %v14273_v24  ;;  %5073 = vmatpush1.bf16.msra.mxu1 %v14276_v63  ;;  %v14344_v24 = vld [vmem:[%s20678_s3 + $0xec] ss:$16 sps:$4 sm:$0xff]  }
 0x686   :  { %5033 = vmatprep.subr.bf16.mxu0 %v14281_v37  ;;  %5074 = vmatprep.subr.bf16.mxu1 %v14284_v44 }
 0x689   :  { %5034 = vmatpush1.bf16.msra.mxu0 %v14279_v0  ;;  %5075 = vmatpush1.bf16.msra.mxu1 %v14282_v9 }
 0x68a   :  { %5035 = vmatprep.subr.bf16.mxu0 %v14287_v62  ;;  %5076 = vmatprep.subr.bf16.mxu1 %v14290_v50 }
 0x68d   :  { %5036 = vmatpush1.bf16.msra.mxu0 %v14285_v58  ;;  %5077 = vmatpush1.bf16.msra.mxu1 %v14288_v38 }
 0x68e   :  { %5296 = vmatprep.subr.bf16.mxu0 %v14293_v5  ;;  %5337 = vmatprep.subr.bf16.mxu1 %v14296_v59 }
 0x690   :  { %5054 = vmatmul.mubr.bf16.vlgmr.msra.gmra.mxu0 %v4828_v3  ;;  %5095 = vmatmul.mubr.bf16.vlgmr.msra.gmra.mxu1 %v4828_v3 }
 0x691   :  { %5328 = vmatprep.mubr.bf16.mxu0 %v15780_v1  ;;  %5369 = vmatprep.mubr.bf16.mxu1 %v15780_v1 }
 0x692   :  { %5297 = vmatpush1.bf16.msra.mxu0 %v14291_v16  ;;  %5338 = vmatpush1.bf16.msra.mxu1 %v14294_v32 }
 0x693   :  { %5298 = vmatprep.subr.bf16.mxu0 %v14299_v21  ;;  %5339 = vmatprep.subr.bf16.mxu1 %v14302_v52 }
 0x696   :  { %5299 = vmatpush1.bf16.msra.mxu0 %v14297_v49  ;;  %5340 = vmatpush1.bf16.msra.mxu1 %v14300_v47 }
 0x697   :  { %5300 = vmatprep.subr.bf16.mxu0 %v14305_v10  ;;  %5341 = vmatprep.subr.bf16.mxu1 %v14308_v11 }
 0x69a   :  { %5301 = vmatpush1.bf16.msra.mxu0 %v14303_v23  ;;  %5342 = vmatpush1.bf16.msra.mxu1 %v14306_v35  ;;  %v12619_v35 = vld [vmem:[%s20679_s1 + $0x60] sm:$0xff] }
 0x69b   :  { %5302 = vmatprep.subr.bf16.mxu0 %v14311_v6  ;;  %5343 = vmatprep.subr.bf16.mxu1 %v14314_v57 }
 0x69e   :  { %5303 = vmatpush1.bf16.msra.mxu0 %v14309_v2  ;;  %5344 = vmatpush1.bf16.msra.mxu1 %v14312_v39 }
 0x69f   :  { %5304 = vmatprep.subr.bf16.mxu0 %v14317_v27  ;;  %5345 = vmatprep.subr.bf16.mxu1 %v14320_v14 }
 0x6a2   :  { %5305 = vmatpush1.bf16.msra.mxu0 %v14315_v46  ;;  %5346 = vmatpush1.bf16.msra.mxu1 %v14318_v34 }
 0x6a3   :  { %5306 = vmatprep.subr.bf16.mxu0 %v14323_v28  ;;  %5347 = vmatprep.subr.bf16.mxu1 %v14326_v30 }
 0x6a6   :  { %5307 = vmatpush1.bf16.msra.mxu0 %v14321_v17  ;;  %5348 = vmatpush1.bf16.msra.mxu1 %v14324_v18 }
 0x6a7   :  { %5308 = vmatprep.subr.bf16.mxu0 %v14329_v19  ;;  %5349 = vmatprep.subr.bf16.mxu1 %v14332_v60 }
 0x6aa   :  { %5309 = vmatpush1.bf16.msra.mxu0 %v14327_v12  ;;  %5350 = vmatpush1.bf16.msra.mxu1 %v14330_v22 }
 0x6ab   :  { %5310 = vmatprep.subr.bf16.mxu0 %v14335_v45  ;;  %5351 = vmatprep.subr.bf16.mxu1 %v14338_v61 }
 0x6ae   :  { %5311 = vmatpush1.bf16.msra.mxu0 %v14333_v29  ;;  %5352 = vmatpush1.bf16.msra.mxu1 %v14336_v31  ;;  %v12622_v31 = vld [vmem:[%s20679_s1 + $0x78] sm:$0xff] }
 0x6af   :  { %5607 = vmatprep.subr.bf16.mxu0 %v14341_v33  ;;  %5648 = vmatprep.subr.bf16.mxu1 %v14344_v24  ;;  %v12621_v24 = vld [vmem:[%s20679_s1 + $0x70] sm:$0xff] }
 0x710   :  { %v4464_v63 = vpop.f32.mrf.mxu0  ;;  %v4505_v37 = vpop.f32.mrf.mxu1 }
 0x711   :  { %v4465_v44 = vadd.f32 %v4464_v63, %v17642_v53  ;;  %v4506_v52 = vadd.f32 %v4505_v37, %v17644_v8  ;;  %v12620_v8 = vld [vmem:[%s20679_s1 + $0x68] sm:$0xff] }
 0x712   :  { %v4466_v0 = vpop.f32.mrf.mxu0  ;;  %v4507_v9 = vpop.f32.mrf.mxu1 }
 0x713   :  { %v4512_v62 = vadd.f32 %v4465_v44, %v16755_v42  ;;  %v4467_v50 = vadd.f32 %v4466_v0, %v17646_v20  ;;  %v4508_v21 = vadd.f32 %v4507_v9, %v17648_v43  ;;  %v4514_v20 = vadd.f32 %v4506_v52, %v16773_v55 }
 0x714   :  { %v4468_v58 = vpop.f32.mrf.mxu0  ;;  %v4509_v38 = vpop.f32.mrf.mxu1 }
 0x715   :  { %v12519_v3 = vmul.f32 -1.442695, %v4512_v62  ;;  %v4513_v5 = vadd.f32 %v4467_v50, %v16760_v51  ;;  %v4515_v53 = vadd.f32 %v4508_v21, %v16767_v54  ;;  %v14347_v21 = vld [vmem:[%s20678_s3 + $0xc4] ss:$16 sps:$4 sm:$0xff]  }
 0x716   :  { %v4469_v59 = vpop.f32.mrf.mxu0  ;;  %v4510_v16 = vpop.f32.mrf.mxu1 }
 0x717   :  { %15523 = vpow2.f32 %v12519_v3  ;;  %v12520_v32 = vmul.f32 -1.442695, %v4513_v5  ;;  %v12521_v49 = vmul.f32 -1.442695, %v4515_v53  ;;  %v14342_v5 = vld [vmem:[%s20678_s3 + $0xe8] ss:$16 sps:$4 sm:$0xff]  }
 0x718   :  { %v14350_v53 = vld [vmem:[%s20678_s3 + $0xcc] ss:$16 sps:$4 sm:$0xff]  }
 0x719   :  { %15525 = vpow2.f32 %v12520_v32 }
 0x71a   :  { %15527 = vpow2.f32 %v12521_v49 }
 0x724   :  { %v15524_v47 = vpop.eup %15523 }
 0x725   :  { %v4519_v10 = vadd.f32 1.0, %v15524_v47  ;;  %v14353_v47 = vld [vmem:[%s20678_s3 + $0xa4] ss:$16 sps:$4 sm:$0xff]  }
 0x726   :  { %v15526_v11 = vpop.eup %15525 }
 0x727   :  { %15529 = vrcp.f32 %v4519_v10  ;;  %v4525_v23 = vadd.f32 1.0, %v15526_v11  ;;  %v15528_v27 = vpop.eup %15527 }
 0x728   :  { %15531 = vtanh.f32 %v4514_v20  ;;  %v4532_v60 = vadd.f32 1.0, %v15528_v27  ;;  %v14356_v20 = vld [vmem:[%s20678_s3 + $0xac] ss:$16 sps:$4 sm:$0xff]   ;;  %v14359_v27 = vld [vmem:[%s20678_s3 + $0x84] ss:$16 sps:$4 sm:$0xff]  }
 0x729   :  { %15533 = vrcp.f32 %v4525_v23 }
 0x730   :  { %v4780_v43 = vpop.f32.mrf.mxu0  ;;  %v4821_v6 = vpop.f32.mrf.mxu1 }
 0x731   :  { %v5383_v57 = vadd.f32 %v12619_v35, %v4780_v43  ;;  %v5385_v37 = vadd.f32 %v12621_v24, %v4821_v6  ;;  %v14351_v6 = vld [vmem:[%s20678_s3 + $0xa0] ss:$16 sps:$4 sm:$0xff]   ;;  %v14371_v24 = vld [vmem:[%s20678_s3 + $0x44] ss:$16 sps:$4 sm:$0xff]  }
 0x732   :  { %v4782_v2 = vpop.f32.mrf.mxu0  ;;  %v4823_v39 = vpop.f32.mrf.mxu1 }
 0x733   :  { %v12623_v14 = vmul.f32 -1.442695, %v5383_v57  ;;  %v5384_v46 = vadd.f32 %v12620_v8, %v4782_v2  ;;  %v5386_v63 = vadd.f32 %v12622_v31, %v4823_v39  ;;  %v14354_v8 = vld [vmem:[%s20678_s3 + $0xa8] ss:$16 sps:$4 sm:$0xff]  }
 0x734   :  { %v15530_v34 = vpop.eup %15529  ;;  %v4784_v28 = vpop.f32.mrf.mxu0  ;;  %v14366_v31 = vld [vmem:[%s20678_s3 + $0x68] ss:$16 sps:$4 sm:$0xff]  }
 0x735   :  { %v4825_v30 = vpop.f32.mrf.mxu1  ;;  %v15532_v17 = vpop.eup %15531  ;;  %15535 = vpow2.f32 %v12623_v14  ;;  %v12624_v18 = vmul.f32 -1.442695, %v5384_v46  ;;  %v12625_v0 = vmul.f32 -1.442695, %v5386_v63  ;;  %v14362_v14 = vld [vmem:[%s20678_s3 + $0x8c] ss:$16 sps:$4 sm:$0xff]  }
 0x736   :  { %v15534_v19 = vpop.eup %15533  ;;  %v4785_v12 = vpop.f32.mrf.mxu0  ;;  %v4536_v45 = vmul.f32 %v15532_v17, %v15530_v34  ;;  %v14369_v63 = vld [vmem:[%s20678_s3 + $0x40] ss:$16 sps:$4 sm:$0xff]  }
 0x737   :  { %v4826_v22 = vpop.f32.mrf.mxu1  ;;  %v4535_v61 = vmul.f32 %v15534_v19, %v17397_v15  ;;  %15537 = vpow2.f32 %v12624_v18  ;;  %v18067_v18 = vpop.permute.xlu1 %4550  ;;  %v14360_v12 = vld [vmem:[%s20678_s3 + $0x88] ss:$16 sps:$4 sm:$0xff]  }
 0x738   :  { %15539 = vrcp.f32 %v4532_v60  ;;  %v14357_v60 = vld [vmem:[%s20678_s3 + $0x80] ss:$16 sps:$4 sm:$0xff]   ;;  %vm4552_vm14 = vcmp.eq.s32.totalorder %v18067_v18, 1  ;;  %v14365_v22 = vld [vmem:[%s20678_s3 + $0x64] ss:$16 sps:$4 sm:$0xff]  }
 0x739   :  { %v4537_v29 = vadd.f32 %v4536_v45, %v4535_v61  ;;  %v14368_v45 = vld [vmem:[%s20678_s3 + $0x6c] ss:$16 sps:$4 sm:$0xff]   ;;  %vm18136_vm15 = vmpackc.low %vm4552_vm14, %vm4552_vm14  ;;  %v14588_v18 = vld [vmem:[%s20678_s3 + $0xc8] ss:$16 sps:$4 sm:$0xff]  }
 0x73b   :  { %15541 = vtanh.f32 %v4537_v29  ;;  %v18003_v33 = vsel %vm3069_vm12, %v4537_v29, %v17397_v15  ;;  %v14339_v15 = vld [vmem:[%s20678_s3 + $0xe0] ss:$16 sps:$4 sm:$0xff]  }
 0x73c   :  { %15543 = vtanh.f32 %v5385_v37  ;;  %v14363_v29 = vld [vmem:[%s20678_s3 + $0x60] ss:$16 sps:$4 sm:$0xff]   ;;  %v14372_v37 = vld [vmem:[%s20678_s3 + $0x48] ss:$16 sps:$4 sm:$0xff]  }
 0x742   :  { %v15536_v44 = vpop.eup %15535 }
 0x743   :  { %v5390_v9 = vadd.f32 1.0, %v15536_v44  ;;  %v14377_v44 = vld [vmem:[%s20678_s3 + $0x24] ss:$16 sps:$4 sm:$0xff]  }
 0x744   :  { %v15538_v62 = vpop.eup %15537 }
 0x745   :  { %15545 = vrcp.f32 %v5390_v9  ;;  %v5396_v50 = vadd.f32 1.0, %v15538_v62  ;;  %v15540_v58 = vpop.eup %15539  ;;  %v14375_v9 = vld [vmem:[%s20678_s3 + $0x20] ss:$16 sps:$4 sm:$0xff]   ;;  %v14378_v62 = vld [vmem:[%s20678_s3 + $0x28] ss:$16 sps:$4 sm:$0xff]  }
 0x746   :  { %15547 = vpow2.f32 %v12625_v0  ;;  %v14380_v0 = vld [vmem:[%s20678_s3 + $0x2c] ss:$16 sps:$4 sm:$0xff]  }
 0x747   :  { %15549 = vrcp.f32 %v5396_v50  ;;  %v14383_v50 = vld [vmem:[%s20678_s3 + $0x4] ss:$16 sps:$4 sm:$0xff]  }
 0x748   :  { %v15542_v38 = vpop.eup %15541 }
 0x749   :  { %v4539_v3 = vmul.f32 %v15542_v38, %v15540_v58  ;;  %v15544_v10 = vpop.eup %15543  ;;  %v14386_v58 = vld [vmem:[%s20678_s3 + $0xc] ss:$16 sps:$4 sm:$0xff]  }
 0x74b   :  { %v18017_v59 = vsel %vm3069_vm12, %v4539_v3, %v17411_v25  ;;  %v4542_v16 = vsel %vm3069_vm12, %v4539_v3, 0.0  ;;  %v14345_v25 = vld [vmem:[%s20678_s3 + $0xc0] ss:$16 sps:$4 sm:$0xff]  }
 0x74c   :  { %12522 = vst [vmem:[%s20683_s9 + $0x10] sm:$0xff] %v4542_v16  ;;  %v5103_v32 = vpack.c.bf16 %v18017_v59, %v18017_v59 }
 0x74e   :  { %5329 = vmatmul.mubr.bf16.vlgmr.msra.gmra.mxu0 %v5103_v32  ;;  %5370 = vmatmul.mubr.bf16.vlgmr.msra.gmra.mxu1 %v5103_v32 }
 0x74f   :  { %5608 = vmatpush1.bf16.msra.mxu0 %v14339_v15  ;;  %5649 = vmatpush1.bf16.msra.mxu1 %v14342_v5  ;;  %v14381_v15 = vld [vmem:[%s20678_s3] ss:$16 sps:$4 sm:$0xff]   ;;  %v14384_v5 = vld [vmem:[%s20678_s3 + $0x8] ss:$16 sps:$4 sm:$0xff]  }
 0x750   :  { %v18038_v52 = vpop.f32.mrf.mxu0  ;;  %v18040_v49 = vpop.f32.mrf.mxu1  ;;  %5609 = vmatprep.subr.bf16.mxu0 %v14347_v21  ;;  %5650 = vmatprep.subr.bf16.mxu1 %v14350_v53  ;;  %v14389_v53 = vld [vmem:[%s20680_s5 + $0xe4] ss:$16 sps:$4 sm:$0xff]   ;;  %v14452_v21 = vld [vmem:[%s20674_s2 + $0xac] ss:$16 sps:$4 sm:$0xff]  }
 0x751   :  { %5639 = vmatprep.mubr.bf16.mxu0 %v15780_v1  ;;  %5680 = vmatprep.mubr.bf16.mxu1 %v15780_v1 }
 0x752   :  { %v15546_v11 = vpop.eup %15545  ;;  %v18050_v23 = vpop.f32.mrf.mxu0 }
 0x753   :  { %v18052_v35 = vpop.f32.mrf.mxu1  ;;  %v15548_v43 = vpop.eup %15547  ;;  %5610 = vmatpush1.bf16.msra.mxu0 %v14345_v25  ;;  %5651 = vmatpush1.bf16.msra.mxu1 %v14348_v56  ;;  %v5407_v46 = vmul.f32 %v15546_v11, %v15544_v10  ;;  %v14392_v25 = vld [vmem:[%s20680_s5 + $0xec] ss:$16 sps:$4 sm:$0xff]   ;;  %v14387_v56 = vld [vmem:[%s20680_s5 + $0xe0] ss:$16 sps:$4 sm:$0xff]  }
 0x754   :  { %v15550_v57 = vpop.eup %15549  ;;  %v5059_v2 = vpop.f32.mrf.mxu0  ;;  %5611 = vmatprep.subr.bf16.mxu0 %v14353_v47  ;;  %5652 = vmatprep.subr.bf16.mxu1 %v14356_v20  ;;  %v5403_v28 = vadd.f32 1.0, %v15548_v43  ;;  %v14390_v47 = vld [vmem:[%s20680_s5 + $0xe8] ss:$16 sps:$4 sm:$0xff]   ;;  %v14395_v20 = vld [vmem:[%s20680_s5 + $0xc4] ss:$16 sps:$4 sm:$0xff]  }
 0x755   :  { %v5100_v39 = vpop.f32.mrf.mxu1  ;;  %v5406_v34 = vmul.f32 %v15550_v57, %v17479_v13  ;;  %v14398_v10 = vld [vmem:[%s20680_s5 + $0xcc] ss:$16 sps:$4 sm:$0xff]   ;;  %v14393_v11 = vld [vmem:[%s20680_s5 + $0xc0] ss:$16 sps:$4 sm:$0xff]   ;;  %v14396_v43 = vld [vmem:[%s20680_s5 + $0xc8] ss:$16 sps:$4 sm:$0xff]  }
 0x756   :  { %v5060_v30 = vpop.f32.mrf.mxu0  ;;  %v14399_v57 = vld [vmem:[%s20680_s5 + $0xa0] ss:$16 sps:$4 sm:$0xff]   ;;  %v14402_v2 = vld [vmem:[%s20680_s5 + $0xa8] ss:$16 sps:$4 sm:$0xff]   ;;  %v14407_v39 = vld [vmem:[%s20680_s5 + $0x84] ss:$16 sps:$4 sm:$0xff]  }
 0x757   :  { %v5101_v17 = vpop.f32.mrf.mxu1  ;;  %v5408_v19 = vadd.f32 %v5407_v46, %v5406_v34  ;;  %5612 = vmatpush1.bf16.msra.mxu0 %v14351_v6  ;;  %5653 = vmatpush1.bf16.msra.mxu1 %v14354_v8  ;;  %v14401_v6 = vld [vmem:[%s20680_s5 + $0xa4] ss:$16 sps:$4 sm:$0xff]   ;;  %v14404_v8 = vld [vmem:[%s20680_s5 + $0xac] ss:$16 sps:$4 sm:$0xff]   ;;  %v14408_v46 = vld [vmem:[%s20680_s5 + $0x88] ss:$16 sps:$4 sm:$0xff]  }
 0x758   :  { %5613 = vmatprep.subr.bf16.mxu0 %v14359_v27  ;;  %5654 = vmatprep.subr.bf16.mxu1 %v14362_v14  ;;  %v14410_v27 = vld [vmem:[%s20680_s5 + $0x8c] ss:$16 sps:$4 sm:$0xff]   ;;  %v14405_v14 = vld [vmem:[%s20680_s5 + $0x80] ss:$16 sps:$4 sm:$0xff]   ;;  %v14414_v30 = vld [vmem:[%s20680_s5 + $0x68] ss:$16 sps:$4 sm:$0xff]  }
 0x759   :  { %15551 = vtanh.f32 %v5408_v19  ;;  %v18085_v61 = vsel %vm4552_vm14, %v5408_v19, %v17479_v13  ;;  %v14374_v13 = vld [vmem:[%s20678_s3 + $0x4c] ss:$16 sps:$4 sm:$0xff]   ;;  %v14411_v34 = vld [vmem:[%s20680_s5 + $0x60] ss:$16 sps:$4 sm:$0xff]   ;;  %v14419_v19 = vld [vmem:[%s20680_s5 + $0x44] ss:$16 sps:$4 sm:$0xff]  }
 0x75a   :  { %15553 = vrcp.f32 %v5403_v28  ;;  %v14413_v28 = vld [vmem:[%s20680_s5 + $0x64] ss:$16 sps:$4 sm:$0xff]   ;;  %v14416_v17 = vld [vmem:[%s20680_s5 + $0x6c] ss:$16 sps:$4 sm:$0xff]  }
 0x75b   :  { %5614 = vmatpush1.bf16.msra.mxu0 %v14357_v60  ;;  %5655 = vmatpush1.bf16.msra.mxu1 %v14360_v12  ;;  %v14422_v60 = vld [vmem:[%s20680_s5 + $0x4c] ss:$16 sps:$4 sm:$0xff]   ;;  %v14417_v12 = vld [vmem:[%s20680_s5 + $0x40] ss:$16 sps:$4 sm:$0xff]  }
 0x75c   :  { %5615 = vmatprep.subr.bf16.mxu0 %v14365_v22  ;;  %5656 = vmatprep.subr.bf16.mxu1 %v14368_v45  ;;  %v14420_v22 = vld [vmem:[%s20680_s5 + $0x48] ss:$16 sps:$4 sm:$0xff]   ;;  %v14425_v45 = vld [vmem:[%s20680_s5 + $0x24] ss:$16 sps:$4 sm:$0xff]  }
 0x75f   :  { %5616 = vmatpush1.bf16.msra.mxu0 %v14363_v29  ;;  %5657 = vmatpush1.bf16.msra.mxu1 %v14366_v31  ;;  %v14428_v29 = vld [vmem:[%s20680_s5 + $0x2c] ss:$16 sps:$4 sm:$0xff]   ;;  %v14423_v31 = vld [vmem:[%s20680_s5 + $0x20] ss:$16 sps:$4 sm:$0xff]  }
 0x760   :  { %5617 = vmatprep.subr.bf16.mxu0 %v14371_v24  ;;  %5658 = vmatprep.subr.bf16.mxu1 %v14374_v13  ;;  %v14426_v24 = vld [vmem:[%s20680_s5 + $0x28] ss:$16 sps:$4 sm:$0xff]   ;;  %v14431_v13 = vld [vmem:[%s20680_s5 + $0x4] ss:$16 sps:$4 sm:$0xff]  }
 0x763   :  { %5618 = vmatpush1.bf16.msra.mxu0 %v14369_v63  ;;  %5659 = vmatpush1.bf16.msra.mxu1 %v14372_v37  ;;  %v14434_v63 = vld [vmem:[%s20680_s5 + $0xc] ss:$16 sps:$4 sm:$0xff]   ;;  %v14429_v37 = vld [vmem:[%s20680_s5] ss:$16 sps:$4 sm:$0xff]  }
 0x764   :  { %5619 = vmatprep.subr.bf16.mxu0 %v14377_v44  ;;  %5660 = vmatprep.subr.bf16.mxu1 %v14380_v0  ;;  %v14432_v44 = vld [vmem:[%s20680_s5 + $0x8] ss:$16 sps:$4 sm:$0xff]   ;;  %v14437_v0 = vld [vmem:[%s20674_s2 + $0xe4] ss:$16 sps:$4 sm:$0xff]  }
 0x766   :  { %v15552_v38 = vpop.eup %15551 }
 0x767   :  { %v15554_v3 = vpop.eup %15553  ;;  %5620 = vmatpush1.bf16.msra.mxu0 %v14375_v9  ;;  %5661 = vmatpush1.bf16.msra.mxu1 %v14378_v62  ;;  %v14440_v9 = vld [vmem:[%s20674_s2 + $0xec] ss:$16 sps:$4 sm:$0xff]  }
 0x768   :  { %5621 = vmatprep.subr.bf16.mxu0 %v14383_v50  ;;  %5662 = vmatprep.subr.bf16.mxu1 %v14386_v58  ;;  %v18129_v16 = vmul.f32 %v15554_v3, %v15552_v38 }
 0x76a   :  { %v12659_v32 = vpack.c.bf16 %v18129_v16, %v18129_v16 }
 0x76b   :  { %5622 = vmatpush1.bf16.msra.mxu0 %v14381_v15  ;;  %5663 = vmatpush1.bf16.msra.mxu1 %v14384_v5 }
 0x76c   :  { %5913 = vmatprep.subr.bf16.mxu0 %v14389_v53  ;;  %5954 = vmatprep.subr.bf16.mxu1 %v14392_v25 }
 0x76e   :  { %12660 = vmatmul.mubr.msk.bf16.vlgmr.msra.gmra.mxu0 %vm18136_vm15, %v12659_v32  ;;  %12663 = vmatmul.mubr.msk.bf16.vlgmr.msra.gmra.mxu1 %vm18136_vm15, %v12659_v32 }
 0x76f   :  { %5945 = vmatprep.mubr.bf16.mxu0 %v15780_v1  ;;  %5986 = vmatprep.mubr.bf16.mxu1 %v15780_v1 }
 0x770   :  { %5914 = vmatpush1.bf16.msra.mxu0 %v14387_v56  ;;  %5955 = vmatpush1.bf16.msra.mxu1 %v14390_v47 }
 0x771   :  { %5915 = vmatprep.subr.bf16.mxu0 %v14395_v20  ;;  %5956 = vmatprep.subr.bf16.mxu1 %v14398_v10 }
 0x774   :  { %5916 = vmatpush1.bf16.msra.mxu0 %v14393_v11  ;;  %5957 = vmatpush1.bf16.msra.mxu1 %v14396_v43 }
 0x775   :  { %5917 = vmatprep.subr.bf16.mxu0 %v14401_v6  ;;  %5958 = vmatprep.subr.bf16.mxu1 %v14404_v8 }
 0x778   :  { %5918 = vmatpush1.bf16.msra.mxu0 %v14399_v57  ;;  %5959 = vmatpush1.bf16.msra.mxu1 %v14402_v2 }
 0x779   :  { %5919 = vmatprep.subr.bf16.mxu0 %v14407_v39  ;;  %5960 = vmatprep.subr.bf16.mxu1 %v14410_v27 }
 0x77c   :  { %5920 = vmatpush1.bf16.msra.mxu0 %v14405_v14  ;;  %5961 = vmatpush1.bf16.msra.mxu1 %v14408_v46 }
 0x77d   :  { %5921 = vmatprep.subr.bf16.mxu0 %v14413_v28  ;;  %5962 = vmatprep.subr.bf16.mxu1 %v14416_v17 }
 0x780   :  { %5922 = vmatpush1.bf16.msra.mxu0 %v14411_v34  ;;  %5963 = vmatpush1.bf16.msra.mxu1 %v14414_v30 }
 0x781   :  { %5923 = vmatprep.subr.bf16.mxu0 %v14419_v19  ;;  %5964 = vmatprep.subr.bf16.mxu1 %v14422_v60 }
 0x784   :  { %5924 = vmatpush1.bf16.msra.mxu0 %v14417_v12  ;;  %5965 = vmatpush1.bf16.msra.mxu1 %v14420_v22 }
 0x785   :  { %5925 = vmatprep.subr.bf16.mxu0 %v14425_v45  ;;  %5966 = vmatprep.subr.bf16.mxu1 %v14428_v29 }
 0x788   :  { %5926 = vmatpush1.bf16.msra.mxu0 %v14423_v31  ;;  %5967 = vmatpush1.bf16.msra.mxu1 %v14426_v24 }
 0x789   :  { %5927 = vmatprep.subr.bf16.mxu0 %v14431_v13  ;;  %5968 = vmatprep.subr.bf16.mxu1 %v14434_v63 }
 0x78c   :  { %5928 = vmatpush1.bf16.msra.mxu0 %v14429_v37  ;;  %5969 = vmatpush1.bf16.msra.mxu1 %v14432_v44  ;;  %v14435_v44 = vld [vmem:[%s20674_s2 + $0xe0] ss:$16 sps:$4 sm:$0xff]  }
 0x78d   :  { %6229 = vmatprep.subr.bf16.mxu0 %v14437_v0  ;;  %6270 = vmatprep.subr.bf16.mxu1 %v14440_v9  ;;  %v14438_v0 = vld [vmem:[%s20674_s2 + $0xe8] ss:$16 sps:$4 sm:$0xff]  }
 0x80e   :  { %v18248_v62 = vpop.f32.mrf.mxu0  ;;  %v18250_v50 = vpop.f32.mrf.mxu1 }
 0x810   :  { %v18252_v58 = vpop.f32.mrf.mxu0  ;;  %v18254_v38 = vpop.f32.mrf.mxu1 }
 0x812   :  { %v5334_v3 = vpop.f32.mrf.mxu0  ;;  %v5375_v15 = vpop.f32.mrf.mxu1 }
 0x813   :  { %v14446_v3 = vld [vmem:[%s20674_s2 + $0xcc] ss:$16 sps:$4 sm:$0xff]   ;;  %v14441_v15 = vld [vmem:[%s20674_s2 + $0xc0] ss:$16 sps:$4 sm:$0xff]  }
 0x814   :  { %v5335_v5 = vpop.f32.mrf.mxu0  ;;  %v5376_v32 = vpop.f32.mrf.mxu1 }
 0x815   :  { %v14444_v5 = vld [vmem:[%s20674_s2 + $0xc8] ss:$16 sps:$4 sm:$0xff]   ;;  %v14449_v32 = vld [vmem:[%s20674_s2 + $0xa4] ss:$16 sps:$4 sm:$0xff]  }
 0x82e   :  { %v5641_v53 = vpop.f32.mrf.mxu0  ;;  %v5682_v25 = vpop.f32.mrf.mxu1 }
 0x82f   :  { %v5642_v56 = vadd.f32 %v5641_v53, %v18038_v52  ;;  %v5683_v46 = vadd.f32 %v5682_v25, %v18040_v49  ;;  %v14447_v53 = vld [vmem:[%s20674_s2 + $0xa0] ss:$16 sps:$4 sm:$0xff]   ;;  %v14450_v25 = vld [vmem:[%s20674_s2 + $0xa8] ss:$16 sps:$4 sm:$0xff]  }
 0x830   :  { %v5643_v47 = vpop.f32.mrf.mxu0  ;;  %v5684_v20 = vpop.f32.mrf.mxu1 }
 0x831   :  { %v5689_v10 = vadd.f32 %v5642_v56, %v16405_v40  ;;  %v5644_v11 = vadd.f32 %v5643_v47, %v18050_v23  ;;  %v5685_v14 = vadd.f32 %v5684_v20, %v18052_v35  ;;  %v5691_v23 = vadd.f32 %v5683_v46, %v16425_v7  ;;  %v14455_v56 = vld [vmem:[%s20674_s2 + $0x84] ss:$16 sps:$4 sm:$0xff]   ;;  %v14458_v47 = vld [vmem:[%s20674_s2 + $0x8c] ss:$16 sps:$4 sm:$0xff]   ;;  %v14453_v20 = vld [vmem:[%s20674_s2 + $0x80] ss:$16 sps:$4 sm:$0xff]  }
 0x832   :  { %v5645_v43 = vpop.f32.mrf.mxu0  ;;  %v5686_v6 = vpop.f32.mrf.mxu1  ;;  %v14471_v46 = vld [vmem:[%s20674_s2 + $0x20] ss:$16 sps:$4 sm:$0xff]  }
 0x833   :  { %v12664_v8 = vmul.f32 -1.442695, %v5689_v10  ;;  %v5690_v57 = vadd.f32 %v5644_v11, %v16410_v41  ;;  %v5692_v52 = vadd.f32 %v5685_v14, %v16418_v4  ;;  %v14456_v10 = vld [vmem:[%s20674_s2 + $0x88] ss:$16 sps:$4 sm:$0xff]   ;;  %v14461_v11 = vld [vmem:[%s20674_s2 + $0x64] ss:$16 sps:$4 sm:$0xff]  }
 0x834   :  { %v5646_v2 = vpop.f32.mrf.mxu0  ;;  %v5687_v39 = vpop.f32.mrf.mxu1  ;;  %v14464_v43 = vld [vmem:[%s20674_s2 + $0x6c] ss:$16 sps:$4 sm:$0xff]   ;;  %v14459_v6 = vld [vmem:[%s20674_s2 + $0x60] ss:$16 sps:$4 sm:$0xff]   ;;  %v14473_v14 = vld [vmem:[%s20674_s2 + $0x24] ss:$16 sps:$4 sm:$0xff]  }
 0x835   :  { %15555 = vpow2.f32 %v12664_v8  ;;  %v12665_v27 = vmul.f32 -1.442695, %v5690_v57  ;;  %v12666_v34 = vmul.f32 -1.442695, %v5692_v52  ;;  %v14462_v8 = vld [vmem:[%s20674_s2 + $0x68] ss:$16 sps:$4 sm:$0xff]  }
 0x836   :  { %v14467_v57 = vld [vmem:[%s20674_s2 + $0x44] ss:$16 sps:$4 sm:$0xff]   ;;  %v14470_v2 = vld [vmem:[%s20674_s2 + $0x4c] ss:$16 sps:$4 sm:$0xff]   ;;  %v14465_v39 = vld [vmem:[%s20674_s2 + $0x40] ss:$16 sps:$4 sm:$0xff]  }
 0x837   :  { %15557 = vpow2.f32 %v12665_v27  ;;  %v14468_v27 = vld [vmem:[%s20674_s2 + $0x48] ss:$16 sps:$4 sm:$0xff]   ;;  %v14476_v52 = vld [vmem:[%s20674_s2 + $0x2c] ss:$16 sps:$4 sm:$0xff]  }
 0x838   :  { %15559 = vpow2.f32 %v12666_v34  ;;  %v14474_v34 = vld [vmem:[%s20674_s2 + $0x28] ss:$16 sps:$4 sm:$0xff]  }
 0x842   :  { %v15556_v28 = vpop.eup %15555 }
 0x843   :  { %v5696_v30 = vadd.f32 1.0, %v15556_v28  ;;  %v14479_v28 = vld [vmem:[%s20674_s2 + $0x4] ss:$16 sps:$4 sm:$0xff]  }
 0x844   :  { %v15558_v17 = vpop.eup %15557 }
 0x845   :  { %15561 = vrcp.f32 %v5696_v30  ;;  %v5702_v19 = vadd.f32 1.0, %v15558_v17  ;;  %v15560_v60 = vpop.eup %15559  ;;  %v14477_v30 = vld [vmem:[%s20674_s2] ss:$16 sps:$4 sm:$0xff]   ;;  %v14480_v17 = vld [vmem:[%s20674_s2 + $0x8] ss:$16 sps:$4 sm:$0xff]  }
 0x846   :  { %15563 = vtanh.f32 %v5691_v23  ;;  %v5709_v35 = vadd.f32 1.0, %v15560_v60  ;;  %v14482_v23 = vld [vmem:[%s20674_s2 + $0xc] ss:$16 sps:$4 sm:$0xff]  }
 0x847   :  { %15565 = vrcp.f32 %v5702_v19  ;;  %v14485_v19 = vld [vmem:[%s20676_s4 + $0xe4] ss:$16 sps:$4 sm:$0xff]   ;;  %v14488_v60 = vld [vmem:[%s20676_s4 + $0xec] ss:$16 sps:$4 sm:$0xff]  }
 0x848   :  { %15567 = vrcp.f32 %v5709_v35 }
 0x852   :  { %v15562_v12 = vpop.eup %15561 }
 0x853   :  { %v15564_v22 = vpop.eup %15563 }
 0x854   :  { %v15566_v45 = vpop.eup %15565  ;;  %v5713_v29 = vmul.f32 %v15564_v22, %v15562_v12  ;;  %v18380_v12 = vsel %vm4552_vm14, %v18129_v16, %v17774_v36  ;;  %v14483_v22 = vld [vmem:[%s20676_s4 + $0xe0] ss:$16 sps:$4 sm:$0xff]   ;;  %v14491_v36 = vld [vmem:[%s20676_s4 + $0xc4] ss:$16 sps:$4 sm:$0xff]   ;;  %v14494_v16 = vld [vmem:[%s20676_s4 + $0xcc] ss:$16 sps:$4 sm:$0xff]  }
 0x855   :  { %v5712_v31 = vmul.f32 %v15566_v45, %v17662_v48  ;;  %v15568_v13 = vpop.eup %15567  ;;  %v14486_v45 = vld [vmem:[%s20676_s4 + $0xe8] ss:$16 sps:$4 sm:$0xff]   ;;  %v6036_v35 = vpack.c.bf16 %v18380_v12, %v18380_v12 }
 0x857   :  { %v5714_v49 = vadd.f32 %v5713_v29, %v5712_v31  ;;  %v14489_v29 = vld [vmem:[%s20676_s4 + $0xc0] ss:$16 sps:$4 sm:$0xff]   ;;  %v14492_v31 = vld [vmem:[%s20676_s4 + $0xc8] ss:$16 sps:$4 sm:$0xff]  }
 0x859   :  { %15569 = vtanh.f32 %v5714_v49  ;;  %v18268_v24 = vsel %vm4552_vm14, %v5714_v49, %v17662_v48  ;;  %v14443_v48 = vld [vmem:[%s20674_s2 + $0xc4] ss:$16 sps:$4 sm:$0xff]  }
 0x85a   :  { %v14497_v49 = vld [vmem:[%s20676_s4 + $0xa4] ss:$16 sps:$4 sm:$0xff]  }
 0x866   :  { %v15570_v63 = vpop.eup %15569 }
 0x867   :  { %v18270_v37 = vmul.f32 %v15570_v63, %v15568_v13  ;;  %v14500_v13 = vld [vmem:[%s20676_s4 + $0xac] ss:$16 sps:$4 sm:$0xff]   ;;  %v14495_v63 = vld [vmem:[%s20676_s4 + $0xa0] ss:$16 sps:$4 sm:$0xff]  }
 0x869   :  { %v12700_v9 = vpack.c.bf16 %v18270_v37, %v18270_v37 }
 0x86b   :  { %12701 = vmatmul.mubr.msk.bf16.vlgmr.msra.gmra.mxu0 %vm18136_vm15, %v12700_v9  ;;  %12704 = vmatmul.mubr.msk.bf16.vlgmr.msra.gmra.mxu1 %vm18136_vm15, %v12700_v9  ;;  %v14506_v9 = vld [vmem:[%s20676_s4 + $0x8c] ss:$16 sps:$4 sm:$0xff]  }
 0x86c   :  { %6230 = vmatpush1.bf16.msra.mxu0 %v14435_v44  ;;  %6271 = vmatpush1.bf16.msra.mxu1 %v14438_v0  ;;  %v14498_v44 = vld [vmem:[%s20676_s4 + $0xa8] ss:$16 sps:$4 sm:$0xff]   ;;  %v14503_v0 = vld [vmem:[%s20676_s4 + $0x84] ss:$16 sps:$4 sm:$0xff]  }
 0x86d   :  { %6231 = vmatprep.subr.bf16.mxu0 %v14443_v48  ;;  %6272 = vmatprep.subr.bf16.mxu1 %v14446_v3  ;;  %v14501_v48 = vld [vmem:[%s20676_s4 + $0x80] ss:$16 sps:$4 sm:$0xff]   ;;  %v14504_v3 = vld [vmem:[%s20676_s4 + $0x88] ss:$16 sps:$4 sm:$0xff]  }
 0x86e   :  { %6261 = vmatprep.mubr.bf16.mxu0 %v15780_v1  ;;  %6302 = vmatprep.mubr.bf16.mxu1 %v15780_v1 }
 0x870   :  { %6232 = vmatpush1.bf16.msra.mxu0 %v14441_v15  ;;  %6273 = vmatpush1.bf16.msra.mxu1 %v14444_v5  ;;  %v14509_v15 = vld [vmem:[%s20676_s4 + $0x64] ss:$16 sps:$4 sm:$0xff]   ;;  %v14512_v5 = vld [vmem:[%s20676_s4 + $0x6c] ss:$16 sps:$4 sm:$0xff]  }
 0x871   :  { %6233 = vmatprep.subr.bf16.mxu0 %v14449_v32  ;;  %6274 = vmatprep.subr.bf16.mxu1 %v14452_v21  ;;  %v14507_v32 = vld [vmem:[%s20676_s4 + $0x60] ss:$16 sps:$4 sm:$0xff]   ;;  %v14510_v21 = vld [vmem:[%s20676_s4 + $0x68] ss:$16 sps:$4 sm:$0xff]  }
 0x874   :  { %6234 = vmatpush1.bf16.msra.mxu0 %v14447_v53  ;;  %6275 = vmatpush1.bf16.msra.mxu1 %v14450_v25  ;;  %v14515_v53 = vld [vmem:[%s20676_s4 + $0x44] ss:$16 sps:$4 sm:$0xff]   ;;  %v14518_v25 = vld [vmem:[%s20676_s4 + $0x4c] ss:$16 sps:$4 sm:$0xff]  }
 0x875   :  { %6235 = vmatprep.subr.bf16.mxu0 %v14455_v56  ;;  %6276 = vmatprep.subr.bf16.mxu1 %v14458_v47  ;;  %v14513_v56 = vld [vmem:[%s20676_s4 + $0x40] ss:$16 sps:$4 sm:$0xff]   ;;  %v14516_v47 = vld [vmem:[%s20676_s4 + $0x48] ss:$16 sps:$4 sm:$0xff]  }
 0x878   :  { %6236 = vmatpush1.bf16.msra.mxu0 %v14453_v20  ;;  %6277 = vmatpush1.bf16.msra.mxu1 %v14456_v10  ;;  %v14521_v20 = vld [vmem:[%s20676_s4 + $0x24] ss:$16 sps:$4 sm:$0xff]   ;;  %v14524_v10 = vld [vmem:[%s20676_s4 + $0x2c] ss:$16 sps:$4 sm:$0xff]  }
 0x879   :  { %6237 = vmatprep.subr.bf16.mxu0 %v14461_v11  ;;  %6278 = vmatprep.subr.bf16.mxu1 %v14464_v43  ;;  %v14519_v11 = vld [vmem:[%s20676_s4 + $0x20] ss:$16 sps:$4 sm:$0xff]   ;;  %v14522_v43 = vld [vmem:[%s20676_s4 + $0x28] ss:$16 sps:$4 sm:$0xff]  }
 0x87c   :  { %6238 = vmatpush1.bf16.msra.mxu0 %v14459_v6  ;;  %6279 = vmatpush1.bf16.msra.mxu1 %v14462_v8  ;;  %v14527_v6 = vld [vmem:[%s20676_s4 + $0x4] ss:$16 sps:$4 sm:$0xff]   ;;  %v14530_v8 = vld [vmem:[%s20676_s4 + $0xc] ss:$16 sps:$4 sm:$0xff]  }
 0x87d   :  { %6239 = vmatprep.subr.bf16.mxu0 %v14467_v57  ;;  %6280 = vmatprep.subr.bf16.mxu1 %v14470_v2  ;;  %v14525_v57 = vld [vmem:[%s20676_s4] ss:$16 sps:$4 sm:$0xff]   ;;  %v14528_v2 = vld [vmem:[%s20676_s4 + $0x8] ss:$16 sps:$4 sm:$0xff]  }
 0x880   :  { %6240 = vmatpush1.bf16.msra.mxu0 %v14465_v39  ;;  %6281 = vmatpush1.bf16.msra.mxu1 %v14468_v27  ;;  %v18480_v39 = vsel %vm4552_vm14, %v18270_v37, %v17874_v26  ;;  %v14536_v26 = vld [vmem:[%s20677_s6 + $0xec] ss:$16 sps:$4 sm:$0xff]   ;;  %v14531_v37 = vld [vmem:[%s20677_s6 + $0xe0] ss:$16 sps:$4 sm:$0xff]  }
 0x881   :  { %6241 = vmatprep.subr.bf16.mxu0 %v14473_v14  ;;  %6282 = vmatprep.subr.bf16.mxu1 %v14476_v52  ;;  %v6311_v27 = vpack.c.bf16 %v18480_v39, %v18480_v39  ;;  %v14533_v14 = vld [vmem:[%s20677_s6 + $0xe4] ss:$16 sps:$4 sm:$0xff]   ;;  %v14534_v52 = vld [vmem:[%s20677_s6 + $0xe8] ss:$16 sps:$4 sm:$0xff]  }
 0x884   :  { %6242 = vmatpush1.bf16.msra.mxu0 %v14471_v46  ;;  %6283 = vmatpush1.bf16.msra.mxu1 %v14474_v34  ;;  %v14539_v46 = vld [vmem:[%s20677_s6 + $0xc4] ss:$16 sps:$4 sm:$0xff]   ;;  %v14542_v34 = vld [vmem:[%s20677_s6 + $0xcc] ss:$16 sps:$4 sm:$0xff]  }
 0x885   :  { %6243 = vmatprep.subr.bf16.mxu0 %v14479_v28  ;;  %6284 = vmatprep.subr.bf16.mxu1 %v14482_v23  ;;  %v14537_v28 = vld [vmem:[%s20677_s6 + $0xc0] ss:$16 sps:$4 sm:$0xff]   ;;  %v14540_v23 = vld [vmem:[%s20677_s6 + $0xc8] ss:$16 sps:$4 sm:$0xff]  }
 0x888   :  { %6244 = vmatpush1.bf16.msra.mxu0 %v14477_v30  ;;  %6285 = vmatpush1.bf16.msra.mxu1 %v14480_v17  ;;  %v14545_v30 = vld [vmem:[%s20677_s6 + $0xa4] ss:$16 sps:$4 sm:$0xff]   ;;  %v14548_v17 = vld [vmem:[%s20677_s6 + $0xac] ss:$16 sps:$4 sm:$0xff]  }
 0x889   :  { %6504 = vmatprep.subr.bf16.mxu0 %v14485_v19  ;;  %6545 = vmatprep.subr.bf16.mxu1 %v14488_v60  ;;  %v14543_v19 = vld [vmem:[%s20677_s6 + $0xa0] ss:$16 sps:$4 sm:$0xff]   ;;  %v14546_v60 = vld [vmem:[%s20677_s6 + $0xa8] ss:$16 sps:$4 sm:$0xff]  }
 0x88b   :  { %6262 = vmatmul.mubr.bf16.vlgmr.msra.gmra.mxu0 %v6036_v35  ;;  %6303 = vmatmul.mubr.bf16.vlgmr.msra.gmra.mxu1 %v6036_v35  ;;  %v14549_v35 = vld [vmem:[%s20677_s6 + $0x80] ss:$16 sps:$4 sm:$0xff]  }
 0x88c   :  { %6505 = vmatpush1.bf16.msra.mxu0 %v14483_v22  ;;  %6546 = vmatpush1.bf16.msra.mxu1 %v14486_v45  ;;  %v14551_v22 = vld [vmem:[%s20677_s6 + $0x84] ss:$16 sps:$4 sm:$0xff]   ;;  %v14554_v45 = vld [vmem:[%s20677_s6 + $0x8c] ss:$16 sps:$4 sm:$0xff]  }
 0x88d   :  { %6506 = vmatprep.subr.bf16.mxu0 %v14491_v36  ;;  %6547 = vmatprep.subr.bf16.mxu1 %v14494_v16  ;;  %v14552_v36 = vld [vmem:[%s20677_s6 + $0x88] ss:$16 sps:$4 sm:$0xff]   ;;  %v14557_v16 = vld [vmem:[%s20677_s6 + $0x64] ss:$16 sps:$4 sm:$0xff]  }
 0x88e   :  { %6536 = vmatprep.mubr.bf16.mxu0 %v15780_v1  ;;  %6577 = vmatprep.mubr.bf16.mxu1 %v15780_v1 }
 0x890   :  { %6507 = vmatpush1.bf16.msra.mxu0 %v14489_v29  ;;  %6548 = vmatpush1.bf16.msra.mxu1 %v14492_v31  ;;  %v14560_v29 = vld [vmem:[%s20677_s6 + $0x6c] ss:$16 sps:$4 sm:$0xff]   ;;  %v14555_v31 = vld [vmem:[%s20677_s6 + $0x60] ss:$16 sps:$4 sm:$0xff]  }
 0x891   :  { %6508 = vmatprep.subr.bf16.mxu0 %v14497_v49  ;;  %6549 = vmatprep.subr.bf16.mxu1 %v14500_v13  ;;  %v14558_v49 = vld [vmem:[%s20677_s6 + $0x68] ss:$16 sps:$4 sm:$0xff]   ;;  %v14563_v13 = vld [vmem:[%s20677_s6 + $0x44] ss:$16 sps:$4 sm:$0xff]  }
 0x894   :  { %6509 = vmatpush1.bf16.msra.mxu0 %v14495_v63  ;;  %6550 = vmatpush1.bf16.msra.mxu1 %v14498_v44  ;;  %v14566_v63 = vld [vmem:[%s20677_s6 + $0x4c] ss:$16 sps:$4 sm:$0xff]   ;;  %v14561_v44 = vld [vmem:[%s20677_s6 + $0x40] ss:$16 sps:$4 sm:$0xff]  }
 0x895   :  { %6510 = vmatprep.subr.bf16.mxu0 %v14503_v0  ;;  %6551 = vmatprep.subr.bf16.mxu1 %v14506_v9  ;;  %v14564_v0 = vld [vmem:[%s20677_s6 + $0x48] ss:$16 sps:$4 sm:$0xff]   ;;  %v14569_v9 = vld [vmem:[%s20677_s6 + $0x24] ss:$16 sps:$4 sm:$0xff]  }
 0x898   :  { %6511 = vmatpush1.bf16.msra.mxu0 %v14501_v48  ;;  %6552 = vmatpush1.bf16.msra.mxu1 %v14504_v3  ;;  %v14572_v48 = vld [vmem:[%s20677_s6 + $0x2c] ss:$16 sps:$4 sm:$0xff]   ;;  %v14567_v3 = vld [vmem:[%s20677_s6 + $0x20] ss:$16 sps:$4 sm:$0xff]  }
 0x899   :  { %6512 = vmatprep.subr.bf16.mxu0 %v14509_v15  ;;  %6553 = vmatprep.subr.bf16.mxu1 %v14512_v5  ;;  %v14570_v15 = vld [vmem:[%s20677_s6 + $0x28] ss:$16 sps:$4 sm:$0xff]   ;;  %v14575_v5 = vld [vmem:[%s20677_s6 + $0x4] ss:$16 sps:$4 sm:$0xff]  }
 0x89c   :  { %6513 = vmatpush1.bf16.msra.mxu0 %v14507_v32  ;;  %6554 = vmatpush1.bf16.msra.mxu1 %v14510_v21  ;;  %v14578_v32 = vld [vmem:[%s20677_s6 + $0xc] ss:$16 sps:$4 sm:$0xff]   ;;  %v14573_v21 = vld [vmem:[%s20677_s6] ss:$16 sps:$4 sm:$0xff]  }
 0x89d   :  { %6514 = vmatprep.subr.bf16.mxu0 %v14515_v53  ;;  %6555 = vmatprep.subr.bf16.mxu1 %v14518_v25  ;;  %v14576_v53 = vld [vmem:[%s20677_s6 + $0x8] ss:$16 sps:$4 sm:$0xff]   ;;  %v14581_v25 = vld [vmem:[%s20678_s3 + $0xe4] ss:$16 sps:$4 sm:$0xff]  }
 0x8a0   :  { %6515 = vmatpush1.bf16.msra.mxu0 %v14513_v56  ;;  %6556 = vmatpush1.bf16.msra.mxu1 %v14516_v47  ;;  %v14584_v56 = vld [vmem:[%s20678_s3 + $0xec] ss:$16 sps:$4 sm:$0xff]  }
 0x8a1   :  { %6516 = vmatprep.subr.bf16.mxu0 %v14521_v20  ;;  %6557 = vmatprep.subr.bf16.mxu1 %v14524_v10 }
 0x8a4   :  { %6517 = vmatpush1.bf16.msra.mxu0 %v14519_v11  ;;  %6558 = vmatpush1.bf16.msra.mxu1 %v14522_v43 }
 0x8a5   :  { %6518 = vmatprep.subr.bf16.mxu0 %v14527_v6  ;;  %6559 = vmatprep.subr.bf16.mxu1 %v14530_v8 }
 0x8a8   :  { %6519 = vmatpush1.bf16.msra.mxu0 %v14525_v57  ;;  %6560 = vmatpush1.bf16.msra.mxu1 %v14528_v2 }
 0x8a9   :  { %6779 = vmatprep.subr.bf16.mxu0 %v14533_v14  ;;  %6820 = vmatprep.subr.bf16.mxu1 %v14536_v26 }
 0x8ab   :  { %6537 = vmatmul.mubr.bf16.vlgmr.msra.gmra.mxu0 %v6311_v27  ;;  %6578 = vmatmul.mubr.bf16.vlgmr.msra.gmra.mxu1 %v6311_v27 }
 0x8ac   :  { %6811 = vmatprep.mubr.bf16.mxu0 %v15780_v1  ;;  %6852 = vmatprep.mubr.bf16.mxu1 %v15780_v1 }
 0x8ad   :  { %6780 = vmatpush1.bf16.msra.mxu0 %v14531_v37  ;;  %6821 = vmatpush1.bf16.msra.mxu1 %v14534_v52 }
 0x8ae   :  { %6781 = vmatprep.subr.bf16.mxu0 %v14539_v46  ;;  %6822 = vmatprep.subr.bf16.mxu1 %v14542_v34 }
 0x8b1   :  { %6782 = vmatpush1.bf16.msra.mxu0 %v14537_v28  ;;  %6823 = vmatpush1.bf16.msra.mxu1 %v14540_v23 }
 0x8b2   :  { %6783 = vmatprep.subr.bf16.mxu0 %v14545_v30  ;;  %6824 = vmatprep.subr.bf16.mxu1 %v14548_v17 }
 0x8b5   :  { %6784 = vmatpush1.bf16.msra.mxu0 %v14543_v19  ;;  %6825 = vmatpush1.bf16.msra.mxu1 %v14546_v60  ;;  %v12805_v60 = vld [vmem:[%s20679_s1 + $0x80] sm:$0xff] }
 0x8b6   :  { %6785 = vmatprep.subr.bf16.mxu0 %v14551_v22  ;;  %6826 = vmatprep.subr.bf16.mxu1 %v14554_v45 }
 0x8b9   :  { %6786 = vmatpush1.bf16.msra.mxu0 %v14549_v35  ;;  %6827 = vmatpush1.bf16.msra.mxu1 %v14552_v36 }
 0x8ba   :  { %6787 = vmatprep.subr.bf16.mxu0 %v14557_v16  ;;  %6828 = vmatprep.subr.bf16.mxu1 %v14560_v29 }
 0x8bd   :  { %6788 = vmatpush1.bf16.msra.mxu0 %v14555_v31  ;;  %6829 = vmatpush1.bf16.msra.mxu1 %v14558_v49 }
 0x8be   :  { %6789 = vmatprep.subr.bf16.mxu0 %v14563_v13  ;;  %6830 = vmatprep.subr.bf16.mxu1 %v14566_v63 }
 0x8c1   :  { %6790 = vmatpush1.bf16.msra.mxu0 %v14561_v44  ;;  %6831 = vmatpush1.bf16.msra.mxu1 %v14564_v0 }
 0x8c2   :  { %6791 = vmatprep.subr.bf16.mxu0 %v14569_v9  ;;  %6832 = vmatprep.subr.bf16.mxu1 %v14572_v48 }
 0x8c5   :  { %6792 = vmatpush1.bf16.msra.mxu0 %v14567_v3  ;;  %6833 = vmatpush1.bf16.msra.mxu1 %v14570_v15 }
 0x8c6   :  { %6793 = vmatprep.subr.bf16.mxu0 %v14575_v5  ;;  %6834 = vmatprep.subr.bf16.mxu1 %v14578_v32 }
 0x8c9   :  { %6794 = vmatpush1.bf16.msra.mxu0 %v14573_v21  ;;  %6835 = vmatpush1.bf16.msra.mxu1 %v14576_v53  ;;  %v12808_v53 = vld [vmem:[%s20679_s1 + $0x98] sm:$0xff] }
 0x8ca   :  { %7090 = vmatprep.subr.bf16.mxu0 %v14581_v25  ;;  %7131 = vmatprep.subr.bf16.mxu1 %v14584_v56  ;;  %v12807_v56 = vld [vmem:[%s20679_s1 + $0x90] sm:$0xff] }
 0x92b   :  { %v5947_v47 = vpop.f32.mrf.mxu0  ;;  %v5988_v20 = vpop.f32.mrf.mxu1 }
 0x92c   :  { %v5948_v10 = vadd.f32 %v5947_v47, %v18248_v62  ;;  %v5989_v34 = vadd.f32 %v5988_v20, %v18250_v50  ;;  %v12806_v50 = vld [vmem:[%s20679_s1 + $0x88] sm:$0xff] }
 0x92d   :  { %v5949_v11 = vpop.f32.mrf.mxu0  ;;  %v5990_v43 = vpop.f32.mrf.mxu1 }
 0x92e   :  { %v5995_v6 = vadd.f32 %v5948_v10, %v16755_v42  ;;  %v5950_v8 = vadd.f32 %v5949_v11, %v18252_v58  ;;  %v5991_v46 = vadd.f32 %v5990_v43, %v18254_v38  ;;  %v5997_v58 = vadd.f32 %v5989_v34, %v16773_v55 }
 0x92f   :  { %v5951_v57 = vpop.f32.mrf.mxu0  ;;  %v5992_v2 = vpop.f32.mrf.mxu1 }
 0x930   :  { %v12705_v27 = vmul.f32 -1.442695, %v5995_v6  ;;  %v5996_v14 = vadd.f32 %v5950_v8, %v16760_v51  ;;  %v5998_v62 = vadd.f32 %v5991_v46, %v16767_v54  ;;  %v14587_v46 = vld [vmem:[%s20678_s3 + $0xc4] ss:$16 sps:$4 sm:$0xff]  }
 0x931   :  { %v5952_v26 = vpop.f32.mrf.mxu0  ;;  %v5993_v37 = vpop.f32.mrf.mxu1 }
 0x932   :  { %15571 = vpow2.f32 %v12705_v27  ;;  %v12706_v52 = vmul.f32 -1.442695, %v5996_v14  ;;  %v12707_v28 = vmul.f32 -1.442695, %v5998_v62  ;;  %v14582_v14 = vld [vmem:[%s20678_s3 + $0xe8] ss:$16 sps:$4 sm:$0xff]  }
 0x933   :  { %v14590_v62 = vld [vmem:[%s20678_s3 + $0xcc] ss:$16 sps:$4 sm:$0xff]  }
 0x934   :  { %15573 = vpow2.f32 %v12706_v52 }
 0x935   :  { %15575 = vpow2.f32 %v12707_v28 }
 0x93f   :  { %v15572_v23 = vpop.eup %15571 }
 0x940   :  { %v6002_v30 = vadd.f32 1.0, %v15572_v23  ;;  %v14593_v23 = vld [vmem:[%s20678_s3 + $0xa4] ss:$16 sps:$4 sm:$0xff]  }
 0x941   :  { %v15574_v17 = vpop.eup %15573 }
 0x942   :  { %15577 = vrcp.f32 %v6002_v30  ;;  %v6008_v19 = vadd.f32 1.0, %v15574_v17  ;;  %v15576_v16 = vpop.eup %15575 }
 0x943   :  { %15579 = vtanh.f32 %v5997_v58  ;;  %v6015_v48 = vadd.f32 1.0, %v15576_v16  ;;  %v14596_v58 = vld [vmem:[%s20678_s3 + $0xac] ss:$16 sps:$4 sm:$0xff]   ;;  %v14599_v16 = vld [vmem:[%s20678_s3 + $0x84] ss:$16 sps:$4 sm:$0xff]  }
 0x944   :  { %15581 = vrcp.f32 %v6008_v19 }
 0x94b   :  { %v6263_v38 = vpop.f32.mrf.mxu0  ;;  %v6304_v22 = vpop.f32.mrf.mxu1 }
 0x94c   :  { %v6866_v45 = vadd.f32 %v12805_v60, %v6263_v38  ;;  %v6868_v20 = vadd.f32 %v12807_v56, %v6304_v22  ;;  %v14591_v22 = vld [vmem:[%s20678_s3 + $0xa0] ss:$16 sps:$4 sm:$0xff]   ;;  %v14611_v56 = vld [vmem:[%s20678_s3 + $0x44] ss:$16 sps:$4 sm:$0xff]  }
 0x94d   :  { %v6265_v35 = vpop.f32.mrf.mxu0  ;;  %v6306_v36 = vpop.f32.mrf.mxu1 }
 0x94e   :  { %v12809_v29 = vmul.f32 -1.442695, %v6866_v45  ;;  %v6867_v31 = vadd.f32 %v12806_v50, %v6265_v35  ;;  %v6869_v47 = vadd.f32 %v12808_v53, %v6306_v36  ;;  %v14594_v50 = vld [vmem:[%s20678_s3 + $0xa8] ss:$16 sps:$4 sm:$0xff]  }
 0x94f   :  { %v15578_v49 = vpop.eup %15577  ;;  %v6267_v13 = vpop.f32.mrf.mxu0  ;;  %v14606_v53 = vld [vmem:[%s20678_s3 + $0x68] ss:$16 sps:$4 sm:$0xff]  }
 0x950   :  { %v6308_v63 = vpop.f32.mrf.mxu1  ;;  %v15580_v44 = vpop.eup %15579  ;;  %15583 = vpow2.f32 %v12809_v29  ;;  %v12810_v0 = vmul.f32 -1.442695, %v6867_v31  ;;  %v12811_v11 = vmul.f32 -1.442695, %v6869_v47  ;;  %v14602_v29 = vld [vmem:[%s20678_s3 + $0x8c] ss:$16 sps:$4 sm:$0xff]  }
 0x951   :  { %v15582_v9 = vpop.eup %15581  ;;  %v6268_v3 = vpop.f32.mrf.mxu0  ;;  %v6019_v5 = vmul.f32 %v15580_v44, %v15578_v49  ;;  %v14609_v47 = vld [vmem:[%s20678_s3 + $0x40] ss:$16 sps:$4 sm:$0xff]  }
 0x952   :  { %v6309_v15 = vpop.f32.mrf.mxu1  ;;  %v6018_v32 = vmul.f32 %v15582_v9, %v18003_v33  ;;  %15585 = vpow2.f32 %v12810_v0  ;;  %v18673_v0 = vpop.permute.xlu0 %6033  ;;  %v14600_v3 = vld [vmem:[%s20678_s3 + $0x88] ss:$16 sps:$4 sm:$0xff]  }
 0x953   :  { %15587 = vrcp.f32 %v6015_v48  ;;  %v14597_v48 = vld [vmem:[%s20678_s3 + $0x80] ss:$16 sps:$4 sm:$0xff]   ;;  %vm6035_vm0 = vcmp.eq.s32.totalorder %v18673_v0, 1  ;;  %v14605_v15 = vld [vmem:[%s20678_s3 + $0x64] ss:$16 sps:$4 sm:$0xff]  }
 0x954   :  { %v6020_v21 = vadd.f32 %v6019_v5, %v6018_v32  ;;  %v14608_v5 = vld [vmem:[%s20678_s3 + $0x6c] ss:$16 sps:$4 sm:$0xff]   ;;  %vm18742_vm1 = vmpackc.low %vm6035_vm0, %vm6035_vm0  ;;  %v14828_v0 = vld [vmem:[%s20678_s3 + $0xc8] ss:$16 sps:$4 sm:$0xff]  }
 0x956   :  { %15589 = vtanh.f32 %v6020_v21  ;;  %v18609_v25 = vsel %vm4552_vm14, %v6020_v21, %v18003_v33  ;;  %v14579_v33 = vld [vmem:[%s20678_s3 + $0xe0] ss:$16 sps:$4 sm:$0xff]  }
 0x957   :  { %15591 = vtanh.f32 %v6868_v20  ;;  %v14603_v21 = vld [vmem:[%s20678_s3 + $0x60] ss:$16 sps:$4 sm:$0xff]   ;;  %v14612_v20 = vld [vmem:[%s20678_s3 + $0x48] ss:$16 sps:$4 sm:$0xff]  }
 0x95d   :  { %v15584_v10 = vpop.eup %15583 }
 0x95e   :  { %v6873_v43 = vadd.f32 1.0, %v15584_v10  ;;  %v14617_v10 = vld [vmem:[%s20678_s3 + $0x24] ss:$16 sps:$4 sm:$0xff]  }
 0x95f   :  { %v15586_v6 = vpop.eup %15585 }
 0x960   :  { %15593 = vrcp.f32 %v6873_v43  ;;  %v6879_v8 = vadd.f32 1.0, %v15586_v6  ;;  %v15588_v57 = vpop.eup %15587  ;;  %v14615_v43 = vld [vmem:[%s20678_s3 + $0x20] ss:$16 sps:$4 sm:$0xff]   ;;  %v14618_v6 = vld [vmem:[%s20678_s3 + $0x28] ss:$16 sps:$4 sm:$0xff]  }
 0x961   :  { %15595 = vpow2.f32 %v12811_v11  ;;  %v14620_v11 = vld [vmem:[%s20678_s3 + $0x2c] ss:$16 sps:$4 sm:$0xff]  }
 0x962   :  { %15597 = vrcp.f32 %v6879_v8  ;;  %v14623_v8 = vld [vmem:[%s20678_s3 + $0x4] ss:$16 sps:$4 sm:$0xff]  }
 0x963   :  { %v15590_v2 = vpop.eup %15589 }
 0x964   :  { %v6022_v27 = vmul.f32 %v15590_v2, %v15588_v57  ;;  %v15592_v30 = vpop.eup %15591  ;;  %v14626_v57 = vld [vmem:[%s20678_s3 + $0xc] ss:$16 sps:$4 sm:$0xff]  }
 0x966   :  { %v18623_v26 = vsel %vm4552_vm14, %v6022_v27, %v18017_v59  ;;  %v6025_v37 = vsel %vm4552_vm14, %v6022_v27, 0.0  ;;  %v14585_v59 = vld [vmem:[%s20678_s3 + $0xc0] ss:$16 sps:$4 sm:$0xff]  }
 0x967   :  { %12708 = vst [vmem:[%s20683_s9 + $0x18] sm:$0xff] %v6025_v37  ;;  %v6586_v52 = vpack.c.bf16 %v18623_v26, %v18623_v26 }
 0x969   :  { %6812 = vmatmul.mubr.bf16.vlgmr.msra.gmra.mxu0 %v6586_v52  ;;  %6853 = vmatmul.mubr.bf16.vlgmr.msra.gmra.mxu1 %v6586_v52 }
 0x96a   :  { %7091 = vmatpush1.bf16.msra.mxu0 %v14579_v33  ;;  %7132 = vmatpush1.bf16.msra.mxu1 %v14582_v14  ;;  %v14621_v33 = vld [vmem:[%s20678_s3] ss:$16 sps:$4 sm:$0xff]   ;;  %v14624_v14 = vld [vmem:[%s20678_s3 + $0x8] ss:$16 sps:$4 sm:$0xff]  }
 0x96b   :  { %v18644_v34 = vpop.f32.mrf.mxu0  ;;  %v18646_v28 = vpop.f32.mrf.mxu1  ;;  %7092 = vmatprep.subr.bf16.mxu0 %v14587_v46  ;;  %7133 = vmatprep.subr.bf16.mxu1 %v14590_v62  ;;  %v14629_v62 = vld [vmem:[%s20680_s5 + $0xe4] ss:$16 sps:$4 sm:$0xff]   ;;  %v14692_v46 = vld [vmem:[%s20674_s2 + $0xac] ss:$16 sps:$4 sm:$0xff]  }
 0x96c   :  { %7122 = vmatprep.mubr.bf16.mxu0 %v15780_v1  ;;  %7163 = vmatprep.mubr.bf16.mxu1 %v15780_v1 }
 0x96d   :  { %v15594_v17 = vpop.eup %15593  ;;  %v18656_v19 = vpop.f32.mrf.mxu0 }
 0x96e   :  { %v18658_v60 = vpop.f32.mrf.mxu1  ;;  %v15596_v38 = vpop.eup %15595  ;;  %7093 = vmatpush1.bf16.msra.mxu0 %v14585_v59  ;;  %7134 = vmatpush1.bf16.msra.mxu1 %v14588_v18  ;;  %v6890_v31 = vmul.f32 %v15594_v17, %v15592_v30  ;;  %v14632_v59 = vld [vmem:[%s20680_s5 + $0xec] ss:$16 sps:$4 sm:$0xff]   ;;  %v14627_v18 = vld [vmem:[%s20680_s5 + $0xe0] ss:$16 sps:$4 sm:$0xff]  }
 0x96f   :  { %v15598_v45 = vpop.eup %15597  ;;  %v6542_v35 = vpop.f32.mrf.mxu0  ;;  %7094 = vmatprep.subr.bf16.mxu0 %v14593_v23  ;;  %7135 = vmatprep.subr.bf16.mxu1 %v14596_v58  ;;  %v6886_v13 = vadd.f32 1.0, %v15596_v38  ;;  %v14630_v23 = vld [vmem:[%s20680_s5 + $0xe8] ss:$16 sps:$4 sm:$0xff]   ;;  %v14635_v58 = vld [vmem:[%s20680_s5 + $0xc4] ss:$16 sps:$4 sm:$0xff]  }
 0x970   :  { %v6583_v36 = vpop.f32.mrf.mxu1  ;;  %v6889_v49 = vmul.f32 %v15598_v45, %v18085_v61  ;;  %v14638_v30 = vld [vmem:[%s20680_s5 + $0xcc] ss:$16 sps:$4 sm:$0xff]   ;;  %v14633_v17 = vld [vmem:[%s20680_s5 + $0xc0] ss:$16 sps:$4 sm:$0xff]   ;;  %v14636_v38 = vld [vmem:[%s20680_s5 + $0xc8] ss:$16 sps:$4 sm:$0xff]  }
 0x971   :  { %v6543_v63 = vpop.f32.mrf.mxu0  ;;  %v14639_v45 = vld [vmem:[%s20680_s5 + $0xa0] ss:$16 sps:$4 sm:$0xff]   ;;  %v14642_v35 = vld [vmem:[%s20680_s5 + $0xa8] ss:$16 sps:$4 sm:$0xff]   ;;  %v14647_v36 = vld [vmem:[%s20680_s5 + $0x84] ss:$16 sps:$4 sm:$0xff]  }
 0x972   :  { %v6584_v44 = vpop.f32.mrf.mxu1  ;;  %v6891_v9 = vadd.f32 %v6890_v31, %v6889_v49  ;;  %7095 = vmatpush1.bf16.msra.mxu0 %v14591_v22  ;;  %7136 = vmatpush1.bf16.msra.mxu1 %v14594_v50  ;;  %v14641_v22 = vld [vmem:[%s20680_s5 + $0xa4] ss:$16 sps:$4 sm:$0xff]   ;;  %v14644_v50 = vld [vmem:[%s20680_s5 + $0xac] ss:$16 sps:$4 sm:$0xff]   ;;  %v14648_v31 = vld [vmem:[%s20680_s5 + $0x88] ss:$16 sps:$4 sm:$0xff]  }
 0x973   :  { %7096 = vmatprep.subr.bf16.mxu0 %v14599_v16  ;;  %7137 = vmatprep.subr.bf16.mxu1 %v14602_v29  ;;  %v14650_v16 = vld [vmem:[%s20680_s5 + $0x8c] ss:$16 sps:$4 sm:$0xff]   ;;  %v14645_v29 = vld [vmem:[%s20680_s5 + $0x80] ss:$16 sps:$4 sm:$0xff]   ;;  %v14654_v63 = vld [vmem:[%s20680_s5 + $0x68] ss:$16 sps:$4 sm:$0xff]  }
 0x974   :  { %15599 = vtanh.f32 %v6891_v9  ;;  %v18691_v32 = vsel %vm6035_vm0, %v6891_v9, %v18085_v61  ;;  %v14614_v61 = vld [vmem:[%s20678_s3 + $0x4c] ss:$16 sps:$4 sm:$0xff]   ;;  %v14651_v49 = vld [vmem:[%s20680_s5 + $0x60] ss:$16 sps:$4 sm:$0xff]   ;;  %v14659_v9 = vld [vmem:[%s20680_s5 + $0x44] ss:$16 sps:$4 sm:$0xff]  }
 0x975   :  { %15601 = vrcp.f32 %v6886_v13  ;;  %v14653_v13 = vld [vmem:[%s20680_s5 + $0x64] ss:$16 sps:$4 sm:$0xff]   ;;  %v14656_v44 = vld [vmem:[%s20680_s5 + $0x6c] ss:$16 sps:$4 sm:$0xff]  }
 0x976   :  { %7097 = vmatpush1.bf16.msra.mxu0 %v14597_v48  ;;  %7138 = vmatpush1.bf16.msra.mxu1 %v14600_v3  ;;  %v14662_v48 = vld [vmem:[%s20680_s5 + $0x4c] ss:$16 sps:$4 sm:$0xff]   ;;  %v14657_v3 = vld [vmem:[%s20680_s5 + $0x40] ss:$16 sps:$4 sm:$0xff]  }
 0x977   :  { %7098 = vmatprep.subr.bf16.mxu0 %v14605_v15  ;;  %7139 = vmatprep.subr.bf16.mxu1 %v14608_v5  ;;  %v14660_v15 = vld [vmem:[%s20680_s5 + $0x48] ss:$16 sps:$4 sm:$0xff]   ;;  %v14665_v5 = vld [vmem:[%s20680_s5 + $0x24] ss:$16 sps:$4 sm:$0xff]  }
 0x97a   :  { %7099 = vmatpush1.bf16.msra.mxu0 %v14603_v21  ;;  %7140 = vmatpush1.bf16.msra.mxu1 %v14606_v53  ;;  %v14668_v21 = vld [vmem:[%s20680_s5 + $0x2c] ss:$16 sps:$4 sm:$0xff]   ;;  %v14663_v53 = vld [vmem:[%s20680_s5 + $0x20] ss:$16 sps:$4 sm:$0xff]  }
 0x97b   :  { %7100 = vmatprep.subr.bf16.mxu0 %v14611_v56  ;;  %7141 = vmatprep.subr.bf16.mxu1 %v14614_v61  ;;  %v14666_v56 = vld [vmem:[%s20680_s5 + $0x28] ss:$16 sps:$4 sm:$0xff]   ;;  %v14671_v61 = vld [vmem:[%s20680_s5 + $0x4] ss:$16 sps:$4 sm:$0xff]  }
 0x97e   :  { %7101 = vmatpush1.bf16.msra.mxu0 %v14609_v47  ;;  %7142 = vmatpush1.bf16.msra.mxu1 %v14612_v20  ;;  %v14674_v47 = vld [vmem:[%s20680_s5 + $0xc] ss:$16 sps:$4 sm:$0xff]   ;;  %v14669_v20 = vld [vmem:[%s20680_s5] ss:$16 sps:$4 sm:$0xff]  }
 0x97f   :  { %7102 = vmatprep.subr.bf16.mxu0 %v14617_v10  ;;  %7143 = vmatprep.subr.bf16.mxu1 %v14620_v11  ;;  %v14672_v10 = vld [vmem:[%s20680_s5 + $0x8] ss:$16 sps:$4 sm:$0xff]   ;;  %v14677_v11 = vld [vmem:[%s20674_s2 + $0xe4] ss:$16 sps:$4 sm:$0xff]  }
 0x981   :  { %v15600_v2 = vpop.eup %15599 }
 0x982   :  { %v15602_v27 = vpop.eup %15601  ;;  %7103 = vmatpush1.bf16.msra.mxu0 %v14615_v43  ;;  %7144 = vmatpush1.bf16.msra.mxu1 %v14618_v6  ;;  %v14680_v43 = vld [vmem:[%s20674_s2 + $0xec] ss:$16 sps:$4 sm:$0xff]  }
 0x983   :  { %7104 = vmatprep.subr.bf16.mxu0 %v14623_v8  ;;  %7145 = vmatprep.subr.bf16.mxu1 %v14626_v57  ;;  %v18735_v37 = vmul.f32 %v15602_v27, %v15600_v2 }
 0x985   :  { %v12845_v52 = vpack.c.bf16 %v18735_v37, %v18735_v37 }
 0x986   :  { %7105 = vmatpush1.bf16.msra.mxu0 %v14621_v33  ;;  %7146 = vmatpush1.bf16.msra.mxu1 %v14624_v14 }
 0x987   :  { %7396 = vmatprep.subr.bf16.mxu0 %v14629_v62  ;;  %7437 = vmatprep.subr.bf16.mxu1 %v14632_v59 }
 0x989   :  { %12846 = vmatmul.mubr.msk.bf16.vlgmr.msra.gmra.mxu0 %vm18742_vm1, %v12845_v52  ;;  %12849 = vmatmul.mubr.msk.bf16.vlgmr.msra.gmra.mxu1 %vm18742_vm1, %v12845_v52 }
 0x98a   :  { %7428 = vmatprep.mubr.bf16.mxu0 %v15780_v1  ;;  %7469 = vmatprep.mubr.bf16.mxu1 %v15780_v1 }
 0x98b   :  { %7397 = vmatpush1.bf16.msra.mxu0 %v14627_v18  ;;  %7438 = vmatpush1.bf16.msra.mxu1 %v14630_v23 }
 0x98c   :  { %7398 = vmatprep.subr.bf16.mxu0 %v14635_v58  ;;  %7439 = vmatprep.subr.bf16.mxu1 %v14638_v30 }
 0x98f   :  { %7399 = vmatpush1.bf16.msra.mxu0 %v14633_v17  ;;  %7440 = vmatpush1.bf16.msra.mxu1 %v14636_v38 }
 0x990   :  { %7400 = vmatprep.subr.bf16.mxu0 %v14641_v22  ;;  %7441 = vmatprep.subr.bf16.mxu1 %v14644_v50 }
 0x993   :  { %7401 = vmatpush1.bf16.msra.mxu0 %v14639_v45  ;;  %7442 = vmatpush1.bf16.msra.mxu1 %v14642_v35 }
 0x994   :  { %7402 = vmatprep.subr.bf16.mxu0 %v14647_v36  ;;  %7443 = vmatprep.subr.bf16.mxu1 %v14650_v16 }
 0x997   :  { %7403 = vmatpush1.bf16.msra.mxu0 %v14645_v29  ;;  %7444 = vmatpush1.bf16.msra.mxu1 %v14648_v31 }
 0x998   :  { %7404 = vmatprep.subr.bf16.mxu0 %v14653_v13  ;;  %7445 = vmatprep.subr.bf16.mxu1 %v14656_v44 }
 0x99b   :  { %7405 = vmatpush1.bf16.msra.mxu0 %v14651_v49  ;;  %7446 = vmatpush1.bf16.msra.mxu1 %v14654_v63 }
 0x99c   :  { %7406 = vmatprep.subr.bf16.mxu0 %v14659_v9  ;;  %7447 = vmatprep.subr.bf16.mxu1 %v14662_v48 }
 0x99f   :  { %7407 = vmatpush1.bf16.msra.mxu0 %v14657_v3  ;;  %7448 = vmatpush1.bf16.msra.mxu1 %v14660_v15 }
 0x9a0   :  { %7408 = vmatprep.subr.bf16.mxu0 %v14665_v5  ;;  %7449 = vmatprep.subr.bf16.mxu1 %v14668_v21 }
 0x9a3   :  { %7409 = vmatpush1.bf16.msra.mxu0 %v14663_v53  ;;  %7450 = vmatpush1.bf16.msra.mxu1 %v14666_v56 }
 0x9a4   :  { %7410 = vmatprep.subr.bf16.mxu0 %v14671_v61  ;;  %7451 = vmatprep.subr.bf16.mxu1 %v14674_v47 }
 0x9a7   :  { %7411 = vmatpush1.bf16.msra.mxu0 %v14669_v20  ;;  %7452 = vmatpush1.bf16.msra.mxu1 %v14672_v10  ;;  %v14675_v10 = vld [vmem:[%s20674_s2 + $0xe0] ss:$16 sps:$4 sm:$0xff]  }
 0x9a8   :  { %7712 = vmatprep.subr.bf16.mxu0 %v14677_v11  ;;  %7753 = vmatprep.subr.bf16.mxu1 %v14680_v43  ;;  %v14678_v11 = vld [vmem:[%s20674_s2 + $0xe8] ss:$16 sps:$4 sm:$0xff]  }
 0xa29   :  { %v18854_v6 = vpop.f32.mrf.mxu0  ;;  %v18856_v8 = vpop.f32.mrf.mxu1 }
 0xa2b   :  { %v18858_v57 = vpop.f32.mrf.mxu0  ;;  %v18860_v2 = vpop.f32.mrf.mxu1 }
 0xa2d   :  { %v6817_v27 = vpop.f32.mrf.mxu0  ;;  %v6858_v33 = vpop.f32.mrf.mxu1 }
 0xa2e   :  { %v14686_v27 = vld [vmem:[%s20674_s2 + $0xcc] ss:$16 sps:$4 sm:$0xff]   ;;  %v14681_v33 = vld [vmem:[%s20674_s2 + $0xc0] ss:$16 sps:$4 sm:$0xff]  }
 0xa2f   :  { %v6818_v14 = vpop.f32.mrf.mxu0  ;;  %v6859_v52 = vpop.f32.mrf.mxu1 }
 0xa30   :  { %v14684_v14 = vld [vmem:[%s20674_s2 + $0xc8] ss:$16 sps:$4 sm:$0xff]   ;;  %v14689_v52 = vld [vmem:[%s20674_s2 + $0xa4] ss:$16 sps:$4 sm:$0xff]  }
 0xa49   :  { %v7124_v62 = vpop.f32.mrf.mxu0  ;;  %v7165_v59 = vpop.f32.mrf.mxu1 }
 0xa4a   :  { %v7125_v18 = vadd.f32 %v7124_v62, %v18644_v34  ;;  %v7166_v31 = vadd.f32 %v7165_v59, %v18646_v28  ;;  %v14687_v62 = vld [vmem:[%s20674_s2 + $0xa0] ss:$16 sps:$4 sm:$0xff]   ;;  %v14690_v59 = vld [vmem:[%s20674_s2 + $0xa8] ss:$16 sps:$4 sm:$0xff]  }
 0xa4b   :  { %v7126_v23 = vpop.f32.mrf.mxu0  ;;  %v7167_v58 = vpop.f32.mrf.mxu1 }
 0xa4c   :  { %v7172_v30 = vadd.f32 %v7125_v18, %v16405_v40  ;;  %v7127_v17 = vadd.f32 %v7126_v23, %v18656_v19  ;;  %v7168_v29 = vadd.f32 %v7167_v58, %v18658_v60  ;;  %v7174_v19 = vadd.f32 %v7166_v31, %v16425_v7  ;;  %v14695_v18 = vld [vmem:[%s20674_s2 + $0x84] ss:$16 sps:$4 sm:$0xff]   ;;  %v14698_v23 = vld [vmem:[%s20674_s2 + $0x8c] ss:$16 sps:$4 sm:$0xff]   ;;  %v14693_v58 = vld [vmem:[%s20674_s2 + $0x80] ss:$16 sps:$4 sm:$0xff]  }
 0xa4d   :  { %v7128_v38 = vpop.f32.mrf.mxu0  ;;  %v7169_v22 = vpop.f32.mrf.mxu1  ;;  %v14711_v31 = vld [vmem:[%s20674_s2 + $0x20] ss:$16 sps:$4 sm:$0xff]  }
 0xa4e   :  { %v12850_v50 = vmul.f32 -1.442695, %v7172_v30  ;;  %v7173_v45 = vadd.f32 %v7127_v17, %v16410_v41  ;;  %v7175_v34 = vadd.f32 %v7168_v29, %v16418_v4  ;;  %v14696_v30 = vld [vmem:[%s20674_s2 + $0x88] ss:$16 sps:$4 sm:$0xff]   ;;  %v14701_v17 = vld [vmem:[%s20674_s2 + $0x64] ss:$16 sps:$4 sm:$0xff]  }
 0xa4f   :  { %v7129_v35 = vpop.f32.mrf.mxu0  ;;  %v7170_v36 = vpop.f32.mrf.mxu1  ;;  %v14704_v38 = vld [vmem:[%s20674_s2 + $0x6c] ss:$16 sps:$4 sm:$0xff]   ;;  %v14699_v22 = vld [vmem:[%s20674_s2 + $0x60] ss:$16 sps:$4 sm:$0xff]   ;;  %v14713_v29 = vld [vmem:[%s20674_s2 + $0x24] ss:$16 sps:$4 sm:$0xff]  }
 0xa50   :  { %15603 = vpow2.f32 %v12850_v50  ;;  %v12851_v16 = vmul.f32 -1.442695, %v7173_v45  ;;  %v12852_v49 = vmul.f32 -1.442695, %v7175_v34  ;;  %v14702_v50 = vld [vmem:[%s20674_s2 + $0x68] ss:$16 sps:$4 sm:$0xff]  }
 0xa51   :  { %v14707_v45 = vld [vmem:[%s20674_s2 + $0x44] ss:$16 sps:$4 sm:$0xff]   ;;  %v14710_v35 = vld [vmem:[%s20674_s2 + $0x4c] ss:$16 sps:$4 sm:$0xff]   ;;  %v14705_v36 = vld [vmem:[%s20674_s2 + $0x40] ss:$16 sps:$4 sm:$0xff]  }
 0xa52   :  { %15605 = vpow2.f32 %v12851_v16  ;;  %v14708_v16 = vld [vmem:[%s20674_s2 + $0x48] ss:$16 sps:$4 sm:$0xff]   ;;  %v14716_v34 = vld [vmem:[%s20674_s2 + $0x2c] ss:$16 sps:$4 sm:$0xff]  }
 0xa53   :  { %15607 = vpow2.f32 %v12852_v49  ;;  %v14714_v49 = vld [vmem:[%s20674_s2 + $0x28] ss:$16 sps:$4 sm:$0xff]  }
 0xa5d   :  { %v15604_v13 = vpop.eup %15603 }
 0xa5e   :  { %v7179_v63 = vadd.f32 1.0, %v15604_v13  ;;  %v14719_v13 = vld [vmem:[%s20674_s2 + $0x4] ss:$16 sps:$4 sm:$0xff]  }
 0xa5f   :  { %v15606_v44 = vpop.eup %15605 }
 0xa60   :  { %15609 = vrcp.f32 %v7179_v63  ;;  %v7185_v9 = vadd.f32 1.0, %v15606_v44  ;;  %v15608_v48 = vpop.eup %15607  ;;  %v14717_v63 = vld [vmem:[%s20674_s2] ss:$16 sps:$4 sm:$0xff]   ;;  %v14720_v44 = vld [vmem:[%s20674_s2 + $0x8] ss:$16 sps:$4 sm:$0xff]  }
 0xa61   :  { %15611 = vtanh.f32 %v7174_v19  ;;  %v7192_v60 = vadd.f32 1.0, %v15608_v48  ;;  %v14722_v19 = vld [vmem:[%s20674_s2 + $0xc] ss:$16 sps:$4 sm:$0xff]  }
 0xa62   :  { %15613 = vrcp.f32 %v7185_v9  ;;  %v14725_v9 = vld [vmem:[%s20676_s4 + $0xe4] ss:$16 sps:$4 sm:$0xff]   ;;  %v14728_v48 = vld [vmem:[%s20676_s4 + $0xec] ss:$16 sps:$4 sm:$0xff]  }
 0xa63   :  { %15615 = vrcp.f32 %v7192_v60 }
 0xa6d   :  { %v15610_v3 = vpop.eup %15609 }
 0xa6e   :  { %v15612_v15 = vpop.eup %15611 }
 0xa6f   :  { %v15614_v5 = vpop.eup %15613  ;;  %v7196_v21 = vmul.f32 %v15612_v15, %v15610_v3  ;;  %v18986_v3 = vsel %vm6035_vm0, %v18735_v37, %v18380_v12  ;;  %v14723_v15 = vld [vmem:[%s20676_s4 + $0xe0] ss:$16 sps:$4 sm:$0xff]   ;;  %v14731_v12 = vld [vmem:[%s20676_s4 + $0xc4] ss:$16 sps:$4 sm:$0xff]   ;;  %v14734_v37 = vld [vmem:[%s20676_s4 + $0xcc] ss:$16 sps:$4 sm:$0xff]  }
 0xa70   :  { %v7195_v53 = vmul.f32 %v15614_v5, %v18268_v24  ;;  %v15616_v61 = vpop.eup %15615  ;;  %v14726_v5 = vld [vmem:[%s20676_s4 + $0xe8] ss:$16 sps:$4 sm:$0xff]   ;;  %v7519_v60 = vpack.c.bf16 %v18986_v3, %v18986_v3 }
 0xa72   :  { %v7197_v28 = vadd.f32 %v7196_v21, %v7195_v53  ;;  %v14729_v21 = vld [vmem:[%s20676_s4 + $0xc0] ss:$16 sps:$4 sm:$0xff]   ;;  %v14732_v53 = vld [vmem:[%s20676_s4 + $0xc8] ss:$16 sps:$4 sm:$0xff]  }
 0xa74   :  { %15617 = vtanh.f32 %v7197_v28  ;;  %v18874_v56 = vsel %vm6035_vm0, %v7197_v28, %v18268_v24  ;;  %v14683_v24 = vld [vmem:[%s20674_s2 + $0xc4] ss:$16 sps:$4 sm:$0xff]  }
 0xa75   :  { %v14737_v28 = vld [vmem:[%s20676_s4 + $0xa4] ss:$16 sps:$4 sm:$0xff]  }
 0xa81   :  { %v15618_v47 = vpop.eup %15617 }
 0xa82   :  { %v18876_v20 = vmul.f32 %v15618_v47, %v15616_v61  ;;  %v14740_v61 = vld [vmem:[%s20676_s4 + $0xac] ss:$16 sps:$4 sm:$0xff]   ;;  %v14735_v47 = vld [vmem:[%s20676_s4 + $0xa0] ss:$16 sps:$4 sm:$0xff]  }
 0xa84   :  { %v12886_v43 = vpack.c.bf16 %v18876_v20, %v18876_v20 }
 0xa86   :  { %12887 = vmatmul.mubr.msk.bf16.vlgmr.msra.gmra.mxu0 %vm18742_vm1, %v12886_v43  ;;  %12890 = vmatmul.mubr.msk.bf16.vlgmr.msra.gmra.mxu1 %vm18742_vm1, %v12886_v43  ;;  %v14746_v43 = vld [vmem:[%s20676_s4 + $0x8c] ss:$16 sps:$4 sm:$0xff]  }
 0xa87   :  { %7713 = vmatpush1.bf16.msra.mxu0 %v14675_v10  ;;  %7754 = vmatpush1.bf16.msra.mxu1 %v14678_v11  ;;  %v14738_v10 = vld [vmem:[%s20676_s4 + $0xa8] ss:$16 sps:$4 sm:$0xff]   ;;  %v14743_v11 = vld [vmem:[%s20676_s4 + $0x84] ss:$16 sps:$4 sm:$0xff]  }
 0xa88   :  { %7714 = vmatprep.subr.bf16.mxu0 %v14683_v24  ;;  %7755 = vmatprep.subr.bf16.mxu1 %v14686_v27  ;;  %v14741_v24 = vld [vmem:[%s20676_s4 + $0x80] ss:$16 sps:$4 sm:$0xff]   ;;  %v14744_v27 = vld [vmem:[%s20676_s4 + $0x88] ss:$16 sps:$4 sm:$0xff]  }
 0xa89   :  { %7744 = vmatprep.mubr.bf16.mxu0 %v15780_v1  ;;  %7785 = vmatprep.mubr.bf16.mxu1 %v15780_v1 }
 0xa8b   :  { %7715 = vmatpush1.bf16.msra.mxu0 %v14681_v33  ;;  %7756 = vmatpush1.bf16.msra.mxu1 %v14684_v14  ;;  %v14749_v33 = vld [vmem:[%s20676_s4 + $0x64] ss:$16 sps:$4 sm:$0xff]   ;;  %v14752_v14 = vld [vmem:[%s20676_s4 + $0x6c] ss:$16 sps:$4 sm:$0xff]  }
 0xa8c   :  { %7716 = vmatprep.subr.bf16.mxu0 %v14689_v52  ;;  %7757 = vmatprep.subr.bf16.mxu1 %v14692_v46  ;;  %v14747_v52 = vld [vmem:[%s20676_s4 + $0x60] ss:$16 sps:$4 sm:$0xff]   ;;  %v14750_v46 = vld [vmem:[%s20676_s4 + $0x68] ss:$16 sps:$4 sm:$0xff]  }
 0xa8f   :  { %7717 = vmatpush1.bf16.msra.mxu0 %v14687_v62  ;;  %7758 = vmatpush1.bf16.msra.mxu1 %v14690_v59  ;;  %v14755_v62 = vld [vmem:[%s20676_s4 + $0x44] ss:$16 sps:$4 sm:$0xff]   ;;  %v14758_v59 = vld [vmem:[%s20676_s4 + $0x4c] ss:$16 sps:$4 sm:$0xff]  }
 0xa90   :  { %7718 = vmatprep.subr.bf16.mxu0 %v14695_v18  ;;  %7759 = vmatprep.subr.bf16.mxu1 %v14698_v23  ;;  %v14753_v18 = vld [vmem:[%s20676_s4 + $0x40] ss:$16 sps:$4 sm:$0xff]   ;;  %v14756_v23 = vld [vmem:[%s20676_s4 + $0x48] ss:$16 sps:$4 sm:$0xff]  }
 0xa93   :  { %7719 = vmatpush1.bf16.msra.mxu0 %v14693_v58  ;;  %7760 = vmatpush1.bf16.msra.mxu1 %v14696_v30  ;;  %v14761_v58 = vld [vmem:[%s20676_s4 + $0x24] ss:$16 sps:$4 sm:$0xff]   ;;  %v14764_v30 = vld [vmem:[%s20676_s4 + $0x2c] ss:$16 sps:$4 sm:$0xff]  }
 0xa94   :  { %7720 = vmatprep.subr.bf16.mxu0 %v14701_v17  ;;  %7761 = vmatprep.subr.bf16.mxu1 %v14704_v38  ;;  %v14759_v17 = vld [vmem:[%s20676_s4 + $0x20] ss:$16 sps:$4 sm:$0xff]   ;;  %v14762_v38 = vld [vmem:[%s20676_s4 + $0x28] ss:$16 sps:$4 sm:$0xff]  }
 0xa97   :  { %7721 = vmatpush1.bf16.msra.mxu0 %v14699_v22  ;;  %7762 = vmatpush1.bf16.msra.mxu1 %v14702_v50  ;;  %v14767_v22 = vld [vmem:[%s20676_s4 + $0x4] ss:$16 sps:$4 sm:$0xff]   ;;  %v14770_v50 = vld [vmem:[%s20676_s4 + $0xc] ss:$16 sps:$4 sm:$0xff]  }
 0xa98   :  { %7722 = vmatprep.subr.bf16.mxu0 %v14707_v45  ;;  %7763 = vmatprep.subr.bf16.mxu1 %v14710_v35  ;;  %v14765_v45 = vld [vmem:[%s20676_s4] ss:$16 sps:$4 sm:$0xff]   ;;  %v14768_v35 = vld [vmem:[%s20676_s4 + $0x8] ss:$16 sps:$4 sm:$0xff]  }
 0xa9b   :  { %7723 = vmatpush1.bf16.msra.mxu0 %v14705_v36  ;;  %7764 = vmatpush1.bf16.msra.mxu1 %v14708_v16  ;;  %v19086_v36 = vsel %vm6035_vm0, %v18876_v20, %v18480_v39  ;;  %v14776_v39 = vld [vmem:[%s20677_s6 + $0xec] ss:$16 sps:$4 sm:$0xff]   ;;  %v14771_v20 = vld [vmem:[%s20677_s6 + $0xe0] ss:$16 sps:$4 sm:$0xff]  }
 0xa9c   :  { %7724 = vmatprep.subr.bf16.mxu0 %v14713_v29  ;;  %7765 = vmatprep.subr.bf16.mxu1 %v14716_v34  ;;  %v7794_v16 = vpack.c.bf16 %v19086_v36, %v19086_v36  ;;  %v14773_v29 = vld [vmem:[%s20677_s6 + $0xe4] ss:$16 sps:$4 sm:$0xff]   ;;  %v14774_v34 = vld [vmem:[%s20677_s6 + $0xe8] ss:$16 sps:$4 sm:$0xff]  }
 0xa9f   :  { %7725 = vmatpush1.bf16.msra.mxu0 %v14711_v31  ;;  %7766 = vmatpush1.bf16.msra.mxu1 %v14714_v49  ;;  %v14779_v31 = vld [vmem:[%s20677_s6 + $0xc4] ss:$16 sps:$4 sm:$0xff]   ;;  %v14782_v49 = vld [vmem:[%s20677_s6 + $0xcc] ss:$16 sps:$4 sm:$0xff]  }
 0xaa0   :  { %7726 = vmatprep.subr.bf16.mxu0 %v14719_v13  ;;  %7767 = vmatprep.subr.bf16.mxu1 %v14722_v19  ;;  %v14777_v13 = vld [vmem:[%s20677_s6 + $0xc0] ss:$16 sps:$4 sm:$0xff]   ;;  %v14780_v19 = vld [vmem:[%s20677_s6 + $0xc8] ss:$16 sps:$4 sm:$0xff]  }
 0xaa3   :  { %7727 = vmatpush1.bf16.msra.mxu0 %v14717_v63  ;;  %7768 = vmatpush1.bf16.msra.mxu1 %v14720_v44  ;;  %v14785_v63 = vld [vmem:[%s20677_s6 + $0xa4] ss:$16 sps:$4 sm:$0xff]   ;;  %v14788_v44 = vld [vmem:[%s20677_s6 + $0xac] ss:$16 sps:$4 sm:$0xff]  }
 0xaa4   :  { %7987 = vmatprep.subr.bf16.mxu0 %v14725_v9  ;;  %8028 = vmatprep.subr.bf16.mxu1 %v14728_v48  ;;  %v14783_v9 = vld [vmem:[%s20677_s6 + $0xa0] ss:$16 sps:$4 sm:$0xff]   ;;  %v14786_v48 = vld [vmem:[%s20677_s6 + $0xa8] ss:$16 sps:$4 sm:$0xff]  }
 0xaa6   :  { %7745 = vmatmul.mubr.bf16.vlgmr.msra.gmra.mxu0 %v7519_v60  ;;  %7786 = vmatmul.mubr.bf16.vlgmr.msra.gmra.mxu1 %v7519_v60  ;;  %v14789_v60 = vld [vmem:[%s20677_s6 + $0x80] ss:$16 sps:$4 sm:$0xff]  }
 0xaa7   :  { %7988 = vmatpush1.bf16.msra.mxu0 %v14723_v15  ;;  %8029 = vmatpush1.bf16.msra.mxu1 %v14726_v5  ;;  %v14791_v15 = vld [vmem:[%s20677_s6 + $0x84] ss:$16 sps:$4 sm:$0xff]   ;;  %v14794_v5 = vld [vmem:[%s20677_s6 + $0x8c] ss:$16 sps:$4 sm:$0xff]  }
 0xaa8   :  { %7989 = vmatprep.subr.bf16.mxu0 %v14731_v12  ;;  %8030 = vmatprep.subr.bf16.mxu1 %v14734_v37  ;;  %v14792_v12 = vld [vmem:[%s20677_s6 + $0x88] ss:$16 sps:$4 sm:$0xff]   ;;  %v14797_v37 = vld [vmem:[%s20677_s6 + $0x64] ss:$16 sps:$4 sm:$0xff]  }
 0xaa9   :  { %8019 = vmatprep.mubr.bf16.mxu0 %v15780_v1  ;;  %8060 = vmatprep.mubr.bf16.mxu1 %v15780_v1 }
 0xaab   :  { %7990 = vmatpush1.bf16.msra.mxu0 %v14729_v21  ;;  %8031 = vmatpush1.bf16.msra.mxu1 %v14732_v53  ;;  %v14800_v21 = vld [vmem:[%s20677_s6 + $0x6c] ss:$16 sps:$4 sm:$0xff]   ;;  %v14795_v53 = vld [vmem:[%s20677_s6 + $0x60] ss:$16 sps:$4 sm:$0xff]  }
 0xaac   :  { %7991 = vmatprep.subr.bf16.mxu0 %v14737_v28  ;;  %8032 = vmatprep.subr.bf16.mxu1 %v14740_v61  ;;  %v14798_v28 = vld [vmem:[%s20677_s6 + $0x68] ss:$16 sps:$4 sm:$0xff]   ;;  %v14803_v61 = vld [vmem:[%s20677_s6 + $0x44] ss:$16 sps:$4 sm:$0xff]  }
 0xaaf   :  { %7992 = vmatpush1.bf16.msra.mxu0 %v14735_v47  ;;  %8033 = vmatpush1.bf16.msra.mxu1 %v14738_v10  ;;  %v14806_v47 = vld [vmem:[%s20677_s6 + $0x4c] ss:$16 sps:$4 sm:$0xff]   ;;  %v14801_v10 = vld [vmem:[%s20677_s6 + $0x40] ss:$16 sps:$4 sm:$0xff]  }
 0xab0   :  { %7993 = vmatprep.subr.bf16.mxu0 %v14743_v11  ;;  %8034 = vmatprep.subr.bf16.mxu1 %v14746_v43  ;;  %v14804_v11 = vld [vmem:[%s20677_s6 + $0x48] ss:$16 sps:$4 sm:$0xff]   ;;  %v14809_v43 = vld [vmem:[%s20677_s6 + $0x24] ss:$16 sps:$4 sm:$0xff]  }
 0xab3   :  { %7994 = vmatpush1.bf16.msra.mxu0 %v14741_v24  ;;  %8035 = vmatpush1.bf16.msra.mxu1 %v14744_v27  ;;  %v14812_v24 = vld [vmem:[%s20677_s6 + $0x2c] ss:$16 sps:$4 sm:$0xff]   ;;  %v14807_v27 = vld [vmem:[%s20677_s6 + $0x20] ss:$16 sps:$4 sm:$0xff]  }
 0xab4   :  { %7995 = vmatprep.subr.bf16.mxu0 %v14749_v33  ;;  %8036 = vmatprep.subr.bf16.mxu1 %v14752_v14  ;;  %v14810_v33 = vld [vmem:[%s20677_s6 + $0x28] ss:$16 sps:$4 sm:$0xff]   ;;  %v14815_v14 = vld [vmem:[%s20677_s6 + $0x4] ss:$16 sps:$4 sm:$0xff]  }
 0xab7   :  { %7996 = vmatpush1.bf16.msra.mxu0 %v14747_v52  ;;  %8037 = vmatpush1.bf16.msra.mxu1 %v14750_v46  ;;  %v14818_v52 = vld [vmem:[%s20677_s6 + $0xc] ss:$16 sps:$4 sm:$0xff]   ;;  %v14813_v46 = vld [vmem:[%s20677_s6] ss:$16 sps:$4 sm:$0xff]  }
 0xab8   :  { %7997 = vmatprep.subr.bf16.mxu0 %v14755_v62  ;;  %8038 = vmatprep.subr.bf16.mxu1 %v14758_v59  ;;  %v14816_v62 = vld [vmem:[%s20677_s6 + $0x8] ss:$16 sps:$4 sm:$0xff]   ;;  %v14821_v59 = vld [vmem:[%s20678_s3 + $0xe4] ss:$16 sps:$4 sm:$0xff]  }
 0xabb   :  { %7998 = vmatpush1.bf16.msra.mxu0 %v14753_v18  ;;  %8039 = vmatpush1.bf16.msra.mxu1 %v14756_v23  ;;  %v14824_v18 = vld [vmem:[%s20678_s3 + $0xec] ss:$16 sps:$4 sm:$0xff]  }
 0xabc   :  { %7999 = vmatprep.subr.bf16.mxu0 %v14761_v58  ;;  %8040 = vmatprep.subr.bf16.mxu1 %v14764_v30 }
 0xabf   :  { %8000 = vmatpush1.bf16.msra.mxu0 %v14759_v17  ;;  %8041 = vmatpush1.bf16.msra.mxu1 %v14762_v38 }
 0xac0   :  { %8001 = vmatprep.subr.bf16.mxu0 %v14767_v22  ;;  %8042 = vmatprep.subr.bf16.mxu1 %v14770_v50 }
 0xac3   :  { %8002 = vmatpush1.bf16.msra.mxu0 %v14765_v45  ;;  %8043 = vmatpush1.bf16.msra.mxu1 %v14768_v35 }
 0xac4   :  { %8262 = vmatprep.subr.bf16.mxu0 %v14773_v29  ;;  %8303 = vmatprep.subr.bf16.mxu1 %v14776_v39 }
 0xac6   :  { %8020 = vmatmul.mubr.bf16.vlgmr.msra.gmra.mxu0 %v7794_v16  ;;  %8061 = vmatmul.mubr.bf16.vlgmr.msra.gmra.mxu1 %v7794_v16 }
 0xac7   :  { %8294 = vmatprep.mubr.bf16.mxu0 %v15780_v1  ;;  %8335 = vmatprep.mubr.bf16.mxu1 %v15780_v1 }
 0xac8   :  { %8263 = vmatpush1.bf16.msra.mxu0 %v14771_v20  ;;  %8304 = vmatpush1.bf16.msra.mxu1 %v14774_v34 }
 0xac9   :  { %8264 = vmatprep.subr.bf16.mxu0 %v14779_v31  ;;  %8305 = vmatprep.subr.bf16.mxu1 %v14782_v49 }
 0xacc   :  { %8265 = vmatpush1.bf16.msra.mxu0 %v14777_v13  ;;  %8306 = vmatpush1.bf16.msra.mxu1 %v14780_v19 }
 0xacd   :  { %8266 = vmatprep.subr.bf16.mxu0 %v14785_v63  ;;  %8307 = vmatprep.subr.bf16.mxu1 %v14788_v44 }
 0xad0   :  { %8267 = vmatpush1.bf16.msra.mxu0 %v14783_v9  ;;  %8308 = vmatpush1.bf16.msra.mxu1 %v14786_v48  ;;  %v12991_v48 = vld [vmem:[%s20679_s1 + $0xa0] sm:$0xff] }
 0xad1   :  { %8268 = vmatprep.subr.bf16.mxu0 %v14791_v15  ;;  %8309 = vmatprep.subr.bf16.mxu1 %v14794_v5 }
 0xad4   :  { %8269 = vmatpush1.bf16.msra.mxu0 %v14789_v60  ;;  %8310 = vmatpush1.bf16.msra.mxu1 %v14792_v12 }
 0xad5   :  { %8270 = vmatprep.subr.bf16.mxu0 %v14797_v37  ;;  %8311 = vmatprep.subr.bf16.mxu1 %v14800_v21 }
 0xad8   :  { %8271 = vmatpush1.bf16.msra.mxu0 %v14795_v53  ;;  %8312 = vmatpush1.bf16.msra.mxu1 %v14798_v28 }
 0xad9   :  { %8272 = vmatprep.subr.bf16.mxu0 %v14803_v61  ;;  %8313 = vmatprep.subr.bf16.mxu1 %v14806_v47 }
 0xadc   :  { %8273 = vmatpush1.bf16.msra.mxu0 %v14801_v10  ;;  %8314 = vmatpush1.bf16.msra.mxu1 %v14804_v11 }
 0xadd   :  { %8274 = vmatprep.subr.bf16.mxu0 %v14809_v43  ;;  %8315 = vmatprep.subr.bf16.mxu1 %v14812_v24 }
 0xae0   :  { %8275 = vmatpush1.bf16.msra.mxu0 %v14807_v27  ;;  %8316 = vmatpush1.bf16.msra.mxu1 %v14810_v33 }
 0xae1   :  { %8276 = vmatprep.subr.bf16.mxu0 %v14815_v14  ;;  %8317 = vmatprep.subr.bf16.mxu1 %v14818_v52 }
 0xae4   :  { %8277 = vmatpush1.bf16.msra.mxu0 %v14813_v46  ;;  %8318 = vmatpush1.bf16.msra.mxu1 %v14816_v62  ;;  %v12994_v62 = vld [vmem:[%s20679_s1 + $0xb8] sm:$0xff] }
 0xae5   :  { %8573 = vmatprep.subr.bf16.mxu0 %v14821_v59  ;;  %8614 = vmatprep.subr.bf16.mxu1 %v14824_v18  ;;  %v12993_v18 = vld [vmem:[%s20679_s1 + $0xb0] sm:$0xff] }
 0xb46   :  { %v7430_v23 = vpop.f32.mrf.mxu0  ;;  %v7471_v58 = vpop.f32.mrf.mxu1 }
 0xb47   :  { %v7431_v30 = vadd.f32 %v7430_v23, %v18854_v6  ;;  %v7472_v49 = vadd.f32 %v7471_v58, %v18856_v8  ;;  %v12992_v8 = vld [vmem:[%s20679_s1 + $0xa8] sm:$0xff] }
 0xb48   :  { %v7432_v17 = vpop.f32.mrf.mxu0  ;;  %v7473_v38 = vpop.f32.mrf.mxu1 }
 0xb49   :  { %v7478_v22 = vadd.f32 %v7431_v30, %v16755_v42  ;;  %v7433_v50 = vadd.f32 %v7432_v17, %v18858_v57  ;;  %v7474_v31 = vadd.f32 %v7473_v38, %v18860_v2  ;;  %v7480_v57 = vadd.f32 %v7472_v49, %v16773_v55 }
 0xb4a   :  { %v7434_v45 = vpop.f32.mrf.mxu0  ;;  %v7475_v35 = vpop.f32.mrf.mxu1 }
 0xb4b   :  { %v12891_v16 = vmul.f32 -1.442695, %v7478_v22  ;;  %v7479_v29 = vadd.f32 %v7433_v50, %v16760_v51  ;;  %v7481_v6 = vadd.f32 %v7474_v31, %v16767_v54  ;;  %v14827_v31 = vld [vmem:[%s20678_s3 + $0xc4] ss:$16 sps:$4 sm:$0xff]  }
 0xb4c   :  { %v7435_v39 = vpop.f32.mrf.mxu0  ;;  %v7476_v20 = vpop.f32.mrf.mxu1 }
 0xb4d   :  { %15619 = vpow2.f32 %v12891_v16  ;;  %v12892_v34 = vmul.f32 -1.442695, %v7479_v29  ;;  %v12893_v13 = vmul.f32 -1.442695, %v7481_v6  ;;  %v14822_v29 = vld [vmem:[%s20678_s3 + $0xe8] ss:$16 sps:$4 sm:$0xff]  }
 0xb4e   :  { %v14830_v6 = vld [vmem:[%s20678_s3 + $0xcc] ss:$16 sps:$4 sm:$0xff]  }
 0xb4f   :  { %15621 = vpow2.f32 %v12892_v34 }
 0xb50   :  { %15623 = vpow2.f32 %v12893_v13 }
 0xb5a   :  { %v15620_v19 = vpop.eup %15619 }
 0xb5b   :  { %v7485_v63 = vadd.f32 1.0, %v15620_v19  ;;  %v14833_v19 = vld [vmem:[%s20678_s3 + $0xa4] ss:$16 sps:$4 sm:$0xff]  }
 0xb5c   :  { %v15622_v44 = vpop.eup %15621 }
 0xb5d   :  { %15625 = vrcp.f32 %v7485_v63  ;;  %v7491_v9 = vadd.f32 1.0, %v15622_v44  ;;  %v15624_v37 = vpop.eup %15623 }
 0xb5e   :  { %15627 = vtanh.f32 %v7480_v57  ;;  %v7498_v24 = vadd.f32 1.0, %v15624_v37  ;;  %v14836_v57 = vld [vmem:[%s20678_s3 + $0xac] ss:$16 sps:$4 sm:$0xff]   ;;  %v14839_v37 = vld [vmem:[%s20678_s3 + $0x84] ss:$16 sps:$4 sm:$0xff]  }
 0xb5f   :  { %15629 = vrcp.f32 %v7491_v9 }
 0xb66   :  { %v7746_v2 = vpop.f32.mrf.mxu0  ;;  %v7787_v15 = vpop.f32.mrf.mxu1 }
 0xb67   :  { %v8349_v5 = vadd.f32 %v12991_v48, %v7746_v2  ;;  %v8351_v58 = vadd.f32 %v12993_v18, %v7787_v15  ;;  %v14831_v15 = vld [vmem:[%s20678_s3 + $0xa0] ss:$16 sps:$4 sm:$0xff]   ;;  %v14851_v18 = vld [vmem:[%s20678_s3 + $0x44] ss:$16 sps:$4 sm:$0xff]  }
 0xb68   :  { %v7748_v60 = vpop.f32.mrf.mxu0  ;;  %v7789_v12 = vpop.f32.mrf.mxu1 }
 0xb69   :  { %v12995_v21 = vmul.f32 -1.442695, %v8349_v5  ;;  %v8350_v53 = vadd.f32 %v12992_v8, %v7748_v60  ;;  %v8352_v23 = vadd.f32 %v12994_v62, %v7789_v12  ;;  %v14834_v8 = vld [vmem:[%s20678_s3 + $0xa8] ss:$16 sps:$4 sm:$0xff]  }
 0xb6a   :  { %v15626_v28 = vpop.eup %15625  ;;  %v7750_v61 = vpop.f32.mrf.mxu0  ;;  %v14846_v62 = vld [vmem:[%s20678_s3 + $0x68] ss:$16 sps:$4 sm:$0xff]  }
 0xb6b   :  { %v7791_v47 = vpop.f32.mrf.mxu1  ;;  %v15628_v10 = vpop.eup %15627  ;;  %15631 = vpow2.f32 %v12995_v21  ;;  %v12996_v11 = vmul.f32 -1.442695, %v8350_v53  ;;  %v12997_v17 = vmul.f32 -1.442695, %v8352_v23  ;;  %v14842_v21 = vld [vmem:[%s20678_s3 + $0x8c] ss:$16 sps:$4 sm:$0xff]  }
 0xb6c   :  { %v15630_v43 = vpop.eup %15629  ;;  %v7751_v27 = vpop.f32.mrf.mxu0  ;;  %v7502_v14 = vmul.f32 %v15628_v10, %v15626_v28  ;;  %v14849_v23 = vld [vmem:[%s20678_s3 + $0x40] ss:$16 sps:$4 sm:$0xff]  }
 0xb6d   :  { %v7792_v33 = vpop.f32.mrf.mxu1  ;;  %v7501_v52 = vmul.f32 %v15630_v43, %v18609_v25  ;;  %15633 = vpow2.f32 %v12996_v11  ;;  %v19279_v11 = vpop.permute.xlu1 %7516  ;;  %v14840_v27 = vld [vmem:[%s20678_s3 + $0x88] ss:$16 sps:$4 sm:$0xff]  }
 0xb6e   :  { %15635 = vrcp.f32 %v7498_v24  ;;  %v14837_v24 = vld [vmem:[%s20678_s3 + $0x80] ss:$16 sps:$4 sm:$0xff]   ;;  %vm7518_vm2 = vcmp.eq.s32.totalorder %v19279_v11, 1  ;;  %v14845_v33 = vld [vmem:[%s20678_s3 + $0x64] ss:$16 sps:$4 sm:$0xff]  }
 0xb6f   :  { %v7503_v46 = vadd.f32 %v7502_v14, %v7501_v52  ;;  %v14848_v14 = vld [vmem:[%s20678_s3 + $0x6c] ss:$16 sps:$4 sm:$0xff]   ;;  %vm19348_vm3 = vmpackc.low %vm7518_vm2, %vm7518_vm2  ;;  %v15068_v11 = vld [vmem:[%s20678_s3 + $0xc8] ss:$16 sps:$4 sm:$0xff]  }
 0xb71   :  { %15637 = vtanh.f32 %v7503_v46  ;;  %v19215_v59 = vsel %vm6035_vm0, %v7503_v46, %v18609_v25  ;;  %v14819_v25 = vld [vmem:[%s20678_s3 + $0xe0] ss:$16 sps:$4 sm:$0xff]  }
 0xb72   :  { %15639 = vtanh.f32 %v8351_v58  ;;  %v14843_v46 = vld [vmem:[%s20678_s3 + $0x60] ss:$16 sps:$4 sm:$0xff]   ;;  %v14852_v58 = vld [vmem:[%s20678_s3 + $0x48] ss:$16 sps:$4 sm:$0xff]  }
 0xb78   :  { %v15632_v30 = vpop.eup %15631 }
 0xb79   :  { %v8356_v38 = vadd.f32 1.0, %v15632_v30  ;;  %v14857_v30 = vld [vmem:[%s20678_s3 + $0x24] ss:$16 sps:$4 sm:$0xff]  }
 0xb7a   :  { %v15634_v22 = vpop.eup %15633 }
 0xb7b   :  { %15641 = vrcp.f32 %v8356_v38  ;;  %v8362_v50 = vadd.f32 1.0, %v15634_v22  ;;  %v15636_v45 = vpop.eup %15635  ;;  %v14855_v38 = vld [vmem:[%s20678_s3 + $0x20] ss:$16 sps:$4 sm:$0xff]   ;;  %v14858_v22 = vld [vmem:[%s20678_s3 + $0x28] ss:$16 sps:$4 sm:$0xff]  }
 0xb7c   :  { %15643 = vpow2.f32 %v12997_v17  ;;  %v14860_v17 = vld [vmem:[%s20678_s3 + $0x2c] ss:$16 sps:$4 sm:$0xff]  }
 0xb7d   :  { %15645 = vrcp.f32 %v8362_v50  ;;  %v14863_v50 = vld [vmem:[%s20678_s3 + $0x4] ss:$16 sps:$4 sm:$0xff]  }
 0xb7e   :  { %v15638_v35 = vpop.eup %15637 }
 0xb7f   :  { %v7505_v16 = vmul.f32 %v15638_v35, %v15636_v45  ;;  %v15640_v63 = vpop.eup %15639  ;;  %v14866_v45 = vld [vmem:[%s20678_s3 + $0xc] ss:$16 sps:$4 sm:$0xff]  }
 0xb81   :  { %v19229_v39 = vsel %vm6035_vm0, %v7505_v16, %v18623_v26  ;;  %v7508_v20 = vsel %vm6035_vm0, %v7505_v16, 0.0  ;;  %v14825_v26 = vld [vmem:[%s20678_s3 + $0xc0] ss:$16 sps:$4 sm:$0xff]  }
 0xb82   :  { %12894 = vst [vmem:[%s20683_s9 + $0x20] sm:$0xff] %v7508_v20  ;;  %v8069_v34 = vpack.c.bf16 %v19229_v39, %v19229_v39 }
 0xb84   :  { %8295 = vmatmul.mubr.bf16.vlgmr.msra.gmra.mxu0 %v8069_v34  ;;  %8336 = vmatmul.mubr.bf16.vlgmr.msra.gmra.mxu1 %v8069_v34 }
 0xb85   :  { %8574 = vmatpush1.bf16.msra.mxu0 %v14819_v25  ;;  %8615 = vmatpush1.bf16.msra.mxu1 %v14822_v29  ;;  %v14861_v25 = vld [vmem:[%s20678_s3] ss:$16 sps:$4 sm:$0xff]   ;;  %v14864_v29 = vld [vmem:[%s20678_s3 + $0x8] ss:$16 sps:$4 sm:$0xff]  }
 0xb86   :  { %v19250_v49 = vpop.f32.mrf.mxu0  ;;  %v19252_v13 = vpop.f32.mrf.mxu1  ;;  %8575 = vmatprep.subr.bf16.mxu0 %v14827_v31  ;;  %8616 = vmatprep.subr.bf16.mxu1 %v14830_v6  ;;  %v14869_v6 = vld [vmem:[%s20680_s5 + $0xe4] ss:$16 sps:$4 sm:$0xff]   ;;  %v14932_v31 = vld [vmem:[%s20674_s2 + $0xac] ss:$16 sps:$4 sm:$0xff]  }
 0xb87   :  { %8605 = vmatprep.mubr.bf16.mxu0 %v15780_v1  ;;  %8646 = vmatprep.mubr.bf16.mxu1 %v15780_v1 }
 0xb88   :  { %v15642_v44 = vpop.eup %15641  ;;  %v19262_v9 = vpop.f32.mrf.mxu0 }
 0xb89   :  { %v19264_v48 = vpop.f32.mrf.mxu1  ;;  %v15644_v2 = vpop.eup %15643  ;;  %8576 = vmatpush1.bf16.msra.mxu0 %v14825_v26  ;;  %8617 = vmatpush1.bf16.msra.mxu1 %v14828_v0  ;;  %v8373_v53 = vmul.f32 %v15642_v44, %v15640_v63  ;;  %v14872_v26 = vld [vmem:[%s20680_s5 + $0xec] ss:$16 sps:$4 sm:$0xff]   ;;  %v14867_v0 = vld [vmem:[%s20680_s5 + $0xe0] ss:$16 sps:$4 sm:$0xff]  }
 0xb8a   :  { %v15646_v5 = vpop.eup %15645  ;;  %v8025_v60 = vpop.f32.mrf.mxu0  ;;  %8577 = vmatprep.subr.bf16.mxu0 %v14833_v19  ;;  %8618 = vmatprep.subr.bf16.mxu1 %v14836_v57  ;;  %v8369_v61 = vadd.f32 1.0, %v15644_v2  ;;  %v14870_v19 = vld [vmem:[%s20680_s5 + $0xe8] ss:$16 sps:$4 sm:$0xff]   ;;  %v14875_v57 = vld [vmem:[%s20680_s5 + $0xc4] ss:$16 sps:$4 sm:$0xff]  }
 0xb8b   :  { %v8066_v12 = vpop.f32.mrf.mxu1  ;;  %v8372_v28 = vmul.f32 %v15646_v5, %v18691_v32  ;;  %v14878_v63 = vld [vmem:[%s20680_s5 + $0xcc] ss:$16 sps:$4 sm:$0xff]   ;;  %v14873_v44 = vld [vmem:[%s20680_s5 + $0xc0] ss:$16 sps:$4 sm:$0xff]   ;;  %v14876_v2 = vld [vmem:[%s20680_s5 + $0xc8] ss:$16 sps:$4 sm:$0xff]  }
 0xb8c   :  { %v8026_v47 = vpop.f32.mrf.mxu0  ;;  %v14879_v5 = vld [vmem:[%s20680_s5 + $0xa0] ss:$16 sps:$4 sm:$0xff]   ;;  %v14882_v60 = vld [vmem:[%s20680_s5 + $0xa8] ss:$16 sps:$4 sm:$0xff]   ;;  %v14887_v12 = vld [vmem:[%s20680_s5 + $0x84] ss:$16 sps:$4 sm:$0xff]  }
 0xb8d   :  { %v8067_v10 = vpop.f32.mrf.mxu1  ;;  %v8374_v43 = vadd.f32 %v8373_v53, %v8372_v28  ;;  %8578 = vmatpush1.bf16.msra.mxu0 %v14831_v15  ;;  %8619 = vmatpush1.bf16.msra.mxu1 %v14834_v8  ;;  %v14881_v15 = vld [vmem:[%s20680_s5 + $0xa4] ss:$16 sps:$4 sm:$0xff]   ;;  %v14884_v8 = vld [vmem:[%s20680_s5 + $0xac] ss:$16 sps:$4 sm:$0xff]   ;;  %v14888_v53 = vld [vmem:[%s20680_s5 + $0x88] ss:$16 sps:$4 sm:$0xff]  }
 0xb8e   :  { %8579 = vmatprep.subr.bf16.mxu0 %v14839_v37  ;;  %8620 = vmatprep.subr.bf16.mxu1 %v14842_v21  ;;  %v14890_v37 = vld [vmem:[%s20680_s5 + $0x8c] ss:$16 sps:$4 sm:$0xff]   ;;  %v14885_v21 = vld [vmem:[%s20680_s5 + $0x80] ss:$16 sps:$4 sm:$0xff]   ;;  %v14894_v47 = vld [vmem:[%s20680_s5 + $0x68] ss:$16 sps:$4 sm:$0xff]  }
 0xb8f   :  { %15647 = vtanh.f32 %v8374_v43  ;;  %v19297_v52 = vsel %vm7518_vm2, %v8374_v43, %v18691_v32  ;;  %v14854_v32 = vld [vmem:[%s20678_s3 + $0x4c] ss:$16 sps:$4 sm:$0xff]   ;;  %v14891_v28 = vld [vmem:[%s20680_s5 + $0x60] ss:$16 sps:$4 sm:$0xff]   ;;  %v14899_v43 = vld [vmem:[%s20680_s5 + $0x44] ss:$16 sps:$4 sm:$0xff]  }
 0xb90   :  { %15649 = vrcp.f32 %v8369_v61  ;;  %v14893_v61 = vld [vmem:[%s20680_s5 + $0x64] ss:$16 sps:$4 sm:$0xff]   ;;  %v14896_v10 = vld [vmem:[%s20680_s5 + $0x6c] ss:$16 sps:$4 sm:$0xff]  }
 0xb91   :  { %8580 = vmatpush1.bf16.msra.mxu0 %v14837_v24  ;;  %8621 = vmatpush1.bf16.msra.mxu1 %v14840_v27  ;;  %v14902_v24 = vld [vmem:[%s20680_s5 + $0x4c] ss:$16 sps:$4 sm:$0xff]   ;;  %v14897_v27 = vld [vmem:[%s20680_s5 + $0x40] ss:$16 sps:$4 sm:$0xff]  }
 0xb92   :  { %8581 = vmatprep.subr.bf16.mxu0 %v14845_v33  ;;  %8622 = vmatprep.subr.bf16.mxu1 %v14848_v14  ;;  %v14900_v33 = vld [vmem:[%s20680_s5 + $0x48] ss:$16 sps:$4 sm:$0xff]   ;;  %v14905_v14 = vld [vmem:[%s20680_s5 + $0x24] ss:$16 sps:$4 sm:$0xff]  }
 0xb95   :  { %8582 = vmatpush1.bf16.msra.mxu0 %v14843_v46  ;;  %8623 = vmatpush1.bf16.msra.mxu1 %v14846_v62  ;;  %v14908_v46 = vld [vmem:[%s20680_s5 + $0x2c] ss:$16 sps:$4 sm:$0xff]   ;;  %v14903_v62 = vld [vmem:[%s20680_s5 + $0x20] ss:$16 sps:$4 sm:$0xff]  }
 0xb96   :  { %8583 = vmatprep.subr.bf16.mxu0 %v14851_v18  ;;  %8624 = vmatprep.subr.bf16.mxu1 %v14854_v32  ;;  %v14906_v18 = vld [vmem:[%s20680_s5 + $0x28] ss:$16 sps:$4 sm:$0xff]   ;;  %v14911_v32 = vld [vmem:[%s20680_s5 + $0x4] ss:$16 sps:$4 sm:$0xff]  }
 0xb99   :  { %8584 = vmatpush1.bf16.msra.mxu0 %v14849_v23  ;;  %8625 = vmatpush1.bf16.msra.mxu1 %v14852_v58  ;;  %v14914_v23 = vld [vmem:[%s20680_s5 + $0xc] ss:$16 sps:$4 sm:$0xff]   ;;  %v14909_v58 = vld [vmem:[%s20680_s5] ss:$16 sps:$4 sm:$0xff]  }
 0xb9a   :  { %8585 = vmatprep.subr.bf16.mxu0 %v14857_v30  ;;  %8626 = vmatprep.subr.bf16.mxu1 %v14860_v17  ;;  %v14912_v30 = vld [vmem:[%s20680_s5 + $0x8] ss:$16 sps:$4 sm:$0xff]   ;;  %v14917_v17 = vld [vmem:[%s20674_s2 + $0xe4] ss:$16 sps:$4 sm:$0xff]  }
 0xb9c   :  { %v15648_v35 = vpop.eup %15647 }
 0xb9d   :  { %v15650_v16 = vpop.eup %15649  ;;  %8586 = vmatpush1.bf16.msra.mxu0 %v14855_v38  ;;  %8627 = vmatpush1.bf16.msra.mxu1 %v14858_v22  ;;  %v14920_v38 = vld [vmem:[%s20674_s2 + $0xec] ss:$16 sps:$4 sm:$0xff]  }
 0xb9e   :  { %8587 = vmatprep.subr.bf16.mxu0 %v14863_v50  ;;  %8628 = vmatprep.subr.bf16.mxu1 %v14866_v45  ;;  %v19341_v20 = vmul.f32 %v15650_v16, %v15648_v35 }
 0xba0   :  { %v13031_v34 = vpack.c.bf16 %v19341_v20, %v19341_v20 }
 0xba1   :  { %8588 = vmatpush1.bf16.msra.mxu0 %v14861_v25  ;;  %8629 = vmatpush1.bf16.msra.mxu1 %v14864_v29 }
 0xba2   :  { %8879 = vmatprep.subr.bf16.mxu0 %v14869_v6  ;;  %8920 = vmatprep.subr.bf16.mxu1 %v14872_v26 }
 0xba4   :  { %13032 = vmatmul.mubr.msk.bf16.vlgmr.msra.gmra.mxu0 %vm19348_vm3, %v13031_v34  ;;  %13035 = vmatmul.mubr.msk.bf16.vlgmr.msra.gmra.mxu1 %vm19348_vm3, %v13031_v34 }
 0xba5   :  { %8911 = vmatprep.mubr.bf16.mxu0 %v15780_v1  ;;  %8952 = vmatprep.mubr.bf16.mxu1 %v15780_v1 }
 0xba6   :  { %8880 = vmatpush1.bf16.msra.mxu0 %v14867_v0  ;;  %8921 = vmatpush1.bf16.msra.mxu1 %v14870_v19 }
 0xba7   :  { %8881 = vmatprep.subr.bf16.mxu0 %v14875_v57  ;;  %8922 = vmatprep.subr.bf16.mxu1 %v14878_v63 }
 0xbaa   :  { %8882 = vmatpush1.bf16.msra.mxu0 %v14873_v44  ;;  %8923 = vmatpush1.bf16.msra.mxu1 %v14876_v2 }
 0xbab   :  { %8883 = vmatprep.subr.bf16.mxu0 %v14881_v15  ;;  %8924 = vmatprep.subr.bf16.mxu1 %v14884_v8 }
 0xbae   :  { %8884 = vmatpush1.bf16.msra.mxu0 %v14879_v5  ;;  %8925 = vmatpush1.bf16.msra.mxu1 %v14882_v60 }
 0xbaf   :  { %8885 = vmatprep.subr.bf16.mxu0 %v14887_v12  ;;  %8926 = vmatprep.subr.bf16.mxu1 %v14890_v37 }
 0xbb2   :  { %8886 = vmatpush1.bf16.msra.mxu0 %v14885_v21  ;;  %8927 = vmatpush1.bf16.msra.mxu1 %v14888_v53 }
 0xbb3   :  { %8887 = vmatprep.subr.bf16.mxu0 %v14893_v61  ;;  %8928 = vmatprep.subr.bf16.mxu1 %v14896_v10 }
 0xbb6   :  { %8888 = vmatpush1.bf16.msra.mxu0 %v14891_v28  ;;  %8929 = vmatpush1.bf16.msra.mxu1 %v14894_v47 }
 0xbb7   :  { %8889 = vmatprep.subr.bf16.mxu0 %v14899_v43  ;;  %8930 = vmatprep.subr.bf16.mxu1 %v14902_v24 }
 0xbba   :  { %8890 = vmatpush1.bf16.msra.mxu0 %v14897_v27  ;;  %8931 = vmatpush1.bf16.msra.mxu1 %v14900_v33 }
 0xbbb   :  { %8891 = vmatprep.subr.bf16.mxu0 %v14905_v14  ;;  %8932 = vmatprep.subr.bf16.mxu1 %v14908_v46 }
 0xbbe   :  { %8892 = vmatpush1.bf16.msra.mxu0 %v14903_v62  ;;  %8933 = vmatpush1.bf16.msra.mxu1 %v14906_v18 }
 0xbbf   :  { %8893 = vmatprep.subr.bf16.mxu0 %v14911_v32  ;;  %8934 = vmatprep.subr.bf16.mxu1 %v14914_v23 }
 0xbc2   :  { %8894 = vmatpush1.bf16.msra.mxu0 %v14909_v58  ;;  %8935 = vmatpush1.bf16.msra.mxu1 %v14912_v30  ;;  %v14915_v30 = vld [vmem:[%s20674_s2 + $0xe0] ss:$16 sps:$4 sm:$0xff]  }
 0xbc3   :  { %9195 = vmatprep.subr.bf16.mxu0 %v14917_v17  ;;  %9236 = vmatprep.subr.bf16.mxu1 %v14920_v38  ;;  %v14918_v17 = vld [vmem:[%s20674_s2 + $0xe8] ss:$16 sps:$4 sm:$0xff]  }
 0xc44   :  { %v19460_v22 = vpop.f32.mrf.mxu0  ;;  %v19462_v50 = vpop.f32.mrf.mxu1 }
 0xc46   :  { %v19464_v45 = vpop.f32.mrf.mxu0  ;;  %v19466_v35 = vpop.f32.mrf.mxu1 }
 0xc48   :  { %v8300_v16 = vpop.f32.mrf.mxu0  ;;  %v8341_v25 = vpop.f32.mrf.mxu1 }
 0xc49   :  { %v14926_v16 = vld [vmem:[%s20674_s2 + $0xcc] ss:$16 sps:$4 sm:$0xff]   ;;  %v14921_v25 = vld [vmem:[%s20674_s2 + $0xc0] ss:$16 sps:$4 sm:$0xff]  }
 0xc4a   :  { %v8301_v29 = vpop.f32.mrf.mxu0  ;;  %v8342_v34 = vpop.f32.mrf.mxu1 }
 0xc4b   :  { %v14924_v29 = vld [vmem:[%s20674_s2 + $0xc8] ss:$16 sps:$4 sm:$0xff]   ;;  %v14929_v34 = vld [vmem:[%s20674_s2 + $0xa4] ss:$16 sps:$4 sm:$0xff]  }
 0xc64   :  { %v8607_v6 = vpop.f32.mrf.mxu0  ;;  %v8648_v26 = vpop.f32.mrf.mxu1 }
 0xc65   :  { %v8608_v0 = vadd.f32 %v8607_v6, %v19250_v49  ;;  %v8649_v53 = vadd.f32 %v8648_v26, %v19252_v13  ;;  %v14927_v6 = vld [vmem:[%s20674_s2 + $0xa0] ss:$16 sps:$4 sm:$0xff]   ;;  %v14930_v26 = vld [vmem:[%s20674_s2 + $0xa8] ss:$16 sps:$4 sm:$0xff]  }
 0xc66   :  { %v8609_v19 = vpop.f32.mrf.mxu0  ;;  %v8650_v57 = vpop.f32.mrf.mxu1 }
 0xc67   :  { %v8655_v63 = vadd.f32 %v8608_v0, %v16405_v40  ;;  %v8610_v44 = vadd.f32 %v8609_v19, %v19262_v9  ;;  %v8651_v21 = vadd.f32 %v8650_v57, %v19264_v48  ;;  %v8657_v9 = vadd.f32 %v8649_v53, %v16425_v7  ;;  %v14935_v0 = vld [vmem:[%s20674_s2 + $0x84] ss:$16 sps:$4 sm:$0xff]   ;;  %v14938_v19 = vld [vmem:[%s20674_s2 + $0x8c] ss:$16 sps:$4 sm:$0xff]   ;;  %v14933_v57 = vld [vmem:[%s20674_s2 + $0x80] ss:$16 sps:$4 sm:$0xff]  }
 0xc68   :  { %v8611_v2 = vpop.f32.mrf.mxu0  ;;  %v8652_v15 = vpop.f32.mrf.mxu1  ;;  %v14951_v53 = vld [vmem:[%s20674_s2 + $0x20] ss:$16 sps:$4 sm:$0xff]  }
 0xc69   :  { %v13036_v8 = vmul.f32 -1.442695, %v8655_v63  ;;  %v8656_v5 = vadd.f32 %v8610_v44, %v16410_v41  ;;  %v8658_v49 = vadd.f32 %v8651_v21, %v16418_v4  ;;  %v14936_v63 = vld [vmem:[%s20674_s2 + $0x88] ss:$16 sps:$4 sm:$0xff]   ;;  %v14941_v44 = vld [vmem:[%s20674_s2 + $0x64] ss:$16 sps:$4 sm:$0xff]  }
 0xc6a   :  { %v8612_v60 = vpop.f32.mrf.mxu0  ;;  %v8653_v12 = vpop.f32.mrf.mxu1  ;;  %v14944_v2 = vld [vmem:[%s20674_s2 + $0x6c] ss:$16 sps:$4 sm:$0xff]   ;;  %v14939_v15 = vld [vmem:[%s20674_s2 + $0x60] ss:$16 sps:$4 sm:$0xff]   ;;  %v14953_v21 = vld [vmem:[%s20674_s2 + $0x24] ss:$16 sps:$4 sm:$0xff]  }
 0xc6b   :  { %15651 = vpow2.f32 %v13036_v8  ;;  %v13037_v37 = vmul.f32 -1.442695, %v8656_v5  ;;  %v13038_v28 = vmul.f32 -1.442695, %v8658_v49  ;;  %v14942_v8 = vld [vmem:[%s20674_s2 + $0x68] ss:$16 sps:$4 sm:$0xff]  }
 0xc6c   :  { %v14947_v5 = vld [vmem:[%s20674_s2 + $0x44] ss:$16 sps:$4 sm:$0xff]   ;;  %v14950_v60 = vld [vmem:[%s20674_s2 + $0x4c] ss:$16 sps:$4 sm:$0xff]   ;;  %v14945_v12 = vld [vmem:[%s20674_s2 + $0x40] ss:$16 sps:$4 sm:$0xff]  }
 0xc6d   :  { %15653 = vpow2.f32 %v13037_v37  ;;  %v14948_v37 = vld [vmem:[%s20674_s2 + $0x48] ss:$16 sps:$4 sm:$0xff]   ;;  %v14956_v49 = vld [vmem:[%s20674_s2 + $0x2c] ss:$16 sps:$4 sm:$0xff]  }
 0xc6e   :  { %15655 = vpow2.f32 %v13038_v28  ;;  %v14954_v28 = vld [vmem:[%s20674_s2 + $0x28] ss:$16 sps:$4 sm:$0xff]  }
 0xc78   :  { %v15652_v61 = vpop.eup %15651 }
 0xc79   :  { %v8662_v47 = vadd.f32 1.0, %v15652_v61  ;;  %v14959_v61 = vld [vmem:[%s20674_s2 + $0x4] ss:$16 sps:$4 sm:$0xff]  }
 0xc7a   :  { %v15654_v10 = vpop.eup %15653 }
 0xc7b   :  { %15657 = vrcp.f32 %v8662_v47  ;;  %v8668_v43 = vadd.f32 1.0, %v15654_v10  ;;  %v15656_v24 = vpop.eup %15655  ;;  %v14957_v47 = vld [vmem:[%s20674_s2] ss:$16 sps:$4 sm:$0xff]   ;;  %v14960_v10 = vld [vmem:[%s20674_s2 + $0x8] ss:$16 sps:$4 sm:$0xff]  }
 0xc7c   :  { %15659 = vtanh.f32 %v8657_v9  ;;  %v8675_v48 = vadd.f32 1.0, %v15656_v24  ;;  %v14962_v9 = vld [vmem:[%s20674_s2 + $0xc] ss:$16 sps:$4 sm:$0xff]  }
 0xc7d   :  { %15661 = vrcp.f32 %v8668_v43  ;;  %v14965_v43 = vld [vmem:[%s20676_s4 + $0xe4] ss:$16 sps:$4 sm:$0xff]   ;;  %v14968_v24 = vld [vmem:[%s20676_s4 + $0xec] ss:$16 sps:$4 sm:$0xff]  }
 0xc7e   :  { %15663 = vrcp.f32 %v8675_v48 }
 0xc88   :  { %v15658_v27 = vpop.eup %15657 }
 0xc89   :  { %v15660_v33 = vpop.eup %15659 }
 0xc8a   :  { %v15662_v14 = vpop.eup %15661  ;;  %v8679_v46 = vmul.f32 %v15660_v33, %v15658_v27  ;;  %v19592_v27 = vsel %vm7518_vm2, %v19341_v20, %v18986_v3  ;;  %v14963_v33 = vld [vmem:[%s20676_s4 + $0xe0] ss:$16 sps:$4 sm:$0xff]   ;;  %v14971_v3 = vld [vmem:[%s20676_s4 + $0xc4] ss:$16 sps:$4 sm:$0xff]   ;;  %v14974_v20 = vld [vmem:[%s20676_s4 + $0xcc] ss:$16 sps:$4 sm:$0xff]  }
 0xc8b   :  { %v8678_v62 = vmul.f32 %v15662_v14, %v18874_v56  ;;  %v15664_v32 = vpop.eup %15663  ;;  %v14966_v14 = vld [vmem:[%s20676_s4 + $0xe8] ss:$16 sps:$4 sm:$0xff]   ;;  %v9002_v48 = vpack.c.bf16 %v19592_v27, %v19592_v27 }
 0xc8d   :  { %v8680_v13 = vadd.f32 %v8679_v46, %v8678_v62  ;;  %v14969_v46 = vld [vmem:[%s20676_s4 + $0xc0] ss:$16 sps:$4 sm:$0xff]   ;;  %v14972_v62 = vld [vmem:[%s20676_s4 + $0xc8] ss:$16 sps:$4 sm:$0xff]  }
 0xc8f   :  { %15665 = vtanh.f32 %v8680_v13  ;;  %v19480_v18 = vsel %vm7518_vm2, %v8680_v13, %v18874_v56  ;;  %v14923_v56 = vld [vmem:[%s20674_s2 + $0xc4] ss:$16 sps:$4 sm:$0xff]  }
 0xc90   :  { %v14977_v13 = vld [vmem:[%s20676_s4 + $0xa4] ss:$16 sps:$4 sm:$0xff]  }
 0xc9c   :  { %v15666_v23 = vpop.eup %15665 }
 0xc9d   :  { %v19482_v58 = vmul.f32 %v15666_v23, %v15664_v32  ;;  %v14980_v32 = vld [vmem:[%s20676_s4 + $0xac] ss:$16 sps:$4 sm:$0xff]   ;;  %v14975_v23 = vld [vmem:[%s20676_s4 + $0xa0] ss:$16 sps:$4 sm:$0xff]  }
 0xc9f   :  { %v13072_v38 = vpack.c.bf16 %v19482_v58, %v19482_v58 }
 0xca1   :  { %13073 = vmatmul.mubr.msk.bf16.vlgmr.msra.gmra.mxu0 %vm19348_vm3, %v13072_v38  ;;  %13076 = vmatmul.mubr.msk.bf16.vlgmr.msra.gmra.mxu1 %vm19348_vm3, %v13072_v38  ;;  %v14986_v38 = vld [vmem:[%s20676_s4 + $0x8c] ss:$16 sps:$4 sm:$0xff]  }
 0xca2   :  { %9196 = vmatpush1.bf16.msra.mxu0 %v14915_v30  ;;  %9237 = vmatpush1.bf16.msra.mxu1 %v14918_v17  ;;  %v14978_v30 = vld [vmem:[%s20676_s4 + $0xa8] ss:$16 sps:$4 sm:$0xff]   ;;  %v14983_v17 = vld [vmem:[%s20676_s4 + $0x84] ss:$16 sps:$4 sm:$0xff]  }
 0xca3   :  { %9197 = vmatprep.subr.bf16.mxu0 %v14923_v56  ;;  %9238 = vmatprep.subr.bf16.mxu1 %v14926_v16  ;;  %v14981_v56 = vld [vmem:[%s20676_s4 + $0x80] ss:$16 sps:$4 sm:$0xff]   ;;  %v14984_v16 = vld [vmem:[%s20676_s4 + $0x88] ss:$16 sps:$4 sm:$0xff]  }
 0xca4   :  { %9227 = vmatprep.mubr.bf16.mxu0 %v15780_v1  ;;  %9268 = vmatprep.mubr.bf16.mxu1 %v15780_v1 }
 0xca6   :  { %9198 = vmatpush1.bf16.msra.mxu0 %v14921_v25  ;;  %9239 = vmatpush1.bf16.msra.mxu1 %v14924_v29  ;;  %v14989_v25 = vld [vmem:[%s20676_s4 + $0x64] ss:$16 sps:$4 sm:$0xff]   ;;  %v14992_v29 = vld [vmem:[%s20676_s4 + $0x6c] ss:$16 sps:$4 sm:$0xff]  }
 0xca7   :  { %9199 = vmatprep.subr.bf16.mxu0 %v14929_v34  ;;  %9240 = vmatprep.subr.bf16.mxu1 %v14932_v31  ;;  %v14987_v34 = vld [vmem:[%s20676_s4 + $0x60] ss:$16 sps:$4 sm:$0xff]   ;;  %v14990_v31 = vld [vmem:[%s20676_s4 + $0x68] ss:$16 sps:$4 sm:$0xff]  }
 0xcaa   :  { %9200 = vmatpush1.bf16.msra.mxu0 %v14927_v6  ;;  %9241 = vmatpush1.bf16.msra.mxu1 %v14930_v26  ;;  %v14995_v6 = vld [vmem:[%s20676_s4 + $0x44] ss:$16 sps:$4 sm:$0xff]   ;;  %v14998_v26 = vld [vmem:[%s20676_s4 + $0x4c] ss:$16 sps:$4 sm:$0xff]  }
 0xcab   :  { %9201 = vmatprep.subr.bf16.mxu0 %v14935_v0  ;;  %9242 = vmatprep.subr.bf16.mxu1 %v14938_v19  ;;  %v14993_v0 = vld [vmem:[%s20676_s4 + $0x40] ss:$16 sps:$4 sm:$0xff]   ;;  %v14996_v19 = vld [vmem:[%s20676_s4 + $0x48] ss:$16 sps:$4 sm:$0xff]  }
 0xcae   :  { %9202 = vmatpush1.bf16.msra.mxu0 %v14933_v57  ;;  %9243 = vmatpush1.bf16.msra.mxu1 %v14936_v63  ;;  %v15001_v57 = vld [vmem:[%s20676_s4 + $0x24] ss:$16 sps:$4 sm:$0xff]   ;;  %v15004_v63 = vld [vmem:[%s20676_s4 + $0x2c] ss:$16 sps:$4 sm:$0xff]  }
 0xcaf   :  { %9203 = vmatprep.subr.bf16.mxu0 %v14941_v44  ;;  %9244 = vmatprep.subr.bf16.mxu1 %v14944_v2  ;;  %v14999_v44 = vld [vmem:[%s20676_s4 + $0x20] ss:$16 sps:$4 sm:$0xff]   ;;  %v15002_v2 = vld [vmem:[%s20676_s4 + $0x28] ss:$16 sps:$4 sm:$0xff]  }
 0xcb2   :  { %9204 = vmatpush1.bf16.msra.mxu0 %v14939_v15  ;;  %9245 = vmatpush1.bf16.msra.mxu1 %v14942_v8  ;;  %v15007_v15 = vld [vmem:[%s20676_s4 + $0x4] ss:$16 sps:$4 sm:$0xff]   ;;  %v15010_v8 = vld [vmem:[%s20676_s4 + $0xc] ss:$16 sps:$4 sm:$0xff]  }
 0xcb3   :  { %9205 = vmatprep.subr.bf16.mxu0 %v14947_v5  ;;  %9246 = vmatprep.subr.bf16.mxu1 %v14950_v60  ;;  %v15005_v5 = vld [vmem:[%s20676_s4] ss:$16 sps:$4 sm:$0xff]   ;;  %v15008_v60 = vld [vmem:[%s20676_s4 + $0x8] ss:$16 sps:$4 sm:$0xff]  }
 0xcb6   :  { %9206 = vmatpush1.bf16.msra.mxu0 %v14945_v12  ;;  %9247 = vmatpush1.bf16.msra.mxu1 %v14948_v37  ;;  %v19692_v12 = vsel %vm7518_vm2, %v19482_v58, %v19086_v36  ;;  %v15016_v36 = vld [vmem:[%s20677_s6 + $0xec] ss:$16 sps:$4 sm:$0xff]   ;;  %v15011_v58 = vld [vmem:[%s20677_s6 + $0xe0] ss:$16 sps:$4 sm:$0xff]  }
 0xcb7   :  { %9207 = vmatprep.subr.bf16.mxu0 %v14953_v21  ;;  %9248 = vmatprep.subr.bf16.mxu1 %v14956_v49  ;;  %v9277_v37 = vpack.c.bf16 %v19692_v12, %v19692_v12  ;;  %v15013_v21 = vld [vmem:[%s20677_s6 + $0xe4] ss:$16 sps:$4 sm:$0xff]   ;;  %v15014_v49 = vld [vmem:[%s20677_s6 + $0xe8] ss:$16 sps:$4 sm:$0xff]  }
 0xcba   :  { %9208 = vmatpush1.bf16.msra.mxu0 %v14951_v53  ;;  %9249 = vmatpush1.bf16.msra.mxu1 %v14954_v28  ;;  %v15019_v53 = vld [vmem:[%s20677_s6 + $0xc4] ss:$16 sps:$4 sm:$0xff]   ;;  %v15022_v28 = vld [vmem:[%s20677_s6 + $0xcc] ss:$16 sps:$4 sm:$0xff]  }
 0xcbb   :  { %9209 = vmatprep.subr.bf16.mxu0 %v14959_v61  ;;  %9250 = vmatprep.subr.bf16.mxu1 %v14962_v9  ;;  %v15017_v61 = vld [vmem:[%s20677_s6 + $0xc0] ss:$16 sps:$4 sm:$0xff]   ;;  %v15020_v9 = vld [vmem:[%s20677_s6 + $0xc8] ss:$16 sps:$4 sm:$0xff]  }
 0xcbe   :  { %9210 = vmatpush1.bf16.msra.mxu0 %v14957_v47  ;;  %9251 = vmatpush1.bf16.msra.mxu1 %v14960_v10  ;;  %v15025_v47 = vld [vmem:[%s20677_s6 + $0xa4] ss:$16 sps:$4 sm:$0xff]   ;;  %v15028_v10 = vld [vmem:[%s20677_s6 + $0xac] ss:$16 sps:$4 sm:$0xff]  }
 0xcbf   :  { %9470 = vmatprep.subr.bf16.mxu0 %v14965_v43  ;;  %9511 = vmatprep.subr.bf16.mxu1 %v14968_v24  ;;  %v15023_v43 = vld [vmem:[%s20677_s6 + $0xa0] ss:$16 sps:$4 sm:$0xff]   ;;  %v15026_v24 = vld [vmem:[%s20677_s6 + $0xa8] ss:$16 sps:$4 sm:$0xff]  }
 0xcc1   :  { %9228 = vmatmul.mubr.bf16.vlgmr.msra.gmra.mxu0 %v9002_v48  ;;  %9269 = vmatmul.mubr.bf16.vlgmr.msra.gmra.mxu1 %v9002_v48  ;;  %v15029_v48 = vld [vmem:[%s20677_s6 + $0x80] ss:$16 sps:$4 sm:$0xff]  }
 0xcc2   :  { %9471 = vmatpush1.bf16.msra.mxu0 %v14963_v33  ;;  %9512 = vmatpush1.bf16.msra.mxu1 %v14966_v14  ;;  %v15031_v33 = vld [vmem:[%s20677_s6 + $0x84] ss:$16 sps:$4 sm:$0xff]   ;;  %v15034_v14 = vld [vmem:[%s20677_s6 + $0x8c] ss:$16 sps:$4 sm:$0xff]  }
 0xcc3   :  { %9472 = vmatprep.subr.bf16.mxu0 %v14971_v3  ;;  %9513 = vmatprep.subr.bf16.mxu1 %v14974_v20  ;;  %v15032_v3 = vld [vmem:[%s20677_s6 + $0x88] ss:$16 sps:$4 sm:$0xff]   ;;  %v15037_v20 = vld [vmem:[%s20677_s6 + $0x64] ss:$16 sps:$4 sm:$0xff]  }
 0xcc4   :  { %9502 = vmatprep.mubr.bf16.mxu0 %v15780_v1  ;;  %9543 = vmatprep.mubr.bf16.mxu1 %v15780_v1 }
 0xcc6   :  { %9473 = vmatpush1.bf16.msra.mxu0 %v14969_v46  ;;  %9514 = vmatpush1.bf16.msra.mxu1 %v14972_v62  ;;  %v15040_v46 = vld [vmem:[%s20677_s6 + $0x6c] ss:$16 sps:$4 sm:$0xff]   ;;  %v15035_v62 = vld [vmem:[%s20677_s6 + $0x60] ss:$16 sps:$4 sm:$0xff]  }
 0xcc7   :  { %9474 = vmatprep.subr.bf16.mxu0 %v14977_v13  ;;  %9515 = vmatprep.subr.bf16.mxu1 %v14980_v32  ;;  %v15038_v13 = vld [vmem:[%s20677_s6 + $0x68] ss:$16 sps:$4 sm:$0xff]   ;;  %v15043_v32 = vld [vmem:[%s20677_s6 + $0x44] ss:$16 sps:$4 sm:$0xff]  }
 0xcca   :  { %9475 = vmatpush1.bf16.msra.mxu0 %v14975_v23  ;;  %9516 = vmatpush1.bf16.msra.mxu1 %v14978_v30  ;;  %v15046_v23 = vld [vmem:[%s20677_s6 + $0x4c] ss:$16 sps:$4 sm:$0xff]   ;;  %v15041_v30 = vld [vmem:[%s20677_s6 + $0x40] ss:$16 sps:$4 sm:$0xff]  }
 0xccb   :  { %9476 = vmatprep.subr.bf16.mxu0 %v14983_v17  ;;  %9517 = vmatprep.subr.bf16.mxu1 %v14986_v38  ;;  %v15044_v17 = vld [vmem:[%s20677_s6 + $0x48] ss:$16 sps:$4 sm:$0xff]   ;;  %v15049_v38 = vld [vmem:[%s20677_s6 + $0x24] ss:$16 sps:$4 sm:$0xff]  }
 0xcce   :  { %9477 = vmatpush1.bf16.msra.mxu0 %v14981_v56  ;;  %9518 = vmatpush1.bf16.msra.mxu1 %v14984_v16  ;;  %v15052_v56 = vld [vmem:[%s20677_s6 + $0x2c] ss:$16 sps:$4 sm:$0xff]   ;;  %v15047_v16 = vld [vmem:[%s20677_s6 + $0x20] ss:$16 sps:$4 sm:$0xff]  }
 0xccf   :  { %9478 = vmatprep.subr.bf16.mxu0 %v14989_v25  ;;  %9519 = vmatprep.subr.bf16.mxu1 %v14992_v29  ;;  %v15050_v25 = vld [vmem:[%s20677_s6 + $0x28] ss:$16 sps:$4 sm:$0xff]   ;;  %v15055_v29 = vld [vmem:[%s20677_s6 + $0x4] ss:$16 sps:$4 sm:$0xff]  }
 0xcd2   :  { %9479 = vmatpush1.bf16.msra.mxu0 %v14987_v34  ;;  %9520 = vmatpush1.bf16.msra.mxu1 %v14990_v31  ;;  %v15058_v34 = vld [vmem:[%s20677_s6 + $0xc] ss:$16 sps:$4 sm:$0xff]   ;;  %v15053_v31 = vld [vmem:[%s20677_s6] ss:$16 sps:$4 sm:$0xff]  }
 0xcd3   :  { %9480 = vmatprep.subr.bf16.mxu0 %v14995_v6  ;;  %9521 = vmatprep.subr.bf16.mxu1 %v14998_v26  ;;  %v15056_v6 = vld [vmem:[%s20677_s6 + $0x8] ss:$16 sps:$4 sm:$0xff]   ;;  %v15061_v26 = vld [vmem:[%s20678_s3 + $0xe4] ss:$16 sps:$4 sm:$0xff]  }
 0xcd6   :  { %9481 = vmatpush1.bf16.msra.mxu0 %v14993_v0  ;;  %9522 = vmatpush1.bf16.msra.mxu1 %v14996_v19  ;;  %v15064_v0 = vld [vmem:[%s20678_s3 + $0xec] ss:$16 sps:$4 sm:$0xff]  }
 0xcd7   :  { %9482 = vmatprep.subr.bf16.mxu0 %v15001_v57  ;;  %9523 = vmatprep.subr.bf16.mxu1 %v15004_v63 }
 0xcda   :  { %9483 = vmatpush1.bf16.msra.mxu0 %v14999_v44  ;;  %9524 = vmatpush1.bf16.msra.mxu1 %v15002_v2 }
 0xcdb   :  { %9484 = vmatprep.subr.bf16.mxu0 %v15007_v15  ;;  %9525 = vmatprep.subr.bf16.mxu1 %v15010_v8 }
 0xcde   :  { %9485 = vmatpush1.bf16.msra.mxu0 %v15005_v5  ;;  %9526 = vmatpush1.bf16.msra.mxu1 %v15008_v60 }
 0xcdf   :  { %9745 = vmatprep.subr.bf16.mxu0 %v15013_v21  ;;  %9786 = vmatprep.subr.bf16.mxu1 %v15016_v36 }
 0xce1   :  { %9503 = vmatmul.mubr.bf16.vlgmr.msra.gmra.mxu0 %v9277_v37  ;;  %9544 = vmatmul.mubr.bf16.vlgmr.msra.gmra.mxu1 %v9277_v37 }
 0xce2   :  { %9777 = vmatprep.mubr.bf16.mxu0 %v15780_v1  ;;  %9818 = vmatprep.mubr.bf16.mxu1 %v15780_v1 }
 0xce3   :  { %9746 = vmatpush1.bf16.msra.mxu0 %v15011_v58  ;;  %9787 = vmatpush1.bf16.msra.mxu1 %v15014_v49 }
 0xce4   :  { %9747 = vmatprep.subr.bf16.mxu0 %v15019_v53  ;;  %9788 = vmatprep.subr.bf16.mxu1 %v15022_v28 }
 0xce7   :  { %9748 = vmatpush1.bf16.msra.mxu0 %v15017_v61  ;;  %9789 = vmatpush1.bf16.msra.mxu1 %v15020_v9 }
 0xce8   :  { %9749 = vmatprep.subr.bf16.mxu0 %v15025_v47  ;;  %9790 = vmatprep.subr.bf16.mxu1 %v15028_v10 }
 0xceb   :  { %9750 = vmatpush1.bf16.msra.mxu0 %v15023_v43  ;;  %9791 = vmatpush1.bf16.msra.mxu1 %v15026_v24  ;;  %v13177_v24 = vld [vmem:[%s20679_s1 + $0xc0] sm:$0xff] }
 0xcec   :  { %9751 = vmatprep.subr.bf16.mxu0 %v15031_v33  ;;  %9792 = vmatprep.subr.bf16.mxu1 %v15034_v14 }
 0xcef   :  { %9752 = vmatpush1.bf16.msra.mxu0 %v15029_v48  ;;  %9793 = vmatpush1.bf16.msra.mxu1 %v15032_v3 }
 0xcf0   :  { %9753 = vmatprep.subr.bf16.mxu0 %v15037_v20  ;;  %9794 = vmatprep.subr.bf16.mxu1 %v15040_v46 }
 0xcf3   :  { %9754 = vmatpush1.bf16.msra.mxu0 %v15035_v62  ;;  %9795 = vmatpush1.bf16.msra.mxu1 %v15038_v13 }
 0xcf4   :  { %9755 = vmatprep.subr.bf16.mxu0 %v15043_v32  ;;  %9796 = vmatprep.subr.bf16.mxu1 %v15046_v23 }
 0xcf7   :  { %9756 = vmatpush1.bf16.msra.mxu0 %v15041_v30  ;;  %9797 = vmatpush1.bf16.msra.mxu1 %v15044_v17 }
 0xcf8   :  { %9757 = vmatprep.subr.bf16.mxu0 %v15049_v38  ;;  %9798 = vmatprep.subr.bf16.mxu1 %v15052_v56 }
 0xcfb   :  { %9758 = vmatpush1.bf16.msra.mxu0 %v15047_v16  ;;  %9799 = vmatpush1.bf16.msra.mxu1 %v15050_v25 }
 0xcfc   :  { %9759 = vmatprep.subr.bf16.mxu0 %v15055_v29  ;;  %9800 = vmatprep.subr.bf16.mxu1 %v15058_v34 }
 0xcff   :  { %9760 = vmatpush1.bf16.msra.mxu0 %v15053_v31  ;;  %9801 = vmatpush1.bf16.msra.mxu1 %v15056_v6  ;;  %v13180_v6 = vld [vmem:[%s20679_s1 + $0xd8] sm:$0xff] }
 0xd00   :  { %10056 = vmatprep.subr.bf16.mxu0 %v15061_v26  ;;  %10097 = vmatprep.subr.bf16.mxu1 %v15064_v0  ;;  %v13179_v0 = vld [vmem:[%s20679_s1 + $0xd0] sm:$0xff] }
 0xd61   :  { %v8913_v19 = vpop.f32.mrf.mxu0  ;;  %v8954_v57 = vpop.f32.mrf.mxu1 }
 0xd62   :  { %v8914_v63 = vadd.f32 %v8913_v19, %v19460_v22  ;;  %v8955_v28 = vadd.f32 %v8954_v57, %v19462_v50  ;;  %v13178_v50 = vld [vmem:[%s20679_s1 + $0xc8] sm:$0xff] }
 0xd63   :  { %v8915_v44 = vpop.f32.mrf.mxu0  ;;  %v8956_v2 = vpop.f32.mrf.mxu1 }
 0xd64   :  { %v8961_v15 = vadd.f32 %v8914_v63, %v16755_v42  ;;  %v8916_v8 = vadd.f32 %v8915_v44, %v19464_v45  ;;  %v8957_v53 = vadd.f32 %v8956_v2, %v19466_v35  ;;  %v8963_v45 = vadd.f32 %v8955_v28, %v16773_v55 }
 0xd65   :  { %v8917_v5 = vpop.f32.mrf.mxu0  ;;  %v8958_v60 = vpop.f32.mrf.mxu1 }
 0xd66   :  { %v13077_v37 = vmul.f32 -1.442695, %v8961_v15  ;;  %v8962_v21 = vadd.f32 %v8916_v8, %v16760_v51  ;;  %v8964_v22 = vadd.f32 %v8957_v53, %v16767_v54  ;;  %v15067_v53 = vld [vmem:[%s20678_s3 + $0xc4] ss:$16 sps:$4 sm:$0xff]  }
 0xd67   :  { %v8918_v36 = vpop.f32.mrf.mxu0  ;;  %v8959_v58 = vpop.f32.mrf.mxu1 }
 0xd68   :  { %15667 = vpow2.f32 %v13077_v37  ;;  %v13078_v49 = vmul.f32 -1.442695, %v8962_v21  ;;  %v13079_v61 = vmul.f32 -1.442695, %v8964_v22  ;;  %v15062_v21 = vld [vmem:[%s20678_s3 + $0xe8] ss:$16 sps:$4 sm:$0xff]  }
 0xd69   :  { %v15070_v22 = vld [vmem:[%s20678_s3 + $0xcc] ss:$16 sps:$4 sm:$0xff]  }
 0xd6a   :  { %15669 = vpow2.f32 %v13078_v49 }
 0xd6b   :  { %15671 = vpow2.f32 %v13079_v61 }
 0xd75   :  { %v15668_v9 = vpop.eup %15667 }
 0xd76   :  { %v8968_v47 = vadd.f32 1.0, %v15668_v9  ;;  %v15073_v9 = vld [vmem:[%s20678_s3 + $0xa4] ss:$16 sps:$4 sm:$0xff]  }
 0xd77   :  { %v15670_v10 = vpop.eup %15669 }
 0xd78   :  { %15673 = vrcp.f32 %v8968_v47  ;;  %v8974_v43 = vadd.f32 1.0, %v15670_v10  ;;  %v15672_v20 = vpop.eup %15671 }
 0xd79   :  { %15675 = vtanh.f32 %v8963_v45  ;;  %v8981_v56 = vadd.f32 1.0, %v15672_v20  ;;  %v15076_v45 = vld [vmem:[%s20678_s3 + $0xac] ss:$16 sps:$4 sm:$0xff]   ;;  %v15079_v20 = vld [vmem:[%s20678_s3 + $0x84] ss:$16 sps:$4 sm:$0xff]  }
 0xd7a   :  { %15677 = vrcp.f32 %v8974_v43 }
 0xd81   :  { %v9229_v35 = vpop.f32.mrf.mxu0  ;;  %v9270_v33 = vpop.f32.mrf.mxu1 }
 0xd82   :  { %v9832_v14 = vadd.f32 %v13177_v24, %v9229_v35  ;;  %v9834_v57 = vadd.f32 %v13179_v0, %v9270_v33  ;;  %v15071_v33 = vld [vmem:[%s20678_s3 + $0xa0] ss:$16 sps:$4 sm:$0xff]   ;;  %v15091_v0 = vld [vmem:[%s20678_s3 + $0x44] ss:$16 sps:$4 sm:$0xff]  }
 0xd83   :  { %v9231_v48 = vpop.f32.mrf.mxu0  ;;  %v9272_v3 = vpop.f32.mrf.mxu1 }
 0xd84   :  { %v13181_v46 = vmul.f32 -1.442695, %v9832_v14  ;;  %v9833_v62 = vadd.f32 %v13178_v50, %v9231_v48  ;;  %v9835_v19 = vadd.f32 %v13180_v6, %v9272_v3  ;;  %v15074_v50 = vld [vmem:[%s20678_s3 + $0xa8] ss:$16 sps:$4 sm:$0xff]  }
 0xd85   :  { %v15674_v13 = vpop.eup %15673  ;;  %v9233_v32 = vpop.f32.mrf.mxu0  ;;  %v15086_v6 = vld [vmem:[%s20678_s3 + $0x68] ss:$16 sps:$4 sm:$0xff]  }
 0xd86   :  { %v9274_v23 = vpop.f32.mrf.mxu1  ;;  %v15676_v30 = vpop.eup %15675  ;;  %15679 = vpow2.f32 %v13181_v46  ;;  %v13182_v17 = vmul.f32 -1.442695, %v9833_v62  ;;  %v13183_v44 = vmul.f32 -1.442695, %v9835_v19  ;;  %v15082_v46 = vld [vmem:[%s20678_s3 + $0x8c] ss:$16 sps:$4 sm:$0xff]  }
 0xd87   :  { %v15678_v38 = vpop.eup %15677  ;;  %v9234_v16 = vpop.f32.mrf.mxu0  ;;  %v8985_v29 = vmul.f32 %v15676_v30, %v15674_v13  ;;  %v15089_v19 = vld [vmem:[%s20678_s3 + $0x40] ss:$16 sps:$4 sm:$0xff]  }
 0xd88   :  { %v9275_v25 = vpop.f32.mrf.mxu1  ;;  %v8984_v34 = vmul.f32 %v15678_v38, %v19215_v59  ;;  %15681 = vpow2.f32 %v13182_v17  ;;  %v19884_v62 = vpop.permute.xlu0 %8999  ;;  %v15080_v16 = vld [vmem:[%s20678_s3 + $0x88] ss:$16 sps:$4 sm:$0xff]  }
 0xd89   :  { %15683 = vrcp.f32 %v8981_v56  ;;  %v15077_v56 = vld [vmem:[%s20678_s3 + $0x80] ss:$16 sps:$4 sm:$0xff]   ;;  %vm9001_vm4 = vcmp.eq.s32.totalorder %v19884_v62, 1  ;;  %v15085_v25 = vld [vmem:[%s20678_s3 + $0x64] ss:$16 sps:$4 sm:$0xff]  }
 0xd8a   :  { %v8986_v31 = vadd.f32 %v8985_v29, %v8984_v34  ;;  %v15088_v29 = vld [vmem:[%s20678_s3 + $0x6c] ss:$16 sps:$4 sm:$0xff]   ;;  %vm19954_vm5 = vmpackc.low %vm9001_vm4, %vm9001_vm4  ;;  %v15308_v62 = vld [vmem:[%s20678_s3 + $0xc8] ss:$16 sps:$4 sm:$0xff]  }
 0xd8c   :  { %15685 = vtanh.f32 %v8986_v31  ;;  %v19821_v26 = vsel %vm7518_vm2, %v8986_v31, %v19215_v59  ;;  %v15059_v59 = vld [vmem:[%s20678_s3 + $0xe0] ss:$16 sps:$4 sm:$0xff]  }
 0xd8d   :  { %15687 = vtanh.f32 %v9834_v57  ;;  %v15083_v31 = vld [vmem:[%s20678_s3 + $0x60] ss:$16 sps:$4 sm:$0xff]   ;;  %v15092_v57 = vld [vmem:[%s20678_s3 + $0x48] ss:$16 sps:$4 sm:$0xff]  }
 0xd93   :  { %v15680_v63 = vpop.eup %15679 }
 0xd94   :  { %v9839_v2 = vadd.f32 1.0, %v15680_v63  ;;  %v15097_v63 = vld [vmem:[%s20678_s3 + $0x24] ss:$16 sps:$4 sm:$0xff]  }
 0xd95   :  { %v15682_v15 = vpop.eup %15681 }
 0xd96   :  { %15689 = vrcp.f32 %v9839_v2  ;;  %v9845_v8 = vadd.f32 1.0, %v15682_v15  ;;  %v15684_v5 = vpop.eup %15683  ;;  %v15095_v2 = vld [vmem:[%s20678_s3 + $0x20] ss:$16 sps:$4 sm:$0xff]   ;;  %v15098_v15 = vld [vmem:[%s20678_s3 + $0x28] ss:$16 sps:$4 sm:$0xff]  }
 0xd97   :  { %15691 = vpow2.f32 %v13183_v44  ;;  %v15100_v44 = vld [vmem:[%s20678_s3 + $0x2c] ss:$16 sps:$4 sm:$0xff]  }
 0xd98   :  { %15693 = vrcp.f32 %v9845_v8  ;;  %v15103_v8 = vld [vmem:[%s20678_s3 + $0x4] ss:$16 sps:$4 sm:$0xff]  }
 0xd99   :  { %v15686_v60 = vpop.eup %15685 }
 0xd9a   :  { %v8988_v37 = vmul.f32 %v15686_v60, %v15684_v5  ;;  %v15688_v47 = vpop.eup %15687  ;;  %v15106_v5 = vld [vmem:[%s20678_s3 + $0xc] ss:$16 sps:$4 sm:$0xff]  }
 0xd9c   :  { %v19835_v36 = vsel %vm7518_vm2, %v8988_v37, %v19229_v39  ;;  %v8991_v58 = vsel %vm7518_vm2, %v8988_v37, 0.0  ;;  %v15065_v39 = vld [vmem:[%s20678_s3 + $0xc0] ss:$16 sps:$4 sm:$0xff]  }
 0xd9d   :  { %13080 = vst [vmem:[%s20683_s9 + $0x28] sm:$0xff] %v8991_v58  ;;  %v9552_v49 = vpack.c.bf16 %v19835_v36, %v19835_v36 }
 0xd9f   :  { %9778 = vmatmul.mubr.bf16.vlgmr.msra.gmra.mxu0 %v9552_v49  ;;  %9819 = vmatmul.mubr.bf16.vlgmr.msra.gmra.mxu1 %v9552_v49 }
 0xda0   :  { %10057 = vmatpush1.bf16.msra.mxu0 %v15059_v59  ;;  %10098 = vmatpush1.bf16.msra.mxu1 %v15062_v21  ;;  %v15101_v59 = vld [vmem:[%s20678_s3] ss:$16 sps:$4 sm:$0xff]   ;;  %v15104_v21 = vld [vmem:[%s20678_s3 + $0x8] ss:$16 sps:$4 sm:$0xff]  }
 0xda1   :  { %v19856_v28 = vpop.f32.mrf.mxu0  ;;  %v19858_v61 = vpop.f32.mrf.mxu1  ;;  %10058 = vmatprep.subr.bf16.mxu0 %v15067_v53  ;;  %10099 = vmatprep.subr.bf16.mxu1 %v15070_v22  ;;  %v15107_v22 = vld [vmem:[%s20680_s5 + $0xe0] ss:$16 sps:$4 sm:$0xff]   ;;  %v15172_v53 = vld [vmem:[%s20674_s2 + $0xac] ss:$16 sps:$4 sm:$0xff]  }
 0xda2   :  { %10088 = vmatprep.mubr.bf16.mxu0 %v15780_v1  ;;  %10129 = vmatprep.mubr.bf16.mxu1 %v15780_v1 }
 0xda3   :  { %v15690_v10 = vpop.eup %15689  ;;  %v19868_v43 = vpop.f32.mrf.mxu0 }
 0xda4   :  { %v19870_v24 = vpop.f32.mrf.mxu1  ;;  %v15692_v35 = vpop.eup %15691  ;;  %10059 = vmatpush1.bf16.msra.mxu0 %v15065_v39  ;;  %10100 = vmatpush1.bf16.msra.mxu1 %v15068_v11  ;;  %v9856_v13 = vmul.f32 %v15690_v10, %v15688_v47  ;;  %v15109_v39 = vld [vmem:[%s20680_s5 + $0xe4] ss:$16 sps:$4 sm:$0xff]   ;;  %v15110_v11 = vld [vmem:[%s20680_s5 + $0xe8] ss:$16 sps:$4 sm:$0xff]   ;;  %v15118_v47 = vld [vmem:[%s20680_s5 + $0xcc] ss:$16 sps:$4 sm:$0xff]  }
 0xda5   :  { %v15694_v14 = vpop.eup %15693  ;;  %v9508_v48 = vpop.f32.mrf.mxu0  ;;  %10060 = vmatprep.subr.bf16.mxu0 %v15073_v9  ;;  %10101 = vmatprep.subr.bf16.mxu1 %v15076_v45  ;;  %v9852_v23 = vadd.f32 1.0, %v15692_v35  ;;  %v15112_v9 = vld [vmem:[%s20680_s5 + $0xec] ss:$16 sps:$4 sm:$0xff]   ;;  %v15115_v45 = vld [vmem:[%s20680_s5 + $0xc4] ss:$16 sps:$4 sm:$0xff]  }
 0xda6   :  { %v9549_v3 = vpop.f32.mrf.mxu1  ;;  %v9855_v32 = vmul.f32 %v15694_v14, %v19297_v52  ;;  %v15113_v10 = vld [vmem:[%s20680_s5 + $0xc0] ss:$16 sps:$4 sm:$0xff]   ;;  %v15116_v35 = vld [vmem:[%s20680_s5 + $0xc8] ss:$16 sps:$4 sm:$0xff]  }
 0xda7   :  { %v9509_v30 = vpop.f32.mrf.mxu0  ;;  %v15119_v14 = vld [vmem:[%s20680_s5 + $0xa0] ss:$16 sps:$4 sm:$0xff]   ;;  %v15122_v48 = vld [vmem:[%s20680_s5 + $0xa8] ss:$16 sps:$4 sm:$0xff]   ;;  %v15127_v3 = vld [vmem:[%s20680_s5 + $0x84] ss:$16 sps:$4 sm:$0xff]  }
 0xda8   :  { %v9550_v17 = vpop.f32.mrf.mxu1  ;;  %v9857_v38 = vadd.f32 %v9856_v13, %v9855_v32  ;;  %10061 = vmatpush1.bf16.msra.mxu0 %v15071_v33  ;;  %10102 = vmatpush1.bf16.msra.mxu1 %v15074_v50  ;;  %v15121_v33 = vld [vmem:[%s20680_s5 + $0xa4] ss:$16 sps:$4 sm:$0xff]   ;;  %v15124_v50 = vld [vmem:[%s20680_s5 + $0xac] ss:$16 sps:$4 sm:$0xff]   ;;  %v15128_v13 = vld [vmem:[%s20680_s5 + $0x88] ss:$16 sps:$4 sm:$0xff]  }
 0xda9   :  { %10062 = vmatprep.subr.bf16.mxu0 %v15079_v20  ;;  %10103 = vmatprep.subr.bf16.mxu1 %v15082_v46  ;;  %v15130_v20 = vld [vmem:[%s20680_s5 + $0x8c] ss:$16 sps:$4 sm:$0xff]   ;;  %v15125_v46 = vld [vmem:[%s20680_s5 + $0x80] ss:$16 sps:$4 sm:$0xff]   ;;  %v15133_v32 = vld [vmem:[%s20680_s5 + $0x64] ss:$16 sps:$4 sm:$0xff]  }
 0xdaa   :  { %15695 = vtanh.f32 %v9857_v38  ;;  %v19903_v34 = vsel %vm9001_vm4, %v9857_v38, %v19297_v52  ;;  %v15094_v52 = vld [vmem:[%s20678_s3 + $0x4c] ss:$16 sps:$4 sm:$0xff]   ;;  %v15131_v30 = vld [vmem:[%s20680_s5 + $0x60] ss:$16 sps:$4 sm:$0xff]   ;;  %v15134_v17 = vld [vmem:[%s20680_s5 + $0x68] ss:$16 sps:$4 sm:$0xff]  }
 0xdab   :  { %15697 = vrcp.f32 %v9852_v23  ;;  %v15136_v23 = vld [vmem:[%s20680_s5 + $0x6c] ss:$16 sps:$4 sm:$0xff]   ;;  %v15139_v38 = vld [vmem:[%s20680_s5 + $0x44] ss:$16 sps:$4 sm:$0xff]  }
 0xdac   :  { %10063 = vmatpush1.bf16.msra.mxu0 %v15077_v56  ;;  %10104 = vmatpush1.bf16.msra.mxu1 %v15080_v16  ;;  %v15142_v56 = vld [vmem:[%s20680_s5 + $0x4c] ss:$16 sps:$4 sm:$0xff]   ;;  %v15137_v16 = vld [vmem:[%s20680_s5 + $0x40] ss:$16 sps:$4 sm:$0xff]  }
 0xdad   :  { %10064 = vmatprep.subr.bf16.mxu0 %v15085_v25  ;;  %10105 = vmatprep.subr.bf16.mxu1 %v15088_v29  ;;  %v15140_v25 = vld [vmem:[%s20680_s5 + $0x48] ss:$16 sps:$4 sm:$0xff]   ;;  %v15145_v29 = vld [vmem:[%s20680_s5 + $0x24] ss:$16 sps:$4 sm:$0xff]  }
 0xdb0   :  { %10065 = vmatpush1.bf16.msra.mxu0 %v15083_v31  ;;  %10106 = vmatpush1.bf16.msra.mxu1 %v15086_v6  ;;  %v15148_v31 = vld [vmem:[%s20680_s5 + $0x2c] ss:$16 sps:$4 sm:$0xff]   ;;  %v15143_v6 = vld [vmem:[%s20680_s5 + $0x20] ss:$16 sps:$4 sm:$0xff]  }
 0xdb1   :  { %10066 = vmatprep.subr.bf16.mxu0 %v15091_v0  ;;  %10107 = vmatprep.subr.bf16.mxu1 %v15094_v52  ;;  %v15146_v0 = vld [vmem:[%s20680_s5 + $0x28] ss:$16 sps:$4 sm:$0xff]   ;;  %v15151_v52 = vld [vmem:[%s20680_s5 + $0x4] ss:$16 sps:$4 sm:$0xff]  }
 0xdb4   :  { %10067 = vmatpush1.bf16.msra.mxu0 %v15089_v19  ;;  %10108 = vmatpush1.bf16.msra.mxu1 %v15092_v57  ;;  %v15154_v19 = vld [vmem:[%s20680_s5 + $0xc] ss:$16 sps:$4 sm:$0xff]   ;;  %v15149_v57 = vld [vmem:[%s20680_s5] ss:$16 sps:$4 sm:$0xff]  }
 0xdb5   :  { %10068 = vmatprep.subr.bf16.mxu0 %v15097_v63  ;;  %10109 = vmatprep.subr.bf16.mxu1 %v15100_v44  ;;  %v15152_v63 = vld [vmem:[%s20680_s5 + $0x8] ss:$16 sps:$4 sm:$0xff]   ;;  %v15157_v44 = vld [vmem:[%s20674_s2 + $0xe4] ss:$16 sps:$4 sm:$0xff]  }
 0xdb7   :  { %v15696_v60 = vpop.eup %15695 }
 0xdb8   :  { %v15698_v37 = vpop.eup %15697  ;;  %10069 = vmatpush1.bf16.msra.mxu0 %v15095_v2  ;;  %10110 = vmatpush1.bf16.msra.mxu1 %v15098_v15  ;;  %v15160_v2 = vld [vmem:[%s20674_s2 + $0xec] ss:$16 sps:$4 sm:$0xff]  }
 0xdb9   :  { %10070 = vmatprep.subr.bf16.mxu0 %v15103_v8  ;;  %10111 = vmatprep.subr.bf16.mxu1 %v15106_v5  ;;  %v19947_v58 = vmul.f32 %v15698_v37, %v15696_v60 }
 0xdbb   :  { %v13217_v49 = vpack.c.bf16 %v19947_v58, %v19947_v58 }
 0xdbc   :  { %10071 = vmatpush1.bf16.msra.mxu0 %v15101_v59  ;;  %10112 = vmatpush1.bf16.msra.mxu1 %v15104_v21 }
 0xdbd   :  { %10362 = vmatprep.subr.bf16.mxu0 %v15109_v39  ;;  %10403 = vmatprep.subr.bf16.mxu1 %v15112_v9 }
 0xdbf   :  { %13218 = vmatmul.mubr.msk.bf16.vlgmr.msra.gmra.mxu0 %vm19954_vm5, %v13217_v49  ;;  %13221 = vmatmul.mubr.msk.bf16.vlgmr.msra.gmra.mxu1 %vm19954_vm5, %v13217_v49 }
 0xdc0   :  { %10394 = vmatprep.mubr.bf16.mxu0 %v15780_v1  ;;  %10435 = vmatprep.mubr.bf16.mxu1 %v15780_v1 }
 0xdc1   :  { %10363 = vmatpush1.bf16.msra.mxu0 %v15107_v22  ;;  %10404 = vmatpush1.bf16.msra.mxu1 %v15110_v11 }
 0xdc2   :  { %10364 = vmatprep.subr.bf16.mxu0 %v15115_v45  ;;  %10405 = vmatprep.subr.bf16.mxu1 %v15118_v47 }
 0xdc5   :  { %10365 = vmatpush1.bf16.msra.mxu0 %v15113_v10  ;;  %10406 = vmatpush1.bf16.msra.mxu1 %v15116_v35 }
 0xdc6   :  { %10366 = vmatprep.subr.bf16.mxu0 %v15121_v33  ;;  %10407 = vmatprep.subr.bf16.mxu1 %v15124_v50 }
 0xdc9   :  { %10367 = vmatpush1.bf16.msra.mxu0 %v15119_v14  ;;  %10408 = vmatpush1.bf16.msra.mxu1 %v15122_v48 }
 0xdca   :  { %10368 = vmatprep.subr.bf16.mxu0 %v15127_v3  ;;  %10409 = vmatprep.subr.bf16.mxu1 %v15130_v20 }
 0xdcd   :  { %10369 = vmatpush1.bf16.msra.mxu0 %v15125_v46  ;;  %10410 = vmatpush1.bf16.msra.mxu1 %v15128_v13 }
 0xdce   :  { %10370 = vmatprep.subr.bf16.mxu0 %v15133_v32  ;;  %10411 = vmatprep.subr.bf16.mxu1 %v15136_v23 }
 0xdd1   :  { %10371 = vmatpush1.bf16.msra.mxu0 %v15131_v30  ;;  %10412 = vmatpush1.bf16.msra.mxu1 %v15134_v17 }
 0xdd2   :  { %10372 = vmatprep.subr.bf16.mxu0 %v15139_v38  ;;  %10413 = vmatprep.subr.bf16.mxu1 %v15142_v56 }
 0xdd5   :  { %10373 = vmatpush1.bf16.msra.mxu0 %v15137_v16  ;;  %10414 = vmatpush1.bf16.msra.mxu1 %v15140_v25 }
 0xdd6   :  { %10374 = vmatprep.subr.bf16.mxu0 %v15145_v29  ;;  %10415 = vmatprep.subr.bf16.mxu1 %v15148_v31 }
 0xdd9   :  { %10375 = vmatpush1.bf16.msra.mxu0 %v15143_v6  ;;  %10416 = vmatpush1.bf16.msra.mxu1 %v15146_v0 }
 0xdda   :  { %10376 = vmatprep.subr.bf16.mxu0 %v15151_v52  ;;  %10417 = vmatprep.subr.bf16.mxu1 %v15154_v19 }
 0xddd   :  { %10377 = vmatpush1.bf16.msra.mxu0 %v15149_v57  ;;  %10418 = vmatpush1.bf16.msra.mxu1 %v15152_v63  ;;  %v15155_v63 = vld [vmem:[%s20674_s2 + $0xe0] ss:$16 sps:$4 sm:$0xff]  }
 0xdde   :  { %10678 = vmatprep.subr.bf16.mxu0 %v15157_v44  ;;  %10719 = vmatprep.subr.bf16.mxu1 %v15160_v2  ;;  %v15158_v44 = vld [vmem:[%s20674_s2 + $0xe8] ss:$16 sps:$4 sm:$0xff]  }
 0xe5f   :  { %v20066_v15 = vpop.f32.mrf.mxu0  ;;  %v20068_v8 = vpop.f32.mrf.mxu1 }
 0xe61   :  { %v20070_v5 = vpop.f32.mrf.mxu0  ;;  %v20072_v60 = vpop.f32.mrf.mxu1 }
 0xe63   :  { %v9783_v37 = vpop.f32.mrf.mxu0  ;;  %v9824_v59 = vpop.f32.mrf.mxu1 }
 0xe64   :  { %v15166_v37 = vld [vmem:[%s20674_s2 + $0xcc] ss:$16 sps:$4 sm:$0xff]   ;;  %v15161_v59 = vld [vmem:[%s20674_s2 + $0xc0] ss:$16 sps:$4 sm:$0xff]  }
 0xe65   :  { %v9784_v21 = vpop.f32.mrf.mxu0  ;;  %v9825_v49 = vpop.f32.mrf.mxu1 }
 0xe66   :  { %v15164_v21 = vld [vmem:[%s20674_s2 + $0xc8] ss:$16 sps:$4 sm:$0xff]   ;;  %v15169_v49 = vld [vmem:[%s20674_s2 + $0xa4] ss:$16 sps:$4 sm:$0xff]  }
 0xe7f   :  { %v10090_v22 = vpop.f32.mrf.mxu0  ;;  %v10131_v39 = vpop.f32.mrf.mxu1 }
 0xe80   :  { %v10091_v11 = vadd.f32 %v10090_v22, %v19856_v28  ;;  %v10132_v13 = vadd.f32 %v10131_v39, %v19858_v61  ;;  %v15167_v22 = vld [vmem:[%s20674_s2 + $0xa0] ss:$16 sps:$4 sm:$0xff]   ;;  %v15170_v39 = vld [vmem:[%s20674_s2 + $0xa8] ss:$16 sps:$4 sm:$0xff]  }
 0xe81   :  { %v10092_v9 = vpop.f32.mrf.mxu0  ;;  %v10133_v45 = vpop.f32.mrf.mxu1 }
 0xe82   :  { %v10138_v47 = vadd.f32 %v10091_v11, %v16405_v40  ;;  %v10093_v10 = vadd.f32 %v10092_v9, %v19868_v43  ;;  %v10134_v46 = vadd.f32 %v10133_v45, %v19870_v24  ;;  %v10140_v43 = vadd.f32 %v10132_v13, %v16425_v7  ;;  %v15175_v11 = vld [vmem:[%s20674_s2 + $0x84] ss:$16 sps:$4 sm:$0xff]   ;;  %v15178_v9 = vld [vmem:[%s20674_s2 + $0x8c] ss:$16 sps:$4 sm:$0xff]   ;;  %v15173_v45 = vld [vmem:[%s20674_s2 + $0x80] ss:$16 sps:$4 sm:$0xff]  }
 0xe83   :  { %v10094_v35 = vpop.f32.mrf.mxu0  ;;  %v10135_v33 = vpop.f32.mrf.mxu1  ;;  %v15191_v13 = vld [vmem:[%s20674_s2 + $0x20] ss:$16 sps:$4 sm:$0xff]  }
 0xe84   :  { %v13222_v50 = vmul.f32 -1.442695, %v10138_v47  ;;  %v10139_v14 = vadd.f32 %v10093_v10, %v16410_v41  ;;  %v10141_v28 = vadd.f32 %v10134_v46, %v16418_v4  ;;  %v15176_v47 = vld [vmem:[%s20674_s2 + $0x88] ss:$16 sps:$4 sm:$0xff]   ;;  %v15181_v10 = vld [vmem:[%s20674_s2 + $0x64] ss:$16 sps:$4 sm:$0xff]  }
 0xe85   :  { %v10095_v48 = vpop.f32.mrf.mxu0  ;;  %v10136_v3 = vpop.f32.mrf.mxu1  ;;  %v15184_v35 = vld [vmem:[%s20674_s2 + $0x6c] ss:$16 sps:$4 sm:$0xff]   ;;  %v15179_v33 = vld [vmem:[%s20674_s2 + $0x60] ss:$16 sps:$4 sm:$0xff]   ;;  %v15193_v46 = vld [vmem:[%s20674_s2 + $0x24] ss:$16 sps:$4 sm:$0xff]  }
 0xe86   :  { %15699 = vpow2.f32 %v13222_v50  ;;  %v13223_v20 = vmul.f32 -1.442695, %v10139_v14  ;;  %v13224_v32 = vmul.f32 -1.442695, %v10141_v28  ;;  %v15182_v50 = vld [vmem:[%s20674_s2 + $0x68] ss:$16 sps:$4 sm:$0xff]  }
 0xe87   :  { %v15187_v14 = vld [vmem:[%s20674_s2 + $0x44] ss:$16 sps:$4 sm:$0xff]   ;;  %v15190_v48 = vld [vmem:[%s20674_s2 + $0x4c] ss:$16 sps:$4 sm:$0xff]   ;;  %v15185_v3 = vld [vmem:[%s20674_s2 + $0x40] ss:$16 sps:$4 sm:$0xff]  }
 0xe88   :  { %15701 = vpow2.f32 %v13223_v20  ;;  %v15188_v20 = vld [vmem:[%s20674_s2 + $0x48] ss:$16 sps:$4 sm:$0xff]   ;;  %v15196_v28 = vld [vmem:[%s20674_s2 + $0x2c] ss:$16 sps:$4 sm:$0xff]  }
 0xe89   :  { %15703 = vpow2.f32 %v13224_v32  ;;  %v15194_v32 = vld [vmem:[%s20674_s2 + $0x28] ss:$16 sps:$4 sm:$0xff]  }
 0xe93   :  { %v15700_v23 = vpop.eup %15699 }
 0xe94   :  { %v10145_v30 = vadd.f32 1.0, %v15700_v23  ;;  %v15199_v23 = vld [vmem:[%s20674_s2 + $0x4] ss:$16 sps:$4 sm:$0xff]  }
 0xe95   :  { %v15702_v17 = vpop.eup %15701 }
 0xe96   :  { %15705 = vrcp.f32 %v10145_v30  ;;  %v10151_v38 = vadd.f32 1.0, %v15702_v17  ;;  %v15704_v56 = vpop.eup %15703  ;;  %v15197_v30 = vld [vmem:[%s20674_s2] ss:$16 sps:$4 sm:$0xff]   ;;  %v15200_v17 = vld [vmem:[%s20674_s2 + $0x8] ss:$16 sps:$4 sm:$0xff]  }
 0xe97   :  { %15707 = vtanh.f32 %v10140_v43  ;;  %v10158_v24 = vadd.f32 1.0, %v15704_v56  ;;  %v15202_v43 = vld [vmem:[%s20674_s2 + $0xc] ss:$16 sps:$4 sm:$0xff]  }
 0xe98   :  { %15709 = vrcp.f32 %v10151_v38  ;;  %v15205_v38 = vld [vmem:[%s20676_s4 + $0xe4] ss:$16 sps:$4 sm:$0xff]   ;;  %v15208_v56 = vld [vmem:[%s20676_s4 + $0xec] ss:$16 sps:$4 sm:$0xff]  }
 0xe99   :  { %15711 = vrcp.f32 %v10158_v24 }
 0xea3   :  { %v15706_v16 = vpop.eup %15705 }
 0xea4   :  { %v15708_v25 = vpop.eup %15707 }
 0xea5   :  { %v15710_v29 = vpop.eup %15709  ;;  %v10162_v31 = vmul.f32 %v15708_v25, %v15706_v16  ;;  %v9860_v16 = vsel %vm9001_vm4, %v19947_v58, %v19592_v27  ;;  %v15203_v25 = vld [vmem:[%s20676_s4 + $0xe0] ss:$16 sps:$4 sm:$0xff]   ;;  %v15214_v27 = vld [vmem:[%s20676_s4 + $0xcc] ss:$16 sps:$4 sm:$0xff]  }
 0xea6   :  { %v10161_v6 = vmul.f32 %v15710_v29, %v19480_v18  ;;  %v15712_v52 = vpop.eup %15711  ;;  %v15206_v29 = vld [vmem:[%s20676_s4 + $0xe8] ss:$16 sps:$4 sm:$0xff]   ;;  %v10485_v24 = vpack.c.bf16 %v9860_v16, %v9860_v16  ;;  %v15209_v58 = vld [vmem:[%s20676_s4 + $0xc0] ss:$16 sps:$4 sm:$0xff]   ;;  %v15271_v16 = vld [vmem:[%s20677_s6 + $0x84] ss:$16 sps:$4 sm:$0xff]  }
 0xea8   :  { %v10163_v61 = vadd.f32 %v10162_v31, %v10161_v6  ;;  %v15211_v31 = vld [vmem:[%s20676_s4 + $0xc4] ss:$16 sps:$4 sm:$0xff]   ;;  %v15212_v6 = vld [vmem:[%s20676_s4 + $0xc8] ss:$16 sps:$4 sm:$0xff]  }
 0xeaa   :  { %15713 = vtanh.f32 %v10163_v61  ;;  %v20086_v0 = vsel %vm9001_vm4, %v10163_v61, %v19480_v18  ;;  %v15163_v18 = vld [vmem:[%s20674_s2 + $0xc4] ss:$16 sps:$4 sm:$0xff]  }
 0xeab   :  { %v15217_v61 = vld [vmem:[%s20676_s4 + $0xa4] ss:$16 sps:$4 sm:$0xff]  }
 0xeb7   :  { %v15714_v19 = vpop.eup %15713 }
 0xeb8   :  { %v20088_v57 = vmul.f32 %v15714_v19, %v15712_v52  ;;  %v15220_v52 = vld [vmem:[%s20676_s4 + $0xac] ss:$16 sps:$4 sm:$0xff]   ;;  %v15215_v19 = vld [vmem:[%s20676_s4 + $0xa0] ss:$16 sps:$4 sm:$0xff]  }
 0xeba   :  { %v13258_v2 = vpack.c.bf16 %v20088_v57, %v20088_v57 }
 0xebc   :  { %13259 = vmatmul.mubr.msk.bf16.vlgmr.msra.gmra.mxu0 %vm19954_vm5, %v13258_v2  ;;  %13262 = vmatmul.mubr.msk.bf16.vlgmr.msra.gmra.mxu1 %vm19954_vm5, %v13258_v2  ;;  %v15226_v2 = vld [vmem:[%s20676_s4 + $0x8c] ss:$16 sps:$4 sm:$0xff]  }
 0xebd   :  { %10679 = vmatpush1.bf16.msra.mxu0 %v15155_v63  ;;  %10720 = vmatpush1.bf16.msra.mxu1 %v15158_v44  ;;  %v15218_v63 = vld [vmem:[%s20676_s4 + $0xa8] ss:$16 sps:$4 sm:$0xff]   ;;  %v15223_v44 = vld [vmem:[%s20676_s4 + $0x84] ss:$16 sps:$4 sm:$0xff]  }
 0xebe   :  { %10680 = vmatprep.subr.bf16.mxu0 %v15163_v18  ;;  %10721 = vmatprep.subr.bf16.mxu1 %v15166_v37  ;;  %v15221_v18 = vld [vmem:[%s20676_s4 + $0x80] ss:$16 sps:$4 sm:$0xff]   ;;  %v15224_v37 = vld [vmem:[%s20676_s4 + $0x88] ss:$16 sps:$4 sm:$0xff]  }
 0xebf   :  { %10710 = vmatprep.mubr.bf16.mxu0 %v15780_v1  ;;  %10751 = vmatprep.mubr.bf16.mxu1 %v15780_v1 }
 0xec1   :  { %10681 = vmatpush1.bf16.msra.mxu0 %v15161_v59  ;;  %10722 = vmatpush1.bf16.msra.mxu1 %v15164_v21  ;;  %v15229_v59 = vld [vmem:[%s20676_s4 + $0x64] ss:$16 sps:$4 sm:$0xff]   ;;  %v15232_v21 = vld [vmem:[%s20676_s4 + $0x6c] ss:$16 sps:$4 sm:$0xff]  }
 0xec2   :  { %10682 = vmatprep.subr.bf16.mxu0 %v15169_v49  ;;  %10723 = vmatprep.subr.bf16.mxu1 %v15172_v53  ;;  %v15227_v49 = vld [vmem:[%s20676_s4 + $0x60] ss:$16 sps:$4 sm:$0xff]   ;;  %v15230_v53 = vld [vmem:[%s20676_s4 + $0x68] ss:$16 sps:$4 sm:$0xff]  }
 0xec5   :  { %10683 = vmatpush1.bf16.msra.mxu0 %v15167_v22  ;;  %10724 = vmatpush1.bf16.msra.mxu1 %v15170_v39  ;;  %v15235_v22 = vld [vmem:[%s20676_s4 + $0x44] ss:$16 sps:$4 sm:$0xff]   ;;  %v15238_v39 = vld [vmem:[%s20676_s4 + $0x4c] ss:$16 sps:$4 sm:$0xff]  }
 0xec6   :  { %10684 = vmatprep.subr.bf16.mxu0 %v15175_v11  ;;  %10725 = vmatprep.subr.bf16.mxu1 %v15178_v9  ;;  %v15233_v11 = vld [vmem:[%s20676_s4 + $0x40] ss:$16 sps:$4 sm:$0xff]   ;;  %v15236_v9 = vld [vmem:[%s20676_s4 + $0x48] ss:$16 sps:$4 sm:$0xff]  }
 0xec9   :  { %10685 = vmatpush1.bf16.msra.mxu0 %v15173_v45  ;;  %10726 = vmatpush1.bf16.msra.mxu1 %v15176_v47  ;;  %v15241_v45 = vld [vmem:[%s20676_s4 + $0x24] ss:$16 sps:$4 sm:$0xff]   ;;  %v15244_v47 = vld [vmem:[%s20676_s4 + $0x2c] ss:$16 sps:$4 sm:$0xff]  }
 0xeca   :  { %10686 = vmatprep.subr.bf16.mxu0 %v15181_v10  ;;  %10727 = vmatprep.subr.bf16.mxu1 %v15184_v35  ;;  %v15239_v10 = vld [vmem:[%s20676_s4 + $0x20] ss:$16 sps:$4 sm:$0xff]   ;;  %v15242_v35 = vld [vmem:[%s20676_s4 + $0x28] ss:$16 sps:$4 sm:$0xff]  }
 0xecd   :  { %10687 = vmatpush1.bf16.msra.mxu0 %v15179_v33  ;;  %10728 = vmatpush1.bf16.msra.mxu1 %v15182_v50  ;;  %v15247_v33 = vld [vmem:[%s20676_s4 + $0x4] ss:$16 sps:$4 sm:$0xff]   ;;  %v15250_v50 = vld [vmem:[%s20676_s4 + $0xc] ss:$16 sps:$4 sm:$0xff]  }
 0xece   :  { %10688 = vmatprep.subr.bf16.mxu0 %v15187_v14  ;;  %10729 = vmatprep.subr.bf16.mxu1 %v15190_v48  ;;  %v15245_v14 = vld [vmem:[%s20676_s4] ss:$16 sps:$4 sm:$0xff]   ;;  %v15248_v48 = vld [vmem:[%s20676_s4 + $0x8] ss:$16 sps:$4 sm:$0xff]  }
 0xed1   :  { %10689 = vmatpush1.bf16.msra.mxu0 %v15185_v3  ;;  %10730 = vmatpush1.bf16.msra.mxu1 %v15188_v20  ;;  %v10166_v3 = vsel %vm9001_vm4, %v20088_v57, %v19692_v12  ;;  %v15254_v12 = vld [vmem:[%s20677_s6 + $0xe8] ss:$16 sps:$4 sm:$0xff]   ;;  %v15256_v57 = vld [vmem:[%s20677_s6 + $0xec] ss:$16 sps:$4 sm:$0xff]  }
 0xed2   :  { %10690 = vmatprep.subr.bf16.mxu0 %v15193_v46  ;;  %10731 = vmatprep.subr.bf16.mxu1 %v15196_v28  ;;  %v10760_v20 = vpack.c.bf16 %v10166_v3, %v10166_v3  ;;  %v15251_v46 = vld [vmem:[%s20677_s6 + $0xe0] ss:$16 sps:$4 sm:$0xff]   ;;  %v15253_v28 = vld [vmem:[%s20677_s6 + $0xe4] ss:$16 sps:$4 sm:$0xff]  }
 0xed5   :  { %10691 = vmatpush1.bf16.msra.mxu0 %v15191_v13  ;;  %10732 = vmatpush1.bf16.msra.mxu1 %v15194_v32  ;;  %v15257_v13 = vld [vmem:[%s20677_s6 + $0xc0] ss:$16 sps:$4 sm:$0xff]   ;;  %v15259_v32 = vld [vmem:[%s20677_s6 + $0xc4] ss:$16 sps:$4 sm:$0xff]  }
 0xed6   :  { %10692 = vmatprep.subr.bf16.mxu0 %v15199_v23  ;;  %10733 = vmatprep.subr.bf16.mxu1 %v15202_v43  ;;  %v15260_v23 = vld [vmem:[%s20677_s6 + $0xc8] ss:$16 sps:$4 sm:$0xff]   ;;  %v15262_v43 = vld [vmem:[%s20677_s6 + $0xcc] ss:$16 sps:$4 sm:$0xff]  }
 0xed9   :  { %10693 = vmatpush1.bf16.msra.mxu0 %v15197_v30  ;;  %10734 = vmatpush1.bf16.msra.mxu1 %v15200_v17  ;;  %v15265_v30 = vld [vmem:[%s20677_s6 + $0xa4] ss:$16 sps:$4 sm:$0xff]   ;;  %v15268_v17 = vld [vmem:[%s20677_s6 + $0xac] ss:$16 sps:$4 sm:$0xff]  }
 0xeda   :  { %10953 = vmatprep.subr.bf16.mxu0 %v15205_v38  ;;  %10994 = vmatprep.subr.bf16.mxu1 %v15208_v56  ;;  %v15263_v38 = vld [vmem:[%s20677_s6 + $0xa0] ss:$16 sps:$4 sm:$0xff]   ;;  %v15266_v56 = vld [vmem:[%s20677_s6 + $0xa8] ss:$16 sps:$4 sm:$0xff]  }
 0xedc   :  { %10711 = vmatmul.mubr.bf16.vlgmr.msra.gmra.mxu0 %v10485_v24  ;;  %10752 = vmatmul.mubr.bf16.vlgmr.msra.gmra.mxu1 %v10485_v24  ;;  %v15272_v24 = vld [vmem:[%s20677_s6 + $0x88] ss:$16 sps:$4 sm:$0xff]  }
 0xedd   :  { %10954 = vmatpush1.bf16.msra.mxu0 %v15203_v25  ;;  %10995 = vmatpush1.bf16.msra.mxu1 %v15206_v29  ;;  %v15274_v25 = vld [vmem:[%s20677_s6 + $0x8c] ss:$16 sps:$4 sm:$0xff]   ;;  %v15269_v29 = vld [vmem:[%s20677_s6 + $0x80] ss:$16 sps:$4 sm:$0xff]  }
 0xede   :  { %10955 = vmatprep.subr.bf16.mxu0 %v15211_v31  ;;  %10996 = vmatprep.subr.bf16.mxu1 %v15214_v27  ;;  %v15277_v31 = vld [vmem:[%s20677_s6 + $0x64] ss:$16 sps:$4 sm:$0xff]   ;;  %v15280_v27 = vld [vmem:[%s20677_s6 + $0x6c] ss:$16 sps:$4 sm:$0xff]  }
 0xedf   :  { %10985 = vmatprep.mubr.bf16.mxu0 %v15780_v1  ;;  %11026 = vmatprep.mubr.bf16.mxu1 %v15780_v1 }
 0xee1   :  { %10956 = vmatpush1.bf16.msra.mxu0 %v15209_v58  ;;  %10997 = vmatpush1.bf16.msra.mxu1 %v15212_v6  ;;  %v15275_v58 = vld [vmem:[%s20677_s6 + $0x60] ss:$16 sps:$4 sm:$0xff]   ;;  %v15278_v6 = vld [vmem:[%s20677_s6 + $0x68] ss:$16 sps:$4 sm:$0xff]  }
 0xee2   :  { %10957 = vmatprep.subr.bf16.mxu0 %v15217_v61  ;;  %10998 = vmatprep.subr.bf16.mxu1 %v15220_v52  ;;  %v15283_v61 = vld [vmem:[%s20677_s6 + $0x44] ss:$16 sps:$4 sm:$0xff]   ;;  %v15286_v52 = vld [vmem:[%s20677_s6 + $0x4c] ss:$16 sps:$4 sm:$0xff]  }
 0xee5   :  { %10958 = vmatpush1.bf16.msra.mxu0 %v15215_v19  ;;  %10999 = vmatpush1.bf16.msra.mxu1 %v15218_v63  ;;  %v15281_v19 = vld [vmem:[%s20677_s6 + $0x40] ss:$16 sps:$4 sm:$0xff]   ;;  %v15284_v63 = vld [vmem:[%s20677_s6 + $0x48] ss:$16 sps:$4 sm:$0xff]  }
 0xee6   :  { %10959 = vmatprep.subr.bf16.mxu0 %v15223_v44  ;;  %11000 = vmatprep.subr.bf16.mxu1 %v15226_v2  ;;  %v15289_v44 = vld [vmem:[%s20677_s6 + $0x24] ss:$16 sps:$4 sm:$0xff]   ;;  %v15292_v2 = vld [vmem:[%s20677_s6 + $0x2c] ss:$16 sps:$4 sm:$0xff]  }
 0xee9   :  { %10960 = vmatpush1.bf16.msra.mxu0 %v15221_v18  ;;  %11001 = vmatpush1.bf16.msra.mxu1 %v15224_v37  ;;  %v15287_v18 = vld [vmem:[%s20677_s6 + $0x20] ss:$16 sps:$4 sm:$0xff]   ;;  %v15290_v37 = vld [vmem:[%s20677_s6 + $0x28] ss:$16 sps:$4 sm:$0xff]  }
 0xeea   :  { %10961 = vmatprep.subr.bf16.mxu0 %v15229_v59  ;;  %11002 = vmatprep.subr.bf16.mxu1 %v15232_v21  ;;  %v15295_v59 = vld [vmem:[%s20677_s6 + $0x4] ss:$16 sps:$4 sm:$0xff]   ;;  %v15298_v21 = vld [vmem:[%s20677_s6 + $0xc] ss:$16 sps:$4 sm:$0xff]  }
 0xeed   :  { %10962 = vmatpush1.bf16.msra.mxu0 %v15227_v49  ;;  %11003 = vmatpush1.bf16.msra.mxu1 %v15230_v53  ;;  %v15293_v49 = vld [vmem:[%s20677_s6] ss:$16 sps:$4 sm:$0xff]   ;;  %v15296_v53 = vld [vmem:[%s20677_s6 + $0x8] ss:$16 sps:$4 sm:$0xff]  }
 0xeee   :  { %10963 = vmatprep.subr.bf16.mxu0 %v15235_v22  ;;  %11004 = vmatprep.subr.bf16.mxu1 %v15238_v39  ;;  %v15301_v22 = vld [vmem:[%s20678_s3 + $0xe4] ss:$16 sps:$4 sm:$0xff]   ;;  %v15304_v39 = vld [vmem:[%s20678_s3 + $0xec] ss:$16 sps:$4 sm:$0xff]  }
 0xef1   :  { %10964 = vmatpush1.bf16.msra.mxu0 %v15233_v11  ;;  %11005 = vmatpush1.bf16.msra.mxu1 %v15236_v9 }
 0xef2   :  { %10965 = vmatprep.subr.bf16.mxu0 %v15241_v45  ;;  %11006 = vmatprep.subr.bf16.mxu1 %v15244_v47 }
 0xef5   :  { %10966 = vmatpush1.bf16.msra.mxu0 %v15239_v10  ;;  %11007 = vmatpush1.bf16.msra.mxu1 %v15242_v35 }
 0xef6   :  { %10967 = vmatprep.subr.bf16.mxu0 %v15247_v33  ;;  %11008 = vmatprep.subr.bf16.mxu1 %v15250_v50 }
 0xef9   :  { %10968 = vmatpush1.bf16.msra.mxu0 %v15245_v14  ;;  %11009 = vmatpush1.bf16.msra.mxu1 %v15248_v48 }
 0xefa   :  { %11228 = vmatprep.subr.bf16.mxu0 %v15253_v28  ;;  %11269 = vmatprep.subr.bf16.mxu1 %v15256_v57 }
 0xefc   :  { %10986 = vmatmul.mubr.bf16.vlgmr.msra.gmra.mxu0 %v10760_v20  ;;  %11027 = vmatmul.mubr.bf16.vlgmr.msra.gmra.mxu1 %v10760_v20 }
 0xefd   :  { %11260 = vmatprep.mubr.bf16.mxu0 %v15780_v1  ;;  %11301 = vmatprep.mubr.bf16.mxu1 %v15780_v1 }
 0xefe   :  { %11229 = vmatpush1.bf16.msra.mxu0 %v15251_v46  ;;  %11270 = vmatpush1.bf16.msra.mxu1 %v15254_v12 }
 0xeff   :  { %11230 = vmatprep.subr.bf16.mxu0 %v15259_v32  ;;  %11271 = vmatprep.subr.bf16.mxu1 %v15262_v43 }
 0xf02   :  { %11231 = vmatpush1.bf16.msra.mxu0 %v15257_v13  ;;  %11272 = vmatpush1.bf16.msra.mxu1 %v15260_v23 }
 0xf03   :  { %11232 = vmatprep.subr.bf16.mxu0 %v15265_v30  ;;  %11273 = vmatprep.subr.bf16.mxu1 %v15268_v17  ;;  %v13363_v17 = vld [vmem:[%s20679_s1 + $0xe0] sm:$0xff] }
 0xf06   :  { %11233 = vmatpush1.bf16.msra.mxu0 %v15263_v38  ;;  %11274 = vmatpush1.bf16.msra.mxu1 %v15266_v56 }
 0xf07   :  { %11234 = vmatprep.subr.bf16.mxu0 %v15271_v16  ;;  %11275 = vmatprep.subr.bf16.mxu1 %v15274_v25 }
 0xf0a   :  { %11235 = vmatpush1.bf16.msra.mxu0 %v15269_v29  ;;  %11276 = vmatpush1.bf16.msra.mxu1 %v15272_v24 }
 0xf0b   :  { %11236 = vmatprep.subr.bf16.mxu0 %v15277_v31  ;;  %11277 = vmatprep.subr.bf16.mxu1 %v15280_v27 }
 0xf0e   :  { %11237 = vmatpush1.bf16.msra.mxu0 %v15275_v58  ;;  %11278 = vmatpush1.bf16.msra.mxu1 %v15278_v6 }
 0xf0f   :  { %11238 = vmatprep.subr.bf16.mxu0 %v15283_v61  ;;  %11279 = vmatprep.subr.bf16.mxu1 %v15286_v52 }
 0xf12   :  { %11239 = vmatpush1.bf16.msra.mxu0 %v15281_v19  ;;  %11280 = vmatpush1.bf16.msra.mxu1 %v15284_v63 }
 0xf13   :  { %11240 = vmatprep.subr.bf16.mxu0 %v15289_v44  ;;  %11281 = vmatprep.subr.bf16.mxu1 %v15292_v2 }
 0xf16   :  { %11241 = vmatpush1.bf16.msra.mxu0 %v15287_v18  ;;  %11282 = vmatpush1.bf16.msra.mxu1 %v15290_v37 }
 0xf17   :  { %11242 = vmatprep.subr.bf16.mxu0 %v15295_v59  ;;  %11283 = vmatprep.subr.bf16.mxu1 %v15298_v21  ;;  %v13366_v21 = vld [vmem:[%s20679_s1 + $0xf8] sm:$0xff] }
 0xf1a   :  { %11243 = vmatpush1.bf16.msra.mxu0 %v15293_v49  ;;  %11284 = vmatpush1.bf16.msra.mxu1 %v15296_v53  ;;  %v13365_v53 = vld [vmem:[%s20679_s1 + $0xf0] sm:$0xff] }
 0xf1b   :  { %11539 = vmatprep.subr.bf16.mxu0 %v15301_v22  ;;  %11580 = vmatprep.subr.bf16.mxu1 %v15304_v39 }
 0xf7c   :  { %v10396_v11 = vpop.f32.mrf.mxu0  ;;  %v10437_v9 = vpop.f32.mrf.mxu1 }
 0xf7d   :  { %v10397_v45 = vadd.f32 %v10396_v11, %v20066_v15  ;;  %v10438_v57 = vadd.f32 %v10437_v9, %v20068_v8  ;;  %v13364_v8 = vld [vmem:[%s20679_s1 + $0xe8] sm:$0xff] }
 0xf7e   :  { %v10398_v47 = vpop.f32.mrf.mxu0  ;;  %v10439_v10 = vpop.f32.mrf.mxu1 }
 0xf7f   :  { %v10444_v35 = vadd.f32 %v10397_v45, %v16755_v42  ;;  %v10399_v33 = vadd.f32 %v10398_v47, %v20070_v5  ;;  %v10440_v12 = vadd.f32 %v10439_v10, %v20072_v60  ;;  %v10446_v5 = vadd.f32 %v10438_v57, %v16773_v55  ;;  %v15313_v57 = vld [vmem:[%s20678_s3 + $0xa4] ss:$16 sps:$4 sm:$0xff]  }
 0xf80   :  { %v10400_v50 = vpop.f32.mrf.mxu0  ;;  %v10441_v14 = vpop.f32.mrf.mxu1 }
 0xf81   :  { %v13263_v48 = vmul.f32 -1.442695, %v10444_v35  ;;  %v10445_v3 = vadd.f32 %v10399_v33, %v16760_v51  ;;  %v10447_v15 = vadd.f32 %v10440_v12, %v16767_v54  ;;  %v15302_v14 = vld [vmem:[%s20678_s3 + $0xe8] ss:$16 sps:$4 sm:$0xff]  }
 0xf82   :  { %v10401_v20 = vpop.f32.mrf.mxu0  ;;  %v10442_v46 = vpop.f32.mrf.mxu1 }
 0xf83   :  { %15715 = vpow2.f32 %v13263_v48  ;;  %v13264_v28 = vmul.f32 -1.442695, %v10445_v3  ;;  %v13265_v13 = vmul.f32 -1.442695, %v10447_v15  ;;  %v15307_v46 = vld [vmem:[%s20678_s3 + $0xc4] ss:$16 sps:$4 sm:$0xff]  }
 0xf85   :  { %15717 = vpow2.f32 %v13264_v28  ;;  %v15310_v28 = vld [vmem:[%s20678_s3 + $0xcc] ss:$16 sps:$4 sm:$0xff]  }
 0xf86   :  { %15719 = vpow2.f32 %v13265_v13  ;;  %v15316_v13 = vld [vmem:[%s20678_s3 + $0xac] ss:$16 sps:$4 sm:$0xff]  }
 0xf90   :  { %v15716_v32 = vpop.eup %15715 }
 0xf91   :  { %v10451_v23 = vadd.f32 1.0, %v15716_v32 }
 0xf92   :  { %v15718_v43 = vpop.eup %15717 }
 0xf93   :  { %15721 = vrcp.f32 %v10451_v23  ;;  %v10457_v30 = vadd.f32 1.0, %v15718_v43  ;;  %v15720_v29 = vpop.eup %15719 }
 0xf94   :  { %15723 = vtanh.f32 %v10446_v5  ;;  %v10464_v63 = vadd.f32 1.0, %v15720_v29 }
 0xf95   :  { %15725 = vrcp.f32 %v10457_v30 }
 0xf9c   :  { %v10712_v60 = vpop.f32.mrf.mxu0  ;;  %v10753_v38 = vpop.f32.mrf.mxu1 }
 0xf9d   :  { %v11315_v56 = vadd.f32 %v13363_v17, %v10712_v60  ;;  %v11317_v39 = vadd.f32 %v13365_v53, %v10753_v38  ;;  %v15311_v17 = vld [vmem:[%s20678_s3 + $0xa0] ss:$16 sps:$4 sm:$0xff]   ;;  %v15314_v60 = vld [vmem:[%s20678_s3 + $0xa8] ss:$16 sps:$4 sm:$0xff]   ;;  %v15340_v53 = vld [vmem:[%s20678_s3 + $0x2c] ss:$16 sps:$4 sm:$0xff]  }
 0xf9e   :  { %v10714_v16 = vpop.f32.mrf.mxu0  ;;  %v10755_v25 = vpop.f32.mrf.mxu1 }
 0xf9f   :  { %v13367_v24 = vmul.f32 -1.442695, %v11315_v56  ;;  %v11316_v31 = vadd.f32 %v13364_v8, %v10714_v16  ;;  %v11318_v22 = vadd.f32 %v13366_v21, %v10755_v25  ;;  %v15319_v16 = vld [vmem:[%s20678_s3 + $0x84] ss:$16 sps:$4 sm:$0xff]   ;;  %v15322_v25 = vld [vmem:[%s20678_s3 + $0x8c] ss:$16 sps:$4 sm:$0xff]  }
 0xfa0   :  { %v15722_v27 = vpop.eup %15721  ;;  %v10716_v58 = vpop.f32.mrf.mxu0  ;;  %v15337_v21 = vld [vmem:[%s20678_s3 + $0x24] ss:$16 sps:$4 sm:$0xff]  }
 0xfa1   :  { %v10757_v6 = vpop.f32.mrf.mxu1  ;;  %v15724_v61 = vpop.eup %15723  ;;  %15727 = vpow2.f32 %v13367_v24  ;;  %v13368_v52 = vmul.f32 -1.442695, %v11316_v31  ;;  %v13369_v9 = vmul.f32 -1.442695, %v11318_v22  ;;  %v15335_v22 = vld [vmem:[%s20678_s3 + $0x20] ss:$16 sps:$4 sm:$0xff]  }
 0xfa2   :  { %v15726_v19 = vpop.eup %15725  ;;  %v10717_v44 = vpop.f32.mrf.mxu0  ;;  %v10468_v18 = vmul.f32 %v15724_v61, %v15722_v27  ;;  %v15317_v61 = vld [vmem:[%s20678_s3 + $0x80] ss:$16 sps:$4 sm:$0xff]  }
 0xfa3   :  { %v10758_v2 = vpop.f32.mrf.mxu1  ;;  %v10467_v37 = vmul.f32 %v15726_v19, %v19821_v26  ;;  %15729 = vpow2.f32 %v13368_v52  ;;  %v15320_v52 = vld [vmem:[%s20678_s3 + $0x88] ss:$16 sps:$4 sm:$0xff]   ;;  %v15328_v19 = vld [vmem:[%s20678_s3 + $0x6c] ss:$16 sps:$4 sm:$0xff]  }
 0xfa4   :  { %15731 = vrcp.f32 %v10464_v63  ;;  %v15323_v63 = vld [vmem:[%s20678_s3 + $0x60] ss:$16 sps:$4 sm:$0xff]   ;;  %v15326_v44 = vld [vmem:[%s20678_s3 + $0x68] ss:$16 sps:$4 sm:$0xff]   ;;  %v15331_v2 = vld [vmem:[%s20678_s3 + $0x44] ss:$16 sps:$4 sm:$0xff]  }
 0xfa5   :  { %v10469_v59 = vadd.f32 %v10468_v18, %v10467_v37  ;;  %v15334_v18 = vld [vmem:[%s20678_s3 + $0x4c] ss:$16 sps:$4 sm:$0xff]   ;;  %v15329_v37 = vld [vmem:[%s20678_s3 + $0x40] ss:$16 sps:$4 sm:$0xff]  }
 0xfa7   :  { %15733 = vtanh.f32 %v10469_v59  ;;  %v20419_v49 = vsel %vm9001_vm4, %v10469_v59, %v19821_v26  ;;  %v15299_v26 = vld [vmem:[%s20678_s3 + $0xe0] ss:$16 sps:$4 sm:$0xff]   ;;  %v15332_v59 = vld [vmem:[%s20678_s3 + $0x48] ss:$16 sps:$4 sm:$0xff]  }
 0xfa8   :  { %15735 = vtanh.f32 %v11317_v39  ;;  %v15338_v39 = vld [vmem:[%s20678_s3 + $0x28] ss:$16 sps:$4 sm:$0xff]  }
 0xfae   :  { %v15728_v11 = vpop.eup %15727 }
 0xfaf   :  { %v11322_v45 = vadd.f32 1.0, %v15728_v11  ;;  %v15343_v11 = vld [vmem:[%s20678_s3 + $0x4] ss:$16 sps:$4 sm:$0xff]  }
 0xfb0   :  { %v15730_v47 = vpop.eup %15729 }
 0xfb1   :  { %15737 = vrcp.f32 %v11322_v45  ;;  %v11328_v10 = vadd.f32 1.0, %v15730_v47  ;;  %v15732_v35 = vpop.eup %15731 }
 0xfb2   :  { %15739 = vpow2.f32 %v13369_v9  ;;  %v15346_v9 = vld [vmem:[%s20678_s3 + $0xc] ss:$16 sps:$4 sm:$0xff]  }
 0xfb3   :  { %15741 = vrcp.f32 %v11328_v10  ;;  %v20527_v10 = vpop.permute.xlu1 %10482 }
 0xfb4   :  { %v15734_v33 = vpop.eup %15733  ;;  %vm10484_vm6 = vcmp.eq.s32.totalorder %v20527_v10, 1 }
 0xfb5   :  { %v10471_v50 = vmul.f32 %v15734_v33, %v15732_v35  ;;  %v15736_v32 = vpop.eup %15735  ;;  %v15341_v35 = vld [vmem:[%s20678_s3] ss:$16 sps:$4 sm:$0xff]   ;;  %v15344_v33 = vld [vmem:[%s20678_s3 + $0x8] ss:$16 sps:$4 sm:$0xff]   ;;  %vm20539_vm7 = vmpackc.low %vm10484_vm6, %vm10484_vm6 }
 0xfb7   :  { %v10472_v48 = vsel %vm9001_vm4, %v10471_v50, %v19835_v36  ;;  %v10474_v3 = vsel %vm9001_vm4, %v10471_v50, 0.0  ;;  %v15305_v36 = vld [vmem:[%s20678_s3 + $0xc0] ss:$16 sps:$4 sm:$0xff]  }
 0xfb8   :  { %13266 = vst [vmem:[%s20683_s9 + $0x30] sm:$0xff] %v10474_v3  ;;  %v11035_v20 = vpack.c.bf16 %v10472_v48, %v10472_v48  ;;  %v15347_v48 = vld [vmem:[%s20680_s5 + $0xe0] ss:$16 sps:$4 sm:$0xff]   ;;  %v15349_v3 = vld [vmem:[%s20680_s5 + $0xe4] ss:$16 sps:$4 sm:$0xff]  }
 0xfba   :  { %11261 = vmatmul.mubr.bf16.vlgmr.msra.gmra.mxu0 %v11035_v20  ;;  %11302 = vmatmul.mubr.bf16.vlgmr.msra.gmra.mxu1 %v11035_v20  ;;  %v15350_v20 = vld [vmem:[%s20680_s5 + $0xe8] ss:$16 sps:$4 sm:$0xff]  }
 0xfbb   :  { %11540 = vmatpush1.bf16.msra.mxu0 %v15299_v26  ;;  %11581 = vmatpush1.bf16.msra.mxu1 %v15302_v14 }
 0xfbc   :  { %v20450_v12 = vpop.f32.mrf.mxu0  ;;  %v20452_v15 = vpop.f32.mrf.mxu1  ;;  %11541 = vmatprep.subr.bf16.mxu0 %v15307_v46  ;;  %11582 = vmatprep.subr.bf16.mxu1 %v15310_v28  ;;  %v15352_v46 = vld [vmem:[%s20680_s5 + $0xec] ss:$16 sps:$4 sm:$0xff]  }
 0xfbd   :  { %11571 = vmatprep.mubr.bf16.mxu0 %v15780_v1  ;;  %11612 = vmatprep.mubr.bf16.mxu1 %v15780_v1  ;;  %v15358_v28 = vld [vmem:[%s20680_s5 + $0xcc] ss:$16 sps:$4 sm:$0xff]  }
 0xfbe   :  { %v15738_v5 = vpop.eup %15737  ;;  %v20462_v23 = vpop.f32.mrf.mxu0 }
 0xfbf   :  { %v20464_v43 = vpop.f32.mrf.mxu1  ;;  %v15740_v30 = vpop.eup %15739  ;;  %11542 = vmatpush1.bf16.msra.mxu0 %v15305_v36  ;;  %11583 = vmatpush1.bf16.msra.mxu1 %v15308_v62  ;;  %v11339_v29 = vmul.f32 %v15738_v5, %v15736_v32  ;;  %v15353_v36 = vld [vmem:[%s20680_s5 + $0xc0] ss:$16 sps:$4 sm:$0xff]   ;;  %v15356_v62 = vld [vmem:[%s20680_s5 + $0xc8] ss:$16 sps:$4 sm:$0xff]  }
 0xfc0   :  { %v15742_v38 = vpop.eup %15741  ;;  %v10991_v8 = vpop.f32.mrf.mxu0  ;;  %11543 = vmatprep.subr.bf16.mxu0 %v15313_v57  ;;  %11584 = vmatprep.subr.bf16.mxu1 %v15316_v13  ;;  %v11335_v31 = vadd.f32 1.0, %v15740_v30  ;;  %v15361_v57 = vld [vmem:[%s20680_s5 + $0xa4] ss:$16 sps:$4 sm:$0xff]   ;;  %v15364_v13 = vld [vmem:[%s20680_s5 + $0xac] ss:$16 sps:$4 sm:$0xff]  }
 0xfc1   :  { %v11032_v56 = vpop.f32.mrf.mxu1  ;;  %v11338_v24 = vmul.f32 %v15742_v38, %v19903_v34  ;;  %v15325_v34 = vld [vmem:[%s20678_s3 + $0x64] ss:$16 sps:$4 sm:$0xff]   ;;  %v15359_v32 = vld [vmem:[%s20680_s5 + $0xa0] ss:$16 sps:$4 sm:$0xff]   ;;  %v15362_v5 = vld [vmem:[%s20680_s5 + $0xa8] ss:$16 sps:$4 sm:$0xff]  }
 0xfc2   :  { %v10992_v27 = vpop.f32.mrf.mxu0  ;;  %v15367_v30 = vld [vmem:[%s20680_s5 + $0x84] ss:$16 sps:$4 sm:$0xff]   ;;  %v15368_v38 = vld [vmem:[%s20680_s5 + $0x88] ss:$16 sps:$4 sm:$0xff]   ;;  %v15376_v56 = vld [vmem:[%s20680_s5 + $0x6c] ss:$16 sps:$4 sm:$0xff]  }
 0xfc3   :  { %v11033_v58 = vpop.f32.mrf.mxu1  ;;  %v11340_v6 = vadd.f32 %v11339_v29, %v11338_v24  ;;  %11544 = vmatpush1.bf16.msra.mxu0 %v15311_v17  ;;  %11585 = vmatpush1.bf16.msra.mxu1 %v15314_v60  ;;  %v15370_v17 = vld [vmem:[%s20680_s5 + $0x8c] ss:$16 sps:$4 sm:$0xff]   ;;  %v15365_v60 = vld [vmem:[%s20680_s5 + $0x80] ss:$16 sps:$4 sm:$0xff]   ;;  %v15373_v8 = vld [vmem:[%s20680_s5 + $0x64] ss:$16 sps:$4 sm:$0xff]  }
 0xfc4   :  { %11545 = vmatprep.subr.bf16.mxu0 %v15319_v16  ;;  %11586 = vmatprep.subr.bf16.mxu1 %v15322_v25  ;;  %v15371_v16 = vld [vmem:[%s20680_s5 + $0x60] ss:$16 sps:$4 sm:$0xff]   ;;  %v15374_v25 = vld [vmem:[%s20680_s5 + $0x68] ss:$16 sps:$4 sm:$0xff]   ;;  %v15379_v29 = vld [vmem:[%s20680_s5 + $0x44] ss:$16 sps:$4 sm:$0xff]  }
 0xfc5   :  { %15743 = vtanh.f32 %v11340_v6  ;;  %v15382_v24 = vld [vmem:[%s20680_s5 + $0x4c] ss:$16 sps:$4 sm:$0xff]   ;;  %v15380_v27 = vld [vmem:[%s20680_s5 + $0x48] ss:$16 sps:$4 sm:$0xff]   ;;  %v15385_v58 = vld [vmem:[%s20680_s5 + $0x24] ss:$16 sps:$4 sm:$0xff]  }
 0xfc6   :  { %15745 = vrcp.f32 %v11335_v31  ;;  %v15377_v31 = vld [vmem:[%s20680_s5 + $0x40] ss:$16 sps:$4 sm:$0xff]   ;;  %v15388_v6 = vld [vmem:[%s20680_s5 + $0x2c] ss:$16 sps:$4 sm:$0xff]  }
 0xfc7   :  { %11546 = vmatpush1.bf16.msra.mxu0 %v15317_v61  ;;  %11587 = vmatpush1.bf16.msra.mxu1 %v15320_v52  ;;  %v15383_v61 = vld [vmem:[%s20680_s5 + $0x20] ss:$16 sps:$4 sm:$0xff]   ;;  %v15386_v52 = vld [vmem:[%s20680_s5 + $0x28] ss:$16 sps:$4 sm:$0xff]  }
 0xfc8   :  { %11547 = vmatprep.subr.bf16.mxu0 %v15325_v34  ;;  %11588 = vmatprep.subr.bf16.mxu1 %v15328_v19  ;;  %v15391_v34 = vld [vmem:[%s20680_s5 + $0x4] ss:$16 sps:$4 sm:$0xff]   ;;  %v15394_v19 = vld [vmem:[%s20680_s5 + $0xc] ss:$16 sps:$4 sm:$0xff]  }
 0xfcb   :  { %11548 = vmatpush1.bf16.msra.mxu0 %v15323_v63  ;;  %11589 = vmatpush1.bf16.msra.mxu1 %v15326_v44  ;;  %v15389_v63 = vld [vmem:[%s20680_s5] ss:$16 sps:$4 sm:$0xff]   ;;  %v15392_v44 = vld [vmem:[%s20680_s5 + $0x8] ss:$16 sps:$4 sm:$0xff]  }
 0xfcc   :  { %11549 = vmatprep.subr.bf16.mxu0 %v15331_v2  ;;  %11590 = vmatprep.subr.bf16.mxu1 %v15334_v18 }
 0xfcf   :  { %11550 = vmatpush1.bf16.msra.mxu0 %v15329_v37  ;;  %11591 = vmatpush1.bf16.msra.mxu1 %v15332_v59 }
 0xfd0   :  { %11551 = vmatprep.subr.bf16.mxu0 %v15337_v21  ;;  %11592 = vmatprep.subr.bf16.mxu1 %v15340_v53 }
 0xfd2   :  { %v15744_v45 = vpop.eup %15743 }
 0xfd3   :  { %v15746_v47 = vpop.eup %15745  ;;  %11552 = vmatpush1.bf16.msra.mxu0 %v15335_v22  ;;  %11593 = vmatpush1.bf16.msra.mxu1 %v15338_v39 }
 0xfd4   :  { %11553 = vmatprep.subr.bf16.mxu0 %v15343_v11  ;;  %11594 = vmatprep.subr.bf16.mxu1 %v15346_v9  ;;  %v11342_v50 = vmul.f32 %v15746_v47, %v15744_v45 }
 0xfd6   :  { %v13403_v26 = vpack.c.bf16 %v11342_v50, %v11342_v50 }
 0xfd7   :  { %11554 = vmatpush1.bf16.msra.mxu0 %v15341_v35  ;;  %11595 = vmatpush1.bf16.msra.mxu1 %v15344_v33 }
 0xfd8   :  { %11845 = vmatprep.subr.bf16.mxu0 %v15349_v3  ;;  %11886 = vmatprep.subr.bf16.mxu1 %v15352_v46 }
 0xfda   :  { %13404 = vmatmul.mubr.msk.bf16.vlgmr.msra.gmra.mxu0 %vm20539_vm7, %v13403_v26  ;;  %13407 = vmatmul.mubr.msk.bf16.vlgmr.msra.gmra.mxu1 %vm20539_vm7, %v13403_v26 }
 0xfdb   :  { %11877 = vmatprep.mubr.bf16.mxu0 %v15780_v1  ;;  %11918 = vmatprep.mubr.bf16.mxu1 %v15780_v1  ;;  %v15355_v1 = vld [vmem:[%s20680_s5 + $0xc4] ss:$16 sps:$4 sm:$0xff]  }
 0xfdc   :  { %11846 = vmatpush1.bf16.msra.mxu0 %v15347_v48  ;;  %11887 = vmatpush1.bf16.msra.mxu1 %v15350_v20 }
 0xfdd   :  { %11847 = vmatprep.subr.bf16.mxu0 %v15355_v1  ;;  %11888 = vmatprep.subr.bf16.mxu1 %v15358_v28 }
 0xfe0   :  { %11848 = vmatpush1.bf16.msra.mxu0 %v15353_v36  ;;  %11889 = vmatpush1.bf16.msra.mxu1 %v15356_v62 }
 0xfe1   :  { %11849 = vmatprep.subr.bf16.mxu0 %v15361_v57  ;;  %11890 = vmatprep.subr.bf16.mxu1 %v15364_v13 }
 0xfe4   :  { %11850 = vmatpush1.bf16.msra.mxu0 %v15359_v32  ;;  %11891 = vmatpush1.bf16.msra.mxu1 %v15362_v5 }
 0xfe5   :  { %11851 = vmatprep.subr.bf16.mxu0 %v15367_v30  ;;  %11892 = vmatprep.subr.bf16.mxu1 %v15370_v17 }
 0xfe8   :  { %11852 = vmatpush1.bf16.msra.mxu0 %v15365_v60  ;;  %11893 = vmatpush1.bf16.msra.mxu1 %v15368_v38 }
 0xfe9   :  { %11853 = vmatprep.subr.bf16.mxu0 %v15373_v8  ;;  %11894 = vmatprep.subr.bf16.mxu1 %v15376_v56 }
 0xfec   :  { %11854 = vmatpush1.bf16.msra.mxu0 %v15371_v16  ;;  %11895 = vmatpush1.bf16.msra.mxu1 %v15374_v25 }
 0xfed   :  { %11855 = vmatprep.subr.bf16.mxu0 %v15379_v29  ;;  %11896 = vmatprep.subr.bf16.mxu1 %v15382_v24 }
 0xff0   :  { %11856 = vmatpush1.bf16.msra.mxu0 %v15377_v31  ;;  %11897 = vmatpush1.bf16.msra.mxu1 %v15380_v27 }
 0xff1   :  { %11857 = vmatprep.subr.bf16.mxu0 %v15385_v58  ;;  %11898 = vmatprep.subr.bf16.mxu1 %v15388_v6 }
 0xff4   :  { %11858 = vmatpush1.bf16.msra.mxu0 %v15383_v61  ;;  %11899 = vmatpush1.bf16.msra.mxu1 %v15386_v52 }
 0xff5   :  { %11859 = vmatprep.subr.bf16.mxu0 %v15391_v34  ;;  %11900 = vmatprep.subr.bf16.mxu1 %v15394_v19 }
 0xff8   :  { %11860 = vmatpush1.bf16.msra.mxu0 %v15389_v63  ;;  %11901 = vmatpush1.bf16.msra.mxu1 %v15392_v44 }
0x107a   :  { %v11262_v2 = vpop.f32.mrf.mxu0  ;;  %v20645_v18 = vpop.f32.mrf.mxu1 }
0x107c   :  { %v11264_v37 = vpop.f32.mrf.mxu0  ;;  %v20647_v59 = vpop.f32.mrf.mxu1 }
0x107e   :  { %v11266_v21 = vpop.f32.mrf.mxu0  ;;  %v11307_v53 = vpop.f32.mrf.mxu1 }
0x1080   :  { %v11267_v22 = vpop.f32.mrf.mxu0  ;;  %v11308_v39 = vpop.f32.mrf.mxu1 }
0x109a   :  { %v11573_v11 = vpop.f32.mrf.mxu0  ;;  %v11614_v9 = vpop.f32.mrf.mxu1 }
0x109b   :  { %v11574_v45 = vadd.f32 %v11573_v11, %v20450_v12  ;;  %v11615_v62 = vadd.f32 %v11614_v9, %v20452_v15 }
0x109c   :  { %v11575_v47 = vpop.f32.mrf.mxu0  ;;  %v11616_v35 = vpop.f32.mrf.mxu1 }
0x109d   :  { %v11621_v33 = vadd.f32 %v11574_v45, %v16405_v40  ;;  %v11576_v50 = vadd.f32 %v11575_v47, %v20462_v23  ;;  %v11617_v36 = vadd.f32 %v11616_v35, %v20464_v43  ;;  %v11623_v23 = vadd.f32 %v11615_v62, %v16425_v7 }
0x109e   :  { %v11577_v26 = vpop.f32.mrf.mxu0  ;;  %v11618_v48 = vpop.f32.mrf.mxu1 }
0x109f   :  { %v13408_v3 = vmul.f32 -1.442695, %v11621_v33  ;;  %v11622_v20 = vadd.f32 %v11576_v50, %v16410_v41  ;;  %v11624_v12 = vadd.f32 %v11617_v36, %v16418_v4 }
0x10a0   :  { %v11578_v46 = vpop.f32.mrf.mxu0  ;;  %v11619_v1 = vpop.f32.mrf.mxu1 }
0x10a1   :  { %15747 = vpow2.f32 %v13408_v3  ;;  %v13409_v28 = vmul.f32 -1.442695, %v11622_v20  ;;  %v13410_v57 = vmul.f32 -1.442695, %v11624_v12 }
0x10a3   :  { %15749 = vpow2.f32 %v13409_v28 }
0x10a4   :  { %15751 = vpow2.f32 %v13410_v57 }
0x10ae   :  { %v15748_v40 = vpop.eup %15747 }
0x10af   :  { %v11628_v13 = vadd.f32 1.0, %v15748_v40 }
0x10b0   :  { %v15750_v32 = vpop.eup %15749 }
0x10b1   :  { %15753 = vrcp.f32 %v11628_v13  ;;  %v11634_v41 = vadd.f32 1.0, %v15750_v32  ;;  %v15752_v5 = vpop.eup %15751 }
0x10b2   :  { %15755 = vtanh.f32 %v11623_v23  ;;  %v11641_v43 = vadd.f32 1.0, %v15752_v5 }
0x10b3   :  { %15757 = vrcp.f32 %v11634_v41 }
0x10b4   :  { %15759 = vrcp.f32 %v11641_v43 }
0x10be   :  { %v15754_v30 = vpop.eup %15753 }
0x10bf   :  { %v15756_v17 = vpop.eup %15755 }
0x10c0   :  { %v15758_v60 = vpop.eup %15757  ;;  %v11645_v38 = vmul.f32 %v15756_v17, %v15754_v30 }
0x10c1   :  { %v11644_v4 = vmul.f32 %v15758_v60, %v20086_v0  ;;  %v15760_v8 = vpop.eup %15759 }
0x10c3   :  { %v11646_v15 = vadd.f32 %v11645_v38, %v11644_v4 }
0x10c5   :  { %15761 = vtanh.f32 %v11646_v15 }
0x10d2   :  { %v15762_v7 = vpop.eup %15761 }
0x10d3   :  { %v11648_v56 = vmul.f32 %v15762_v7, %v15760_v8 }
0x10d5   :  { %v13444_v16 = vpack.c.bf16 %v11648_v56, %v11648_v56 }
0x10d7   :  { %13445 = vmatmul.mubr.msk.bf16.vlgmr.msra.gmra.mxu0 %vm20539_vm7, %v13444_v16  ;;  %13448 = vmatmul.mubr.msk.bf16.vlgmr.msra.gmra.mxu1 %vm20539_vm7, %v13444_v16 }
0x1197   :  { %v11879_v25 = vpop.f32.mrf.mxu0  ;;  %v11920_v29 = vpop.f32.mrf.mxu1 }
0x1198   :  { %v11880_v24 = vadd.f32 %v11879_v25, %v11262_v2  ;;  %v11921_v2 = vadd.f32 %v11920_v29, %v20645_v18 }
0x1199   :  { %v11881_v31 = vpop.f32.mrf.mxu0  ;;  %v11922_v27 = vpop.f32.mrf.mxu1 }
0x119a   :  { %v11927_v0 = vadd.f32 %v11880_v24, %v16755_v42  ;;  %v11882_v58 = vadd.f32 %v11881_v31, %v11264_v37  ;;  %v11923_v14 = vadd.f32 %v11922_v27, %v20647_v59  ;;  %v11929_v42 = vadd.f32 %v11921_v2, %v16773_v55 }
0x119b   :  { %v11883_v6 = vpop.f32.mrf.mxu0  ;;  %v11924_v61 = vpop.f32.mrf.mxu1 }
0x119c   :  { %v13449_v52 = vmul.f32 -1.442695, %v11927_v0  ;;  %v11928_v34 = vadd.f32 %v11882_v58, %v16760_v51  ;;  %v11930_v21 = vadd.f32 %v11923_v14, %v16767_v54 }
0x119d   :  { %v11884_v19 = vpop.f32.mrf.mxu0  ;;  %v11925_v63 = vpop.f32.mrf.mxu1 }
0x119e   :  { %15763 = vpow2.f32 %v13449_v52  ;;  %v13450_v44 = vmul.f32 -1.442695, %v11928_v34  ;;  %v13451_v53 = vmul.f32 -1.442695, %v11930_v21 }
0x11a0   :  { %15765 = vpow2.f32 %v13450_v44 }
0x11a1   :  { %15767 = vpow2.f32 %v13451_v53 }
0x11ab   :  { %v15764_v22 = vpop.eup %15763 }
0x11ac   :  { %v11934_v37 = vadd.f32 1.0, %v15764_v22 }
0x11ad   :  { %v15766_v39 = vpop.eup %15765 }
0x11ae   :  { %15769 = vrcp.f32 %v11934_v37  ;;  %v11940_v51 = vadd.f32 1.0, %v15766_v39  ;;  %v15768_v11 = vpop.eup %15767 }
0x11af   :  { %15771 = vtanh.f32 %v11929_v42  ;;  %v11947_v59 = vadd.f32 1.0, %v15768_v11 }
0x11b0   :  { %15773 = vrcp.f32 %v11940_v51 }
0x11b1   :  { %15775 = vrcp.f32 %v11947_v59 }
0x11bb   :  { %v15770_v9 = vpop.eup %15769 }
0x11bc   :  { %v15772_v45 = vpop.eup %15771 }
0x11bd   :  { %v15774_v47 = vpop.eup %15773  ;;  %v11951_v35 = vmul.f32 %v15772_v45, %v15770_v9 }
0x11be   :  { %v11950_v54 = vmul.f32 %v15774_v47, %v20419_v49  ;;  %v15776_v33 = vpop.eup %15775 }
0x11c0   :  { %v11952_v18 = vadd.f32 %v11951_v35, %v11950_v54 }
0x11c2   :  { %15777 = vtanh.f32 %v11952_v18 }
0x11cf   :  { %v15778_v55 = vpop.eup %15777 }
0x11d0   :  { %v11954_v50 = vmul.f32 %v15778_v55, %v15776_v33 }
0x11d2   :  { %v11957_v26 = vsel %vm10484_vm6, %v11954_v50, 0.0 }
0x11d3   :  { %13452 = vst [vmem:[%s20683_s9 + $0x38] sm:$0xff] %v11957_v26 }

</bundles_post_ra>
